<compile_context>
chip_gen: v7x
topology: tpu7x:2x2x1
jax: 0.10.0
libtpu: 0.0.40
codegen_flags: <defaults>
</compile_context>

<pallas_src>
import functools

import jax
import jax.numpy as jnp
from jax import lax
from jax.experimental import pallas as pl
from jax.experimental.pallas import tpu as pltpu


def _round_up(x, m):
    return ((x + m - 1) // m) * m


def _pad_axis(x, mult, axis):
    size = x.shape[axis]
    pad = (-size) % mult
    if pad == 0:
        return x
    widths = [(0, 0)] * x.ndim
    widths[axis] = (0, pad)
    return jnp.pad(x, widths)


# ----------------------------------------------------------------------------
# Pallas matmul kernel (conv hot path): C = A @ B + bias [, tanh]
# A/B are bf16, accumulation is f32 in a VMEM scratch, output bf16 (or f32 for
# the final tanh layer).
# ----------------------------------------------------------------------------
def _make_matmul_kernel(act):
    def kernel(a_ref, b_ref, bias_ref, o_ref, acc_ref):
        @pl.when(pl.program_id(2) == 0)
        def _():
            acc_ref[...] = jnp.zeros_like(acc_ref)

        acc_ref[...] += jnp.dot(a_ref[...], b_ref[...],
                                preferred_element_type=jnp.float32)

        @pl.when(pl.program_id(2) == pl.num_programs(2) - 1)
        def _():
            y = acc_ref[...] + bias_ref[...]
            if act == "tanh":
                y = jnp.tanh(y)
            o_ref[...] = y.astype(o_ref.dtype)

    return kernel


def matmul_bias(a, b, bias, act=None, out_dtype=jnp.bfloat16):
    """a: (M, K), b: (K, N), bias: (N,). Returns (M, N) in out_dtype."""
    M, K = a.shape
    _, N = b.shape
    # Adaptive tiles: feed the 256-wide MXU (v6e/v7x) with big K tiles while not
    # over-padding the small layers.  tm multiple of 16 (bf16 sublane packing),
    # tk/tn multiples of 128 (lane width).
    tm = min(256, _round_up(M, 16))
    tk = min(512, _round_up(K, 128))
    tn = min(256, _round_up(N, 128))

    a_p = _pad_axis(_pad_axis(a.astype(jnp.bfloat16), tm, 0), tk, 1)
    b_p = _pad_axis(_pad_axis(b.astype(jnp.bfloat16), tk, 0), tn, 1)
    bias_p = _pad_axis(bias.reshape(1, -1).astype(jnp.float32), tn, 1)
    Mp, Kp = a_p.shape
    Np = b_p.shape[1]
    grid = (Mp // tm, Np // tn, Kp // tk)

    out = pl.pallas_call(
        _make_matmul_kernel(act),
        out_shape=jax.ShapeDtypeStruct((Mp, Np), out_dtype),
        grid_spec=pltpu.PrefetchScalarGridSpec(
            num_scalar_prefetch=0,
            grid=grid,
            in_specs=[
                pl.BlockSpec((tm, tk), lambda i, j, k: (i, k)),
                pl.BlockSpec((tk, tn), lambda i, j, k: (k, j)),
                pl.BlockSpec((1, tn), lambda i, j, k: (0, j)),
            ],
            out_specs=pl.BlockSpec((tm, tn), lambda i, j, k: (i, j)),
            scratch_shapes=[pltpu.VMEM((tm, tn), jnp.float32)],
        ),
        compiler_params=pltpu.CompilerParams(
            dimension_semantics=("parallel", "parallel", "arbitrary")),
    )(a_p, b_p, bias_p)
    return out[:M, :N]


# ----------------------------------------------------------------------------
# Pallas InstanceNorm kernel (+ optional ReLU / residual add)
# Input x: (N, H*W, C), gridded over (N, C/ct); reduction over H*W per (n, c).
# Single-pass statistics: mean and E[x^2]; gamma/rsqrt folded into one scale,
# beta - mean*scale into one shift.  eps = 1e-5 (PyTorch default).
# ----------------------------------------------------------------------------
def _make_instnorm_kernel(relu, add_residual, eps=1e-5):
    def _norm(x_ref, g_ref, b_ref):
        x = x_ref[...].astype(jnp.float32)
        inv_hw = 1.0 / x.shape[1]
        mean = jnp.sum(x, axis=1, keepdims=True) * inv_hw
        ex2 = jnp.sum(x * x, axis=1, keepdims=True) * inv_hw
        var = jnp.maximum(ex2 - mean * mean, 0.0)
        scale = g_ref[...] * lax.rsqrt(var + eps)
        shift = b_ref[...] - mean * scale
        y = x * scale + shift
        if relu:
            y = jnp.maximum(y, 0.0)
        return y

    if add_residual:
        def kernel(x_ref, g_ref, b_ref, r_ref, o_ref):
            y = _norm(x_ref, g_ref, b_ref) + r_ref[...].astype(jnp.float32)
            o_ref[...] = y.astype(o_ref.dtype)
    else:
        def kernel(x_ref, g_ref, b_ref, o_ref):
            o_ref[...] = _norm(x_ref, g_ref, b_ref).astype(o_ref.dtype)

    return kernel


def instance_norm(x_nhwc, gamma, beta, relu=False, residual=None,
                  out_dtype=jnp.bfloat16):
    N, H, W, C = x_nhwc.shape
    HW = H * W
    x3 = x_nhwc.reshape(N, HW, C)
    ct = C if C <= 128 else 128
    assert C % ct == 0, (C, ct)
    # NOTE: for very large H*W (e.g. 256x256 on v7x) this full-HW block should be
    # split into an 'arbitrary' HW-chunk grid axis with running sum / sum-of-squares.
    g = gamma.reshape(1, 1, C).astype(jnp.float32)
    b = beta.reshape(1, 1, C).astype(jnp.float32)
    kernel = _make_instnorm_kernel(relu, residual is not None)

    x_spec = pl.BlockSpec((1, HW, ct), lambda n, j: (n, 0, j))
    p_spec = pl.BlockSpec((1, 1, ct), lambda n, j: (0, 0, j))
    in_specs = [x_spec, p_spec, p_spec]
    args = [x3, g, b]
    if residual is not None:
        in_specs.append(pl.BlockSpec((1, HW, ct), lambda n, j: (n, 0, j)))
        args.append(residual.reshape(N, HW, C))

    out = pl.pallas_call(
        kernel,
        out_shape=jax.ShapeDtypeStruct((N, HW, C), out_dtype),
        grid_spec=pltpu.PrefetchScalarGridSpec(
            num_scalar_prefetch=0,
            grid=(N, C // ct),
            in_specs=in_specs,
            out_specs=pl.BlockSpec((1, HW, ct), lambda n, j: (n, 0, j)),
        ),
        compiler_params=pltpu.CompilerParams(
            dimension_semantics=("parallel", "parallel")),
    )(*args)
    return out.reshape(N, H, W, C)


# ----------------------------------------------------------------------------
# Convolution glue: im2col (bf16) -> Pallas matmul
# ----------------------------------------------------------------------------
def conv2d(x_nhwc, w_oihw, bias, stride=1, padding=0, pad_mode="zero",
           act=None, out_dtype=jnp.bfloat16):
    x = x_nhwc.astype(jnp.bfloat16)
    N, H, W, Cin = x.shape
    Cout, _, kh, kw = w_oihw.shape
    if padding > 0:
        mode = "reflect" if pad_mode == "reflect" else "constant"
        x = jnp.pad(x, ((0, 0), (padding, padding), (padding, padding), (0, 0)),
                    mode=mode)
    Hp, Wp = H + 2 * padding, W + 2 * padding
    Ho = (Hp - kh) // stride + 1
    Wo = (Wp - kw) // stride + 1

    # TODO(synk): fuse im2col into the matmul A BlockSpec (read shifted windows
    # of the padded NHWC input directly) to remove the kh*kw HBM patch blowup
    # on large images.
    patches = []
    for dy in range(kh):
        for dx in range(kw):
            patches.append(
                x[:, dy:dy + stride * Ho:stride, dx:dx + stride * Wo:stride, :])
    pat = jnp.stack(patches, axis=3)                       # (N, Ho, Wo, kh*kw, Cin) bf16
    a = pat.reshape(N * Ho * Wo, kh * kw * Cin)
    wmat = jnp.transpose(w_oihw, (2, 3, 1, 0)).reshape(kh * kw * Cin, Cout)
    if bias is None:
        bias = jnp.zeros((Cout,), jnp.float32)
    out = matmul_bias(a, wmat, bias, act=act, out_dtype=out_dtype)
    return out.reshape(N, Ho, Wo, Cout)


def conv_transpose2d(x_nhwc, w_iohw, stride=2, padding=1,
                     out_dtype=jnp.bfloat16):
    """ConvTranspose2d(k=4, s=2, p=1) via sub-pixel decomposition.

    out[n, 2i+r, 2j+s, o] only touches input pixels {i-1+r..i+r} x {j-1+s..j+s}
    with kernel taps rows [3,1] (r=0) / [2,0] (r=1) and likewise for columns.
    Padding the input by 1 on all sides makes all four (r,s) sub-convolutions a
    single 2x2 stride-1 conv with 4*Cout output channels; the result is then
    pixel-shuffled.  4x fewer MXU FLOPs than the zero-dilated lowering.
    """
    assert stride == 2 and padding == 1
    N, H, W, Cin = x_nhwc.shape
    _, Cout, kh, kw = w_iohw.shape
    assert kh == 4 and kw == 4

    taps = (jnp.array([3, 1]), jnp.array([2, 0]))          # kernel taps for r/s = 0, 1
    subs = []
    for r in range(2):
        for s in range(2):
            w_rs = w_iohw[:, :, taps[r], :][:, :, :, taps[s]]   # (Cin, Cout, 2, 2)
            subs.append(jnp.transpose(w_rs, (1, 0, 2, 3)))      # (Cout, Cin, 2, 2)
    w_all = jnp.concatenate(subs, axis=0)                       # (4*Cout, Cin, 2, 2)

    # One 2x2 stride-1 conv on the pad-1 input -> (N, H+1, W+1, 4*Cout)
    y = conv2d(x_nhwc, w_all, None, stride=1, padding=1, pad_mode="zero",
               out_dtype=out_dtype)

    # Pixel-shuffle interleave: out[n, 2i+r, 2j+s, c] = y[n, i+r, j+s, (2r+s)*Cout + c]
    p = [[y[:, r:r + H, s:s + W, (r * 2 + s) * Cout:(r * 2 + s + 1) * Cout]
          for s in range(2)] for r in range(2)]
    row0 = jnp.stack([p[0][0], p[0][1]], axis=3)   # (N, H, W, 2, Cout)
    row1 = jnp.stack([p[1][0], p[1][1]], axis=3)
    q = jnp.stack([row0, row1], axis=2)            # (N, H, 2, W, 2, Cout)
    return q.reshape(N, 2 * H, 2 * W, Cout)


# ----------------------------------------------------------------------------
# GeneratorResNet parameters + forward
# ----------------------------------------------------------------------------
def init_params(key, channels=3, c_dim=5, res_blocks=2):
    keys = iter(jax.random.split(key, 128))

    def w(shape):
        return jax.random.normal(next(keys), shape, jnp.float32) * 0.05

    p = {}
    p["conv0_w"] = w((64, channels + c_dim, 7, 7))
    p["in0_g"] = jnp.ones((64,), jnp.float32)
    p["in0_b"] = jnp.zeros((64,), jnp.float32)
    curr = 64
    for i in range(2):
        p[f"down{i}_w"] = w((curr * 2, curr, 4, 4))
        p[f"down{i}_g"] = jnp.ones((curr * 2,), jnp.float32)
        p[f"down{i}_b"] = jnp.zeros((curr * 2,), jnp.float32)
        curr *= 2
    for i in range(res_blocks):
        p[f"res{i}_w1"] = w((curr, curr, 3, 3))
        p[f"res{i}_b1"] = w((curr,))
        p[f"res{i}_w2"] = w((curr, curr, 3, 3))
        p[f"res{i}_b2"] = w((curr,))
    for i in range(2):
        p[f"up{i}_w"] = w((curr, curr // 2, 4, 4))   # ConvTranspose2d: (Cin, Cout, kh, kw)
        p[f"up{i}_g"] = jnp.ones((curr // 2,), jnp.float32)
        p[f"up{i}_b"] = jnp.zeros((curr // 2,), jnp.float32)
        curr //= 2
    p["out_w"] = w((channels, curr, 7, 7))
    p["out_b"] = w((channels,))
    return p


def generator_resnet_forward(params, x_nchw, c, res_blocks=2):
    N, ch, H, W = x_nchw.shape
    c_dim = c.shape[1]
    # c.view(N, c_dim, 1, 1).repeat(1, 1, H, W); concat along channels
    c_map = jnp.broadcast_to(c[:, :, None, None], (N, c_dim, H, W))
    xin = jnp.concatenate([x_nchw, c_map], axis=1)

    h = jnp.transpose(xin, (0, 2, 3, 1))                  # NCHW -> NHWC (internal)

    # Initial 7x7 conv
    h = conv2d(h, params["conv0_w"], None, stride=1, padding=3)
    h = instance_norm(h, params["in0_g"], params["in0_b"], relu=True)

    # Downsampling
    for i in range(2):
        h = conv2d(h, params[f"down{i}_w"], None, stride=2, padding=1)
        h = instance_norm(h, params[f"down{i}_g"], params[f"down{i}_b"], relu=True)

    # Residual blocks (reflection-padded 3x3 convs, non-affine InstanceNorm)
    C = h.shape[-1]
    ones_c = jnp.ones((C,), jnp.float32)
    zeros_c = jnp.zeros((C,), jnp.float32)
    for i in range(res_blocks):
        y = conv2d(h, params[f"res{i}_w1"], params[f"res{i}_b1"],
                   stride=1, padding=1, pad_mode="reflect")
        y = instance_norm(y, ones_c, zeros_c, relu=True)
        y = conv2d(y, params[f"res{i}_w2"], params[f"res{i}_b2"],
                   stride=1, padding=1, pad_mode="reflect")
        h = instance_norm(y, ones_c, zeros_c, relu=False, residual=h)  # x + block(x)

    # Upsampling (sub-pixel ConvTranspose lowering)
    for i in range(2):
        h = conv_transpose2d(h, params[f"up{i}_w"], stride=2, padding=1)
        h = instance_norm(h, params[f"up{i}_g"], params[f"up{i}_b"], relu=True)

    # Output 7x7 conv + tanh (fused in matmul epilogue); public output is f32
    h = conv2d(h, params["out_w"], params["out_b"], stride=1, padding=3,
               act="tanh", out_dtype=jnp.float32)
    return jnp.transpose(h, (0, 3, 1, 2))                 # NHWC -> NCHW


if __name__ == "__main__":
    # Small shapes consistent with the module: img_shape=(3, 16, 16), c_dim=5,
    # res_blocks=2, batch=2.  (H must be divisible by 4 for the 2 stride-2 stages.)
    BATCH, CH, HW, CDIM, RES = 2, 3, 16, 5, 2

    key = jax.random.PRNGKey(0)
    k_x, k_c, k_p = jax.random.split(key, 3)
    x = jax.random.normal(k_x, (BATCH, CH, HW, HW), jnp.float32)
    c = jax.random.normal(k_c, (BATCH, CDIM), jnp.float32)
    params = init_params(k_p, channels=CH, c_dim=CDIM, res_blocks=RES)

    fwd = jax.jit(functools.partial(generator_resnet_forward, res_blocks=RES))
    out = fwd(params, x, c)
    out = jax.block_until_ready(out)

    assert out.shape == (BATCH, CH, HW, HW), out.shape
    assert bool(jnp.all(jnp.isfinite(out))), "non-finite output"
    assert bool(jnp.all(jnp.abs(out) <= 1.0 + 1e-6)), "tanh range violated"
    print("KERNEL_OK")
</pallas_src>

<mosaic_0001>
module attributes {stable_mosaic.version = 11 : i64} {
  func.func @kernel(%arg0: i32, %arg1: i32, %arg2: i32, %arg3: memref<256x512xbf16, #tpu.memory_space<vmem>>, %arg4: memref<512x128xbf16, #tpu.memory_space<vmem>>, %arg5: memref<1x128xf32, #tpu.memory_space<vmem>>, %arg6: memref<256x128xbf16, #tpu.memory_space<vmem>>, %arg7: memref<256x128xf32, #tpu.memory_space<vmem>>) attributes {dimension_semantics = [#tpu.dimension_semantics<parallel>, #tpu.dimension_semantics<parallel>, #tpu.dimension_semantics<arbitrary>], iteration_bounds = array<i64: 2, 1, 1>, scalar_prefetch = 0 : i64, scratch_operands = 1 : i64, tpu.core_type = #tpu.core_type<tc>, window_params = [{transform_indices = @transform_0, window_bounds = array<i64: 256, 512>}, {transform_indices = @transform_1, window_bounds = array<i64: 512, 128>}, {transform_indices = @transform_2, window_bounds = array<i64: 1, 128>}, {transform_indices = @transform_3, window_bounds = array<i64: 256, 128>}]} {
    %c0_i32 = arith.constant 0 : i32
    %0 = arith.cmpi eq, %arg2, %c0_i32 : i32
    %1 = arith.extui %0 : i1 to i32
    %c0_i32_0 = arith.constant 0 : i32
    %2 = arith.cmpi ne, %1, %c0_i32_0 : i32
    scf.if %2 {
      %cst_10 = arith.constant 0.000000e+00 : f32
      %12 = vector.broadcast %cst_10 : f32 to vector<256x128xf32>
      %c0_11 = arith.constant 0 : index
      %c0_12 = arith.constant 0 : index
      %13 = vector.load %arg7[%c0_11, %c0_12] : memref<256x128xf32, #tpu.memory_space<vmem>>, vector<256x128xf32>
      tpu.vector_store %arg7[%c0_11, %c0_12], %12 {strides = array<i32>} : memref<256x128xf32, #tpu.memory_space<vmem>>, vector<256x128xf32>,
    } else {
    }
    %c0 = arith.constant 0 : index
    %c0_1 = arith.constant 0 : index
    %3 = vector.load %arg7[%c0, %c0_1] : memref<256x128xf32, #tpu.memory_space<vmem>>, vector<256x128xf32>
    %c0_2 = arith.constant 0 : index
    %c0_3 = arith.constant 0 : index
    %4 = vector.load %arg3[%c0_2, %c0_3] : memref<256x512xbf16, #tpu.memory_space<vmem>>, vector<256x512xbf16>
    %c0_4 = arith.constant 0 : index
    %c0_5 = arith.constant 0 : index
    %5 = vector.load %arg4[%c0_4, %c0_5] : memref<512x128xbf16, #tpu.memory_space<vmem>>, vector<512x128xbf16>
    %cst = arith.constant dense<0.000000e+00> : vector<256x128xf32>
    %6 = tpu.matmul %4, %5, %cst {dimension_numbers = #tpu.dot_dimension_numbers<[1], [0], [0], [1], [0, 0, 1, 1], [], []>} : vector<256x512xbf16>, vector<512x128xbf16>, vector<256x128xf32> -> vector<256x128xf32>
    %7 = arith.addf %3, %6 : vector<256x128xf32>
    %c0_6 = arith.constant 0 : index
    %c0_7 = arith.constant 0 : index
    %8 = vector.load %arg7[%c0_6, %c0_7] : memref<256x128xf32, #tpu.memory_space<vmem>>, vector<256x128xf32>
    tpu.vector_store %arg7[%c0_6, %c0_7], %7 {strides = array<i32>} : memref<256x128xf32, #tpu.memory_space<vmem>>, vector<256x128xf32>,
    %c0_i32_8 = arith.constant 0 : i32
    %9 = arith.cmpi eq, %arg2, %c0_i32_8 : i32
    %10 = arith.extui %9 : i1 to i32
    %c0_i32_9 = arith.constant 0 : i32
    %11 = arith.cmpi ne, %10, %c0_i32_9 : i32
    scf.if %11 {
      %c0_10 = arith.constant 0 : index
      %c0_11 = arith.constant 0 : index
      %12 = vector.load %arg7[%c0_10, %c0_11] : memref<256x128xf32, #tpu.memory_space<vmem>>, vector<256x128xf32>
      %c0_12 = arith.constant 0 : index
      %c0_13 = arith.constant 0 : index
      %13 = vector.load %arg5[%c0_12, %c0_13] : memref<1x128xf32, #tpu.memory_space<vmem>>, vector<1x128xf32>
      %14 = vector.broadcast %13 : vector<1x128xf32> to vector<256x128xf32>
      %15 = arith.addf %12, %14 : vector<256x128xf32>
      %16 = arith.truncf %15 : vector<256x128xf32> to vector<256x128xbf16>
      %c0_14 = arith.constant 0 : index
      %c0_15 = arith.constant 0 : index
      %17 = vector.load %arg6[%c0_14, %c0_15] : memref<256x128xbf16, #tpu.memory_space<vmem>>, vector<256x128xbf16>
      tpu.vector_store %arg6[%c0_14, %c0_15], %16 {strides = array<i32>} : memref<256x128xbf16, #tpu.memory_space<vmem>>, vector<256x128xbf16>,
    } else {
    }
    return
  }
  func.func @transform_0(%arg0: i32, %arg1: i32, %arg2: i32) -> (i32, i32) {
    %c0_i32 = arith.constant 0 : i32
    return %arg0, %arg2 : i32, i32
  }
  func.func @transform_1(%arg0: i32, %arg1: i32, %arg2: i32) -> (i32, i32) {
    %c0_i32 = arith.constant 0 : i32
    return %arg2, %arg1 : i32, i32
  }
  func.func @transform_2(%arg0: i32, %arg1: i32, %arg2: i32) -> (i32, i32) {
    %c0_i32 = arith.constant 0 : i32
    %c0_i32_0 = arith.constant 0 : i32
    return %c0_i32, %arg1 : i32, i32
  }
  func.func @transform_3(%arg0: i32, %arg1: i32, %arg2: i32) -> (i32, i32) {
    %c0_i32 = arith.constant 0 : i32
    return %arg0, %arg1 : i32, i32
  }
}

module attributes {stable_mosaic.version = 11 : i64} {
  func.func @kernel(%arg0: i32, %arg1: i32, %arg2: memref<1x256x64xbf16, #tpu.memory_space<vmem>>, %arg3: memref<1x1x64xf32, #tpu.memory_space<vmem>>, %arg4: memref<1x1x64xf32, #tpu.memory_space<vmem>>, %arg5: memref<1x256x64xbf16, #tpu.memory_space<vmem>>) attributes {dimension_semantics = [#tpu.dimension_semantics<parallel>, #tpu.dimension_semantics<parallel>], iteration_bounds = array<i64: 2, 1>, scalar_prefetch = 0 : i64, scratch_operands = 0 : i64, tpu.core_type = #tpu.core_type<tc>, window_params = [{transform_indices = @transform_0, window_bounds = array<i64: 1, 256, 64>}, {transform_indices = @transform_1, window_bounds = array<i64: 1, 1, 64>}, {transform_indices = @transform_2, window_bounds = array<i64: 1, 1, 64>}, {transform_indices = @transform_3, window_bounds = array<i64: 1, 256, 64>}]} {
    %c0 = arith.constant 0 : index
    %c0_0 = arith.constant 0 : index
    %c0_1 = arith.constant 0 : index
    %0 = vector.load %arg2[%c0, %c0_0, %c0_1] : memref<1x256x64xbf16, #tpu.memory_space<vmem>>, vector<1x256x64xbf16>
    %1 = arith.extf %0 : vector<1x256x64xbf16> to vector<1x256x64xf32>
    %cst = arith.constant dense<0.000000e+00> : vector<1x64xf32>
    %2 = vector.multi_reduction <add>, %1, %cst [1] : vector<1x256x64xf32> to vector<1x64xf32>
    %3 = vector.shape_cast %2 : vector<1x64xf32> to vector<1x1x64xf32>
    %cst_2 = arith.constant 3.906250e-03 : f32
    %4 = vector.broadcast %cst_2 : f32 to vector<1x1x64xf32>
    %5 = arith.mulf %3, %4 : vector<1x1x64xf32>
    %6 = arith.mulf %1, %1 : vector<1x256x64xf32>
    %cst_3 = arith.constant dense<0.000000e+00> : vector<1x64xf32>
    %7 = vector.multi_reduction <add>, %6, %cst_3 [1] : vector<1x256x64xf32> to vector<1x64xf32>
    %8 = vector.shape_cast %7 : vector<1x64xf32> to vector<1x1x64xf32>
    %cst_4 = arith.constant 3.906250e-03 : f32
    %9 = vector.broadcast %cst_4 : f32 to vector<1x1x64xf32>
    %10 = arith.mulf %8, %9 : vector<1x1x64xf32>
    %11 = arith.mulf %5, %5 : vector<1x1x64xf32>
    %12 = arith.subf %10, %11 : vector<1x1x64xf32>
    %cst_5 = arith.constant 0.000000e+00 : f32
    %13 = vector.broadcast %cst_5 : f32 to vector<1x1x64xf32>
    %14 = arith.maximumf %12, %13 : vector<1x1x64xf32>
    %c0_6 = arith.constant 0 : index
    %c0_7 = arith.constant 0 : index
    %c0_8 = arith.constant 0 : index
    %15 = vector.load %arg3[%c0_6, %c0_7, %c0_8] : memref<1x1x64xf32, #tpu.memory_space<vmem>>, vector<1x1x64xf32>
    %cst_9 = arith.constant 9.99999974E-6 : f32
    %16 = vector.broadcast %cst_9 : f32 to vector<1x1x64xf32>
    %17 = arith.addf %14, %16 : vector<1x1x64xf32>
    %18 = math.rsqrt %17 : vector<1x1x64xf32>
    %19 = arith.mulf %15, %18 : vector<1x1x64xf32>
    %c0_10 = arith.constant 0 : index
    %c0_11 = arith.constant 0 : index
    %c0_12 = arith.constant 0 : index
    %20 = vector.load %arg4[%c0_10, %c0_11, %c0_12] : memref<1x1x64xf32, #tpu.memory_space<vmem>>, vector<1x1x64xf32>
    %21 = arith.mulf %5, %19 : vector<1x1x64xf32>
    %22 = arith.subf %20, %21 : vector<1x1x64xf32>
    %23 = vector.broadcast %19 : vector<1x1x64xf32> to vector<1x256x64xf32>
    %24 = arith.mulf %1, %23 : vector<1x256x64xf32>
    %25 = vector.broadcast %22 : vector<1x1x64xf32> to vector<1x256x64xf32>
    %26 = arith.addf %24, %25 : vector<1x256x64xf32>
    %cst_13 = arith.constant 0.000000e+00 : f32
    %27 = vector.broadcast %cst_13 : f32 to vector<1x256x64xf32>
    %28 = arith.maximumf %26, %27 : vector<1x256x64xf32>
    %29 = arith.truncf %28 : vector<1x256x64xf32> to vector<1x256x64xbf16>
    %c0_14 = arith.constant 0 : index
    %c0_15 = arith.constant 0 : index
    %c0_16 = arith.constant 0 : index
    %30 = vector.load %arg5[%c0_14, %c0_15, %c0_16] : memref<1x256x64xbf16, #tpu.memory_space<vmem>>, vector<1x256x64xbf16>
    tpu.vector_store %arg5[%c0_14, %c0_15, %c0_16], %29 {strides = array<i32>} : memref<1x256x64xbf16, #tpu.memory_space<vmem>>, vector<1x256x64xbf16>,
    return
  }
  func.func @transform_0(%arg0: i32, %arg1: i32) -> (i32, i32, i32) {
    %c0_i32 = arith.constant 0 : i32
    %c0_i32_0 = arith.constant 0 : i32
    return %arg0, %c0_i32, %arg1 : i32, i32, i32
  }
  func.func @transform_1(%arg0: i32, %arg1: i32) -> (i32, i32, i32) {
    %c0_i32 = arith.constant 0 : i32
    %c0_i32_0 = arith.constant 0 : i32
    %c0_i32_1 = arith.constant 0 : i32
    return %c0_i32, %c0_i32_0, %arg1 : i32, i32, i32
  }
  func.func @transform_2(%arg0: i32, %arg1: i32) -> (i32, i32, i32) {
    %c0_i32 = arith.constant 0 : i32
    %c0_i32_0 = arith.constant 0 : i32
    %c0_i32_1 = arith.constant 0 : i32
    return %c0_i32, %c0_i32_0, %arg1 : i32, i32, i32
  }
  func.func @transform_3(%arg0: i32, %arg1: i32) -> (i32, i32, i32) {
    %c0_i32 = arith.constant 0 : i32
    %c0_i32_0 = arith.constant 0 : i32
    return %arg0, %c0_i32, %arg1 : i32, i32, i32
  }
}

module attributes {stable_mosaic.version = 11 : i64} {
  func.func @kernel(%arg0: i32, %arg1: i32, %arg2: i32, %arg3: memref<128x512xbf16, #tpu.memory_space<vmem>>, %arg4: memref<512x128xbf16, #tpu.memory_space<vmem>>, %arg5: memref<1x128xf32, #tpu.memory_space<vmem>>, %arg6: memref<128x128xbf16, #tpu.memory_space<vmem>>, %arg7: memref<128x128xf32, #tpu.memory_space<vmem>>) attributes {dimension_semantics = [#tpu.dimension_semantics<parallel>, #tpu.dimension_semantics<parallel>, #tpu.dimension_semantics<arbitrary>], iteration_bounds = array<i64: 1, 1, 2>, scalar_prefetch = 0 : i64, scratch_operands = 1 : i64, tpu.core_type = #tpu.core_type<tc>, window_params = [{transform_indices = @transform_0, window_bounds = array<i64: 128, 512>}, {transform_indices = @transform_1, window_bounds = array<i64: 512, 128>}, {transform_indices = @transform_2, window_bounds = array<i64: 1, 128>}, {transform_indices = @transform_3, window_bounds = array<i64: 128, 128>}]} {
    %c0_i32 = arith.constant 0 : i32
    %0 = arith.cmpi eq, %arg2, %c0_i32 : i32
    %1 = arith.extui %0 : i1 to i32
    %c0_i32_0 = arith.constant 0 : i32
    %2 = arith.cmpi ne, %1, %c0_i32_0 : i32
    scf.if %2 {
      %cst_9 = arith.constant 0.000000e+00 : f32
      %12 = vector.broadcast %cst_9 : f32 to vector<128x128xf32>
      %c0_10 = arith.constant 0 : index
      %c0_11 = arith.constant 0 : index
      %13 = vector.load %arg7[%c0_10, %c0_11] : memref<128x128xf32, #tpu.memory_space<vmem>>, vector<128x128xf32>
      tpu.vector_store %arg7[%c0_10, %c0_11], %12 {strides = array<i32>} : memref<128x128xf32, #tpu.memory_space<vmem>>, vector<128x128xf32>,
    } else {
    }
    %c0 = arith.constant 0 : index
    %c0_1 = arith.constant 0 : index
    %3 = vector.load %arg7[%c0, %c0_1] : memref<128x128xf32, #tpu.memory_space<vmem>>, vector<128x128xf32>
    %c0_2 = arith.constant 0 : index
    %c0_3 = arith.constant 0 : index
    %4 = vector.load %arg3[%c0_2, %c0_3] : memref<128x512xbf16, #tpu.memory_space<vmem>>, vector<128x512xbf16>
    %c0_4 = arith.constant 0 : index
    %c0_5 = arith.constant 0 : index
    %5 = vector.load %arg4[%c0_4, %c0_5] : memref<512x128xbf16, #tpu.memory_space<vmem>>, vector<512x128xbf16>
    %cst = arith.constant dense<0.000000e+00> : vector<128x128xf32>
    %6 = tpu.matmul %4, %5, %cst {dimension_numbers = #tpu.dot_dimension_numbers<[1], [0], [0], [1], [0, 0, 1, 1], [], []>} : vector<128x512xbf16>, vector<512x128xbf16>, vector<128x128xf32> -> vector<128x128xf32>
    %7 = arith.addf %3, %6 : vector<128x128xf32>
    %c0_6 = arith.constant 0 : index
    %c0_7 = arith.constant 0 : index
    %8 = vector.load %arg7[%c0_6, %c0_7] : memref<128x128xf32, #tpu.memory_space<vmem>>, vector<128x128xf32>
    tpu.vector_store %arg7[%c0_6, %c0_7], %7 {strides = array<i32>} : memref<128x128xf32, #tpu.memory_space<vmem>>, vector<128x128xf32>,
    %c1_i32 = arith.constant 1 : i32
    %9 = arith.cmpi eq, %arg2, %c1_i32 : i32
    %10 = arith.extui %9 : i1 to i32
    %c0_i32_8 = arith.constant 0 : i32
    %11 = arith.cmpi ne, %10, %c0_i32_8 : i32
    scf.if %11 {
      %c0_9 = arith.constant 0 : index
      %c0_10 = arith.constant 0 : index
      %12 = vector.load %arg7[%c0_9, %c0_10] : memref<128x128xf32, #tpu.memory_space<vmem>>, vector<128x128xf32>
      %c0_11 = arith.constant 0 : index
      %c0_12 = arith.constant 0 : index
      %13 = vector.load %arg5[%c0_11, %c0_12] : memref<1x128xf32, #tpu.memory_space<vmem>>, vector<1x128xf32>
      %14 = vector.broadcast %13 : vector<1x128xf32> to vector<128x128xf32>
      %15 = arith.addf %12, %14 : vector<128x128xf32>
      %16 = arith.truncf %15 : vector<128x128xf32> to vector<128x128xbf16>
      %c0_13 = arith.constant 0 : index
      %c0_14 = arith.constant 0 : index
      %17 = vector.load %arg6[%c0_13, %c0_14] : memref<128x128xbf16, #tpu.memory_space<vmem>>, vector<128x128xbf16>
      tpu.vector_store %arg6[%c0_13, %c0_14], %16 {strides = array<i32>} : memref<128x128xbf16, #tpu.memory_space<vmem>>, vector<128x128xbf16>,
    } else {
    }
    return
  }
  func.func @transform_0(%arg0: i32, %arg1: i32, %arg2: i32) -> (i32, i32) {
    %c0_i32 = arith.constant 0 : i32
    return %arg0, %arg2 : i32, i32
  }
  func.func @transform_1(%arg0: i32, %arg1: i32, %arg2: i32) -> (i32, i32) {
    %c0_i32 = arith.constant 0 : i32
    return %arg2, %arg1 : i32, i32
  }
  func.func @transform_2(%arg0: i32, %arg1: i32, %arg2: i32) -> (i32, i32) {
    %c0_i32 = arith.constant 0 : i32
    %c0_i32_0 = arith.constant 0 : i32
    return %c0_i32, %arg1 : i32, i32
  }
  func.func @transform_3(%arg0: i32, %arg1: i32, %arg2: i32) -> (i32, i32) {
    %c0_i32 = arith.constant 0 : i32
    return %arg0, %arg1 : i32, i32
  }
}

module attributes {stable_mosaic.version = 11 : i64} {
  func.func @kernel(%arg0: i32, %arg1: i32, %arg2: memref<1x64x128xbf16, #tpu.memory_space<vmem>>, %arg3: memref<1x1x128xf32, #tpu.memory_space<vmem>>, %arg4: memref<1x1x128xf32, #tpu.memory_space<vmem>>, %arg5: memref<1x64x128xbf16, #tpu.memory_space<vmem>>) attributes {dimension_semantics = [#tpu.dimension_semantics<parallel>, #tpu.dimension_semantics<parallel>], iteration_bounds = array<i64: 2, 1>, scalar_prefetch = 0 : i64, scratch_operands = 0 : i64, tpu.core_type = #tpu.core_type<tc>, window_params = [{transform_indices = @transform_0, window_bounds = array<i64: 1, 64, 128>}, {transform_indices = @transform_1, window_bounds = array<i64: 1, 1, 128>}, {transform_indices = @transform_2, window_bounds = array<i64: 1, 1, 128>}, {transform_indices = @transform_3, window_bounds = array<i64: 1, 64, 128>}]} {
    %c0 = arith.constant 0 : index
    %c0_0 = arith.constant 0 : index
    %c0_1 = arith.constant 0 : index
    %0 = vector.load %arg2[%c0, %c0_0, %c0_1] : memref<1x64x128xbf16, #tpu.memory_space<vmem>>, vector<1x64x128xbf16>
    %1 = arith.extf %0 : vector<1x64x128xbf16> to vector<1x64x128xf32>
    %cst = arith.constant dense<0.000000e+00> : vector<1x128xf32>
    %2 = vector.multi_reduction <add>, %1, %cst [1] : vector<1x64x128xf32> to vector<1x128xf32>
    %3 = vector.shape_cast %2 : vector<1x128xf32> to vector<1x1x128xf32>
    %cst_2 = arith.constant 1.562500e-02 : f32
    %4 = vector.broadcast %cst_2 : f32 to vector<1x1x128xf32>
    %5 = arith.mulf %3, %4 : vector<1x1x128xf32>
    %6 = arith.mulf %1, %1 : vector<1x64x128xf32>
    %cst_3 = arith.constant dense<0.000000e+00> : vector<1x128xf32>
    %7 = vector.multi_reduction <add>, %6, %cst_3 [1] : vector<1x64x128xf32> to vector<1x128xf32>
    %8 = vector.shape_cast %7 : vector<1x128xf32> to vector<1x1x128xf32>
    %cst_4 = arith.constant 1.562500e-02 : f32
    %9 = vector.broadcast %cst_4 : f32 to vector<1x1x128xf32>
    %10 = arith.mulf %8, %9 : vector<1x1x128xf32>
    %11 = arith.mulf %5, %5 : vector<1x1x128xf32>
    %12 = arith.subf %10, %11 : vector<1x1x128xf32>
    %cst_5 = arith.constant 0.000000e+00 : f32
    %13 = vector.broadcast %cst_5 : f32 to vector<1x1x128xf32>
    %14 = arith.maximumf %12, %13 : vector<1x1x128xf32>
    %c0_6 = arith.constant 0 : index
    %c0_7 = arith.constant 0 : index
    %c0_8 = arith.constant 0 : index
    %15 = vector.load %arg3[%c0_6, %c0_7, %c0_8] : memref<1x1x128xf32, #tpu.memory_space<vmem>>, vector<1x1x128xf32>
    %cst_9 = arith.constant 9.99999974E-6 : f32
    %16 = vector.broadcast %cst_9 : f32 to vector<1x1x128xf32>
    %17 = arith.addf %14, %16 : vector<1x1x128xf32>
    %18 = math.rsqrt %17 : vector<1x1x128xf32>
    %19 = arith.mulf %15, %18 : vector<1x1x128xf32>
    %c0_10 = arith.constant 0 : index
    %c0_11 = arith.constant 0 : index
    %c0_12 = arith.constant 0 : index
    %20 = vector.load %arg4[%c0_10, %c0_11, %c0_12] : memref<1x1x128xf32, #tpu.memory_space<vmem>>, vector<1x1x128xf32>
    %21 = arith.mulf %5, %19 : vector<1x1x128xf32>
    %22 = arith.subf %20, %21 : vector<1x1x128xf32>
    %23 = vector.broadcast %19 : vector<1x1x128xf32> to vector<1x64x128xf32>
    %24 = arith.mulf %1, %23 : vector<1x64x128xf32>
    %25 = vector.broadcast %22 : vector<1x1x128xf32> to vector<1x64x128xf32>
    %26 = arith.addf %24, %25 : vector<1x64x128xf32>
    %cst_13 = arith.constant 0.000000e+00 : f32
    %27 = vector.broadcast %cst_13 : f32 to vector<1x64x128xf32>
    %28 = arith.maximumf %26, %27 : vector<1x64x128xf32>
    %29 = arith.truncf %28 : vector<1x64x128xf32> to vector<1x64x128xbf16>
    %c0_14 = arith.constant 0 : index
    %c0_15 = arith.constant 0 : index
    %c0_16 = arith.constant 0 : index
    %30 = vector.load %arg5[%c0_14, %c0_15, %c0_16] : memref<1x64x128xbf16, #tpu.memory_space<vmem>>, vector<1x64x128xbf16>
    tpu.vector_store %arg5[%c0_14, %c0_15, %c0_16], %29 {strides = array<i32>} : memref<1x64x128xbf16, #tpu.memory_space<vmem>>, vector<1x64x128xbf16>,
    return
  }
  func.func @transform_0(%arg0: i32, %arg1: i32) -> (i32, i32, i32) {
    %c0_i32 = arith.constant 0 : i32
    %c0_i32_0 = arith.constant 0 : i32
    return %arg0, %c0_i32, %arg1 : i32, i32, i32
  }
  func.func @transform_1(%arg0: i32, %arg1: i32) -> (i32, i32, i32) {
    %c0_i32 = arith.constant 0 : i32
    %c0_i32_0 = arith.constant 0 : i32
    %c0_i32_1 = arith.constant 0 : i32
    return %c0_i32, %c0_i32_0, %arg1 : i32, i32, i32
  }
  func.func @transform_2(%arg0: i32, %arg1: i32) -> (i32, i32, i32) {
    %c0_i32 = arith.constant 0 : i32
    %c0_i32_0 = arith.constant 0 : i32
    %c0_i32_1 = arith.constant 0 : i32
    return %c0_i32, %c0_i32_0, %arg1 : i32, i32, i32
  }
  func.func @transform_3(%arg0: i32, %arg1: i32) -> (i32, i32, i32) {
    %c0_i32 = arith.constant 0 : i32
    %c0_i32_0 = arith.constant 0 : i32
    return %arg0, %c0_i32, %arg1 : i32, i32, i32
  }
}

module attributes {stable_mosaic.version = 11 : i64} {
  func.func @kernel(%arg0: i32, %arg1: i32, %arg2: i32, %arg3: memref<32x512xbf16, #tpu.memory_space<vmem>>, %arg4: memref<512x256xbf16, #tpu.memory_space<vmem>>, %arg5: memref<1x256xf32, #tpu.memory_space<vmem>>, %arg6: memref<32x256xbf16, #tpu.memory_space<vmem>>, %arg7: memref<32x256xf32, #tpu.memory_space<vmem>>) attributes {dimension_semantics = [#tpu.dimension_semantics<parallel>, #tpu.dimension_semantics<parallel>, #tpu.dimension_semantics<arbitrary>], iteration_bounds = array<i64: 1, 1, 4>, scalar_prefetch = 0 : i64, scratch_operands = 1 : i64, tpu.core_type = #tpu.core_type<tc>, window_params = [{transform_indices = @transform_0, window_bounds = array<i64: 32, 512>}, {transform_indices = @transform_1, window_bounds = array<i64: 512, 256>}, {transform_indices = @transform_2, window_bounds = array<i64: 1, 256>}, {transform_indices = @transform_3, window_bounds = array<i64: 32, 256>}]} {
    %c0_i32 = arith.constant 0 : i32
    %0 = arith.cmpi eq, %arg2, %c0_i32 : i32
    %1 = arith.extui %0 : i1 to i32
    %c0_i32_0 = arith.constant 0 : i32
    %2 = arith.cmpi ne, %1, %c0_i32_0 : i32
    scf.if %2 {
      %cst_9 = arith.constant 0.000000e+00 : f32
      %12 = vector.broadcast %cst_9 : f32 to vector<32x256xf32>
      %c0_10 = arith.constant 0 : index
      %c0_11 = arith.constant 0 : index
      %13 = vector.load %arg7[%c0_10, %c0_11] : memref<32x256xf32, #tpu.memory_space<vmem>>, vector<32x256xf32>
      tpu.vector_store %arg7[%c0_10, %c0_11], %12 {strides = array<i32>} : memref<32x256xf32, #tpu.memory_space<vmem>>, vector<32x256xf32>,
    } else {
    }
    %c0 = arith.constant 0 : index
    %c0_1 = arith.constant 0 : index
    %3 = vector.load %arg7[%c0, %c0_1] : memref<32x256xf32, #tpu.memory_space<vmem>>, vector<32x256xf32>
    %c0_2 = arith.constant 0 : index
    %c0_3 = arith.constant 0 : index
    %4 = vector.load %arg3[%c0_2, %c0_3] : memref<32x512xbf16, #tpu.memory_space<vmem>>, vector<32x512xbf16>
    %c0_4 = arith.constant 0 : index
    %c0_5 = arith.constant 0 : index
    %5 = vector.load %arg4[%c0_4, %c0_5] : memref<512x256xbf16, #tpu.memory_space<vmem>>, vector<512x256xbf16>
    %cst = arith.constant dense<0.000000e+00> : vector<32x256xf32>
    %6 = tpu.matmul %4, %5, %cst {dimension_numbers = #tpu.dot_dimension_numbers<[1], [0], [0], [1], [0, 0, 1, 1], [], []>} : vector<32x512xbf16>, vector<512x256xbf16>, vector<32x256xf32> -> vector<32x256xf32>
    %7 = arith.addf %3, %6 : vector<32x256xf32>
    %c0_6 = arith.constant 0 : index
    %c0_7 = arith.constant 0 : index
    %8 = vector.load %arg7[%c0_6, %c0_7] : memref<32x256xf32, #tpu.memory_space<vmem>>, vector<32x256xf32>
    tpu.vector_store %arg7[%c0_6, %c0_7], %7 {strides = array<i32>} : memref<32x256xf32, #tpu.memory_space<vmem>>, vector<32x256xf32>,
    %c3_i32 = arith.constant 3 : i32
    %9 = arith.cmpi eq, %arg2, %c3_i32 : i32
    %10 = arith.extui %9 : i1 to i32
    %c0_i32_8 = arith.constant 0 : i32
    %11 = arith.cmpi ne, %10, %c0_i32_8 : i32
    scf.if %11 {
      %c0_9 = arith.constant 0 : index
      %c0_10 = arith.constant 0 : index
      %12 = vector.load %arg7[%c0_9, %c0_10] : memref<32x256xf32, #tpu.memory_space<vmem>>, vector<32x256xf32>
      %c0_11 = arith.constant 0 : index
      %c0_12 = arith.constant 0 : index
      %13 = vector.load %arg5[%c0_11, %c0_12] : memref<1x256xf32, #tpu.memory_space<vmem>>, vector<1x256xf32>
      %14 = vector.broadcast %13 : vector<1x256xf32> to vector<32x256xf32>
      %15 = arith.addf %12, %14 : vector<32x256xf32>
      %16 = arith.truncf %15 : vector<32x256xf32> to vector<32x256xbf16>
      %c0_13 = arith.constant 0 : index
      %c0_14 = arith.constant 0 : index
      %17 = vector.load %arg6[%c0_13, %c0_14] : memref<32x256xbf16, #tpu.memory_space<vmem>>, vector<32x256xbf16>
      tpu.vector_store %arg6[%c0_13, %c0_14], %16 {strides = array<i32>} : memref<32x256xbf16, #tpu.memory_space<vmem>>, vector<32x256xbf16>,
    } else {
    }
    return
  }
  func.func @transform_0(%arg0: i32, %arg1: i32, %arg2: i32) -> (i32, i32) {
    %c0_i32 = arith.constant 0 : i32
    return %arg0, %arg2 : i32, i32
  }
  func.func @transform_1(%arg0: i32, %arg1: i32, %arg2: i32) -> (i32, i32) {
    %c0_i32 = arith.constant 0 : i32
    return %arg2, %arg1 : i32, i32
  }
  func.func @transform_2(%arg0: i32, %arg1: i32, %arg2: i32) -> (i32, i32) {
    %c0_i32 = arith.constant 0 : i32
    %c0_i32_0 = arith.constant 0 : i32
    return %c0_i32, %arg1 : i32, i32
  }
  func.func @transform_3(%arg0: i32, %arg1: i32, %arg2: i32) -> (i32, i32) {
    %c0_i32 = arith.constant 0 : i32
    return %arg0, %arg1 : i32, i32
  }
}

module attributes {stable_mosaic.version = 11 : i64} {
  func.func @kernel(%arg0: i32, %arg1: i32, %arg2: memref<1x16x128xbf16, #tpu.memory_space<vmem>>, %arg3: memref<1x1x128xf32, #tpu.memory_space<vmem>>, %arg4: memref<1x1x128xf32, #tpu.memory_space<vmem>>, %arg5: memref<1x16x128xbf16, #tpu.memory_space<vmem>>) attributes {dimension_semantics = [#tpu.dimension_semantics<parallel>, #tpu.dimension_semantics<parallel>], iteration_bounds = array<i64: 2, 2>, scalar_prefetch = 0 : i64, scratch_operands = 0 : i64, tpu.core_type = #tpu.core_type<tc>, window_params = [{transform_indices = @transform_0, window_bounds = array<i64: 1, 16, 128>}, {transform_indices = @transform_1, window_bounds = array<i64: 1, 1, 128>}, {transform_indices = @transform_2, window_bounds = array<i64: 1, 1, 128>}, {transform_indices = @transform_3, window_bounds = array<i64: 1, 16, 128>}]} {
    %c0 = arith.constant 0 : index
    %c0_0 = arith.constant 0 : index
    %c0_1 = arith.constant 0 : index
    %0 = vector.load %arg2[%c0, %c0_0, %c0_1] : memref<1x16x128xbf16, #tpu.memory_space<vmem>>, vector<1x16x128xbf16>
    %1 = arith.extf %0 : vector<1x16x128xbf16> to vector<1x16x128xf32>
    %cst = arith.constant dense<0.000000e+00> : vector<1x128xf32>
    %2 = vector.multi_reduction <add>, %1, %cst [1] : vector<1x16x128xf32> to vector<1x128xf32>
    %3 = vector.shape_cast %2 : vector<1x128xf32> to vector<1x1x128xf32>
    %cst_2 = arith.constant 6.250000e-02 : f32
    %4 = vector.broadcast %cst_2 : f32 to vector<1x1x128xf32>
    %5 = arith.mulf %3, %4 : vector<1x1x128xf32>
    %6 = arith.mulf %1, %1 : vector<1x16x128xf32>
    %cst_3 = arith.constant dense<0.000000e+00> : vector<1x128xf32>
    %7 = vector.multi_reduction <add>, %6, %cst_3 [1] : vector<1x16x128xf32> to vector<1x128xf32>
    %8 = vector.shape_cast %7 : vector<1x128xf32> to vector<1x1x128xf32>
    %cst_4 = arith.constant 6.250000e-02 : f32
    %9 = vector.broadcast %cst_4 : f32 to vector<1x1x128xf32>
    %10 = arith.mulf %8, %9 : vector<1x1x128xf32>
    %11 = arith.mulf %5, %5 : vector<1x1x128xf32>
    %12 = arith.subf %10, %11 : vector<1x1x128xf32>
    %cst_5 = arith.constant 0.000000e+00 : f32
    %13 = vector.broadcast %cst_5 : f32 to vector<1x1x128xf32>
    %14 = arith.maximumf %12, %13 : vector<1x1x128xf32>
    %c0_6 = arith.constant 0 : index
    %c0_7 = arith.constant 0 : index
    %c0_8 = arith.constant 0 : index
    %15 = vector.load %arg3[%c0_6, %c0_7, %c0_8] : memref<1x1x128xf32, #tpu.memory_space<vmem>>, vector<1x1x128xf32>
    %cst_9 = arith.constant 9.99999974E-6 : f32
    %16 = vector.broadcast %cst_9 : f32 to vector<1x1x128xf32>
    %17 = arith.addf %14, %16 : vector<1x1x128xf32>
    %18 = math.rsqrt %17 : vector<1x1x128xf32>
    %19 = arith.mulf %15, %18 : vector<1x1x128xf32>
    %c0_10 = arith.constant 0 : index
    %c0_11 = arith.constant 0 : index
    %c0_12 = arith.constant 0 : index
    %20 = vector.load %arg4[%c0_10, %c0_11, %c0_12] : memref<1x1x128xf32, #tpu.memory_space<vmem>>, vector<1x1x128xf32>
    %21 = arith.mulf %5, %19 : vector<1x1x128xf32>
    %22 = arith.subf %20, %21 : vector<1x1x128xf32>
    %23 = vector.broadcast %19 : vector<1x1x128xf32> to vector<1x16x128xf32>
    %24 = arith.mulf %1, %23 : vector<1x16x128xf32>
    %25 = vector.broadcast %22 : vector<1x1x128xf32> to vector<1x16x128xf32>
    %26 = arith.addf %24, %25 : vector<1x16x128xf32>
    %cst_13 = arith.constant 0.000000e+00 : f32
    %27 = vector.broadcast %cst_13 : f32 to vector<1x16x128xf32>
    %28 = arith.maximumf %26, %27 : vector<1x16x128xf32>
    %29 = arith.truncf %28 : vector<1x16x128xf32> to vector<1x16x128xbf16>
    %c0_14 = arith.constant 0 : index
    %c0_15 = arith.constant 0 : index
    %c0_16 = arith.constant 0 : index
    %30 = vector.load %arg5[%c0_14, %c0_15, %c0_16] : memref<1x16x128xbf16, #tpu.memory_space<vmem>>, vector<1x16x128xbf16>
    tpu.vector_store %arg5[%c0_14, %c0_15, %c0_16], %29 {strides = array<i32>} : memref<1x16x128xbf16, #tpu.memory_space<vmem>>, vector<1x16x128xbf16>,
    return
  }
  func.func @transform_0(%arg0: i32, %arg1: i32) -> (i32, i32, i32) {
    %c0_i32 = arith.constant 0 : i32
    %c0_i32_0 = arith.constant 0 : i32
    return %arg0, %c0_i32, %arg1 : i32, i32, i32
  }
  func.func @transform_1(%arg0: i32, %arg1: i32) -> (i32, i32, i32) {
    %c0_i32 = arith.constant 0 : i32
    %c0_i32_0 = arith.constant 0 : i32
    %c0_i32_1 = arith.constant 0 : i32
    return %c0_i32, %c0_i32_0, %arg1 : i32, i32, i32
  }
  func.func @transform_2(%arg0: i32, %arg1: i32) -> (i32, i32, i32) {
    %c0_i32 = arith.constant 0 : i32
    %c0_i32_0 = arith.constant 0 : i32
    %c0_i32_1 = arith.constant 0 : i32
    return %c0_i32, %c0_i32_0, %arg1 : i32, i32, i32
  }
  func.func @transform_3(%arg0: i32, %arg1: i32) -> (i32, i32, i32) {
    %c0_i32 = arith.constant 0 : i32
    %c0_i32_0 = arith.constant 0 : i32
    return %arg0, %c0_i32, %arg1 : i32, i32, i32
  }
}

module attributes {stable_mosaic.version = 11 : i64} {
  func.func @kernel(%arg0: i32, %arg1: i32, %arg2: i32, %arg3: memref<32x512xbf16, #tpu.memory_space<vmem>>, %arg4: memref<512x256xbf16, #tpu.memory_space<vmem>>, %arg5: memref<1x256xf32, #tpu.memory_space<vmem>>, %arg6: memref<32x256xbf16, #tpu.memory_space<vmem>>, %arg7: memref<32x256xf32, #tpu.memory_space<vmem>>) attributes {dimension_semantics = [#tpu.dimension_semantics<parallel>, #tpu.dimension_semantics<parallel>, #tpu.dimension_semantics<arbitrary>], iteration_bounds = array<i64: 1, 1, 5>, scalar_prefetch = 0 : i64, scratch_operands = 1 : i64, tpu.core_type = #tpu.core_type<tc>, window_params = [{transform_indices = @transform_0, window_bounds = array<i64: 32, 512>}, {transform_indices = @transform_1, window_bounds = array<i64: 512, 256>}, {transform_indices = @transform_2, window_bounds = array<i64: 1, 256>}, {transform_indices = @transform_3, window_bounds = array<i64: 32, 256>}]} {
    %c0_i32 = arith.constant 0 : i32
    %0 = arith.cmpi eq, %arg2, %c0_i32 : i32
    %1 = arith.extui %0 : i1 to i32
    %c0_i32_0 = arith.constant 0 : i32
    %2 = arith.cmpi ne, %1, %c0_i32_0 : i32
    scf.if %2 {
      %cst_9 = arith.constant 0.000000e+00 : f32
      %12 = vector.broadcast %cst_9 : f32 to vector<32x256xf32>
      %c0_10 = arith.constant 0 : index
      %c0_11 = arith.constant 0 : index
      %13 = vector.load %arg7[%c0_10, %c0_11] : memref<32x256xf32, #tpu.memory_space<vmem>>, vector<32x256xf32>
      tpu.vector_store %arg7[%c0_10, %c0_11], %12 {strides = array<i32>} : memref<32x256xf32, #tpu.memory_space<vmem>>, vector<32x256xf32>,
    } else {
    }
    %c0 = arith.constant 0 : index
    %c0_1 = arith.constant 0 : index
    %3 = vector.load %arg7[%c0, %c0_1] : memref<32x256xf32, #tpu.memory_space<vmem>>, vector<32x256xf32>
    %c0_2 = arith.constant 0 : index
    %c0_3 = arith.constant 0 : index
    %4 = vector.load %arg3[%c0_2, %c0_3] : memref<32x512xbf16, #tpu.memory_space<vmem>>, vector<32x512xbf16>
    %c0_4 = arith.constant 0 : index
    %c0_5 = arith.constant 0 : index
    %5 = vector.load %arg4[%c0_4, %c0_5] : memref<512x256xbf16, #tpu.memory_space<vmem>>, vector<512x256xbf16>
    %cst = arith.constant dense<0.000000e+00> : vector<32x256xf32>
    %6 = tpu.matmul %4, %5, %cst {dimension_numbers = #tpu.dot_dimension_numbers<[1], [0], [0], [1], [0, 0, 1, 1], [], []>} : vector<32x512xbf16>, vector<512x256xbf16>, vector<32x256xf32> -> vector<32x256xf32>
    %7 = arith.addf %3, %6 : vector<32x256xf32>
    %c0_6 = arith.constant 0 : index
    %c0_7 = arith.constant 0 : index
    %8 = vector.load %arg7[%c0_6, %c0_7] : memref<32x256xf32, #tpu.memory_space<vmem>>, vector<32x256xf32>
    tpu.vector_store %arg7[%c0_6, %c0_7], %7 {strides = array<i32>} : memref<32x256xf32, #tpu.memory_space<vmem>>, vector<32x256xf32>,
    %c4_i32 = arith.constant 4 : i32
    %9 = arith.cmpi eq, %arg2, %c4_i32 : i32
    %10 = arith.extui %9 : i1 to i32
    %c0_i32_8 = arith.constant 0 : i32
    %11 = arith.cmpi ne, %10, %c0_i32_8 : i32
    scf.if %11 {
      %c0_9 = arith.constant 0 : index
      %c0_10 = arith.constant 0 : index
      %12 = vector.load %arg7[%c0_9, %c0_10] : memref<32x256xf32, #tpu.memory_space<vmem>>, vector<32x256xf32>
      %c0_11 = arith.constant 0 : index
      %c0_12 = arith.constant 0 : index
      %13 = vector.load %arg5[%c0_11, %c0_12] : memref<1x256xf32, #tpu.memory_space<vmem>>, vector<1x256xf32>
      %14 = vector.broadcast %13 : vector<1x256xf32> to vector<32x256xf32>
      %15 = arith.addf %12, %14 : vector<32x256xf32>
      %16 = arith.truncf %15 : vector<32x256xf32> to vector<32x256xbf16>
      %c0_13 = arith.constant 0 : index
      %c0_14 = arith.constant 0 : index
      %17 = vector.load %arg6[%c0_13, %c0_14] : memref<32x256xbf16, #tpu.memory_space<vmem>>, vector<32x256xbf16>
      tpu.vector_store %arg6[%c0_13, %c0_14], %16 {strides = array<i32>} : memref<32x256xbf16, #tpu.memory_space<vmem>>, vector<32x256xbf16>,
    } else {
    }
    return
  }
  func.func @transform_0(%arg0: i32, %arg1: i32, %arg2: i32) -> (i32, i32) {
    %c0_i32 = arith.constant 0 : i32
    return %arg0, %arg2 : i32, i32
  }
  func.func @transform_1(%arg0: i32, %arg1: i32, %arg2: i32) -> (i32, i32) {
    %c0_i32 = arith.constant 0 : i32
    return %arg2, %arg1 : i32, i32
  }
  func.func @transform_2(%arg0: i32, %arg1: i32, %arg2: i32) -> (i32, i32) {
    %c0_i32 = arith.constant 0 : i32
    %c0_i32_0 = arith.constant 0 : i32
    return %c0_i32, %arg1 : i32, i32
  }
  func.func @transform_3(%arg0: i32, %arg1: i32, %arg2: i32) -> (i32, i32) {
    %c0_i32 = arith.constant 0 : i32
    return %arg0, %arg1 : i32, i32
  }
}

module attributes {stable_mosaic.version = 11 : i64} {
  func.func @kernel(%arg0: i32, %arg1: i32, %arg2: memref<1x16x128xbf16, #tpu.memory_space<vmem>>, %arg3: memref<1x1x128xf32, #tpu.memory_space<vmem>>, %arg4: memref<1x1x128xf32, #tpu.memory_space<vmem>>, %arg5: memref<1x16x128xbf16, #tpu.memory_space<vmem>>, %arg6: memref<1x16x128xbf16, #tpu.memory_space<vmem>>) attributes {dimension_semantics = [#tpu.dimension_semantics<parallel>, #tpu.dimension_semantics<parallel>], iteration_bounds = array<i64: 2, 2>, scalar_prefetch = 0 : i64, scratch_operands = 0 : i64, tpu.core_type = #tpu.core_type<tc>, window_params = [{transform_indices = @transform_0, window_bounds = array<i64: 1, 16, 128>}, {transform_indices = @transform_1, window_bounds = array<i64: 1, 1, 128>}, {transform_indices = @transform_2, window_bounds = array<i64: 1, 1, 128>}, {transform_indices = @transform_3, window_bounds = array<i64: 1, 16, 128>}, {transform_indices = @transform_4, window_bounds = array<i64: 1, 16, 128>}]} {
    %c0 = arith.constant 0 : index
    %c0_0 = arith.constant 0 : index
    %c0_1 = arith.constant 0 : index
    %0 = vector.load %arg2[%c0, %c0_0, %c0_1] : memref<1x16x128xbf16, #tpu.memory_space<vmem>>, vector<1x16x128xbf16>
    %1 = arith.extf %0 : vector<1x16x128xbf16> to vector<1x16x128xf32>
    %cst = arith.constant dense<0.000000e+00> : vector<1x128xf32>
    %2 = vector.multi_reduction <add>, %1, %cst [1] : vector<1x16x128xf32> to vector<1x128xf32>
    %3 = vector.shape_cast %2 : vector<1x128xf32> to vector<1x1x128xf32>
    %cst_2 = arith.constant 6.250000e-02 : f32
    %4 = vector.broadcast %cst_2 : f32 to vector<1x1x128xf32>
    %5 = arith.mulf %3, %4 : vector<1x1x128xf32>
    %6 = arith.mulf %1, %1 : vector<1x16x128xf32>
    %cst_3 = arith.constant dense<0.000000e+00> : vector<1x128xf32>
    %7 = vector.multi_reduction <add>, %6, %cst_3 [1] : vector<1x16x128xf32> to vector<1x128xf32>
    %8 = vector.shape_cast %7 : vector<1x128xf32> to vector<1x1x128xf32>
    %cst_4 = arith.constant 6.250000e-02 : f32
    %9 = vector.broadcast %cst_4 : f32 to vector<1x1x128xf32>
    %10 = arith.mulf %8, %9 : vector<1x1x128xf32>
    %11 = arith.mulf %5, %5 : vector<1x1x128xf32>
    %12 = arith.subf %10, %11 : vector<1x1x128xf32>
    %cst_5 = arith.constant 0.000000e+00 : f32
    %13 = vector.broadcast %cst_5 : f32 to vector<1x1x128xf32>
    %14 = arith.maximumf %12, %13 : vector<1x1x128xf32>
    %c0_6 = arith.constant 0 : index
    %c0_7 = arith.constant 0 : index
    %c0_8 = arith.constant 0 : index
    %15 = vector.load %arg3[%c0_6, %c0_7, %c0_8] : memref<1x1x128xf32, #tpu.memory_space<vmem>>, vector<1x1x128xf32>
    %cst_9 = arith.constant 9.99999974E-6 : f32
    %16 = vector.broadcast %cst_9 : f32 to vector<1x1x128xf32>
    %17 = arith.addf %14, %16 : vector<1x1x128xf32>
    %18 = math.rsqrt %17 : vector<1x1x128xf32>
    %19 = arith.mulf %15, %18 : vector<1x1x128xf32>
    %c0_10 = arith.constant 0 : index
    %c0_11 = arith.constant 0 : index
    %c0_12 = arith.constant 0 : index
    %20 = vector.load %arg4[%c0_10, %c0_11, %c0_12] : memref<1x1x128xf32, #tpu.memory_space<vmem>>, vector<1x1x128xf32>
    %21 = arith.mulf %5, %19 : vector<1x1x128xf32>
    %22 = arith.subf %20, %21 : vector<1x1x128xf32>
    %23 = vector.broadcast %19 : vector<1x1x128xf32> to vector<1x16x128xf32>
    %24 = arith.mulf %1, %23 : vector<1x16x128xf32>
    %25 = vector.broadcast %22 : vector<1x1x128xf32> to vector<1x16x128xf32>
    %26 = arith.addf %24, %25 : vector<1x16x128xf32>
    %c0_13 = arith.constant 0 : index
    %c0_14 = arith.constant 0 : index
    %c0_15 = arith.constant 0 : index
    %27 = vector.load %arg5[%c0_13, %c0_14, %c0_15] : memref<1x16x128xbf16, #tpu.memory_space<vmem>>, vector<1x16x128xbf16>
    %28 = arith.extf %27 : vector<1x16x128xbf16> to vector<1x16x128xf32>
    %29 = arith.addf %26, %28 : vector<1x16x128xf32>
    %30 = arith.truncf %29 : vector<1x16x128xf32> to vector<1x16x128xbf16>
    %c0_16 = arith.constant 0 : index
    %c0_17 = arith.constant 0 : index
    %c0_18 = arith.constant 0 : index
    %31 = vector.load %arg6[%c0_16, %c0_17, %c0_18] : memref<1x16x128xbf16, #tpu.memory_space<vmem>>, vector<1x16x128xbf16>
    tpu.vector_store %arg6[%c0_16, %c0_17, %c0_18], %30 {strides = array<i32>} : memref<1x16x128xbf16, #tpu.memory_space<vmem>>, vector<1x16x128xbf16>,
    return
  }
  func.func @transform_0(%arg0: i32, %arg1: i32) -> (i32, i32, i32) {
    %c0_i32 = arith.constant 0 : i32
    %c0_i32_0 = arith.constant 0 : i32
    return %arg0, %c0_i32, %arg1 : i32, i32, i32
  }
  func.func @transform_1(%arg0: i32, %arg1: i32) -> (i32, i32, i32) {
    %c0_i32 = arith.constant 0 : i32
    %c0_i32_0 = arith.constant 0 : i32
    %c0_i32_1 = arith.constant 0 : i32
    return %c0_i32, %c0_i32_0, %arg1 : i32, i32, i32
  }
  func.func @transform_2(%arg0: i32, %arg1: i32) -> (i32, i32, i32) {
    %c0_i32 = arith.constant 0 : i32
    %c0_i32_0 = arith.constant 0 : i32
    %c0_i32_1 = arith.constant 0 : i32
    return %c0_i32, %c0_i32_0, %arg1 : i32, i32, i32
  }
  func.func @transform_3(%arg0: i32, %arg1: i32) -> (i32, i32, i32) {
    %c0_i32 = arith.constant 0 : i32
    %c0_i32_0 = arith.constant 0 : i32
    return %arg0, %c0_i32, %arg1 : i32, i32, i32
  }
  func.func @transform_4(%arg0: i32, %arg1: i32) -> (i32, i32, i32) {
    %c0_i32 = arith.constant 0 : i32
    %c0_i32_0 = arith.constant 0 : i32
    return %arg0, %c0_i32, %arg1 : i32, i32, i32
  }
}

module attributes {stable_mosaic.version = 11 : i64} {
  func.func @kernel(%arg0: i32, %arg1: i32, %arg2: i32, %arg3: memref<64x512xbf16, #tpu.memory_space<vmem>>, %arg4: memref<512x256xbf16, #tpu.memory_space<vmem>>, %arg5: memref<1x256xf32, #tpu.memory_space<vmem>>, %arg6: memref<64x256xbf16, #tpu.memory_space<vmem>>, %arg7: memref<64x256xf32, #tpu.memory_space<vmem>>) attributes {dimension_semantics = [#tpu.dimension_semantics<parallel>, #tpu.dimension_semantics<parallel>, #tpu.dimension_semantics<arbitrary>], iteration_bounds = array<i64: 1, 2, 2>, scalar_prefetch = 0 : i64, scratch_operands = 1 : i64, tpu.core_type = #tpu.core_type<tc>, window_params = [{transform_indices = @transform_0, window_bounds = array<i64: 64, 512>}, {transform_indices = @transform_1, window_bounds = array<i64: 512, 256>}, {transform_indices = @transform_2, window_bounds = array<i64: 1, 256>}, {transform_indices = @transform_3, window_bounds = array<i64: 64, 256>}]} {
    %c0_i32 = arith.constant 0 : i32
    %0 = arith.cmpi eq, %arg2, %c0_i32 : i32
    %1 = arith.extui %0 : i1 to i32
    %c0_i32_0 = arith.constant 0 : i32
    %2 = arith.cmpi ne, %1, %c0_i32_0 : i32
    scf.if %2 {
      %cst_9 = arith.constant 0.000000e+00 : f32
      %12 = vector.broadcast %cst_9 : f32 to vector<64x256xf32>
      %c0_10 = arith.constant 0 : index
      %c0_11 = arith.constant 0 : index
      %13 = vector.load %arg7[%c0_10, %c0_11] : memref<64x256xf32, #tpu.memory_space<vmem>>, vector<64x256xf32>
      tpu.vector_store %arg7[%c0_10, %c0_11], %12 {strides = array<i32>} : memref<64x256xf32, #tpu.memory_space<vmem>>, vector<64x256xf32>,
    } else {
    }
    %c0 = arith.constant 0 : index
    %c0_1 = arith.constant 0 : index
    %3 = vector.load %arg7[%c0, %c0_1] : memref<64x256xf32, #tpu.memory_space<vmem>>, vector<64x256xf32>
    %c0_2 = arith.constant 0 : index
    %c0_3 = arith.constant 0 : index
    %4 = vector.load %arg3[%c0_2, %c0_3] : memref<64x512xbf16, #tpu.memory_space<vmem>>, vector<64x512xbf16>
    %c0_4 = arith.constant 0 : index
    %c0_5 = arith.constant 0 : index
    %5 = vector.load %arg4[%c0_4, %c0_5] : memref<512x256xbf16, #tpu.memory_space<vmem>>, vector<512x256xbf16>
    %cst = arith.constant dense<0.000000e+00> : vector<64x256xf32>
    %6 = tpu.matmul %4, %5, %cst {dimension_numbers = #tpu.dot_dimension_numbers<[1], [0], [0], [1], [0, 0, 1, 1], [], []>} : vector<64x512xbf16>, vector<512x256xbf16>, vector<64x256xf32> -> vector<64x256xf32>
    %7 = arith.addf %3, %6 : vector<64x256xf32>
    %c0_6 = arith.constant 0 : index
    %c0_7 = arith.constant 0 : index
    %8 = vector.load %arg7[%c0_6, %c0_7] : memref<64x256xf32, #tpu.memory_space<vmem>>, vector<64x256xf32>
    tpu.vector_store %arg7[%c0_6, %c0_7], %7 {strides = array<i32>} : memref<64x256xf32, #tpu.memory_space<vmem>>, vector<64x256xf32>,
    %c1_i32 = arith.constant 1 : i32
    %9 = arith.cmpi eq, %arg2, %c1_i32 : i32
    %10 = arith.extui %9 : i1 to i32
    %c0_i32_8 = arith.constant 0 : i32
    %11 = arith.cmpi ne, %10, %c0_i32_8 : i32
    scf.if %11 {
      %c0_9 = arith.constant 0 : index
      %c0_10 = arith.constant 0 : index
      %12 = vector.load %arg7[%c0_9, %c0_10] : memref<64x256xf32, #tpu.memory_space<vmem>>, vector<64x256xf32>
      %c0_11 = arith.constant 0 : index
      %c0_12 = arith.constant 0 : index
      %13 = vector.load %arg5[%c0_11, %c0_12] : memref<1x256xf32, #tpu.memory_space<vmem>>, vector<1x256xf32>
      %14 = vector.broadcast %13 : vector<1x256xf32> to vector<64x256xf32>
      %15 = arith.addf %12, %14 : vector<64x256xf32>
      %16 = arith.truncf %15 : vector<64x256xf32> to vector<64x256xbf16>
      %c0_13 = arith.constant 0 : index
      %c0_14 = arith.constant 0 : index
      %17 = vector.load %arg6[%c0_13, %c0_14] : memref<64x256xbf16, #tpu.memory_space<vmem>>, vector<64x256xbf16>
      tpu.vector_store %arg6[%c0_13, %c0_14], %16 {strides = array<i32>} : memref<64x256xbf16, #tpu.memory_space<vmem>>, vector<64x256xbf16>,
    } else {
    }
    return
  }
  func.func @transform_0(%arg0: i32, %arg1: i32, %arg2: i32) -> (i32, i32) {
    %c0_i32 = arith.constant 0 : i32
    return %arg0, %arg2 : i32, i32
  }
  func.func @transform_1(%arg0: i32, %arg1: i32, %arg2: i32) -> (i32, i32) {
    %c0_i32 = arith.constant 0 : i32
    return %arg2, %arg1 : i32, i32
  }
  func.func @transform_2(%arg0: i32, %arg1: i32, %arg2: i32) -> (i32, i32) {
    %c0_i32 = arith.constant 0 : i32
    %c0_i32_0 = arith.constant 0 : i32
    return %c0_i32, %arg1 : i32, i32
  }
  func.func @transform_3(%arg0: i32, %arg1: i32, %arg2: i32) -> (i32, i32) {
    %c0_i32 = arith.constant 0 : i32
    return %arg0, %arg1 : i32, i32
  }
}

module attributes {stable_mosaic.version = 11 : i64} {
  func.func @kernel(%arg0: i32, %arg1: i32, %arg2: i32, %arg3: memref<176x512xbf16, #tpu.memory_space<vmem>>, %arg4: memref<512x256xbf16, #tpu.memory_space<vmem>>, %arg5: memref<1x256xf32, #tpu.memory_space<vmem>>, %arg6: memref<176x256xbf16, #tpu.memory_space<vmem>>, %arg7: memref<176x256xf32, #tpu.memory_space<vmem>>) attributes {dimension_semantics = [#tpu.dimension_semantics<parallel>, #tpu.dimension_semantics<parallel>, #tpu.dimension_semantics<arbitrary>], iteration_bounds = array<i64: 1, 1, 1>, scalar_prefetch = 0 : i64, scratch_operands = 1 : i64, tpu.core_type = #tpu.core_type<tc>, window_params = [{transform_indices = @transform_0, window_bounds = array<i64: 176, 512>}, {transform_indices = @transform_1, window_bounds = array<i64: 512, 256>}, {transform_indices = @transform_2, window_bounds = array<i64: 1, 256>}, {transform_indices = @transform_3, window_bounds = array<i64: 176, 256>}]} {
    %c0_i32 = arith.constant 0 : i32
    %0 = arith.cmpi eq, %arg2, %c0_i32 : i32
    %1 = arith.extui %0 : i1 to i32
    %c0_i32_0 = arith.constant 0 : i32
    %2 = arith.cmpi ne, %1, %c0_i32_0 : i32
    scf.if %2 {
      %cst_10 = arith.constant 0.000000e+00 : f32
      %12 = vector.broadcast %cst_10 : f32 to vector<176x256xf32>
      %c0_11 = arith.constant 0 : index
      %c0_12 = arith.constant 0 : index
      %13 = vector.load %arg7[%c0_11, %c0_12] : memref<176x256xf32, #tpu.memory_space<vmem>>, vector<176x256xf32>
      tpu.vector_store %arg7[%c0_11, %c0_12], %12 {strides = array<i32>} : memref<176x256xf32, #tpu.memory_space<vmem>>, vector<176x256xf32>,
    } else {
    }
    %c0 = arith.constant 0 : index
    %c0_1 = arith.constant 0 : index
    %3 = vector.load %arg7[%c0, %c0_1] : memref<176x256xf32, #tpu.memory_space<vmem>>, vector<176x256xf32>
    %c0_2 = arith.constant 0 : index
    %c0_3 = arith.constant 0 : index
    %4 = vector.load %arg3[%c0_2, %c0_3] : memref<176x512xbf16, #tpu.memory_space<vmem>>, vector<176x512xbf16>
    %c0_4 = arith.constant 0 : index
    %c0_5 = arith.constant 0 : index
    %5 = vector.load %arg4[%c0_4, %c0_5] : memref<512x256xbf16, #tpu.memory_space<vmem>>, vector<512x256xbf16>
    %cst = arith.constant dense<0.000000e+00> : vector<176x256xf32>
    %6 = tpu.matmul %4, %5, %cst {dimension_numbers = #tpu.dot_dimension_numbers<[1], [0], [0], [1], [0, 0, 1, 1], [], []>} : vector<176x512xbf16>, vector<512x256xbf16>, vector<176x256xf32> -> vector<176x256xf32>
    %7 = arith.addf %3, %6 : vector<176x256xf32>
    %c0_6 = arith.constant 0 : index
    %c0_7 = arith.constant 0 : index
    %8 = vector.load %arg7[%c0_6, %c0_7] : memref<176x256xf32, #tpu.memory_space<vmem>>, vector<176x256xf32>
    tpu.vector_store %arg7[%c0_6, %c0_7], %7 {strides = array<i32>} : memref<176x256xf32, #tpu.memory_space<vmem>>, vector<176x256xf32>,
    %c0_i32_8 = arith.constant 0 : i32
    %9 = arith.cmpi eq, %arg2, %c0_i32_8 : i32
    %10 = arith.extui %9 : i1 to i32
    %c0_i32_9 = arith.constant 0 : i32
    %11 = arith.cmpi ne, %10, %c0_i32_9 : i32
    scf.if %11 {
      %c0_10 = arith.constant 0 : index
      %c0_11 = arith.constant 0 : index
      %12 = vector.load %arg7[%c0_10, %c0_11] : memref<176x256xf32, #tpu.memory_space<vmem>>, vector<176x256xf32>
      %c0_12 = arith.constant 0 : index
      %c0_13 = arith.constant 0 : index
      %13 = vector.load %arg5[%c0_12, %c0_13] : memref<1x256xf32, #tpu.memory_space<vmem>>, vector<1x256xf32>
      %14 = vector.broadcast %13 : vector<1x256xf32> to vector<176x256xf32>
      %15 = arith.addf %12, %14 : vector<176x256xf32>
      %16 = arith.truncf %15 : vector<176x256xf32> to vector<176x256xbf16>
      %c0_14 = arith.constant 0 : index
      %c0_15 = arith.constant 0 : index
      %17 = vector.load %arg6[%c0_14, %c0_15] : memref<176x256xbf16, #tpu.memory_space<vmem>>, vector<176x256xbf16>
      tpu.vector_store %arg6[%c0_14, %c0_15], %16 {strides = array<i32>} : memref<176x256xbf16, #tpu.memory_space<vmem>>, vector<176x256xbf16>,
    } else {
    }
    return
  }
  func.func @transform_0(%arg0: i32, %arg1: i32, %arg2: i32) -> (i32, i32) {
    %c0_i32 = arith.constant 0 : i32
    return %arg0, %arg2 : i32, i32
  }
  func.func @transform_1(%arg0: i32, %arg1: i32, %arg2: i32) -> (i32, i32) {
    %c0_i32 = arith.constant 0 : i32
    return %arg2, %arg1 : i32, i32
  }
  func.func @transform_2(%arg0: i32, %arg1: i32, %arg2: i32) -> (i32, i32) {
    %c0_i32 = arith.constant 0 : i32
    %c0_i32_0 = arith.constant 0 : i32
    return %c0_i32, %arg1 : i32, i32
  }
  func.func @transform_3(%arg0: i32, %arg1: i32, %arg2: i32) -> (i32, i32) {
    %c0_i32 = arith.constant 0 : i32
    return %arg0, %arg1 : i32, i32
  }
}

module attributes {stable_mosaic.version = 11 : i64} {
  func.func @kernel(%arg0: i32, %arg1: i32, %arg2: i32, %arg3: memref<256x512xbf16, #tpu.memory_space<vmem>>, %arg4: memref<512x128xbf16, #tpu.memory_space<vmem>>, %arg5: memref<1x128xf32, #tpu.memory_space<vmem>>, %arg6: memref<256x128xf32, #tpu.memory_space<vmem>>, %arg7: memref<256x128xf32, #tpu.memory_space<vmem>>) attributes {dimension_semantics = [#tpu.dimension_semantics<parallel>, #tpu.dimension_semantics<parallel>, #tpu.dimension_semantics<arbitrary>], iteration_bounds = array<i64: 2, 1, 7>, scalar_prefetch = 0 : i64, scratch_operands = 1 : i64, tpu.core_type = #tpu.core_type<tc>, window_params = [{transform_indices = @transform_0, window_bounds = array<i64: 256, 512>}, {transform_indices = @transform_1, window_bounds = array<i64: 512, 128>}, {transform_indices = @transform_2, window_bounds = array<i64: 1, 128>}, {transform_indices = @transform_3, window_bounds = array<i64: 256, 128>}]} {
    %c0_i32 = arith.constant 0 : i32
    %0 = arith.cmpi eq, %arg2, %c0_i32 : i32
    %1 = arith.extui %0 : i1 to i32
    %c0_i32_0 = arith.constant 0 : i32
    %2 = arith.cmpi ne, %1, %c0_i32_0 : i32
    scf.if %2 {
      %cst_9 = arith.constant 0.000000e+00 : f32
      %12 = vector.broadcast %cst_9 : f32 to vector<256x128xf32>
      %c0_10 = arith.constant 0 : index
      %c0_11 = arith.constant 0 : index
      %13 = vector.load %arg7[%c0_10, %c0_11] : memref<256x128xf32, #tpu.memory_space<vmem>>, vector<256x128xf32>
      tpu.vector_store %arg7[%c0_10, %c0_11], %12 {strides = array<i32>} : memref<256x128xf32, #tpu.memory_space<vmem>>, vector<256x128xf32>,
    } else {
    }
    %c0 = arith.constant 0 : index
    %c0_1 = arith.constant 0 : index
    %3 = vector.load %arg7[%c0, %c0_1] : memref<256x128xf32, #tpu.memory_space<vmem>>, vector<256x128xf32>
    %c0_2 = arith.constant 0 : index
    %c0_3 = arith.constant 0 : index
    %4 = vector.load %arg3[%c0_2, %c0_3] : memref<256x512xbf16, #tpu.memory_space<vmem>>, vector<256x512xbf16>
    %c0_4 = arith.constant 0 : index
    %c0_5 = arith.constant 0 : index
    %5 = vector.load %arg4[%c0_4, %c0_5] : memref<512x128xbf16, #tpu.memory_space<vmem>>, vector<512x128xbf16>
    %cst = arith.constant dense<0.000000e+00> : vector<256x128xf32>
    %6 = tpu.matmul %4, %5, %cst {dimension_numbers = #tpu.dot_dimension_numbers<[1], [0], [0], [1], [0, 0, 1, 1], [], []>} : vector<256x512xbf16>, vector<512x128xbf16>, vector<256x128xf32> -> vector<256x128xf32>
    %7 = arith.addf %3, %6 : vector<256x128xf32>
    %c0_6 = arith.constant 0 : index
    %c0_7 = arith.constant 0 : index
    %8 = vector.load %arg7[%c0_6, %c0_7] : memref<256x128xf32, #tpu.memory_space<vmem>>, vector<256x128xf32>
    tpu.vector_store %arg7[%c0_6, %c0_7], %7 {strides = array<i32>} : memref<256x128xf32, #tpu.memory_space<vmem>>, vector<256x128xf32>,
    %c6_i32 = arith.constant 6 : i32
    %9 = arith.cmpi eq, %arg2, %c6_i32 : i32
    %10 = arith.extui %9 : i1 to i32
    %c0_i32_8 = arith.constant 0 : i32
    %11 = arith.cmpi ne, %10, %c0_i32_8 : i32
    scf.if %11 {
      %c0_9 = arith.constant 0 : index
      %c0_10 = arith.constant 0 : index
      %12 = vector.load %arg7[%c0_9, %c0_10] : memref<256x128xf32, #tpu.memory_space<vmem>>, vector<256x128xf32>
      %c0_11 = arith.constant 0 : index
      %c0_12 = arith.constant 0 : index
      %13 = vector.load %arg5[%c0_11, %c0_12] : memref<1x128xf32, #tpu.memory_space<vmem>>, vector<1x128xf32>
      %14 = vector.broadcast %13 : vector<1x128xf32> to vector<256x128xf32>
      %15 = arith.addf %12, %14 : vector<256x128xf32>
      %16 = math.tanh %15 : vector<256x128xf32>
      %c0_13 = arith.constant 0 : index
      %c0_14 = arith.constant 0 : index
      %17 = vector.load %arg6[%c0_13, %c0_14] : memref<256x128xf32, #tpu.memory_space<vmem>>, vector<256x128xf32>
      tpu.vector_store %arg6[%c0_13, %c0_14], %16 {strides = array<i32>} : memref<256x128xf32, #tpu.memory_space<vmem>>, vector<256x128xf32>,
    } else {
    }
    return
  }
  func.func @transform_0(%arg0: i32, %arg1: i32, %arg2: i32) -> (i32, i32) {
    %c0_i32 = arith.constant 0 : i32
    return %arg0, %arg2 : i32, i32
  }
  func.func @transform_1(%arg0: i32, %arg1: i32, %arg2: i32) -> (i32, i32) {
    %c0_i32 = arith.constant 0 : i32
    return %arg2, %arg1 : i32, i32
  }
  func.func @transform_2(%arg0: i32, %arg1: i32, %arg2: i32) -> (i32, i32) {
    %c0_i32 = arith.constant 0 : i32
    %c0_i32_0 = arith.constant 0 : i32
    return %c0_i32, %arg1 : i32, i32
  }
  func.func @transform_3(%arg0: i32, %arg1: i32, %arg2: i32) -> (i32, i32) {
    %c0_i32 = arith.constant 0 : i32
    return %arg0, %arg1 : i32, i32
  }
}

</mosaic_0001>

<bundles_post_ra>
// kernel: generator_resnet_forward.20
= control target key start
LH: loop header
LB: loop body
LE: loop exit
PB: predicated region body
PF: predicated region fallthrough
CT: control target
= control target key end

     0   :  { %s1082_s12 = smov 0   ;;  %s1084_s13 = smov 0   ;;  %s1536_s0 = inlined_call_operand.vmem [shape: bf16[2,256,64], index: 0, kind: input, shape index: {}]   ;;  %s1537_s1 = inlined_call_operand.vmem [shape: f32[1,1,64], index: 1, kind: input, shape index: {}]   ;;  %s1538_s2 = inlined_call_operand.vmem [shape: f32[1,1,64], index: 2, kind: input, shape index: {}]   ;;  %s1539_s3 = inlined_call_operand.vmem [shape: bf16[2,256,64], index: 3, kind: output, shape index: {}]  }
   0x1   :  { %s1086_s14 = smov 0  }
   0x2 LB: > { %s25_s15 = sadd.s32 1, %s1056_s13  ;;  %p860_p0 = scmp.ge.s32.totalorder %s1060_s14, 1  ;;  %s1060_s14 = sphi %s1086_s14, %s13_s14   ;;  %s1056_s13 = sphi %s1084_s13, %s1541_s13   ;;  %s1052_s12 = sphi %s1082_s12, %s1540_s12  }
   0x3   : > { %p27_p1 = scmp.ge.s32.totalorder %s25_s15, 2  ;;  %p172_p2 = scmp.lt.s32.totalorder %s1060_s14, 3 }
   0x5   : > { %s1543_s15 = smov (%p27_p1, %s25_s15), 0  ;;  %p173_p3 = pnand %p860_p0, %p172_p2 }
   0x6   : > { %p208_p4 = scmp.lt.s32.totalorder (!%p173_p3), %s1052_s12, 1  ;;  %vm294_vm0 = vcmask (!%p173_p3), 523264   ;;  %vm713_vm1 = vcmask (!%p173_p3), 519168  }
   0x7   : > { %176 = sbr.rel (%p173_p3) target bundleno = 165 (0xa5), region = 32 }
   0xe   : > { %s1545_s12 = smov (!%p208_p4, %s1052_s12), 1 }
   0xf   : > { %s899_s16 = sshll.u32 %s1545_s12, 7 }
  0x10   : > { %s1108_s19 = scalar_lea.vmem %s1536_s0, %s899_s16  ;;  %s1401_s26 = scalar_lea.vmem %s1539_s3, %s899_s16 }
  0x11   : > { %v934_v0 = vld [vmem:[%s1108_s19] sm:$0xff]   ;;  %v997_v1 = vld [vmem:[%s1108_s19 + $0x8] sm:$0xff]   ;;  %v998_v5 = vld [vmem:[%s1108_s19 + $0x10] sm:$0xff]  }
  0x12   : > { %v1112_v2 = vunpack.c.l.bf16 %v934_v0  ;;  %v1114_v3 = vunpack.c.h.bf16 %v934_v0  ;;  %v1116_v4 = vunpack.c.l.bf16 %v997_v1  ;;  %v1119_v6 = vunpack.c.h.bf16 %v997_v1  ;;  %v999_v11 = vld [vmem:[%s1108_s19 + $0x18] sm:$0xff]   ;;  %v1000_v18 = vld [vmem:[%s1108_s19 + $0x20] sm:$0xff]   ;;  %v1001_v25 = vld [vmem:[%s1108_s19 + $0x28] sm:$0xff]  }
  0x13   : > { %v1121_v7 = vunpack.c.l.bf16 %v998_v5  ;;  %v1130_v13 = vunpack.c.h.bf16 %v998_v5  ;;  %v1134_v16 = vunpack.c.l.bf16 %v999_v11  ;;  %v1139_v20 = vunpack.c.h.bf16 %v999_v11  ;;  %v1002_v33 = vld [vmem:[%s1108_s19 + $0x30] sm:$0xff]   ;;  %v1003_v44 = vld [vmem:[%s1108_s19 + $0x38] sm:$0xff]   ;;  %v1004_v57 = vld [vmem:[%s1108_s19 + $0x40] sm:$0xff]  }
  0x14   : > { %v295_v8 = vsel %vm294_vm0, %v1112_v2, 0.0  ;;  %v296_v9 = vsel %vm294_vm0, %v1114_v3, 0.0  ;;  %v298_v10 = vsel %vm294_vm0, %v1116_v4, 0.0  ;;  %v300_v14 = vsel %vm294_vm0, %v1119_v6, 0.0  ;;  %v1005_v11 = vld [vmem:[%s1108_s19 + $0x48] sm:$0xff]  }
  0x15   : > { %v297_v12 = vadd.f32 %v296_v9, %v295_v8  ;;  %v302_v17 = vsel %vm294_vm0, %v1121_v7, 0.0  ;;  %v304_v21 = vsel %vm294_vm0, %v1130_v13, 0.0  ;;  %v1143_v23 = vunpack.c.l.bf16 %v1000_v18 }
  0x16   : > { %v306_v24 = vsel %vm294_vm0, %v1134_v16, 0.0  ;;  %v1148_v27 = vunpack.c.h.bf16 %v1000_v18  ;;  %v308_v28 = vsel %vm294_vm0, %v1139_v20, 0.0  ;;  %v1152_v30 = vunpack.c.l.bf16 %v1001_v25 }
  0x17   : > { %v299_v15 = vadd.f32 %v298_v10, %v297_v12  ;;  %v310_v31 = vsel %vm294_vm0, %v1143_v23, 0.0  ;;  %v1156_v32 = vunpack.c.h.bf16 %v1001_v25  ;;  %v365_v36 = vmul.f32 %v1112_v2, %v1112_v2 }
  0x18   : > { %v312_v35 = vsel %vm294_vm0, %v1148_v27, 0.0  ;;  %v366_v37 = vmul.f32 %v1114_v3, %v1114_v3  ;;  %v367_v38 = vmul.f32 %v1116_v4, %v1116_v4  ;;  %v1167_v40 = vunpack.c.l.bf16 %v1002_v33 }
  0x19   : > { %v301_v19 = vadd.f32 %v300_v14, %v299_v15  ;;  %v314_v41 = vsel %vm294_vm0, %v1152_v30, 0.0  ;;  %v368_v42 = vmul.f32 %v1119_v6, %v1119_v6  ;;  %v1173_v43 = vunpack.c.h.bf16 %v1002_v33 }
  0x1a   : > { %v316_v46 = vsel %vm294_vm0, %v1156_v32, 0.0  ;;  %v369_v47 = vmul.f32 %v1121_v7, %v1121_v7  ;;  %v397_v48 = vsel %vm294_vm0, %v365_v36, 0.0  ;;  %v398_v49 = vsel %vm294_vm0, %v366_v37, 0.0 }
  0x1b   : > { %v303_v22 = vadd.f32 %v302_v17, %v301_v19  ;;  %v400_v50 = vsel %vm294_vm0, %v367_v38, 0.0  ;;  %v399_v52 = vadd.f32 %v398_v49, %v397_v48  ;;  %v1183_v53 = vunpack.c.l.bf16 %v1003_v44 }
  0x1c   : > { %v318_v54 = vsel %vm294_vm0, %v1167_v40, 0.0  ;;  %v370_v55 = vmul.f32 %v1130_v13, %v1130_v13  ;;  %v402_v56 = vsel %vm294_vm0, %v368_v42, 0.0  ;;  %v1191_v60 = vunpack.c.h.bf16 %v1003_v44 }
  0x1d   : > { %v305_v26 = vadd.f32 %v304_v21, %v303_v22  ;;  %v401_v59 = vadd.f32 %v400_v50, %v399_v52  ;;  %v320_v61 = vsel %vm294_vm0, %v1173_v43, 0.0  ;;  %v371_v62 = vmul.f32 %v1134_v16, %v1134_v16 }
  0x1e   : > { %v404_v63 = vsel %vm294_vm0, %v369_v47, 0.0  ;;  %v1198_v5 = vunpack.c.l.bf16 %v1004_v57  ;;  %v322_v8 = vsel %vm294_vm0, %v1183_v53, 0.0  ;;  %v372_v9 = vmul.f32 %v1139_v20, %v1139_v20 }
  0x1f   : > { %v307_v29 = vadd.f32 %v306_v24, %v305_v26  ;;  %v403_v1 = vadd.f32 %v402_v56, %v401_v59  ;;  %v406_v10 = vsel %vm294_vm0, %v370_v55, 0.0  ;;  %v1206_v15 = vunpack.c.h.bf16 %v1004_v57 }
  0x20   : > { %v324_v17 = vsel %vm294_vm0, %v1191_v60, 0.0  ;;  %v373_v18 = vmul.f32 %v1143_v23, %v1143_v23  ;;  %v408_v19 = vsel %vm294_vm0, %v371_v62, 0.0  ;;  %v1213_v24 = vunpack.c.l.bf16 %v1005_v11 }
  0x21   : > { %v309_v34 = vadd.f32 %v308_v28, %v307_v29  ;;  %v405_v14 = vadd.f32 %v404_v63, %v403_v1  ;;  %v326_v25 = vsel %vm294_vm0, %v1198_v5, 0.0  ;;  %v374_v26 = vmul.f32 %v1148_v27, %v1148_v27  ;;  %v1006_v29 = vld [vmem:[%s1108_s19 + $0x50] sm:$0xff]  }
  0x22   : > { %v410_v28 = vsel %vm294_vm0, %v372_v9, 0.0  ;;  %v375_v36 = vmul.f32 %v1152_v30, %v1152_v30  ;;  %v412_v37 = vsel %vm294_vm0, %v373_v18, 0.0  ;;  %v330_v42 = vsel %vm294_vm0, %v1213_v24, 0.0 }
  0x23   : > { %v311_v39 = vadd.f32 %v310_v31, %v309_v34  ;;  %v407_v22 = vadd.f32 %v406_v10, %v405_v14  ;;  %v1221_v34 = vunpack.c.h.bf16 %v1005_v11  ;;  %v376_v44 = vmul.f32 %v1156_v32, %v1156_v32 }
  0x24   : > { %v1236_v49 = vunpack.c.h.bf16 %v1006_v29  ;;  %v416_v52 = vsel %vm294_vm0, %v375_v36, 0.0 }
  0x25   : > { %v313_v45 = vadd.f32 %v312_v35, %v311_v39  ;;  %v409_v33 = vadd.f32 %v408_v19, %v407_v22  ;;  %v328_v35 = vsel %vm294_vm0, %v1206_v15, 0.0  ;;  %v332_v50 = vsel %vm294_vm0, %v1221_v34, 0.0  ;;  %v1009_v19 = vld [vmem:[%s1108_s19 + $0x68] sm:$0xff]  }
  0x26   : > { %v418_v59 = vsel %vm294_vm0, %v376_v44, 0.0  ;;  %v336_v1 = vsel %vm294_vm0, %v1236_v49, 0.0 }
  0x27   : > { %v315_v51 = vadd.f32 %v314_v41, %v313_v45  ;;  %v411_v39 = vadd.f32 %v410_v28, %v409_v33  ;;  %v1228_v41 = vunpack.c.l.bf16 %v1006_v29  ;;  %v414_v45 = vsel %vm294_vm0, %v374_v26, 0.0 }
  0x28   : > { %v381_v28 = vmul.f32 %v1198_v5, %v1198_v5 }
  0x29   : > { %v317_v58 = vadd.f32 %v316_v46, %v315_v51  ;;  %v1007_v46 = vld [vmem:[%s1108_s19 + $0x58] sm:$0xff]   ;;  %v413_v48 = vadd.f32 %v412_v37, %v411_v39  ;;  %v377_v51 = vmul.f32 %v1167_v40, %v1167_v40  ;;  %v334_v57 = vsel %vm294_vm0, %v1228_v41, 0.0  ;;  %v1010_v39 = vld [vmem:[%s1108_s19 + $0x70] sm:$0xff]  }
  0x2a   : > { %v1243_v56 = vunpack.c.l.bf16 %v1007_v46  ;;  %v382_v37 = vmul.f32 %v1206_v15, %v1206_v15 }
  0x2b   : > { %v319_v0 = vadd.f32 %v318_v54, %v317_v58  ;;  %v415_v55 = vadd.f32 %v414_v45, %v413_v48  ;;  %v378_v58 = vmul.f32 %v1173_v43, %v1173_v43  ;;  %v420_v9 = vsel %vm294_vm0, %v377_v51, 0.0 }
  0x2c   : > { %v338_v14 = vsel %vm294_vm0, %v1243_v56, 0.0  ;;  %v1281_v45 = vunpack.c.h.bf16 %v1009_v19  ;;  %v428_v48 = vsel %vm294_vm0, %v381_v28, 0.0  ;;  %v387_v28 = vmul.f32 %v1243_v56, %v1243_v56 }
  0x2d   : > { %v321_v12 = vadd.f32 %v320_v61, %v319_v0  ;;  %v1008_v61 = vld [vmem:[%s1108_s19 + $0x60] sm:$0xff]   ;;  %v417_v63 = vadd.f32 %v416_v52, %v415_v55  ;;  %v1251_v0 = vunpack.c.h.bf16 %v1007_v46  ;;  %v422_v18 = vsel %vm294_vm0, %v378_v58, 0.0  ;;  %v1011_v58 = vld [vmem:[%s1108_s19 + $0x78] sm:$0xff]  }
  0x2e   : > { %v1288_v52 = vunpack.c.l.bf16 %v1010_v39  ;;  %v384_v55 = vmul.f32 %v1221_v34, %v1221_v34 }
  0x2f   : > { %v323_v21 = vadd.f32 %v322_v8, %v321_v12  ;;  %v379_v8 = vmul.f32 %v1183_v53, %v1183_v53  ;;  %v419_v11 = vadd.f32 %v418_v59, %v417_v63  ;;  %v1258_v12 = vunpack.c.l.bf16 %v1008_v61 }
  0x30   : > { %v340_v26 = vsel %vm294_vm0, %v1251_v0, 0.0  ;;  %v348_v63 = vsel %vm294_vm0, %v1281_v45, 0.0 }
  0x31   : > { %v325_v31 = vadd.f32 %v324_v17, %v323_v21  ;;  %v380_v17 = vmul.f32 %v1191_v60, %v1191_v60  ;;  %v421_v22 = vadd.f32 %v420_v9, %v419_v11  ;;  %v424_v29 = vsel %vm294_vm0, %v379_v8, 0.0 }
  0x32   : > { %v342_v36 = vsel %vm294_vm0, %v1258_v12, 0.0  ;;  %v1303_v11 = vunpack.c.l.bf16 %v1011_v58 }
  0x33   : > { %v327_v38 = vadd.f32 %v326_v25, %v325_v31  ;;  %v1266_v25 = vunpack.c.h.bf16 %v1008_v61  ;;  %v423_v33 = vadd.f32 %v422_v18, %v421_v22  ;;  %v434_v18 = vsel %vm294_vm0, %v384_v55, 0.0 }
  0x34   : > { %v1310_v22 = vunpack.c.h.bf16 %v1011_v58 }
  0x35   : > { %v329_v47 = vadd.f32 %v328_v35, %v327_v38  ;;  %v1273_v35 = vunpack.c.l.bf16 %v1009_v19  ;;  %v426_v38 = vsel %vm294_vm0, %v380_v17, 0.0  ;;  %v425_v44 = vadd.f32 %v424_v29, %v423_v33 }
  0x36   : > { %v344_v46 = vsel %vm294_vm0, %v1266_v25, 0.0  ;;  %v386_v17 = vmul.f32 %v1236_v49, %v1236_v49 }
  0x37   : > { %v331_v54 = vadd.f32 %v330_v42, %v329_v47  ;;  %v383_v47 = vmul.f32 %v1213_v24, %v1213_v24  ;;  %v427_v51 = vadd.f32 %v426_v38, %v425_v44  ;;  %v356_v44 = vsel %vm294_vm0, %v1310_v22, 0.0 }
  0x38   : > { %v438_v38 = vsel %vm294_vm0, %v386_v17, 0.0  ;;  %v391_v58 = vmul.f32 %v1273_v35, %v1273_v35 }
  0x39   : > { %v333_v62 = vadd.f32 %v332_v50, %v331_v54  ;;  %v346_v54 = vsel %vm294_vm0, %v1273_v35, 0.0  ;;  %v429_v61 = vadd.f32 %v428_v48, %v427_v51  ;;  %v432_v8 = vsel %vm294_vm0, %v383_v47, 0.0 }
  0x3a   : > { %v440_v47 = vsel %vm294_vm0, %v387_v28, 0.0  ;;  %v390_v51 = vmul.f32 %v1266_v25, %v1266_v25  ;;  %v395_v28 = vmul.f32 %v1303_v11, %v1303_v11 }
  0x3b   : > { %v335_v10 = vadd.f32 %v334_v57, %v333_v62  ;;  %v430_v57 = vsel %vm294_vm0, %v382_v37, 0.0  ;;  %v1296_v62 = vunpack.c.h.bf16 %v1010_v39  ;;  %v388_v37 = vmul.f32 %v1251_v0, %v1251_v0 }
  0x3d   : > { %v337_v21 = vadd.f32 %v336_v1, %v335_v10  ;;  %v385_v1 = vmul.f32 %v1228_v41, %v1228_v41  ;;  %v431_v10 = vadd.f32 %v430_v57, %v429_v61 }
  0x3f   : > { %v339_v31 = vadd.f32 %v338_v14, %v337_v21  ;;  %v350_v14 = vsel %vm294_vm0, %v1288_v52, 0.0  ;;  %v433_v21 = vadd.f32 %v432_v8, %v431_v10  ;;  %v436_v29 = vsel %vm294_vm0, %v385_v1, 0.0 }
  0x40   : > { %v392_v1 = vmul.f32 %v1281_v45, %v1281_v45  ;;  %v446_v8 = vsel %vm294_vm0, %v390_v51, 0.0  ;;  %v393_v10 = vmul.f32 %v1288_v52, %v1288_v52 }
  0x41   : > { %v341_v42 = vadd.f32 %v340_v26, %v339_v31  ;;  %v352_v26 = vsel %vm294_vm0, %v1296_v62, 0.0  ;;  %v435_v33 = vadd.f32 %v434_v18, %v433_v21 }
  0x42   : > { %v450_v21 = vsel %vm294_vm0, %v392_v1, 0.0 }
  0x43   : > { %v343_v50 = vadd.f32 %v342_v36, %v341_v42  ;;  %v354_v36 = vsel %vm294_vm0, %v1303_v11, 0.0  ;;  %v437_v42 = vadd.f32 %v436_v29, %v435_v33  ;;  %v452_v29 = vsel %vm294_vm0, %v393_v10, 0.0 }
  0x45   : > { %v345_v59 = vadd.f32 %v344_v46, %v343_v50  ;;  %v389_v46 = vmul.f32 %v1258_v12, %v1258_v12  ;;  %v439_v50 = vadd.f32 %v438_v38, %v437_v42 }
  0x47   : > { %v347_v9 = vadd.f32 %v346_v54, %v345_v59  ;;  %v442_v54 = vsel %vm294_vm0, %v388_v37, 0.0  ;;  %v441_v57 = vadd.f32 %v440_v47, %v439_v50  ;;  %v444_v59 = vsel %vm294_vm0, %v389_v46, 0.0 }
  0x49   : > { %v349_v19 = vadd.f32 %v348_v63, %v347_v9  ;;  %v443_v63 = vadd.f32 %v442_v54, %v441_v57 }
  0x4b   : > { %v351_v31 = vadd.f32 %v350_v14, %v349_v19  ;;  %v445_v9 = vadd.f32 %v444_v59, %v443_v63  ;;  %v448_v14 = vsel %vm294_vm0, %v391_v58, 0.0  ;;  %v394_v19 = vmul.f32 %v1296_v62, %v1296_v62 }
  0x4d   : > { %v353_v39 = vadd.f32 %v352_v26, %v351_v31  ;;  %v447_v18 = vadd.f32 %v446_v8, %v445_v9  ;;  %v454_v37 = vsel %vm294_vm0, %v394_v19, 0.0  ;;  %v470_v19 = vld [vmem:[%s1537_s1] sm:$0x1] }
  0x4f   : > { %v355_v48 = vadd.f32 %v354_v36, %v353_v39  ;;  %v449_v26 = vadd.f32 %v448_v14, %v447_v18  ;;  %v396_v36 = vmul.f32 %v1310_v22, %v1310_v22  ;;  %v456_v39 = vsel %vm294_vm0, %v395_v28, 0.0 }
  0x51   : > { %v357_v55 = vadd.f32 %v356_v44, %v355_v48  ;;  %v451_v33 = vadd.f32 %v450_v21, %v449_v26  ;;  %v458_v46 = vsel %vm294_vm0, %v396_v36, 0.0 }
  0x53   : > { %v358_v61 = vrot.slane %v357_v55, 4  ;;  %v453_v38 = vadd.f32 %v452_v29, %v451_v33  ;;  %v474_v29 = vld [vmem:[%s1538_s2] sm:$0x1] }
  0x55   : > { %v359_v17 = vadd.f32 %v358_v61, %v357_v55  ;;  %v455_v44 = vadd.f32 %v454_v37, %v453_v38 }
  0x57   : > { %v360_v31 = vrot.slane %v359_v17, 2  ;;  %v457_v47 = vadd.f32 %v456_v39, %v455_v44 }
  0x59   : > { %v361_v42 = vadd.f32 %v360_v31, %v359_v17  ;;  %v459_v50 = vadd.f32 %v458_v46, %v457_v47  ;;  %v478_v17 = vlaneseq }
  0x5b   : > { %v362_v48 = vrot.slane %v361_v42, 1  ;;  %v460_v51 = vrot.slane %v459_v50, 4  ;;  %v479_v18 = vshrl.u32 %v478_v17, 7 }
  0x5d   : > { %v363_v54 = vadd.f32 %v362_v48, %v361_v42  ;;  %v461_v55 = vadd.f32 %v460_v51, %v459_v50  ;;  %v480_v21 = vsub.s32 0, %v479_v18 }
  0x5f   : > { %v462_v57 = vrot.slane %v461_v55, 2  ;;  %v364_v58 = vmul.f32 0.00390625, %v363_v54 }
  0x61   : > { %v463_v59 = vadd.f32 %v462_v57, %v461_v55  ;;  %v467_v1 = vmul.f32 %v364_v58, %v364_v58 }
  0x63   : > { %v464_v61 = vrot.slane %v463_v59, 1 }
  0x65   : > { %v465_v63 = vadd.f32 %v464_v61, %v463_v59 }
  0x67   : > { %v466_v8 = vmul.f32 0.00390625, %v465_v63 }
  0x69   : > { %v468_v9 = vsub.f32 %v466_v8, %v467_v1 }
  0x6b   : > { %v469_v10 = vmax.f32 %v468_v9, 0.0 }
  0x6d   : > { %v471_v14 = vadd.f32 1e-05, %v469_v10 }
  0x6f   : > { %1036 = vrsqrt.f32 %v471_v14 }
  0x79   : > { %v1037_v26 = vpop.eup %1036 }
  0x7a   : > { %v473_v28 = vmul.f32 %v1037_v26, %v470_v19 }
  0x7c   : > { %v475_v31 = vmul.f32 %v473_v28, %v364_v58  ;;  %v1356_v33 = vrot.slane %v473_v28, %v480_v21 }
  0x7e   : > { %v476_v36 = vsub.f32 %v474_v29, %v475_v31  ;;  %v483_v37 = vmul.f32 %v1112_v2, %v1356_v33  ;;  %v484_v38 = vmul.f32 %v1114_v3, %v1356_v33  ;;  %v485_v39 = vmul.f32 %v1116_v4, %v1356_v33 }
  0x7f   : > { %v486_v42 = vmul.f32 %v1119_v6, %v1356_v33  ;;  %v487_v44 = vmul.f32 %v1121_v7, %v1356_v33  ;;  %v488_v46 = vmul.f32 %v1130_v13, %v1356_v33  ;;  %v489_v47 = vmul.f32 %v1134_v16, %v1356_v33 }
  0x80   : > { %v1372_v48 = vrot.slane %v476_v36, %v480_v21  ;;  %v490_v2 = vmul.f32 %v1139_v20, %v1356_v33  ;;  %v491_v3 = vmul.f32 %v1143_v23, %v1356_v33  ;;  %v492_v4 = vmul.f32 %v1148_v27, %v1356_v33 }
  0x81   : > { %v493_v6 = vmul.f32 %v1152_v30, %v1356_v33  ;;  %v494_v7 = vmul.f32 %v1156_v32, %v1356_v33  ;;  %v495_v13 = vmul.f32 %v1167_v40, %v1356_v33  ;;  %v496_v16 = vmul.f32 %v1173_v43, %v1356_v33 }
  0x82   : > { %v521_v20 = vadd.f32 %v1372_v48, %v483_v37  ;;  %v522_v23 = vadd.f32 %v1372_v48, %v484_v38  ;;  %v523_v50 = vadd.f32 %v1372_v48, %v485_v39  ;;  %v524_v27 = vadd.f32 %v1372_v48, %v486_v42 }
  0x83   : > { %v525_v30 = vadd.f32 %v1372_v48, %v487_v44  ;;  %v526_v51 = vadd.f32 %v1372_v48, %v488_v46  ;;  %v527_v32 = vadd.f32 %v1372_v48, %v489_v47  ;;  %v528_v54 = vadd.f32 %v1372_v48, %v490_v2 }
  0x84   : > { %v553_v40 = vmax.f32 %v521_v20, 0.0  ;;  %v554_v55 = vmax.f32 %v522_v23, 0.0  ;;  %v555_v57 = vmax.f32 %v523_v50, 0.0  ;;  %v556_v43 = vmax.f32 %v524_v27, 0.0 }
  0x85   : > { %v557_v58 = vmax.f32 %v525_v30, 0.0  ;;  %v558_v59 = vmax.f32 %v526_v51, 0.0  ;;  %v559_v61 = vmax.f32 %v527_v32, 0.0  ;;  %v560_v63 = vmax.f32 %v528_v54, 0.0 }
  0x86   : > { %v901_v1 = vpack.c.bf16 %v553_v40, %v553_v40  ;;  %v902_v8 = vpack.c.bf16 %v554_v55, %v554_v55  ;;  %v903_v9 = vpack.c.bf16 %v555_v57, %v555_v57  ;;  %v904_v10 = vpack.c.bf16 %v556_v43, %v556_v43 }
  0x87   : > { %v905_v14 = vpack.c.bf16 %v557_v58, %v557_v58  ;;  %v906_v17 = vpack.c.bf16 %v558_v59, %v558_v59  ;;  %v907_v18 = vpack.c.bf16 %v559_v61, %v559_v61  ;;  %v908_v19 = vpack.c.bf16 %v560_v63, %v560_v63 }
  0x88   : > { %714 = vst.msk [vmem:[%s1401_s26] sm:$0xf] %vm713_vm1, %v901_v1  ;;  %715 = vst.msk [vmem:[%s1401_s26 + $0x4] sm:$0xf] %vm713_vm1, %v902_v8  ;;  %v529_v21 = vadd.f32 %v1372_v48, %v491_v3  ;;  %v530_v26 = vadd.f32 %v1372_v48, %v492_v4  ;;  %v531_v28 = vadd.f32 %v1372_v48, %v493_v6 }
  0x89   : > { %716 = vst.msk [vmem:[%s1401_s26 + $0x8] sm:$0xf] %vm713_vm1, %v903_v9  ;;  %717 = vst.msk [vmem:[%s1401_s26 + $0xc] sm:$0xf] %vm713_vm1, %v904_v10  ;;  %v532_v29 = vadd.f32 %v1372_v48, %v494_v7  ;;  %v533_v31 = vadd.f32 %v1372_v48, %v495_v13  ;;  %v534_v36 = vadd.f32 %v1372_v48, %v496_v16 }
  0x8a   : > { %718 = vst.msk [vmem:[%s1401_s26 + $0x10] sm:$0xf] %vm713_vm1, %v905_v14  ;;  %719 = vst.msk [vmem:[%s1401_s26 + $0x14] sm:$0xf] %vm713_vm1, %v906_v17  ;;  %v497_v37 = vmul.f32 %v1183_v53, %v1356_v33  ;;  %v498_v38 = vmul.f32 %v1191_v60, %v1356_v33  ;;  %v561_v39 = vmax.f32 %v529_v21, 0.0  ;;  %v562_v42 = vmax.f32 %v530_v26, 0.0 }
  0x8b   : > { %720 = vst.msk [vmem:[%s1401_s26 + $0x18] sm:$0xf] %vm713_vm1, %v907_v18  ;;  %721 = vst.msk [vmem:[%s1401_s26 + $0x1c] sm:$0xf] %vm713_vm1, %v908_v19  ;;  %v563_v44 = vmax.f32 %v531_v28, 0.0  ;;  %v564_v46 = vmax.f32 %v532_v29, 0.0  ;;  %v499_v50 = vmul.f32 %v1198_v5, %v1356_v33  ;;  %v500_v27 = vmul.f32 %v1206_v15, %v1356_v33 }
  0x8c   : > { %v565_v47 = vmax.f32 %v533_v31, 0.0  ;;  %v566_v2 = vmax.f32 %v534_v36, 0.0  ;;  %v535_v3 = vadd.f32 %v1372_v48, %v497_v37  ;;  %v536_v4 = vadd.f32 %v1372_v48, %v498_v38 }
  0x8d   : > { %v909_v6 = vpack.c.bf16 %v561_v39, %v561_v39  ;;  %v910_v53 = vpack.c.bf16 %v562_v42, %v562_v42  ;;  %v911_v7 = vpack.c.bf16 %v563_v44, %v563_v44  ;;  %v912_v60 = vpack.c.bf16 %v564_v46, %v564_v46 }
  0x8e   : > { %v913_v13 = vpack.c.bf16 %v565_v47, %v565_v47  ;;  %v914_v16 = vpack.c.bf16 %v566_v2, %v566_v2  ;;  %v567_v20 = vmax.f32 %v535_v3, 0.0  ;;  %v568_v23 = vmax.f32 %v536_v4, 0.0 }
  0x8f   : > { %722 = vst.msk [vmem:[%s1401_s26 + $0x20] sm:$0xf] %vm713_vm1, %v909_v6  ;;  %723 = vst.msk [vmem:[%s1401_s26 + $0x24] sm:$0xf] %vm713_vm1, %v910_v53  ;;  %v501_v30 = vmul.f32 %v1213_v24, %v1356_v33  ;;  %v502_v51 = vmul.f32 %v1221_v34, %v1356_v33  ;;  %v503_v40 = vmul.f32 %v1228_v41, %v1356_v33 }
  0x90   : > { %724 = vst.msk [vmem:[%s1401_s26 + $0x28] sm:$0xf] %vm713_vm1, %v911_v7  ;;  %725 = vst.msk [vmem:[%s1401_s26 + $0x2c] sm:$0xf] %vm713_vm1, %v912_v60  ;;  %v915_v32 = vpack.c.bf16 %v567_v20, %v567_v20  ;;  %v916_v54 = vpack.c.bf16 %v568_v23, %v568_v23  ;;  %v504_v5 = vmul.f32 %v1236_v49, %v1356_v33 }
  0x91   : > { %726 = vst.msk [vmem:[%s1401_s26 + $0x30] sm:$0xf] %vm713_vm1, %v913_v13  ;;  %727 = vst.msk [vmem:[%s1401_s26 + $0x34] sm:$0xf] %vm713_vm1, %v914_v16  ;;  %v537_v15 = vadd.f32 %v1372_v48, %v499_v50  ;;  %v538_v55 = vadd.f32 %v1372_v48, %v500_v27  ;;  %v539_v24 = vadd.f32 %v1372_v48, %v501_v30 }
  0x92   : > { %v540_v34 = vadd.f32 %v1372_v48, %v502_v51  ;;  %728 = vst.msk [vmem:[%s1401_s26 + $0x38] sm:$0xf] %vm713_vm1, %v915_v32  ;;  %729 = vst.msk [vmem:[%s1401_s26 + $0x3c] sm:$0xf] %vm713_vm1, %v916_v54  ;;  %v541_v57 = vadd.f32 %v1372_v48, %v503_v40  ;;  %v542_v43 = vadd.f32 %v1372_v48, %v504_v5 }
  0x93   : > { %v505_v41 = vmul.f32 %v1243_v56, %v1356_v33  ;;  %v506_v49 = vmul.f32 %v1251_v0, %v1356_v33  ;;  %v569_v58 = vmax.f32 %v537_v15, 0.0  ;;  %v570_v59 = vmax.f32 %v538_v55, 0.0 }
  0x94   : > { %v571_v61 = vmax.f32 %v539_v24, 0.0  ;;  %v572_v63 = vmax.f32 %v540_v34, 0.0  ;;  %v573_v1 = vmax.f32 %v541_v57, 0.0  ;;  %v574_v8 = vmax.f32 %v542_v43, 0.0 }
  0x95   : > { %v543_v9 = vadd.f32 %v1372_v48, %v505_v41  ;;  %v544_v10 = vadd.f32 %v1372_v48, %v506_v49  ;;  %v917_v14 = vpack.c.bf16 %v569_v58, %v569_v58  ;;  %v918_v56 = vpack.c.bf16 %v570_v59, %v570_v59 }
  0x96   : > { %v919_v17 = vpack.c.bf16 %v571_v61, %v571_v61  ;;  %v920_v0 = vpack.c.bf16 %v572_v63, %v572_v63  ;;  %v921_v18 = vpack.c.bf16 %v573_v1, %v573_v1  ;;  %v922_v19 = vpack.c.bf16 %v574_v8, %v574_v8 }
  0x97   : > { %v575_v21 = vmax.f32 %v543_v9, 0.0  ;;  %v576_v26 = vmax.f32 %v544_v10, 0.0  ;;  %730 = vst.msk [vmem:[%s1401_s26 + $0x40] sm:$0xf] %vm713_vm1, %v917_v14  ;;  %731 = vst.msk [vmem:[%s1401_s26 + $0x44] sm:$0xf] %vm713_vm1, %v918_v56  ;;  %v507_v28 = vmul.f32 %v1258_v12, %v1356_v33  ;;  %v508_v29 = vmul.f32 %v1266_v25, %v1356_v33 }
  0x98   : > { %732 = vst.msk [vmem:[%s1401_s26 + $0x48] sm:$0xf] %vm713_vm1, %v919_v17  ;;  %733 = vst.msk [vmem:[%s1401_s26 + $0x4c] sm:$0xf] %vm713_vm1, %v920_v0  ;;  %v509_v31 = vmul.f32 %v1273_v35, %v1356_v33  ;;  %v510_v36 = vmul.f32 %v1281_v45, %v1356_v33  ;;  %v511_v39 = vmul.f32 %v1288_v52, %v1356_v33 }
  0x99   : > { %734 = vst.msk [vmem:[%s1401_s26 + $0x50] sm:$0xf] %vm713_vm1, %v921_v18  ;;  %735 = vst.msk [vmem:[%s1401_s26 + $0x54] sm:$0xf] %vm713_vm1, %v922_v19  ;;  %v923_v37 = vpack.c.bf16 %v575_v21, %v575_v21  ;;  %v924_v38 = vpack.c.bf16 %v576_v26, %v576_v26  ;;  %v512_v12 = vmul.f32 %v1296_v62, %v1356_v33 }
  0x9a   : > { %v545_v25 = vadd.f32 %v1372_v48, %v507_v28  ;;  %v546_v42 = vadd.f32 %v1372_v48, %v508_v29  ;;  %v547_v35 = vadd.f32 %v1372_v48, %v509_v31  ;;  %v548_v45 = vadd.f32 %v1372_v48, %v510_v36 }
  0x9b   : > { %736 = vst.msk [vmem:[%s1401_s26 + $0x58] sm:$0xf] %vm713_vm1, %v923_v37  ;;  %737 = vst.msk [vmem:[%s1401_s26 + $0x5c] sm:$0xf] %vm713_vm1, %v924_v38  ;;  %v549_v44 = vadd.f32 %v1372_v48, %v511_v39  ;;  %v550_v46 = vadd.f32 %v1372_v48, %v512_v12  ;;  %v513_v52 = vmul.f32 %v1303_v11, %v1356_v33 }
  0x9c   : > { %v514_v62 = vmul.f32 %v1310_v22, %v1356_v33  ;;  %v577_v47 = vmax.f32 %v545_v25, 0.0  ;;  %v578_v2 = vmax.f32 %v546_v42, 0.0  ;;  %v579_v3 = vmax.f32 %v547_v35, 0.0 }
  0x9d   : > { %v580_v4 = vmax.f32 %v548_v45, 0.0  ;;  %v581_v6 = vmax.f32 %v549_v44, 0.0  ;;  %v582_v53 = vmax.f32 %v550_v46, 0.0  ;;  %v551_v7 = vadd.f32 %v1372_v48, %v513_v52 }
  0x9e   : > { %v552_v60 = vadd.f32 %v1372_v48, %v514_v62  ;;  %v925_v11 = vpack.c.bf16 %v577_v47, %v577_v47  ;;  %v926_v13 = vpack.c.bf16 %v578_v2, %v578_v2  ;;  %v927_v22 = vpack.c.bf16 %v579_v3, %v579_v3 }
  0x9f   : > { %v928_v33 = vpack.c.bf16 %v580_v4, %v580_v4  ;;  %v929_v16 = vpack.c.bf16 %v581_v6, %v581_v6  ;;  %v930_v20 = vpack.c.bf16 %v582_v53, %v582_v53  ;;  %v583_v23 = vmax.f32 %v551_v7, 0.0 }
  0xa0   : > { %v584_v50 = vmax.f32 %v552_v60, 0.0  ;;  %738 = vst.msk [vmem:[%s1401_s26 + $0x60] sm:$0xf] %vm713_vm1, %v925_v11  ;;  %739 = vst.msk [vmem:[%s1401_s26 + $0x64] sm:$0xf] %vm713_vm1, %v926_v13 }
  0xa1   : > { %740 = vst.msk [vmem:[%s1401_s26 + $0x68] sm:$0xf] %vm713_vm1, %v927_v22  ;;  %741 = vst.msk [vmem:[%s1401_s26 + $0x6c] sm:$0xf] %vm713_vm1, %v928_v33  ;;  %v931_v48 = vpack.c.bf16 %v583_v23, %v583_v23 }
  0xa2   : > { %742 = vst.msk [vmem:[%s1401_s26 + $0x70] sm:$0xf] %vm713_vm1, %v929_v16  ;;  %743 = vst.msk [vmem:[%s1401_s26 + $0x74] sm:$0xf] %vm713_vm1, %v930_v20  ;;  %v932_v27 = vpack.c.bf16 %v584_v50, %v584_v50 }
  0xa3   : > { %744 = vst.msk [vmem:[%s1401_s26 + $0x78] sm:$0xf] %vm713_vm1, %v931_v48 }
  0xa4   : > { %745 = vst.msk [vmem:[%s1401_s26 + $0x7c] sm:$0xf] %vm713_vm1, %v932_v27 }
  0xa5 PF: > { %s13_s14 = sadd.s32 1, %s1060_s14   ;;  %s1540_s12 = smov %s1056_s13 }
  0xa6   : > { %p10_p5 = scmp.ge.s32.totalorder %s13_s14, 4   ;;  %s1541_s13 = smov %s1543_s15 }
  0xa8   :  { %12 = sbr.rel (!%p10_p5) target bundleno = 2 (0x2), region = 68 }

// kernel: generator_resnet_forward.19
= control target key start
LH: loop header
LB: loop body
LE: loop exit
PB: predicated region body
PF: predicated region fallthrough
CT: control target
= control target key end

     0   :  { %s2401_s12 = smov 0   ;;  %s2403_s13 = smov 0   ;;  %s2658_s0 = inlined_call_operand.vmem [shape: bf16[512,512], index: 0, kind: input, shape index: {}]   ;;  %s2659_s1 = inlined_call_operand.vmem [shape: bf16[512,128], index: 1, kind: input, shape index: {}]   ;;  %s2660_s2 = inlined_call_operand.vmem [shape: f32[1,128], index: 2, kind: input, shape index: {}]   ;;  %s2661_s3 = inlined_call_operand.vmem [shape: bf16[512,128], index: 3, kind: output, shape index: {}]  }
   0x1   :  { %s2405_s14 = smov 0  }
   0x2 LB: > { %s32_s15 = sadd.s32 1, %s2375_s13  ;;  %p1716_p0 = scmp.ge.s32.totalorder %s2379_s14, 1  ;;  %s2379_s14 = sphi %s2405_s14, %s13_s14   ;;  %s2375_s13 = sphi %s2403_s13, %s2663_s13   ;;  %s2371_s12 = sphi %s2401_s12, %s2662_s12  }
   0x3   : > { %p34_p1 = scmp.ge.s32.totalorder %s32_s15, 2  ;;  %p191_p2 = scmp.lt.s32.totalorder %s2379_s14, 3 }
   0x5   : > { %s2665_s15 = smov (%p34_p1, %s32_s15), 0  ;;  %p192_p3 = pnand %p1716_p0, %p191_p2 }
   0x6   : > { %v2229_v0 = vld [vmem:[%s2659_s1 + $0x40] sm:$0xff] (!%p192_p3)   ;;  %v2233_v4 = vld [vmem:[%s2659_s1 + $0x48] sm:$0xff] (!%p192_p3)   ;;  %v2237_v8 = vld [vmem:[%s2659_s1 + $0x50] sm:$0xff] (!%p192_p3)   ;;  %s1717_s25 = sshll.u32 (!%p192_p3), %s2371_s12, 5 }
   0x7   : > { %195 = sbr.rel (%p192_p3) target bundleno = 385 (0x181), region = 32  ;;  %v2230_v1 = vld [vmem:[%s2659_s1 + $0xc0] sm:$0xff] (!%p192_p3)   ;;  %1981 = vmatprep.subr.bf16.mxu0 (!%p192_p3), %v2229_v0  ;;  %v2234_v5 = vld [vmem:[%s2659_s1 + $0xc8] sm:$0xff] (!%p192_p3)   ;;  %v2238_v9 = vld [vmem:[%s2659_s1 + $0xd0] sm:$0xff] (!%p192_p3)   ;;  %p236_p4 = scmp.lt.s32.totalorder (!%p192_p3), %s1717_s25, 63 }
   0x8   : > { %v2231_v2 = vld [vmem:[%s2659_s1] sm:$0xff] (!%p192_p3)   ;;  %2093 = vmatprep.subr.bf16.mxu1 (!%p192_p3), %v2230_v1  ;;  %v2235_v6 = vld [vmem:[%s2659_s1 + $0x8] sm:$0xff] (!%p192_p3)   ;;  %v2239_v10 = vld [vmem:[%s2659_s1 + $0x10] sm:$0xff] (!%p192_p3)  }
   0x9   : > { %v2232_v3 = vld [vmem:[%s2659_s1 + $0x80] sm:$0xff] (!%p192_p3)   ;;  %1982 = vmatpush3.bf16.msra.mxu0 (!%p192_p3), %v2231_v2  ;;  %v2236_v7 = vld [vmem:[%s2659_s1 + $0x88] sm:$0xff] (!%p192_p3)   ;;  %v2240_v11 = vld [vmem:[%s2659_s1 + $0x90] sm:$0xff] (!%p192_p3)  }
   0xa   : > { %2094 = vmatpush3.bf16.msra.mxu1 (!%p192_p3), %v2232_v3  ;;  %1983 = vmatprep.subr.bf16.mxu0 (!%p192_p3), %v2233_v4  ;;  %v2241_v12 = vld [vmem:[%s2659_s1 + $0x58] sm:$0xff] (!%p192_p3)   ;;  %v2245_v16 = vld [vmem:[%s2659_s1 + $0x60] sm:$0xff] (!%p192_p3)   ;;  %v2249_v20 = vld [vmem:[%s2659_s1 + $0x68] sm:$0xff] (!%p192_p3)  }
   0xb   : > { %2095 = vmatprep.subr.bf16.mxu1 (!%p192_p3), %v2234_v5  ;;  %v2242_v13 = vld [vmem:[%s2659_s1 + $0xd8] sm:$0xff] (!%p192_p3)   ;;  %v2246_v17 = vld [vmem:[%s2659_s1 + $0xe0] sm:$0xff] (!%p192_p3)   ;;  %v2250_v21 = vld [vmem:[%s2659_s1 + $0xe8] sm:$0xff] (!%p192_p3)  }
   0xc   : > { %v2243_v14 = vld [vmem:[%s2659_s1 + $0x18] sm:$0xff] (!%p192_p3)   ;;  %v2247_v18 = vld [vmem:[%s2659_s1 + $0x20] sm:$0xff] (!%p192_p3)   ;;  %v2251_v22 = vld [vmem:[%s2659_s1 + $0x28] sm:$0xff] (!%p192_p3)  }
   0xd   : > { %1984 = vmatpush3.bf16.msra.mxu0 (!%p192_p3), %v2235_v6  ;;  %v2244_v15 = vld [vmem:[%s2659_s1 + $0x98] sm:$0xff] (!%p192_p3)   ;;  %v2248_v19 = vld [vmem:[%s2659_s1 + $0xa0] sm:$0xff] (!%p192_p3)   ;;  %v2252_v23 = vld [vmem:[%s2659_s1 + $0xa8] sm:$0xff] (!%p192_p3)  }
   0xe   : > { %2096 = vmatpush3.bf16.msra.mxu1 %v2236_v7  ;;  %1985 = vmatprep.subr.bf16.mxu0 %v2237_v8  ;;  %s2667_s25 = smov (!%p236_p4, %s1717_s25), 63  ;;  %v2253_v24 = vld [vmem:[%s2659_s1 + $0x70] sm:$0xff]   ;;  %v2257_v28 = vld [vmem:[%s2659_s1 + $0x78] sm:$0xff]  }
   0xf   : > { %2097 = vmatprep.subr.bf16.mxu1 %v2238_v9  ;;  %v2254_v25 = vld [vmem:[%s2659_s1 + $0xf0] sm:$0xff]   ;;  %s1853_s24 = sshll.u32 %s2667_s25, 4  ;;  %v2258_v29 = vld [vmem:[%s2659_s1 + $0xf8] sm:$0xff]   ;;  %s1721_s17 = sshll.u32 %s2667_s25, 2 }
  0x10   : > { %v2255_v26 = vld [vmem:[%s2659_s1 + $0x30] sm:$0xff]   ;;  %s2518_s12 = scalar_lea.vmem %s2658_s0, %s1853_s24  ;;  %v2259_v30 = vld [vmem:[%s2659_s1 + $0x38] sm:$0xff]   ;;  %s2601_s20 = scalar_lea.vmem %s2661_s3, %s1721_s17 }
  0x11   : > { %1986 = vmatpush3.bf16.msra.mxu0 %v2239_v10  ;;  %v2256_v27 = vld [vmem:[%s2659_s1 + $0xb0] sm:$0xff]   ;;  %v2260_v31 = vld [vmem:[%s2659_s1 + $0xb8] sm:$0xff]  }
  0x12   : > { %2098 = vmatpush3.bf16.msra.mxu1 %v2240_v11  ;;  %1987 = vmatprep.subr.bf16.mxu0 %v2241_v12  ;;  %v2261_v32 = vld [vmem:[%s2518_s12] ss:$16 sps:$4 sm:$0xff]   ;;  %v2263_v33 = vld [vmem:[%s2518_s12 + $0x4] ss:$16 sps:$4 sm:$0xff]   ;;  %v2264_v34 = vld [vmem:[%s2518_s12 + $0x8] ss:$16 sps:$4 sm:$0xff]  }
  0x13   : > { %2099 = vmatprep.subr.bf16.mxu1 %v2242_v13  ;;  %v2266_v35 = vld [vmem:[%s2518_s12 + $0xc] ss:$16 sps:$4 sm:$0xff]   ;;  %1008 = vmatprep.mubr.bf16.mxu0 %v2263_v33  ;;  %v2267_v36 = vld [vmem:[%s2518_s12 + $0x24] ss:$16 sps:$4 sm:$0xff]   ;;  %v2271_v38 = vld [vmem:[%s2518_s12 + $0x20] ss:$16 sps:$4 sm:$0xff]  }
  0x14   : > { %1169 = vmatprep.mubr.bf16.mxu1 %v2266_v35  ;;  %v2269_v37 = vld [vmem:[%s2518_s12 + $0x2c] ss:$16 sps:$4 sm:$0xff]   ;;  %v2272_v39 = vld [vmem:[%s2518_s12 + $0x28] ss:$16 sps:$4 sm:$0xff]   ;;  %v2273_v40 = vld [vmem:[%s2518_s12 + $0x44] ss:$16 sps:$4 sm:$0xff]  }
  0x15   : > { %1988 = vmatpush3.bf16.msra.mxu0 %v2243_v14  ;;  %v2275_v41 = vld [vmem:[%s2518_s12 + $0x4c] ss:$16 sps:$4 sm:$0xff]   ;;  %v2277_v42 = vld [vmem:[%s2518_s12 + $0x40] ss:$16 sps:$4 sm:$0xff]   ;;  %v2278_v43 = vld [vmem:[%s2518_s12 + $0x48] ss:$16 sps:$4 sm:$0xff]  }
  0x16   : > { %2100 = vmatpush3.bf16.msra.mxu1 %v2244_v15  ;;  %1989 = vmatprep.subr.bf16.mxu0 %v2245_v16  ;;  %v2279_v44 = vld [vmem:[%s2518_s12 + $0x64] ss:$16 sps:$4 sm:$0xff]   ;;  %v2281_v45 = vld [vmem:[%s2518_s12 + $0x6c] ss:$16 sps:$4 sm:$0xff]   ;;  %v2283_v46 = vld [vmem:[%s2518_s12 + $0x60] ss:$16 sps:$4 sm:$0xff]  }
  0x17   : > { %2101 = vmatprep.subr.bf16.mxu1 %v2246_v17  ;;  %v2284_v47 = vld [vmem:[%s2518_s12 + $0x68] ss:$16 sps:$4 sm:$0xff]   ;;  %v2285_v48 = vld [vmem:[%s2518_s12 + $0x84] ss:$16 sps:$4 sm:$0xff]   ;;  %v2287_v49 = vld [vmem:[%s2518_s12 + $0x8c] ss:$16 sps:$4 sm:$0xff]  }
  0x18   : > { %v2289_v50 = vld [vmem:[%s2518_s12 + $0x80] ss:$16 sps:$4 sm:$0xff]   ;;  %v2290_v51 = vld [vmem:[%s2518_s12 + $0x88] ss:$16 sps:$4 sm:$0xff]   ;;  %v2291_v52 = vld [vmem:[%s2518_s12 + $0xa4] ss:$16 sps:$4 sm:$0xff]  }
  0x19   : > { %1990 = vmatpush3.bf16.msra.mxu0 %v2247_v18  ;;  %v2293_v53 = vld [vmem:[%s2518_s12 + $0xac] ss:$16 sps:$4 sm:$0xff]   ;;  %v2295_v54 = vld [vmem:[%s2518_s12 + $0xa0] ss:$16 sps:$4 sm:$0xff]   ;;  %v2296_v55 = vld [vmem:[%s2518_s12 + $0xa8] ss:$16 sps:$4 sm:$0xff]  }
  0x1a   : > { %2102 = vmatpush3.bf16.msra.mxu1 %v2248_v19  ;;  %1991 = vmatprep.subr.bf16.mxu0 %v2249_v20  ;;  %v2297_v56 = vld [vmem:[%s2518_s12 + $0xc4] ss:$16 sps:$4 sm:$0xff]   ;;  %v2299_v57 = vld [vmem:[%s2518_s12 + $0xcc] ss:$16 sps:$4 sm:$0xff]   ;;  %v2301_v58 = vld [vmem:[%s2518_s12 + $0xc0] ss:$16 sps:$4 sm:$0xff]  }
  0x1b   : > { %2103 = vmatprep.subr.bf16.mxu1 %v2250_v21  ;;  %v2302_v59 = vld [vmem:[%s2518_s12 + $0xc8] ss:$16 sps:$4 sm:$0xff]   ;;  %v2303_v60 = vld [vmem:[%s2518_s12 + $0xe4] ss:$16 sps:$4 sm:$0xff]   ;;  %v2305_v61 = vld [vmem:[%s2518_s12 + $0xec] ss:$16 sps:$4 sm:$0xff]  }
  0x1c   : > { %v2307_v62 = vld [vmem:[%s2518_s12 + $0xe0] ss:$16 sps:$4 sm:$0xff]   ;;  %v2308_v63 = vld [vmem:[%s2518_s12 + $0xe8] ss:$16 sps:$4 sm:$0xff]   ;;  %v2309_v0 = vld [vmem:[%s2518_s12 + $0x104] ss:$16 sps:$4 sm:$0xff]  }
  0x1d   : > { %1992 = vmatpush3.bf16.msra.mxu0 %v2251_v22  ;;  %v2311_v1 = vld [vmem:[%s2518_s12 + $0x10c] ss:$16 sps:$4 sm:$0xff]   ;;  %v2313_v2 = vld [vmem:[%s2518_s12 + $0x100] ss:$16 sps:$4 sm:$0xff]   ;;  %v2314_v3 = vld [vmem:[%s2518_s12 + $0x108] ss:$16 sps:$4 sm:$0xff]  }
  0x1e   : > { %2104 = vmatpush3.bf16.msra.mxu1 %v2252_v23  ;;  %1993 = vmatprep.subr.bf16.mxu0 %v2253_v24  ;;  %v2315_v4 = vld [vmem:[%s2518_s12 + $0x124] ss:$16 sps:$4 sm:$0xff]   ;;  %v2317_v5 = vld [vmem:[%s2518_s12 + $0x12c] ss:$16 sps:$4 sm:$0xff]   ;;  %v2319_v6 = vld [vmem:[%s2518_s12 + $0x120] ss:$16 sps:$4 sm:$0xff]  }
  0x1f   : > { %2105 = vmatprep.subr.bf16.mxu1 %v2254_v25  ;;  %v2320_v7 = vld [vmem:[%s2518_s12 + $0x128] ss:$16 sps:$4 sm:$0xff]   ;;  %v2321_v8 = vld [vmem:[%s2518_s12 + $0x144] ss:$16 sps:$4 sm:$0xff]   ;;  %v2323_v9 = vld [vmem:[%s2518_s12 + $0x14c] ss:$16 sps:$4 sm:$0xff]  }
  0x20   : > { %v2325_v10 = vld [vmem:[%s2518_s12 + $0x140] ss:$16 sps:$4 sm:$0xff]   ;;  %v2326_v11 = vld [vmem:[%s2518_s12 + $0x148] ss:$16 sps:$4 sm:$0xff]   ;;  %v2327_v12 = vld [vmem:[%s2518_s12 + $0x164] ss:$16 sps:$4 sm:$0xff]  }
  0x21   : > { %1994 = vmatpush3.bf16.msra.mxu0 %v2255_v26  ;;  %v2329_v13 = vld [vmem:[%s2518_s12 + $0x16c] ss:$16 sps:$4 sm:$0xff]   ;;  %v2331_v14 = vld [vmem:[%s2518_s12 + $0x160] ss:$16 sps:$4 sm:$0xff]   ;;  %v2332_v15 = vld [vmem:[%s2518_s12 + $0x168] ss:$16 sps:$4 sm:$0xff]  }
  0x22   : > { %2106 = vmatpush3.bf16.msra.mxu1 %v2256_v27  ;;  %1995 = vmatprep.subr.bf16.mxu0 %v2257_v28  ;;  %v2333_v16 = vld [vmem:[%s2518_s12 + $0x184] ss:$16 sps:$4 sm:$0xff]   ;;  %v2335_v17 = vld [vmem:[%s2518_s12 + $0x18c] ss:$16 sps:$4 sm:$0xff]   ;;  %v2337_v18 = vld [vmem:[%s2518_s12 + $0x180] ss:$16 sps:$4 sm:$0xff]  }
  0x23   : > { %2107 = vmatprep.subr.bf16.mxu1 %v2258_v29  ;;  %v2338_v19 = vld [vmem:[%s2518_s12 + $0x188] ss:$16 sps:$4 sm:$0xff]   ;;  %v2339_v20 = vld [vmem:[%s2518_s12 + $0x1a4] ss:$16 sps:$4 sm:$0xff]   ;;  %v2341_v21 = vld [vmem:[%s2518_s12 + $0x1ac] ss:$16 sps:$4 sm:$0xff]  }
  0x24   : > { %v2343_v22 = vld [vmem:[%s2518_s12 + $0x1a0] ss:$16 sps:$4 sm:$0xff]   ;;  %v2344_v23 = vld [vmem:[%s2518_s12 + $0x1a8] ss:$16 sps:$4 sm:$0xff]   ;;  %v2345_v24 = vld [vmem:[%s2518_s12 + $0x1c4] ss:$16 sps:$4 sm:$0xff]  }
  0x25   : > { %1996 = vmatpush3.bf16.msra.mxu0 %v2259_v30  ;;  %v2347_v25 = vld [vmem:[%s2518_s12 + $0x1cc] ss:$16 sps:$4 sm:$0xff]   ;;  %v2349_v26 = vld [vmem:[%s2518_s12 + $0x1c0] ss:$16 sps:$4 sm:$0xff]   ;;  %v2350_v27 = vld [vmem:[%s2518_s12 + $0x1c8] ss:$16 sps:$4 sm:$0xff]  }
  0x26   : > { %2108 = vmatpush3.bf16.msra.mxu1 %v2260_v31  ;;  %v2351_v28 = vld [vmem:[%s2518_s12 + $0x1e4] ss:$16 sps:$4 sm:$0xff]   ;;  %v2353_v29 = vld [vmem:[%s2518_s12 + $0x1ec] ss:$16 sps:$4 sm:$0xff]   ;;  %v2355_v30 = vld [vmem:[%s2518_s12 + $0x1e0] ss:$16 sps:$4 sm:$0xff]  }
  0x27   : > { %v2356_v31 = vld [vmem:[%s2518_s12 + $0x1e8] ss:$16 sps:$4 sm:$0xff]  }
  0x28   : > { %1009 = vmatmul.mubr.bf16.vlgmr.msra.gmra.mrb[0].mxu0 %v2261_v32 }
  0x29   : > { %1170 = vmatmul.mubr.bf16.vlgmr.msra.gmra.mrb[0].mxu1 %v2264_v34  ;;  %1016 = vmatprep.mubr.bf16.mxu0 %v2267_v36 }
  0x2a   : > { %1177 = vmatprep.mubr.bf16.mxu1 %v2269_v37 }
  0x30   : > { %1017 = vmatmul.mubr.bf16.gmra.mrb[4].mxu0 %v2271_v38 }
  0x31   : > { %1178 = vmatmul.mubr.bf16.gmra.mrb[4].mxu1 %v2272_v39  ;;  %1024 = vmatprep.mubr.bf16.mxu0 %v2273_v40 }
  0x32   : > { %1185 = vmatprep.mubr.bf16.mxu1 %v2275_v41 }
  0x38   : > { %1025 = vmatmul.mubr.bf16.gmra.mrb[8].mxu0 %v2277_v42 }
  0x39   : > { %1186 = vmatmul.mubr.bf16.gmra.mrb[8].mxu1 %v2278_v43  ;;  %1032 = vmatprep.mubr.bf16.mxu0 %v2279_v44 }
  0x3a   : > { %1193 = vmatprep.mubr.bf16.mxu1 %v2281_v45  ;;  %v2593_v45 = vld [vmem:[%s2660_s2] ss:$0 sm:$0xff] }
  0x40   : > { %1033 = vmatmul.mubr.bf16.gmra.mrb[12].mxu0 %v2283_v46 }
  0x41   : > { %1194 = vmatmul.mubr.bf16.gmra.mrb[12].mxu1 %v2284_v47  ;;  %1040 = vmatprep.mubr.bf16.mxu0 %v2285_v48 }
  0x42   : > { %1201 = vmatprep.mubr.bf16.mxu1 %v2287_v49 }
  0x48   : > { %1041 = vmatmul.mubr.bf16.gmra.mrb[16].mxu0 %v2289_v50 }
  0x49   : > { %1202 = vmatmul.mubr.bf16.gmra.mrb[16].mxu1 %v2290_v51  ;;  %1048 = vmatprep.mubr.bf16.mxu0 %v2291_v52 }
  0x4a   : > { %1209 = vmatprep.mubr.bf16.mxu1 %v2293_v53 }
  0x50   : > { %1049 = vmatmul.mubr.bf16.gmra.mrb[20].mxu0 %v2295_v54 }
  0x51   : > { %1210 = vmatmul.mubr.bf16.gmra.mrb[20].mxu1 %v2296_v55  ;;  %1056 = vmatprep.mubr.bf16.mxu0 %v2297_v56 }
  0x52   : > { %1217 = vmatprep.mubr.bf16.mxu1 %v2299_v57 }
  0x58   : > { %1057 = vmatmul.mubr.bf16.gmra.mrb[24].mxu0 %v2301_v58 }
  0x59   : > { %1218 = vmatmul.mubr.bf16.gmra.mrb[24].mxu1 %v2302_v59  ;;  %1064 = vmatprep.mubr.bf16.mxu0 %v2303_v60 }
  0x5a   : > { %1225 = vmatprep.mubr.bf16.mxu1 %v2305_v61 }
  0x60   : > { %1065 = vmatmul.mubr.bf16.gmra.mrb[28].mxu0 %v2307_v62 }
  0x61   : > { %1226 = vmatmul.mubr.bf16.gmra.mrb[28].mxu1 %v2308_v63  ;;  %1072 = vmatprep.mubr.bf16.mxu0 %v2309_v0 }
  0x62   : > { %1233 = vmatprep.mubr.bf16.mxu1 %v2311_v1 }
  0x68   : > { %1073 = vmatmul.mubr.bf16.gmra.mrb[32].mxu0 %v2313_v2 }
  0x69   : > { %1234 = vmatmul.mubr.bf16.gmra.mrb[32].mxu1 %v2314_v3  ;;  %1080 = vmatprep.mubr.bf16.mxu0 %v2315_v4 }
  0x6a   : > { %1241 = vmatprep.mubr.bf16.mxu1 %v2317_v5 }
  0x70   : > { %1081 = vmatmul.mubr.bf16.gmra.mrb[36].mxu0 %v2319_v6 }
  0x71   : > { %1242 = vmatmul.mubr.bf16.gmra.mrb[36].mxu1 %v2320_v7  ;;  %1088 = vmatprep.mubr.bf16.mxu0 %v2321_v8 }
  0x72   : > { %1249 = vmatprep.mubr.bf16.mxu1 %v2323_v9 }
  0x78   : > { %1089 = vmatmul.mubr.bf16.gmra.mrb[40].mxu0 %v2325_v10 }
  0x79   : > { %1250 = vmatmul.mubr.bf16.gmra.mrb[40].mxu1 %v2326_v11  ;;  %1096 = vmatprep.mubr.bf16.mxu0 %v2327_v12 }
  0x7a   : > { %1257 = vmatprep.mubr.bf16.mxu1 %v2329_v13 }
  0x80   : > { %1097 = vmatmul.mubr.bf16.gmra.mrb[44].mxu0 %v2331_v14 }
  0x81   : > { %1258 = vmatmul.mubr.bf16.gmra.mrb[44].mxu1 %v2332_v15  ;;  %1104 = vmatprep.mubr.bf16.mxu0 %v2333_v16 }
  0x82   : > { %1265 = vmatprep.mubr.bf16.mxu1 %v2335_v17 }
  0x88   : > { %1105 = vmatmul.mubr.bf16.gmra.mrb[48].mxu0 %v2337_v18 }
  0x89   : > { %1266 = vmatmul.mubr.bf16.gmra.mrb[48].mxu1 %v2338_v19  ;;  %1112 = vmatprep.mubr.bf16.mxu0 %v2339_v20 }
  0x8a   : > { %1273 = vmatprep.mubr.bf16.mxu1 %v2341_v21 }
  0x90   : > { %1113 = vmatmul.mubr.bf16.gmra.mrb[52].mxu0 %v2343_v22 }
  0x91   : > { %1274 = vmatmul.mubr.bf16.gmra.mrb[52].mxu1 %v2344_v23  ;;  %1120 = vmatprep.mubr.bf16.mxu0 %v2345_v24 }
  0x92   : > { %1281 = vmatprep.mubr.bf16.mxu1 %v2347_v25 }
  0x98   : > { %1121 = vmatmul.mubr.bf16.gmra.mrb[56].mxu0 %v2349_v26 }
  0x99   : > { %1282 = vmatmul.mubr.bf16.gmra.mrb[56].mxu1 %v2350_v27  ;;  %1128 = vmatprep.mubr.bf16.mxu0 %v2351_v28 }
  0x9a   : > { %1289 = vmatprep.mubr.bf16.mxu1 %v2353_v29 }
  0xa0   : > { %1129 = vmatmul.mubr.bf16.gmra.mrb[60].mxu0 %v2355_v30 }
  0xa1   : > { %1290 = vmatmul.mubr.bf16.gmra.mrb[60].mxu1 %v2356_v31 }
  0xfb   : > { %v1997_v32 = vpop.f32.mrb[0].mxu0 }
  0xfc   : > { %v2109_v33 = vpop.f32.mrb[0].mxu1  ;;  %v1998_v34 = vpop.f32.mrb[1].mxu0 }
  0xfd   : > { %v1999_v35 = vadd.f32 %v1998_v34, %v1997_v32  ;;  %v2110_v36 = vpop.f32.mrb[1].mxu1  ;;  %v2000_v37 = vpop.f32.mrb[2].mxu0 }
  0xfe   : > { %v2111_v38 = vadd.f32 %v2110_v36, %v2109_v33  ;;  %v2112_v39 = vpop.f32.mrb[2].mxu1  ;;  %v2001_v40 = vpop.f32.mrb[3].mxu0 }
  0xff   : > { %v2002_v41 = vadd.f32 %v2001_v40, %v2000_v37  ;;  %v2113_v42 = vpop.f32.mrb[3].mxu1 }
 0x100   : > { %v1172_v43 = vadd.f32 %v2111_v38, %v1999_v35  ;;  %v2114_v44 = vadd.f32 %v2113_v42, %v2112_v39 }
 0x102   : > { %v1175_v46 = vadd.f32 %v2114_v44, %v2002_v41  ;;  %v1404_v48 = vadd.f32 %v2593_v45, %v1172_v43 }
 0x103   : > { %v2003_v47 = vpop.f32.mrb[4].mxu0 }
 0x104   : > { %v1405_v49 = vadd.f32 %v2593_v45, %v1175_v46  ;;  %v2115_v50 = vpop.f32.mrb[4].mxu1  ;;  %v2004_v51 = vpop.f32.mrb[5].mxu0 }
 0x105   : > { %v2005_v52 = vadd.f32 %v2004_v51, %v2003_v47  ;;  %v2116_v53 = vpop.f32.mrb[5].mxu1  ;;  %v2006_v54 = vpop.f32.mrb[6].mxu0 }
 0x106   : > { %v1889_v55 = vpack.c.bf16 %v1405_v49, %v1404_v48  ;;  %v2117_v56 = vadd.f32 %v2116_v53, %v2115_v50  ;;  %v2118_v57 = vpop.f32.mrb[6].mxu1  ;;  %v2007_v58 = vpop.f32.mrb[7].mxu0 }
 0x107   : > { %v2008_v59 = vadd.f32 %v2007_v58, %v2006_v54  ;;  %v2119_v60 = vpop.f32.mrb[7].mxu1 }
 0x108   : > { %1890 = vst [vmem:[%s2601_s20] sm:$0xff] %v1889_v55   ;;  %v1180_v61 = vadd.f32 %v2117_v56, %v2005_v52  ;;  %v2120_v62 = vadd.f32 %v2119_v60, %v2118_v57 }
 0x10a   : > { %v1183_v63 = vadd.f32 %v2120_v62, %v2008_v59  ;;  %v1406_v1 = vadd.f32 %v2593_v45, %v1180_v61 }
 0x10b   : > { %v2009_v0 = vpop.f32.mrb[8].mxu0 }
 0x10c   : > { %v1407_v2 = vadd.f32 %v2593_v45, %v1183_v63  ;;  %v2121_v3 = vpop.f32.mrb[8].mxu1  ;;  %v2010_v4 = vpop.f32.mrb[9].mxu0 }
 0x10d   : > { %v2011_v5 = vadd.f32 %v2010_v4, %v2009_v0  ;;  %v2122_v6 = vpop.f32.mrb[9].mxu1  ;;  %v2012_v7 = vpop.f32.mrb[10].mxu0 }
 0x10e   : > { %v1894_v8 = vpack.c.bf16 %v1407_v2, %v1406_v1  ;;  %v2123_v9 = vadd.f32 %v2122_v6, %v2121_v3  ;;  %v2124_v10 = vpop.f32.mrb[10].mxu1  ;;  %v2013_v11 = vpop.f32.mrb[11].mxu0 }
 0x10f   : > { %v2014_v12 = vadd.f32 %v2013_v11, %v2012_v7  ;;  %v2125_v13 = vpop.f32.mrb[11].mxu1 }
 0x110   : > { %1966 = vst [vmem:[%s2601_s20 + $0x8] sm:$0xff] %v1894_v8   ;;  %v1188_v14 = vadd.f32 %v2123_v9, %v2011_v5  ;;  %v2126_v15 = vadd.f32 %v2125_v13, %v2124_v10 }
 0x112   : > { %v1191_v16 = vadd.f32 %v2126_v15, %v2014_v12  ;;  %v1408_v18 = vadd.f32 %v2593_v45, %v1188_v14 }
 0x113   : > { %v2015_v17 = vpop.f32.mrb[12].mxu0 }
 0x114   : > { %v1409_v19 = vadd.f32 %v2593_v45, %v1191_v16  ;;  %v2127_v20 = vpop.f32.mrb[12].mxu1  ;;  %v2016_v21 = vpop.f32.mrb[13].mxu0 }
 0x115   : > { %v2017_v22 = vadd.f32 %v2016_v21, %v2015_v17  ;;  %v2128_v23 = vpop.f32.mrb[13].mxu1  ;;  %v2018_v24 = vpop.f32.mrb[14].mxu0 }
 0x116   : > { %v1899_v25 = vpack.c.bf16 %v1409_v19, %v1408_v18  ;;  %v2129_v26 = vadd.f32 %v2128_v23, %v2127_v20  ;;  %v2130_v27 = vpop.f32.mrb[14].mxu1  ;;  %v2019_v28 = vpop.f32.mrb[15].mxu0 }
 0x117   : > { %v2020_v29 = vadd.f32 %v2019_v28, %v2018_v24  ;;  %v2131_v30 = vpop.f32.mrb[15].mxu1 }
 0x118   : > { %1967 = vst [vmem:[%s2601_s20 + $0x10] sm:$0xff] %v1899_v25   ;;  %v1196_v31 = vadd.f32 %v2129_v26, %v2017_v22  ;;  %v2132_v32 = vadd.f32 %v2131_v30, %v2130_v27 }
 0x11a   : > { %v1199_v33 = vadd.f32 %v2132_v32, %v2020_v29  ;;  %v1410_v35 = vadd.f32 %v2593_v45, %v1196_v31 }
 0x11b   : > { %v2021_v34 = vpop.f32.mrb[16].mxu0 }
 0x11c   : > { %v1411_v36 = vadd.f32 %v2593_v45, %v1199_v33  ;;  %v2133_v37 = vpop.f32.mrb[16].mxu1  ;;  %v2022_v38 = vpop.f32.mrb[17].mxu0 }
 0x11d   : > { %v2023_v39 = vadd.f32 %v2022_v38, %v2021_v34  ;;  %v2134_v40 = vpop.f32.mrb[17].mxu1  ;;  %v2024_v41 = vpop.f32.mrb[18].mxu0 }
 0x11e   : > { %v1904_v42 = vpack.c.bf16 %v1411_v36, %v1410_v35  ;;  %v2135_v43 = vadd.f32 %v2134_v40, %v2133_v37  ;;  %v2136_v44 = vpop.f32.mrb[18].mxu1  ;;  %v2025_v46 = vpop.f32.mrb[19].mxu0 }
 0x11f   : > { %v2026_v47 = vadd.f32 %v2025_v46, %v2024_v41  ;;  %v2137_v48 = vpop.f32.mrb[19].mxu1 }
 0x120   : > { %1968 = vst [vmem:[%s2601_s20 + $0x18] sm:$0xff] %v1904_v42   ;;  %v1204_v49 = vadd.f32 %v2135_v43, %v2023_v39  ;;  %v2138_v50 = vadd.f32 %v2137_v48, %v2136_v44 }
 0x122   : > { %v1207_v51 = vadd.f32 %v2138_v50, %v2026_v47  ;;  %v1412_v53 = vadd.f32 %v2593_v45, %v1204_v49 }
 0x123   : > { %v2027_v52 = vpop.f32.mrb[20].mxu0 }
 0x124   : > { %v1413_v54 = vadd.f32 %v2593_v45, %v1207_v51  ;;  %v2139_v55 = vpop.f32.mrb[20].mxu1  ;;  %v2028_v56 = vpop.f32.mrb[21].mxu0 }
 0x125   : > { %v2029_v57 = vadd.f32 %v2028_v56, %v2027_v52  ;;  %v2140_v58 = vpop.f32.mrb[21].mxu1  ;;  %v2030_v59 = vpop.f32.mrb[22].mxu0 }
 0x126   : > { %v1909_v60 = vpack.c.bf16 %v1413_v54, %v1412_v53  ;;  %v2141_v61 = vadd.f32 %v2140_v58, %v2139_v55  ;;  %v2142_v62 = vpop.f32.mrb[22].mxu1  ;;  %v2031_v63 = vpop.f32.mrb[23].mxu0 }
 0x127   : > { %v2032_v0 = vadd.f32 %v2031_v63, %v2030_v59  ;;  %v2143_v1 = vpop.f32.mrb[23].mxu1 }
 0x128   : > { %1969 = vst [vmem:[%s2601_s20 + $0x20] sm:$0xff] %v1909_v60   ;;  %v1212_v2 = vadd.f32 %v2141_v61, %v2029_v57  ;;  %v2144_v3 = vadd.f32 %v2143_v1, %v2142_v62 }
 0x12a   : > { %v1215_v4 = vadd.f32 %v2144_v3, %v2032_v0  ;;  %v1414_v6 = vadd.f32 %v2593_v45, %v1212_v2 }
 0x12b   : > { %v2033_v5 = vpop.f32.mrb[24].mxu0 }
 0x12c   : > { %v1415_v7 = vadd.f32 %v2593_v45, %v1215_v4  ;;  %v2145_v8 = vpop.f32.mrb[24].mxu1  ;;  %v2034_v9 = vpop.f32.mrb[25].mxu0 }
 0x12d   : > { %v2035_v10 = vadd.f32 %v2034_v9, %v2033_v5  ;;  %v2146_v11 = vpop.f32.mrb[25].mxu1  ;;  %v2036_v12 = vpop.f32.mrb[26].mxu0 }
 0x12e   : > { %v1914_v13 = vpack.c.bf16 %v1415_v7, %v1414_v6  ;;  %v2147_v14 = vadd.f32 %v2146_v11, %v2145_v8  ;;  %v2148_v15 = vpop.f32.mrb[26].mxu1  ;;  %v2037_v16 = vpop.f32.mrb[27].mxu0 }
 0x12f   : > { %v2038_v17 = vadd.f32 %v2037_v16, %v2036_v12  ;;  %v2149_v18 = vpop.f32.mrb[27].mxu1 }
 0x130   : > { %1970 = vst [vmem:[%s2601_s20 + $0x28] sm:$0xff] %v1914_v13   ;;  %v1220_v19 = vadd.f32 %v2147_v14, %v2035_v10  ;;  %v2150_v20 = vadd.f32 %v2149_v18, %v2148_v15 }
 0x132   : > { %v1223_v21 = vadd.f32 %v2150_v20, %v2038_v17  ;;  %v1416_v23 = vadd.f32 %v2593_v45, %v1220_v19 }
 0x133   : > { %v2039_v22 = vpop.f32.mrb[28].mxu0 }
 0x134   : > { %v1417_v24 = vadd.f32 %v2593_v45, %v1223_v21  ;;  %v2151_v25 = vpop.f32.mrb[28].mxu1  ;;  %v2040_v26 = vpop.f32.mrb[29].mxu0 }
 0x135   : > { %v2041_v27 = vadd.f32 %v2040_v26, %v2039_v22  ;;  %v2152_v28 = vpop.f32.mrb[29].mxu1  ;;  %v2042_v29 = vpop.f32.mrb[30].mxu0 }
 0x136   : > { %v1919_v30 = vpack.c.bf16 %v1417_v24, %v1416_v23  ;;  %v2153_v31 = vadd.f32 %v2152_v28, %v2151_v25  ;;  %v2154_v32 = vpop.f32.mrb[30].mxu1  ;;  %v2043_v33 = vpop.f32.mrb[31].mxu0 }
 0x137   : > { %v2044_v34 = vadd.f32 %v2043_v33, %v2042_v29  ;;  %v2155_v35 = vpop.f32.mrb[31].mxu1 }
 0x138   : > { %1971 = vst [vmem:[%s2601_s20 + $0x30] sm:$0xff] %v1919_v30   ;;  %v1228_v36 = vadd.f32 %v2153_v31, %v2041_v27  ;;  %v2156_v37 = vadd.f32 %v2155_v35, %v2154_v32 }
 0x13a   : > { %v1231_v38 = vadd.f32 %v2156_v37, %v2044_v34  ;;  %v1418_v40 = vadd.f32 %v2593_v45, %v1228_v36 }
 0x13b   : > { %v2045_v39 = vpop.f32.mrb[32].mxu0 }
 0x13c   : > { %v1419_v41 = vadd.f32 %v2593_v45, %v1231_v38  ;;  %v2157_v42 = vpop.f32.mrb[32].mxu1  ;;  %v2046_v43 = vpop.f32.mrb[33].mxu0 }
 0x13d   : > { %v2047_v44 = vadd.f32 %v2046_v43, %v2045_v39  ;;  %v2158_v46 = vpop.f32.mrb[33].mxu1  ;;  %v2048_v47 = vpop.f32.mrb[34].mxu0 }
 0x13e   : > { %v1924_v48 = vpack.c.bf16 %v1419_v41, %v1418_v40  ;;  %v2159_v49 = vadd.f32 %v2158_v46, %v2157_v42  ;;  %v2160_v50 = vpop.f32.mrb[34].mxu1  ;;  %v2049_v51 = vpop.f32.mrb[35].mxu0 }
 0x13f   : > { %v2050_v52 = vadd.f32 %v2049_v51, %v2048_v47  ;;  %v2161_v53 = vpop.f32.mrb[35].mxu1 }
 0x140   : > { %1972 = vst [vmem:[%s2601_s20 + $0x38] sm:$0xff] %v1924_v48   ;;  %v1236_v54 = vadd.f32 %v2159_v49, %v2047_v44  ;;  %v2162_v55 = vadd.f32 %v2161_v53, %v2160_v50 }
 0x142   : > { %v1239_v56 = vadd.f32 %v2162_v55, %v2050_v52  ;;  %v1420_v58 = vadd.f32 %v2593_v45, %v1236_v54 }
 0x143   : > { %v2051_v57 = vpop.f32.mrb[36].mxu0 }
 0x144   : > { %v1421_v59 = vadd.f32 %v2593_v45, %v1239_v56  ;;  %v2163_v60 = vpop.f32.mrb[36].mxu1  ;;  %v2052_v61 = vpop.f32.mrb[37].mxu0 }
 0x145   : > { %v2053_v62 = vadd.f32 %v2052_v61, %v2051_v57  ;;  %v2164_v63 = vpop.f32.mrb[37].mxu1  ;;  %v2054_v0 = vpop.f32.mrb[38].mxu0 }
 0x146   : > { %v1929_v1 = vpack.c.bf16 %v1421_v59, %v1420_v58  ;;  %v2165_v2 = vadd.f32 %v2164_v63, %v2163_v60  ;;  %v2166_v3 = vpop.f32.mrb[38].mxu1  ;;  %v2055_v4 = vpop.f32.mrb[39].mxu0 }
 0x147   : > { %v2056_v5 = vadd.f32 %v2055_v4, %v2054_v0  ;;  %v2167_v6 = vpop.f32.mrb[39].mxu1 }
 0x148   : > { %1973 = vst [vmem:[%s2601_s20 + $0x40] sm:$0xff] %v1929_v1   ;;  %v1244_v7 = vadd.f32 %v2165_v2, %v2053_v62  ;;  %v2168_v8 = vadd.f32 %v2167_v6, %v2166_v3 }
 0x14a   : > { %v1247_v9 = vadd.f32 %v2168_v8, %v2056_v5  ;;  %v1422_v11 = vadd.f32 %v2593_v45, %v1244_v7 }
 0x14b   : > { %v2057_v10 = vpop.f32.mrb[40].mxu0 }
 0x14c   : > { %v1423_v12 = vadd.f32 %v2593_v45, %v1247_v9  ;;  %v2169_v13 = vpop.f32.mrb[40].mxu1  ;;  %v2058_v14 = vpop.f32.mrb[41].mxu0 }
 0x14d   : > { %v2059_v15 = vadd.f32 %v2058_v14, %v2057_v10  ;;  %v2170_v16 = vpop.f32.mrb[41].mxu1  ;;  %v2060_v17 = vpop.f32.mrb[42].mxu0 }
 0x14e   : > { %v1934_v18 = vpack.c.bf16 %v1423_v12, %v1422_v11  ;;  %v2171_v19 = vadd.f32 %v2170_v16, %v2169_v13  ;;  %v2172_v20 = vpop.f32.mrb[42].mxu1  ;;  %v2061_v21 = vpop.f32.mrb[43].mxu0 }
 0x14f   : > { %v2062_v22 = vadd.f32 %v2061_v21, %v2060_v17  ;;  %v2173_v23 = vpop.f32.mrb[43].mxu1 }
 0x150   : > { %1974 = vst [vmem:[%s2601_s20 + $0x48] sm:$0xff] %v1934_v18   ;;  %v1252_v24 = vadd.f32 %v2171_v19, %v2059_v15  ;;  %v2174_v25 = vadd.f32 %v2173_v23, %v2172_v20 }
 0x152   : > { %v1255_v26 = vadd.f32 %v2174_v25, %v2062_v22  ;;  %v1424_v28 = vadd.f32 %v2593_v45, %v1252_v24 }
 0x153   : > { %v2063_v27 = vpop.f32.mrb[44].mxu0 }
 0x154   : > { %v1425_v29 = vadd.f32 %v2593_v45, %v1255_v26  ;;  %v2175_v30 = vpop.f32.mrb[44].mxu1  ;;  %v2064_v31 = vpop.f32.mrb[45].mxu0 }
 0x155   : > { %v2065_v32 = vadd.f32 %v2064_v31, %v2063_v27  ;;  %v2176_v33 = vpop.f32.mrb[45].mxu1  ;;  %v2066_v34 = vpop.f32.mrb[46].mxu0 }
 0x156   : > { %v1939_v35 = vpack.c.bf16 %v1425_v29, %v1424_v28  ;;  %v2177_v36 = vadd.f32 %v2176_v33, %v2175_v30  ;;  %v2178_v37 = vpop.f32.mrb[46].mxu1  ;;  %v2067_v38 = vpop.f32.mrb[47].mxu0 }
 0x157   : > { %v2068_v39 = vadd.f32 %v2067_v38, %v2066_v34  ;;  %v2179_v40 = vpop.f32.mrb[47].mxu1 }
 0x158   : > { %1975 = vst [vmem:[%s2601_s20 + $0x50] sm:$0xff] %v1939_v35   ;;  %v1260_v41 = vadd.f32 %v2177_v36, %v2065_v32  ;;  %v2180_v42 = vadd.f32 %v2179_v40, %v2178_v37 }
 0x15a   : > { %v1263_v43 = vadd.f32 %v2180_v42, %v2068_v39  ;;  %v1426_v46 = vadd.f32 %v2593_v45, %v1260_v41 }
 0x15b   : > { %v2069_v44 = vpop.f32.mrb[48].mxu0 }
 0x15c   : > { %v1427_v47 = vadd.f32 %v2593_v45, %v1263_v43  ;;  %v2181_v48 = vpop.f32.mrb[48].mxu1  ;;  %v2070_v49 = vpop.f32.mrb[49].mxu0 }
 0x15d   : > { %v2071_v50 = vadd.f32 %v2070_v49, %v2069_v44  ;;  %v2182_v51 = vpop.f32.mrb[49].mxu1  ;;  %v2072_v52 = vpop.f32.mrb[50].mxu0 }
 0x15e   : > { %v1944_v53 = vpack.c.bf16 %v1427_v47, %v1426_v46  ;;  %v2183_v54 = vadd.f32 %v2182_v51, %v2181_v48  ;;  %v2184_v55 = vpop.f32.mrb[50].mxu1  ;;  %v2073_v56 = vpop.f32.mrb[51].mxu0 }
 0x15f   : > { %v2074_v57 = vadd.f32 %v2073_v56, %v2072_v52  ;;  %v2185_v58 = vpop.f32.mrb[51].mxu1 }
 0x160   : > { %1976 = vst [vmem:[%s2601_s20 + $0x58] sm:$0xff] %v1944_v53   ;;  %v1268_v59 = vadd.f32 %v2183_v54, %v2071_v50  ;;  %v2186_v60 = vadd.f32 %v2185_v58, %v2184_v55 }
 0x162   : > { %v1271_v61 = vadd.f32 %v2186_v60, %v2074_v57  ;;  %v1428_v63 = vadd.f32 %v2593_v45, %v1268_v59 }
 0x163   : > { %v2075_v62 = vpop.f32.mrb[52].mxu0 }
 0x164   : > { %v1429_v0 = vadd.f32 %v2593_v45, %v1271_v61  ;;  %v2187_v1 = vpop.f32.mrb[52].mxu1  ;;  %v2076_v2 = vpop.f32.mrb[53].mxu0 }
 0x165   : > { %v2077_v3 = vadd.f32 %v2076_v2, %v2075_v62  ;;  %v2188_v4 = vpop.f32.mrb[53].mxu1  ;;  %v2078_v5 = vpop.f32.mrb[54].mxu0 }
 0x166   : > { %v1949_v6 = vpack.c.bf16 %v1429_v0, %v1428_v63  ;;  %v2189_v7 = vadd.f32 %v2188_v4, %v2187_v1  ;;  %v2190_v8 = vpop.f32.mrb[54].mxu1  ;;  %v2079_v9 = vpop.f32.mrb[55].mxu0 }
 0x167   : > { %v2080_v10 = vadd.f32 %v2079_v9, %v2078_v5  ;;  %v2191_v11 = vpop.f32.mrb[55].mxu1 }
 0x168   : > { %1977 = vst [vmem:[%s2601_s20 + $0x60] sm:$0xff] %v1949_v6   ;;  %v1276_v12 = vadd.f32 %v2189_v7, %v2077_v3  ;;  %v2192_v13 = vadd.f32 %v2191_v11, %v2190_v8 }
 0x16a   : > { %v1279_v14 = vadd.f32 %v2192_v13, %v2080_v10  ;;  %v1430_v16 = vadd.f32 %v2593_v45, %v1276_v12 }
 0x16b   : > { %v2081_v15 = vpop.f32.mrb[56].mxu0 }
 0x16c   : > { %v1431_v17 = vadd.f32 %v2593_v45, %v1279_v14  ;;  %v2193_v18 = vpop.f32.mrb[56].mxu1  ;;  %v2082_v19 = vpop.f32.mrb[57].mxu0 }
 0x16d   : > { %v2083_v20 = vadd.f32 %v2082_v19, %v2081_v15  ;;  %v2194_v21 = vpop.f32.mrb[57].mxu1  ;;  %v2084_v22 = vpop.f32.mrb[58].mxu0 }
 0x16e   : > { %v1954_v23 = vpack.c.bf16 %v1431_v17, %v1430_v16  ;;  %v2195_v24 = vadd.f32 %v2194_v21, %v2193_v18  ;;  %v2196_v25 = vpop.f32.mrb[58].mxu1  ;;  %v2085_v26 = vpop.f32.mrb[59].mxu0 }
 0x16f   : > { %v2086_v27 = vadd.f32 %v2085_v26, %v2084_v22  ;;  %v2197_v28 = vpop.f32.mrb[59].mxu1 }
 0x170   : > { %1978 = vst [vmem:[%s2601_s20 + $0x68] sm:$0xff] %v1954_v23   ;;  %v1284_v29 = vadd.f32 %v2195_v24, %v2083_v20  ;;  %v2198_v30 = vadd.f32 %v2197_v28, %v2196_v25 }
 0x172   : > { %v1287_v31 = vadd.f32 %v2198_v30, %v2086_v27  ;;  %v1432_v33 = vadd.f32 %v2593_v45, %v1284_v29 }
 0x173   : > { %v2087_v32 = vpop.f32.mrb[60].mxu0 }
 0x174   : > { %v1433_v34 = vadd.f32 %v2593_v45, %v1287_v31  ;;  %v2199_v35 = vpop.f32.mrb[60].mxu1  ;;  %v2088_v36 = vpop.f32.mrb[61].mxu0 }
 0x175   : > { %v2089_v37 = vadd.f32 %v2088_v36, %v2087_v32  ;;  %v2200_v38 = vpop.f32.mrb[61].mxu1  ;;  %v2090_v39 = vpop.f32.mrb[62].mxu0 }
 0x176   : > { %v1959_v40 = vpack.c.bf16 %v1433_v34, %v1432_v33  ;;  %v2201_v41 = vadd.f32 %v2200_v38, %v2199_v35  ;;  %v2202_v42 = vpop.f32.mrb[62].mxu1  ;;  %v2091_v43 = vpop.f32.mrb[63].mxu0 }
 0x177   : > { %v2092_v44 = vadd.f32 %v2091_v43, %v2090_v39  ;;  %v2203_v46 = vpop.f32.mrb[63].mxu1 }
 0x178   : > { %1979 = vst [vmem:[%s2601_s20 + $0x70] sm:$0xff] %v1959_v40   ;;  %v1292_v47 = vadd.f32 %v2201_v41, %v2089_v37  ;;  %v2204_v48 = vadd.f32 %v2203_v46, %v2202_v42 }
 0x17a   : > { %v1295_v49 = vadd.f32 %v2204_v48, %v2092_v44  ;;  %v1434_v50 = vadd.f32 %v2593_v45, %v1292_v47 }
 0x17c   : > { %v1435_v51 = vadd.f32 %v2593_v45, %v1295_v49 }
 0x17e   : > { %v1964_v52 = vpack.c.bf16 %v1435_v51, %v1434_v50 }
 0x180   : > { %1980 = vst [vmem:[%s2601_s20 + $0x78] sm:$0xff] %v1964_v52  }
 0x181 PF: > { %s13_s14 = sadd.s32 1, %s2379_s14   ;;  %s2662_s12 = smov %s2375_s13 }
 0x182   : > { %p10_p5 = scmp.ge.s32.totalorder %s13_s14, 4   ;;  %s2663_s13 = smov %s2665_s15 }
 0x184   :  { %12 = sbr.rel (!%p10_p5) target bundleno = 2 (0x2), region = 76 }

// kernel: generator_resnet_forward.21
= control target key start
LH: loop header
LB: loop body
LE: loop exit
PB: predicated region body
PF: predicated region fallthrough
CT: control target
= control target key end

     0   :  { %s1752_s12 = smov 0   ;;  %s1754_s13 = smov 0   ;;  %s1982_s0 = inlined_call_operand.vmem [shape: bf16[128,1024], index: 0, kind: input, shape index: {}]   ;;  %s1983_s1 = inlined_call_operand.vmem [shape: bf16[1024,128], index: 1, kind: input, shape index: {}]   ;;  %s1984_s2 = inlined_call_operand.vmem [shape: f32[1,128], index: 2, kind: input, shape index: {}]   ;;  %s1985_s3 = inlined_call_operand.vmem [shape: bf16[128,128], index: 3, kind: output, shape index: {}]  }
   0x1   :  { %s1756_s14 = smov 0   ;;  %s1758_s15 = smov 0  }
   0x2   :  { %s1760_s16 = smov 0  }
   0x3 LB: > { %s25_s17 = sadd.s32 1, %s1725_s15  ;;  %p48_p1 = scmp.ne.s32.totalorder %s1717_s13, %s1713_s12  ;;  %s1729_s16 = sphi %s1760_s16, %s13_s16   ;;  %s1725_s15 = sphi %s1758_s15, %s1989_s15   ;;  %s1721_s14 = sphi %s1756_s14, %s1988_s14   ;;  %s1717_s13 = sphi %s1754_s13, %s1987_s13   ;;  %s1713_s12 = sphi %s1752_s12, %s1986_s12  }
   0x4   : > { %p26_p0 = scmp.ge.s32.totalorder %s25_s17, 2  ;;  %p49_p2 = scmp.eq.s32.totalorder %s1729_s16, 0 }
   0x5   : > { %s41_s19 = sadd.s32 1, %s1717_s13  ;;  %p1283_p5 = scmp.ge.s32.totalorder %s1729_s16, 2 }
   0x6   : > { %s1991_s17 = smov (%p26_p0, %s25_s17), 0  ;;  %p50_p3 = por %p49_p2, %p48_p1 }
   0x7   : > { %s37_s18 = ssub.s32 %s1725_s15, %s1991_s17  ;;  %162 = sbr.rel (%p1283_p5) target bundleno = 34 (0x22), region = 20 }
   0x8   : > { %p39_p4 = scmp.eq.s32.totalorder %s37_s18, 0 }
   0xa   : > { %s1787_s20 = scalar_select %p39_p4, %s1717_s13, %s41_s19  }
   0xe   : > { %165 = sbr.rel (!%p50_p3) target bundleno = 34 (0x22), region = 24  ;;  %s167_s21 = sand.u32 (%p50_p3), 1, %s1717_s13  }
   0xf   : > { %s1378_s22 = sshll.u32 (%p50_p3), %s1725_s15, 4  ;;  %s1284_s23 = sshll.u32 (%p50_p3), %s167_s21, 8 }
  0x10   : > { %s1795_s26 = scalar_lea.vmem (%p50_p3), %s1982_s0, %s1378_s22  ;;  %s1800_s27 = scalar_lea.vmem (%p50_p3), [#allocation3], %s1284_s23 }
  0x11   : > { %v188_v0 = vld [vmem:[%s1795_s26] sm:$0xff] (%p50_p3)  ;;  %v190_v1 = vld [vmem:[%s1795_s26 + $0x8] sm:$0xff] (%p50_p3) }
  0x12   : > { %v192_v2 = vld [vmem:[%s1795_s26 + $0x20] sm:$0xff] (%p50_p3)  ;;  %189 = vst [vmem:[%s1800_s27] sm:$0xff] (%p50_p3), %v188_v0  ;;  %191 = vst [vmem:[%s1800_s27 + $0x8] sm:$0xff] (%p50_p3), %v190_v1  ;;  %v194_v3 = vld [vmem:[%s1795_s26 + $0x28] sm:$0xff] (%p50_p3) }
  0x13   : > { %193 = vst [vmem:[%s1800_s27 + $0x10] sm:$0xff] (%p50_p3), %v192_v2  ;;  %v196_v4 = vld [vmem:[%s1795_s26 + $0x40] sm:$0xff] (%p50_p3)  ;;  %v198_v5 = vld [vmem:[%s1795_s26 + $0x48] sm:$0xff] (%p50_p3)  ;;  %195 = vst [vmem:[%s1800_s27 + $0x18] sm:$0xff] (%p50_p3), %v194_v3 }
  0x14   : > { %197 = vst [vmem:[%s1800_s27 + $0x20] sm:$0xff] (%p50_p3), %v196_v4  ;;  %199 = vst [vmem:[%s1800_s27 + $0x28] sm:$0xff] (%p50_p3), %v198_v5  ;;  %v200_v6 = vld [vmem:[%s1795_s26 + $0x60] sm:$0xff] (%p50_p3)  ;;  %v202_v7 = vld [vmem:[%s1795_s26 + $0x68] sm:$0xff] (%p50_p3) }
  0x15   : > { %v204_v8 = vld [vmem:[%s1795_s26 + $0x80] sm:$0xff]  ;;  %201 = vst [vmem:[%s1800_s27 + $0x30] sm:$0xff] %v200_v6  ;;  %203 = vst [vmem:[%s1800_s27 + $0x38] sm:$0xff] %v202_v7  ;;  %v206_v9 = vld [vmem:[%s1795_s26 + $0x88] sm:$0xff] }
  0x16   : > { %205 = vst [vmem:[%s1800_s27 + $0x40] sm:$0xff] %v204_v8  ;;  %v208_v10 = vld [vmem:[%s1795_s26 + $0xa0] sm:$0xff]  ;;  %v210_v11 = vld [vmem:[%s1795_s26 + $0xa8] sm:$0xff]  ;;  %207 = vst [vmem:[%s1800_s27 + $0x48] sm:$0xff] %v206_v9 }
  0x17   : > { %209 = vst [vmem:[%s1800_s27 + $0x50] sm:$0xff] %v208_v10  ;;  %211 = vst [vmem:[%s1800_s27 + $0x58] sm:$0xff] %v210_v11  ;;  %v212_v12 = vld [vmem:[%s1795_s26 + $0xc0] sm:$0xff]  ;;  %v214_v13 = vld [vmem:[%s1795_s26 + $0xc8] sm:$0xff] }
  0x18   : > { %v216_v14 = vld [vmem:[%s1795_s26 + $0xe0] sm:$0xff]  ;;  %213 = vst [vmem:[%s1800_s27 + $0x60] sm:$0xff] %v212_v12  ;;  %215 = vst [vmem:[%s1800_s27 + $0x68] sm:$0xff] %v214_v13  ;;  %v218_v15 = vld [vmem:[%s1795_s26 + $0xe8] sm:$0xff] }
  0x19   : > { %217 = vst [vmem:[%s1800_s27 + $0x70] sm:$0xff] %v216_v14  ;;  %v220_v16 = vld [vmem:[%s1795_s26 + $0x100] sm:$0xff]  ;;  %v222_v17 = vld [vmem:[%s1795_s26 + $0x108] sm:$0xff]  ;;  %219 = vst [vmem:[%s1800_s27 + $0x78] sm:$0xff] %v218_v15 }
  0x1a   : > { %221 = vst [vmem:[%s1800_s27 + $0x80] sm:$0xff] %v220_v16  ;;  %223 = vst [vmem:[%s1800_s27 + $0x88] sm:$0xff] %v222_v17  ;;  %v224_v18 = vld [vmem:[%s1795_s26 + $0x120] sm:$0xff]  ;;  %v226_v19 = vld [vmem:[%s1795_s26 + $0x128] sm:$0xff] }
  0x1b   : > { %v228_v20 = vld [vmem:[%s1795_s26 + $0x140] sm:$0xff]  ;;  %225 = vst [vmem:[%s1800_s27 + $0x90] sm:$0xff] %v224_v18  ;;  %227 = vst [vmem:[%s1800_s27 + $0x98] sm:$0xff] %v226_v19  ;;  %v230_v21 = vld [vmem:[%s1795_s26 + $0x148] sm:$0xff] }
  0x1c   : > { %229 = vst [vmem:[%s1800_s27 + $0xa0] sm:$0xff] %v228_v20  ;;  %v232_v22 = vld [vmem:[%s1795_s26 + $0x160] sm:$0xff]  ;;  %v234_v23 = vld [vmem:[%s1795_s26 + $0x168] sm:$0xff]  ;;  %231 = vst [vmem:[%s1800_s27 + $0xa8] sm:$0xff] %v230_v21 }
  0x1d   : > { %233 = vst [vmem:[%s1800_s27 + $0xb0] sm:$0xff] %v232_v22  ;;  %235 = vst [vmem:[%s1800_s27 + $0xb8] sm:$0xff] %v234_v23  ;;  %v236_v24 = vld [vmem:[%s1795_s26 + $0x180] sm:$0xff]  ;;  %v238_v25 = vld [vmem:[%s1795_s26 + $0x188] sm:$0xff] }
  0x1e   : > { %v240_v26 = vld [vmem:[%s1795_s26 + $0x1a0] sm:$0xff]  ;;  %237 = vst [vmem:[%s1800_s27 + $0xc0] sm:$0xff] %v236_v24  ;;  %239 = vst [vmem:[%s1800_s27 + $0xc8] sm:$0xff] %v238_v25  ;;  %v242_v27 = vld [vmem:[%s1795_s26 + $0x1a8] sm:$0xff] }
  0x1f   : > { %241 = vst [vmem:[%s1800_s27 + $0xd0] sm:$0xff] %v240_v26  ;;  %v244_v28 = vld [vmem:[%s1795_s26 + $0x1c0] sm:$0xff]  ;;  %v246_v29 = vld [vmem:[%s1795_s26 + $0x1c8] sm:$0xff]  ;;  %243 = vst [vmem:[%s1800_s27 + $0xd8] sm:$0xff] %v242_v27 }
  0x20   : > { %245 = vst [vmem:[%s1800_s27 + $0xe0] sm:$0xff] %v244_v28  ;;  %247 = vst [vmem:[%s1800_s27 + $0xe8] sm:$0xff] %v246_v29  ;;  %v248_v30 = vld [vmem:[%s1795_s26 + $0x1e0] sm:$0xff]  ;;  %v250_v31 = vld [vmem:[%s1795_s26 + $0x1e8] sm:$0xff] }
  0x21   : > { %249 = vst [vmem:[%s1800_s27 + $0xf0] sm:$0xff] %v248_v30  ;;  %251 = vst [vmem:[%s1800_s27 + $0xf8] sm:$0xff] %v250_v31 }
  0x22 PF: > { %p1287_p6 = scmp.ge.s32.totalorder %s1729_s16, 1  ;;  %p268_p7 = scmp.lt.s32.totalorder %s1729_s16, 3 }
  0x24   : > { %p269_p8 = pnand %p1287_p6, %p268_p7 }
  0x25   : > { %s275_s28 = sand.u32 (!%p269_p8), 1, %s1713_s12   ;;  %s1289_s29 = sshll.u32 (!%p269_p8), %s1721_s14, 6 }
  0x26   : > { %272 = sbr.rel (%p269_p8) target bundleno = 380 (0x17c), region = 51  ;;  %s1288_s30 = sshll.u32 (!%p269_p8), %s275_s28, 8 }
  0x27   : > { %p315_p9 = scmp.lt.s32.totalorder (!%p269_p8), %s1289_s29, 127  ;;  %s1872_s8 = scalar_lea.vmem (!%p269_p8), [#allocation3], %s1288_s30 }
  0x28   : > { %p1291_p10 = scmp.ne.s32.totalorder (!%p269_p8), %s1721_s14, 0 }
  0x2d   : > { %s1993_s29 = smov (!%p315_p9, %s1289_s29), 127  ;;  %339 = sbr.rel (%p1291_p10) target bundleno = 55 (0x37), region = 59 }
  0x2e   : > { %s1290_s4 = sshll.u32 %s1993_s29, 2  ;;  %v1731_v32 = vmov (!%p1291_p10), 0.0  }
  0x2f   : > { %s1870_s7 = scalar_lea.vmem %s1983_s1, %s1290_s4  ;;  %340 = vst [vmem:[#allocation2] sm:$0xff] (!%p1291_p10), %v1731_v32  ;;  %341 = vst [vmem:[#allocation2 + $0x8] sm:$0xff] (!%p1291_p10), %v1731_v32 }
  0x30   : > { %342 = vst [vmem:[#allocation2 + $0x10] sm:$0xff] (!%p1291_p10), %v1731_v32  ;;  %343 = vst [vmem:[#allocation2 + $0x18] sm:$0xff] (!%p1291_p10), %v1731_v32 }
  0x31   : > { %344 = vst [vmem:[#allocation2 + $0x20] sm:$0xff] (!%p1291_p10), %v1731_v32  ;;  %345 = vst [vmem:[#allocation2 + $0x28] sm:$0xff] (!%p1291_p10), %v1731_v32 }
  0x32   : > { %346 = vst [vmem:[#allocation2 + $0x30] sm:$0xff] (!%p1291_p10), %v1731_v32  ;;  %347 = vst [vmem:[#allocation2 + $0x38] sm:$0xff] (!%p1291_p10), %v1731_v32 }
  0x33   : > { %348 = vst [vmem:[#allocation2 + $0x40] sm:$0xff] (!%p1291_p10), %v1731_v32  ;;  %349 = vst [vmem:[#allocation2 + $0x48] sm:$0xff] (!%p1291_p10), %v1731_v32 }
  0x34   : > { %350 = vst [vmem:[#allocation2 + $0x50] sm:$0xff] %v1731_v32  ;;  %351 = vst [vmem:[#allocation2 + $0x58] sm:$0xff] %v1731_v32 }
  0x35   : > { %352 = vst [vmem:[#allocation2 + $0x60] sm:$0xff] %v1731_v32  ;;  %353 = vst [vmem:[#allocation2 + $0x68] sm:$0xff] %v1731_v32 }
  0x36   : > { %354 = vst [vmem:[#allocation2 + $0x70] sm:$0xff] %v1731_v32  ;;  %355 = vst [vmem:[#allocation2 + $0x78] sm:$0xff] %v1731_v32 }
  0x37 PF: > { %v1611_v33 = vld [vmem:[%s1870_s7 + $0x40] sm:$0xff]   ;;  %v1615_v37 = vld [vmem:[%s1870_s7 + $0x48] sm:$0xff]   ;;  %v1619_v41 = vld [vmem:[%s1870_s7 + $0x50] sm:$0xff]   ;;  %p1356_p11 = scmp.ne.s32.totalorder %s1721_s14, 1 }
  0x38   : > { %v1612_v34 = vld [vmem:[%s1870_s7 + $0xc0] sm:$0xff]   ;;  %1442 = vmatprep.subr.bf16.mxu0 %v1611_v33  ;;  %v1616_v38 = vld [vmem:[%s1870_s7 + $0xc8] sm:$0xff]   ;;  %v1620_v42 = vld [vmem:[%s1870_s7 + $0xd0] sm:$0xff]  }
  0x39   : > { %v1613_v35 = vld [vmem:[%s1870_s7] sm:$0xff]   ;;  %1506 = vmatprep.subr.bf16.mxu1 %v1612_v34  ;;  %v1617_v39 = vld [vmem:[%s1870_s7 + $0x8] sm:$0xff]   ;;  %v1621_v43 = vld [vmem:[%s1870_s7 + $0x10] sm:$0xff]  }
  0x3a   : > { %v1614_v36 = vld [vmem:[%s1870_s7 + $0x80] sm:$0xff]   ;;  %1443 = vmatpush3.bf16.msra.mxu0 %v1613_v35  ;;  %v1618_v40 = vld [vmem:[%s1870_s7 + $0x88] sm:$0xff]   ;;  %v1622_v44 = vld [vmem:[%s1870_s7 + $0x90] sm:$0xff]  }
  0x3b   : > { %1507 = vmatpush3.bf16.msra.mxu1 %v1614_v36  ;;  %1444 = vmatprep.subr.bf16.mxu0 %v1615_v37  ;;  %v1623_v45 = vld [vmem:[%s1870_s7 + $0x58] sm:$0xff]   ;;  %v1627_v49 = vld [vmem:[%s1870_s7 + $0x60] sm:$0xff]   ;;  %v1631_v53 = vld [vmem:[%s1870_s7 + $0x68] sm:$0xff]  }
  0x3c   : > { %1508 = vmatprep.subr.bf16.mxu1 %v1616_v38  ;;  %v1624_v46 = vld [vmem:[%s1870_s7 + $0xd8] sm:$0xff]   ;;  %v1628_v50 = vld [vmem:[%s1870_s7 + $0xe0] sm:$0xff]   ;;  %v1632_v54 = vld [vmem:[%s1870_s7 + $0xe8] sm:$0xff]  }
  0x3d   : > { %v1625_v47 = vld [vmem:[%s1870_s7 + $0x18] sm:$0xff]   ;;  %v1629_v51 = vld [vmem:[%s1870_s7 + $0x20] sm:$0xff]   ;;  %v1633_v55 = vld [vmem:[%s1870_s7 + $0x28] sm:$0xff]  }
  0x3e   : > { %1445 = vmatpush3.bf16.msra.mxu0 %v1617_v39  ;;  %v1626_v48 = vld [vmem:[%s1870_s7 + $0x98] sm:$0xff]   ;;  %v1630_v52 = vld [vmem:[%s1870_s7 + $0xa0] sm:$0xff]   ;;  %v1634_v56 = vld [vmem:[%s1870_s7 + $0xa8] sm:$0xff]  }
  0x3f   : > { %1509 = vmatpush3.bf16.msra.mxu1 %v1618_v40  ;;  %1446 = vmatprep.subr.bf16.mxu0 %v1619_v41  ;;  %v1635_v57 = vld [vmem:[%s1870_s7 + $0x70] sm:$0xff]   ;;  %v1639_v61 = vld [vmem:[%s1870_s7 + $0x78] sm:$0xff]  }
  0x40   : > { %1510 = vmatprep.subr.bf16.mxu1 %v1620_v42  ;;  %v1636_v58 = vld [vmem:[%s1870_s7 + $0xf0] sm:$0xff]   ;;  %v1640_v62 = vld [vmem:[%s1870_s7 + $0xf8] sm:$0xff]   ;;  %v356_v42 = vld [vmem:[#allocation2] sm:$0xff] }
  0x41   : > { %v1637_v59 = vld [vmem:[%s1870_s7 + $0x30] sm:$0xff]   ;;  %v1641_v63 = vld [vmem:[%s1870_s7 + $0x38] sm:$0xff]  }
  0x42   : > { %1447 = vmatpush3.bf16.msra.mxu0 %v1621_v43  ;;  %v1638_v60 = vld [vmem:[%s1870_s7 + $0xb0] sm:$0xff]   ;;  %v1642_v0 = vld [vmem:[%s1870_s7 + $0xb8] sm:$0xff]  }
  0x43   : > { %1511 = vmatpush3.bf16.msra.mxu1 %v1622_v44  ;;  %1448 = vmatprep.subr.bf16.mxu0 %v1623_v45  ;;  %v1643_v1 = vld [vmem:[%s1872_s8] ss:$16 sps:$4 sm:$0xff]   ;;  %v1645_v2 = vld [vmem:[%s1872_s8 + $0x4] ss:$16 sps:$4 sm:$0xff]   ;;  %v1646_v3 = vld [vmem:[%s1872_s8 + $0x8] ss:$16 sps:$4 sm:$0xff]  }
  0x44   : > { %1512 = vmatprep.subr.bf16.mxu1 %v1624_v46  ;;  %v1648_v4 = vld [vmem:[%s1872_s8 + $0xc] ss:$16 sps:$4 sm:$0xff]   ;;  %852 = vmatprep.mubr.bf16.mxu0 %v1645_v2  ;;  %v1649_v5 = vld [vmem:[%s1872_s8 + $0x24] ss:$16 sps:$4 sm:$0xff]   ;;  %v1653_v7 = vld [vmem:[%s1872_s8 + $0x20] ss:$16 sps:$4 sm:$0xff]  }
  0x45   : > { %949 = vmatprep.mubr.bf16.mxu1 %v1648_v4  ;;  %v1651_v6 = vld [vmem:[%s1872_s8 + $0x2c] ss:$16 sps:$4 sm:$0xff]   ;;  %v1654_v8 = vld [vmem:[%s1872_s8 + $0x28] ss:$16 sps:$4 sm:$0xff]   ;;  %v1655_v9 = vld [vmem:[%s1872_s8 + $0x44] ss:$16 sps:$4 sm:$0xff]  }
  0x46   : > { %1449 = vmatpush3.bf16.msra.mxu0 %v1625_v47  ;;  %v1657_v10 = vld [vmem:[%s1872_s8 + $0x4c] ss:$16 sps:$4 sm:$0xff]   ;;  %v1659_v11 = vld [vmem:[%s1872_s8 + $0x40] ss:$16 sps:$4 sm:$0xff]   ;;  %v1660_v12 = vld [vmem:[%s1872_s8 + $0x48] ss:$16 sps:$4 sm:$0xff]  }
  0x47   : > { %1513 = vmatpush3.bf16.msra.mxu1 %v1626_v48  ;;  %1450 = vmatprep.subr.bf16.mxu0 %v1627_v49  ;;  %v1661_v13 = vld [vmem:[%s1872_s8 + $0x64] ss:$16 sps:$4 sm:$0xff]   ;;  %v1663_v14 = vld [vmem:[%s1872_s8 + $0x6c] ss:$16 sps:$4 sm:$0xff]   ;;  %v1665_v15 = vld [vmem:[%s1872_s8 + $0x60] ss:$16 sps:$4 sm:$0xff]  }
  0x48   : > { %1514 = vmatprep.subr.bf16.mxu1 %v1628_v50  ;;  %v1666_v16 = vld [vmem:[%s1872_s8 + $0x68] ss:$16 sps:$4 sm:$0xff]   ;;  %v1667_v17 = vld [vmem:[%s1872_s8 + $0x84] ss:$16 sps:$4 sm:$0xff]   ;;  %v1669_v18 = vld [vmem:[%s1872_s8 + $0x8c] ss:$16 sps:$4 sm:$0xff]  }
  0x49   : > { %v1671_v19 = vld [vmem:[%s1872_s8 + $0x80] ss:$16 sps:$4 sm:$0xff]   ;;  %v1672_v20 = vld [vmem:[%s1872_s8 + $0x88] ss:$16 sps:$4 sm:$0xff]   ;;  %v1673_v21 = vld [vmem:[%s1872_s8 + $0xa4] ss:$16 sps:$4 sm:$0xff]  }
  0x4a   : > { %1451 = vmatpush3.bf16.msra.mxu0 %v1629_v51  ;;  %v1675_v22 = vld [vmem:[%s1872_s8 + $0xac] ss:$16 sps:$4 sm:$0xff]   ;;  %v1677_v23 = vld [vmem:[%s1872_s8 + $0xa0] ss:$16 sps:$4 sm:$0xff]   ;;  %v1678_v24 = vld [vmem:[%s1872_s8 + $0xa8] ss:$16 sps:$4 sm:$0xff]  }
  0x4b   : > { %1515 = vmatpush3.bf16.msra.mxu1 %v1630_v52  ;;  %1452 = vmatprep.subr.bf16.mxu0 %v1631_v53  ;;  %v1679_v25 = vld [vmem:[%s1872_s8 + $0xc4] ss:$16 sps:$4 sm:$0xff]   ;;  %v1681_v26 = vld [vmem:[%s1872_s8 + $0xcc] ss:$16 sps:$4 sm:$0xff]   ;;  %v1683_v27 = vld [vmem:[%s1872_s8 + $0xc0] ss:$16 sps:$4 sm:$0xff]  }
  0x4c   : > { %1516 = vmatprep.subr.bf16.mxu1 %v1632_v54  ;;  %v1684_v28 = vld [vmem:[%s1872_s8 + $0xc8] ss:$16 sps:$4 sm:$0xff]   ;;  %v1685_v29 = vld [vmem:[%s1872_s8 + $0xe4] ss:$16 sps:$4 sm:$0xff]   ;;  %v1687_v30 = vld [vmem:[%s1872_s8 + $0xec] ss:$16 sps:$4 sm:$0xff]  }
  0x4d   : > { %v1689_v31 = vld [vmem:[%s1872_s8 + $0xe0] ss:$16 sps:$4 sm:$0xff]   ;;  %v1690_v32 = vld [vmem:[%s1872_s8 + $0xe8] ss:$16 sps:$4 sm:$0xff]  }
  0x4e   : > { %1453 = vmatpush3.bf16.msra.mxu0 %v1633_v55  ;;  %v357_v47 = vld [vmem:[#allocation2 + $0x8] sm:$0xff] }
  0x4f   : > { %1517 = vmatpush3.bf16.msra.mxu1 %v1634_v56  ;;  %1454 = vmatprep.subr.bf16.mxu0 %v1635_v57 }
  0x50   : > { %1518 = vmatprep.subr.bf16.mxu1 %v1636_v58 }
  0x52   : > { %1455 = vmatpush3.bf16.msra.mxu0 %v1637_v59 }
  0x53   : > { %1519 = vmatpush3.bf16.msra.mxu1 %v1638_v60  ;;  %1456 = vmatprep.subr.bf16.mxu0 %v1639_v61  ;;  %v358_v60 = vld [vmem:[#allocation2 + $0x10] sm:$0xff] }
  0x54   : > { %1520 = vmatprep.subr.bf16.mxu1 %v1640_v62 }
  0x56   : > { %1457 = vmatpush3.bf16.msra.mxu0 %v1641_v63 }
  0x57   : > { %1521 = vmatpush3.bf16.msra.mxu1 %v1642_v0 }
  0x59   : > { %853 = vmatmul.mubr.bf16.vlgmr.msra.gmra.mrb[0].mxu0 %v1643_v1  ;;  %v359_v1 = vld [vmem:[#allocation2 + $0x18] sm:$0xff] }
  0x5a   : > { %950 = vmatmul.mubr.bf16.vlgmr.msra.gmra.mrb[0].mxu1 %v1646_v3  ;;  %860 = vmatprep.mubr.bf16.mxu0 %v1649_v5 }
  0x5b   : > { %957 = vmatprep.mubr.bf16.mxu1 %v1651_v6 }
  0x61   : > { %861 = vmatmul.mubr.bf16.gmra.mrb[4].mxu0 %v1653_v7 }
  0x62   : > { %958 = vmatmul.mubr.bf16.gmra.mrb[4].mxu1 %v1654_v8  ;;  %868 = vmatprep.mubr.bf16.mxu0 %v1655_v9 }
  0x63   : > { %965 = vmatprep.mubr.bf16.mxu1 %v1657_v10 }
  0x69   : > { %869 = vmatmul.mubr.bf16.gmra.mrb[8].mxu0 %v1659_v11 }
  0x6a   : > { %966 = vmatmul.mubr.bf16.gmra.mrb[8].mxu1 %v1660_v12  ;;  %876 = vmatprep.mubr.bf16.mxu0 %v1661_v13 }
  0x6b   : > { %973 = vmatprep.mubr.bf16.mxu1 %v1663_v14  ;;  %v360_v14 = vld [vmem:[#allocation2 + $0x20] sm:$0xff] }
  0x71   : > { %877 = vmatmul.mubr.bf16.gmra.mrb[12].mxu0 %v1665_v15 }
  0x72   : > { %974 = vmatmul.mubr.bf16.gmra.mrb[12].mxu1 %v1666_v16  ;;  %884 = vmatprep.mubr.bf16.mxu0 %v1667_v17 }
  0x73   : > { %981 = vmatprep.mubr.bf16.mxu1 %v1669_v18 }
  0x79   : > { %885 = vmatmul.mubr.bf16.gmra.mrb[16].mxu0 %v1671_v19  ;;  %v361_v19 = vld [vmem:[#allocation2 + $0x28] sm:$0xff] }
  0x7a   : > { %982 = vmatmul.mubr.bf16.gmra.mrb[16].mxu1 %v1672_v20  ;;  %892 = vmatprep.mubr.bf16.mxu0 %v1673_v21 }
  0x7b   : > { %989 = vmatprep.mubr.bf16.mxu1 %v1675_v22 }
  0x81   : > { %893 = vmatmul.mubr.bf16.gmra.mrb[20].mxu0 %v1677_v23 }
  0x82   : > { %990 = vmatmul.mubr.bf16.gmra.mrb[20].mxu1 %v1678_v24  ;;  %900 = vmatprep.mubr.bf16.mxu0 %v1679_v25 }
  0x83   : > { %997 = vmatprep.mubr.bf16.mxu1 %v1681_v26 }
  0x89   : > { %901 = vmatmul.mubr.bf16.gmra.mrb[24].mxu0 %v1683_v27 }
  0x8a   : > { %998 = vmatmul.mubr.bf16.gmra.mrb[24].mxu1 %v1684_v28  ;;  %908 = vmatprep.mubr.bf16.mxu0 %v1685_v29 }
  0x8b   : > { %1005 = vmatprep.mubr.bf16.mxu1 %v1687_v30 }
  0x91   : > { %909 = vmatmul.mubr.bf16.gmra.mrb[28].mxu0 %v1689_v31 }
  0x92   : > { %1006 = vmatmul.mubr.bf16.gmra.mrb[28].mxu1 %v1690_v32  ;;  %v362_v32 = vld [vmem:[#allocation2 + $0x30] sm:$0xff] }
 0x12c   : > { %v1458_v33 = vpop.f32.mrb[0].mxu0 }
 0x12d   : > { %v1522_v34 = vpop.f32.mrb[0].mxu1  ;;  %v1459_v35 = vpop.f32.mrb[1].mxu0 }
 0x12e   : > { %v1460_v36 = vadd.f32 %v1459_v35, %v1458_v33  ;;  %v1523_v37 = vpop.f32.mrb[1].mxu1  ;;  %v1461_v38 = vpop.f32.mrb[2].mxu0 }
 0x12f   : > { %v1524_v39 = vadd.f32 %v1523_v37, %v1522_v34  ;;  %v1525_v40 = vpop.f32.mrb[2].mxu1  ;;  %v1462_v41 = vpop.f32.mrb[3].mxu0  ;;  %v363_v37 = vld [vmem:[#allocation2 + $0x38] sm:$0xff] }
 0x130   : > { %v1463_v43 = vadd.f32 %v1462_v41, %v1461_v38  ;;  %v1526_v44 = vpop.f32.mrb[3].mxu1 }
 0x131   : > { %v952_v45 = vadd.f32 %v1524_v39, %v1460_v36  ;;  %v1527_v46 = vadd.f32 %v1526_v44, %v1525_v40 }
 0x133   : > { %v1014_v48 = vadd.f32 %v952_v45, %v356_v42  ;;  %v955_v49 = vadd.f32 %v1527_v46, %v1463_v43 }
 0x134   : > { %v1464_v50 = vpop.f32.mrb[4].mxu0 }
 0x135   : > { %1030 = vst [vmem:[#allocation2] sm:$0xff] %v1014_v48  ;;  %v1015_v51 = vadd.f32 %v955_v49, %v357_v47  ;;  %v1528_v52 = vpop.f32.mrb[4].mxu1  ;;  %v1465_v53 = vpop.f32.mrb[5].mxu0 }
 0x136   : > { %v1466_v54 = vadd.f32 %v1465_v53, %v1464_v50  ;;  %v1529_v55 = vpop.f32.mrb[5].mxu1  ;;  %v1467_v56 = vpop.f32.mrb[6].mxu0  ;;  %v364_v50 = vld [vmem:[#allocation2 + $0x40] sm:$0xff] }
 0x137   : > { %1031 = vst [vmem:[#allocation2 + $0x8] sm:$0xff] %v1015_v51  ;;  %v1530_v57 = vadd.f32 %v1529_v55, %v1528_v52  ;;  %v1531_v58 = vpop.f32.mrb[6].mxu1  ;;  %v1468_v59 = vpop.f32.mrb[7].mxu0  ;;  %v365_v55 = vld [vmem:[#allocation2 + $0x48] sm:$0xff] }
 0x138   : > { %v1469_v61 = vadd.f32 %v1468_v59, %v1467_v56  ;;  %v1532_v62 = vpop.f32.mrb[7].mxu1 }
 0x139   : > { %v960_v63 = vadd.f32 %v1530_v57, %v1466_v54  ;;  %v1533_v0 = vadd.f32 %v1532_v62, %v1531_v58 }
 0x13b   : > { %v1016_v2 = vadd.f32 %v960_v63, %v358_v60  ;;  %v963_v3 = vadd.f32 %v1533_v0, %v1469_v61 }
 0x13c   : > { %v1470_v4 = vpop.f32.mrb[8].mxu0 }
 0x13d   : > { %1032 = vst [vmem:[#allocation2 + $0x10] sm:$0xff] %v1016_v2  ;;  %v1017_v5 = vadd.f32 %v963_v3, %v359_v1  ;;  %v1534_v6 = vpop.f32.mrb[8].mxu1  ;;  %v1471_v7 = vpop.f32.mrb[9].mxu0 }
 0x13e   : > { %v1472_v8 = vadd.f32 %v1471_v7, %v1470_v4  ;;  %v1535_v9 = vpop.f32.mrb[9].mxu1  ;;  %v1473_v10 = vpop.f32.mrb[10].mxu0  ;;  %v366_v4 = vld [vmem:[#allocation2 + $0x50] sm:$0xff] }
 0x13f   : > { %1033 = vst [vmem:[#allocation2 + $0x18] sm:$0xff] %v1017_v5  ;;  %v1536_v11 = vadd.f32 %v1535_v9, %v1534_v6  ;;  %v1537_v12 = vpop.f32.mrb[10].mxu1  ;;  %v1474_v13 = vpop.f32.mrb[11].mxu0  ;;  %v367_v9 = vld [vmem:[#allocation2 + $0x58] sm:$0xff] }
 0x140   : > { %v1475_v15 = vadd.f32 %v1474_v13, %v1473_v10  ;;  %v1538_v16 = vpop.f32.mrb[11].mxu1 }
 0x141   : > { %v968_v17 = vadd.f32 %v1536_v11, %v1472_v8  ;;  %v1539_v18 = vadd.f32 %v1538_v16, %v1537_v12 }
 0x143   : > { %v1018_v20 = vadd.f32 %v968_v17, %v360_v14  ;;  %v971_v21 = vadd.f32 %v1539_v18, %v1475_v15 }
 0x144   : > { %v1476_v22 = vpop.f32.mrb[12].mxu0 }
 0x145   : > { %1034 = vst [vmem:[#allocation2 + $0x20] sm:$0xff] %v1018_v20  ;;  %v1019_v23 = vadd.f32 %v971_v21, %v361_v19  ;;  %v1540_v24 = vpop.f32.mrb[12].mxu1  ;;  %v1477_v25 = vpop.f32.mrb[13].mxu0 }
 0x146   : > { %v1478_v26 = vadd.f32 %v1477_v25, %v1476_v22  ;;  %v1541_v27 = vpop.f32.mrb[13].mxu1  ;;  %v1479_v28 = vpop.f32.mrb[14].mxu0  ;;  %v368_v22 = vld [vmem:[#allocation2 + $0x60] sm:$0xff] }
 0x147   : > { %1035 = vst [vmem:[#allocation2 + $0x28] sm:$0xff] %v1019_v23  ;;  %v1542_v29 = vadd.f32 %v1541_v27, %v1540_v24  ;;  %v1543_v30 = vpop.f32.mrb[14].mxu1  ;;  %v1480_v31 = vpop.f32.mrb[15].mxu0  ;;  %v369_v27 = vld [vmem:[#allocation2 + $0x68] sm:$0xff] }
 0x148   : > { %v1481_v33 = vadd.f32 %v1480_v31, %v1479_v28  ;;  %v1544_v34 = vpop.f32.mrb[15].mxu1 }
 0x149   : > { %v976_v35 = vadd.f32 %v1542_v29, %v1478_v26  ;;  %v1545_v36 = vadd.f32 %v1544_v34, %v1543_v30 }
 0x14b   : > { %v1020_v38 = vadd.f32 %v976_v35, %v362_v32  ;;  %v979_v39 = vadd.f32 %v1545_v36, %v1481_v33 }
 0x14c   : > { %v1482_v40 = vpop.f32.mrb[16].mxu0 }
 0x14d   : > { %1036 = vst [vmem:[#allocation2 + $0x30] sm:$0xff] %v1020_v38  ;;  %v1021_v41 = vadd.f32 %v979_v39, %v363_v37  ;;  %v1546_v42 = vpop.f32.mrb[16].mxu1  ;;  %v1483_v43 = vpop.f32.mrb[17].mxu0 }
 0x14e   : > { %v1484_v44 = vadd.f32 %v1483_v43, %v1482_v40  ;;  %v1547_v45 = vpop.f32.mrb[17].mxu1  ;;  %v1485_v46 = vpop.f32.mrb[18].mxu0  ;;  %v370_v40 = vld [vmem:[#allocation2 + $0x70] sm:$0xff] }
 0x14f   : > { %1037 = vst [vmem:[#allocation2 + $0x38] sm:$0xff] %v1021_v41  ;;  %v1548_v47 = vadd.f32 %v1547_v45, %v1546_v42  ;;  %v1549_v48 = vpop.f32.mrb[18].mxu1  ;;  %v1486_v49 = vpop.f32.mrb[19].mxu0  ;;  %v371_v45 = vld [vmem:[#allocation2 + $0x78] sm:$0xff] }
 0x150   : > { %v1487_v51 = vadd.f32 %v1486_v49, %v1485_v46  ;;  %v1550_v52 = vpop.f32.mrb[19].mxu1  ;;  %v1050_v49 = vld [vmem:[#allocation2] sm:$0xff] (!%p1356_p11) }
 0x151   : > { %v984_v53 = vadd.f32 %v1548_v47, %v1484_v44  ;;  %v1551_v54 = vadd.f32 %v1550_v52, %v1549_v48 }
 0x153   : > { %v1022_v56 = vadd.f32 %v984_v53, %v364_v50  ;;  %v987_v57 = vadd.f32 %v1551_v54, %v1487_v51  ;;  %v1051_v50 = vld [vmem:[#allocation2 + $0x8] sm:$0xff] (!%p1356_p11)  ;;  %v1357_v51 = vld [vmem:[%s1984_s2] ss:$0 sm:$0xff] (!%p1356_p11)  ;;  %v1052_v54 = vld [vmem:[#allocation2 + $0x10] sm:$0xff] (!%p1356_p11) }
 0x154   : > { %v1488_v58 = vpop.f32.mrb[20].mxu0  ;;  %v1073_v52 = vadd.f32 (!%p1356_p11), %v1357_v51, %v1050_v49  ;;  %v1074_v53 = vadd.f32 (!%p1356_p11), %v1357_v51, %v1051_v50 }
 0x155   : > { %1038 = vst [vmem:[#allocation2 + $0x40] sm:$0xff] %v1022_v56  ;;  %v1023_v59 = vadd.f32 %v987_v57, %v365_v55  ;;  %v1552_v60 = vpop.f32.mrb[20].mxu1  ;;  %v1489_v61 = vpop.f32.mrb[21].mxu0  ;;  %v1053_v55 = vld [vmem:[#allocation2 + $0x18] sm:$0xff] (!%p1356_p11)  ;;  %v1054_v56 = vld [vmem:[#allocation2 + $0x20] sm:$0xff] (!%p1356_p11)  ;;  %v1075_v57 = vadd.f32 (!%p1356_p11), %v1357_v51, %v1052_v54 }
 0x156   : > { %v1490_v62 = vadd.f32 %v1489_v61, %v1488_v58  ;;  %v1553_v63 = vpop.f32.mrb[21].mxu1  ;;  %v1491_v0 = vpop.f32.mrb[22].mxu0  ;;  %v1076_v58 = vadd.f32 (!%p1356_p11), %v1357_v51, %v1053_v55  ;;  %v1056_v61 = vld [vmem:[#allocation2 + $0x30] sm:$0xff] (!%p1356_p11) }
 0x157   : > { %1039 = vst [vmem:[#allocation2 + $0x48] sm:$0xff] %v1023_v59  ;;  %v1554_v1 = vadd.f32 %v1553_v63, %v1552_v60  ;;  %v1555_v2 = vpop.f32.mrb[22].mxu1  ;;  %v1492_v3 = vpop.f32.mrb[23].mxu0  ;;  %v1055_v59 = vld [vmem:[#allocation2 + $0x28] sm:$0xff] (!%p1356_p11)  ;;  %v1077_v60 = vadd.f32 (!%p1356_p11), %v1357_v51, %v1054_v56  ;;  %v1398_v63 = vpack.c.bf16 (!%p1356_p11), %v1074_v53, %v1073_v52 }
 0x158   : > { %v1493_v5 = vadd.f32 %v1492_v3, %v1491_v0  ;;  %v1556_v6 = vpop.f32.mrb[23].mxu1  ;;  %v1078_v0 = vadd.f32 (!%p1356_p11), %v1357_v51, %v1055_v59 }
 0x159   : > { %v992_v7 = vadd.f32 %v1554_v1, %v1490_v62  ;;  %v1557_v8 = vadd.f32 %v1556_v6, %v1555_v2  ;;  %v1057_v62 = vld [vmem:[#allocation2 + $0x38] sm:$0xff] (!%p1356_p11)  ;;  %v1079_v1 = vadd.f32 (!%p1356_p11), %v1357_v51, %v1056_v61  ;;  %v1403_v6 = vpack.c.bf16 (!%p1356_p11), %v1076_v58, %v1075_v57  ;;  %1399 = vst [vmem:[%s1985_s3] sm:$0xff] (!%p1356_p11), %v1398_v63  }
 0x15a   : > { %v1080_v2 = vadd.f32 (!%p1356_p11), %v1357_v51, %v1057_v62 }
 0x15b   : > { %v1024_v10 = vadd.f32 %v992_v7, %v366_v4  ;;  %v995_v11 = vadd.f32 %v1557_v8, %v1493_v5  ;;  %1435 = vst [vmem:[%s1985_s3 + $0x8] sm:$0xff] (!%p1356_p11), %v1403_v6  }
 0x15c   : > { %v1494_v12 = vpop.f32.mrb[24].mxu0  ;;  %v1058_v3 = vld [vmem:[#allocation2 + $0x40] sm:$0xff] (!%p1356_p11) }
 0x15d   : > { %1040 = vst [vmem:[#allocation2 + $0x50] sm:$0xff] %v1024_v10  ;;  %v1025_v13 = vadd.f32 %v995_v11, %v367_v9  ;;  %v1558_v14 = vpop.f32.mrb[24].mxu1  ;;  %v1495_v15 = vpop.f32.mrb[25].mxu0  ;;  %v1081_v7 = vadd.f32 (!%p1356_p11), %v1357_v51, %v1058_v3 }
 0x15e   : > { %v1496_v16 = vadd.f32 %v1495_v15, %v1494_v12  ;;  %v1559_v17 = vpop.f32.mrb[25].mxu1  ;;  %v1497_v18 = vpop.f32.mrb[26].mxu0  ;;  %v1059_v4 = vld [vmem:[#allocation2 + $0x48] sm:$0xff] (!%p1356_p11) }
 0x15f   : > { %1041 = vst [vmem:[#allocation2 + $0x58] sm:$0xff] %v1025_v13  ;;  %v1560_v19 = vadd.f32 %v1559_v17, %v1558_v14  ;;  %v1561_v20 = vpop.f32.mrb[26].mxu1  ;;  %v1498_v21 = vpop.f32.mrb[27].mxu0  ;;  %v1082_v8 = vadd.f32 (!%p1356_p11), %v1357_v51, %v1059_v4  ;;  %v1408_v13 = vpack.c.bf16 (!%p1356_p11), %v1078_v0, %v1077_v60  ;;  %v1413_v14 = vpack.c.bf16 (!%p1356_p11), %v1080_v2, %v1079_v1 }
 0x160   : > { %v1499_v23 = vadd.f32 %v1498_v21, %v1497_v18  ;;  %v1562_v24 = vpop.f32.mrb[27].mxu1 }
 0x161   : > { %v1000_v25 = vadd.f32 %v1560_v19, %v1496_v16  ;;  %v1563_v26 = vadd.f32 %v1562_v24, %v1561_v20  ;;  %v1418_v19 = vpack.c.bf16 (!%p1356_p11), %v1082_v8, %v1081_v7  ;;  %1436 = vst [vmem:[%s1985_s3 + $0x10] sm:$0xff] (!%p1356_p11), %v1408_v13   ;;  %1437 = vst [vmem:[%s1985_s3 + $0x18] sm:$0xff] (!%p1356_p11), %v1413_v14  }
 0x163   : > { %v1026_v28 = vadd.f32 %v1000_v25, %v368_v22  ;;  %v1003_v29 = vadd.f32 %v1563_v26, %v1499_v23  ;;  %1438 = vst [vmem:[%s1985_s3 + $0x20] sm:$0xff] (!%p1356_p11), %v1418_v19  }
 0x164   : > { %v1500_v30 = vpop.f32.mrb[28].mxu0  ;;  %v1060_v5 = vld [vmem:[#allocation2 + $0x50] sm:$0xff] (!%p1356_p11) }
 0x165   : > { %1042 = vst [vmem:[#allocation2 + $0x60] sm:$0xff] %v1026_v28  ;;  %v1027_v31 = vadd.f32 %v1003_v29, %v369_v27  ;;  %v1564_v32 = vpop.f32.mrb[28].mxu1  ;;  %v1501_v33 = vpop.f32.mrb[29].mxu0  ;;  %v1083_v10 = vadd.f32 (!%p1356_p11), %v1357_v51, %v1060_v5 }
 0x166   : > { %v1502_v34 = vadd.f32 %v1501_v33, %v1500_v30  ;;  %v1565_v35 = vpop.f32.mrb[29].mxu1  ;;  %v1503_v36 = vpop.f32.mrb[30].mxu0  ;;  %v1061_v9 = vld [vmem:[#allocation2 + $0x58] sm:$0xff] (!%p1356_p11) }
 0x167   : > { %1043 = vst [vmem:[#allocation2 + $0x68] sm:$0xff] %v1027_v31  ;;  %v1566_v37 = vadd.f32 %v1565_v35, %v1564_v32  ;;  %v1567_v38 = vpop.f32.mrb[30].mxu1  ;;  %v1504_v39 = vpop.f32.mrb[31].mxu0  ;;  %v1084_v15 = vadd.f32 (!%p1356_p11), %v1357_v51, %v1061_v9 }
 0x168   : > { %v1505_v41 = vadd.f32 %v1504_v39, %v1503_v36  ;;  %v1568_v42 = vpop.f32.mrb[31].mxu1 }
 0x169   : > { %v1008_v43 = vadd.f32 %v1566_v37, %v1502_v34  ;;  %v1569_v44 = vadd.f32 %v1568_v42, %v1567_v38  ;;  %1049 = sbr.rel (%p1356_p11) target bundleno = 380 (0x17c), region = 63  ;;  %v1423_v23 = vpack.c.bf16 (!%p1356_p11), %v1084_v15, %v1083_v10 }
 0x16b   : > { %v1028_v46 = vadd.f32 %v1008_v43, %v370_v40  ;;  %v1011_v47 = vadd.f32 %v1569_v44, %v1505_v41  ;;  %1439 = vst [vmem:[%s1985_s3 + $0x28] sm:$0xff] (!%p1356_p11), %v1423_v23  }
 0x16c   : > { %v1062_v11 = vld [vmem:[#allocation2 + $0x60] sm:$0xff] (!%p1356_p11) }
 0x16d   : > { %1044 = vst [vmem:[#allocation2 + $0x70] sm:$0xff] %v1028_v46  ;;  %v1029_v48 = vadd.f32 %v1011_v47, %v371_v45  ;;  %v1085_v16 = vadd.f32 (!%p1356_p11), %v1357_v51, %v1062_v11 }
 0x16e   : > { %v1063_v12 = vld [vmem:[#allocation2 + $0x68] sm:$0xff] (!%p1356_p11) }
 0x16f   : > { %1045 = vst [vmem:[#allocation2 + $0x78] sm:$0xff] %v1029_v48  ;;  %v1086_v20 = vadd.f32 (!%p1356_p11), %v1357_v51, %v1063_v12 }
 0x171   : > { %v1428_v24 = vpack.c.bf16 %v1086_v20, %v1085_v16 }
 0x173   : > { %1440 = vst [vmem:[%s1985_s3 + $0x30] sm:$0xff] %v1428_v24  }
 0x174   : > { %v1064_v17 = vld [vmem:[#allocation2 + $0x70] sm:$0xff] }
 0x175   : > { %v1087_v21 = vadd.f32 %v1357_v51, %v1064_v17 }
 0x176   : > { %v1065_v18 = vld [vmem:[#allocation2 + $0x78] sm:$0xff] }
 0x177   : > { %v1088_v22 = vadd.f32 %v1357_v51, %v1065_v18 }
 0x179   : > { %v1433_v25 = vpack.c.bf16 %v1088_v22, %v1087_v21 }
 0x17b   : > { %1441 = vst [vmem:[%s1985_s3 + $0x38] sm:$0xff] %v1433_v25  }
 0x17c PF: > { %s13_s16 = sadd.s32 1, %s1729_s16   ;;  %s1986_s12 = smov %s1717_s13 }
 0x17d   : > { %p10_p12 = scmp.ge.s32.totalorder %s13_s16, 4   ;;  %s1987_s13 = smov %s1787_s20 }
 0x17e   : > { %s1988_s14 = smov %s1725_s15  ;;  %s1989_s15 = smov %s1991_s17 }
 0x17f   :  { %12 = sbr.rel (!%p10_p12) target bundleno = 3 (0x3), region = 104 }

// kernel: generator_resnet_forward.22
= control target key start
LH: loop header
LB: loop body
LE: loop exit
PB: predicated region body
PF: predicated region fallthrough
CT: control target
= control target key end

     0   :  { %s619_s12 = smov 0   ;;  %s621_s13 = smov 0   ;;  %s665_s0 = inlined_call_operand.vmem [shape: bf16[2,64,128], index: 0, kind: input, shape index: {}]   ;;  %s666_s1 = inlined_call_operand.vmem [shape: f32[1,1,128], index: 1, kind: input, shape index: {}]   ;;  %s667_s2 = inlined_call_operand.vmem [shape: f32[1,1,128], index: 2, kind: input, shape index: {}]   ;;  %s668_s3 = inlined_call_operand.vmem [shape: bf16[2,64,128], index: 3, kind: output, shape index: {}]  }
   0x1   :  { %s623_s14 = smov 0  }
   0x2 LB: > { %s25_s15 = sadd.s32 1, %s593_s13  ;;  %p482_p0 = scmp.ge.s32.totalorder %s597_s14, 1  ;;  %s597_s14 = sphi %s623_s14, %s13_s14   ;;  %s593_s13 = sphi %s621_s13, %s670_s13   ;;  %s589_s12 = sphi %s619_s12, %s669_s12  }
   0x3   : > { %p27_p1 = scmp.ge.s32.totalorder %s25_s15, 2  ;;  %p172_p2 = scmp.lt.s32.totalorder %s597_s14, 3 }
   0x5   : > { %s672_s15 = smov (%p27_p1, %s25_s15), 0  ;;  %p173_p3 = pnand %p482_p0, %p172_p2 }
   0x6   : > { %p208_p4 = scmp.lt.s32.totalorder (!%p173_p3), %s589_s12, 1  ;;  %v293_v52 = vlaneseq (!%p173_p3)  ;;  %v285_v54 = vld [vmem:[%s666_s1] sm:$0x1] (!%p173_p3) }
   0x7   : > { %176 = sbr.rel (%p173_p3) target bundleno = 83 (0x53), region = 32  ;;  %v289_v58 = vld [vmem:[%s667_s2] sm:$0x1] (!%p173_p3) }
   0x8   : > { %v294_v53 = vshrl.u32 (!%p173_p3), %v293_v52, 7 }
   0xa   : > { %v295_v55 = vsub.s32 (!%p173_p3), 0, %v294_v53 }
   0xe   : > { %s674_s12 = smov (!%p208_p4, %s589_s12), 1 }
   0xf   : > { %s497_s16 = sshll.u32 %s674_s12, 5 }
  0x10   : > { %s215_s19 = scalar_lea.vmem %s665_s0, %s497_s16  ;;  %s229_s26 = scalar_lea.vmem %s668_s3, %s497_s16 }
  0x11   : > { %v508_v0 = vld [vmem:[%s215_s19] sm:$0xff]   ;;  %v543_v1 = vld [vmem:[%s215_s19 + $0x8] sm:$0xff]   ;;  %v544_v2 = vld [vmem:[%s215_s19 + $0x10] sm:$0xff]  }
  0x12   : > { %v509_v3 = vunpack.c.l.bf16 %v508_v0  ;;  %v510_v4 = vunpack.c.h.bf16 %v508_v0  ;;  %v513_v5 = vunpack.c.l.bf16 %v543_v1  ;;  %v514_v6 = vunpack.c.h.bf16 %v543_v1  ;;  %v545_v12 = vld [vmem:[%s215_s19 + $0x18] sm:$0xff]  }
  0x13   : > { %v517_v7 = vunpack.c.l.bf16 %v544_v2  ;;  %v518_v13 = vunpack.c.h.bf16 %v544_v2  ;;  %v521_v17 = vunpack.c.l.bf16 %v545_v12  ;;  %v522_v21 = vunpack.c.h.bf16 %v545_v12 }
  0x14   : > { %v246_v8 = vadd.f32 %v510_v4, %v509_v3  ;;  %v260_v9 = vmul.f32 %v509_v3, %v509_v3  ;;  %v261_v10 = vmul.f32 %v510_v4, %v510_v4  ;;  %v262_v11 = vmul.f32 %v513_v5, %v513_v5 }
  0x15   : > { %v263_v15 = vmul.f32 %v514_v6, %v514_v6  ;;  %v264_v19 = vmul.f32 %v517_v7, %v517_v7  ;;  %v265_v23 = vmul.f32 %v518_v13, %v518_v13  ;;  %v266_v26 = vmul.f32 %v521_v17, %v521_v17 }
  0x16   : > { %v247_v14 = vadd.f32 %v513_v5, %v246_v8  ;;  %v268_v16 = vadd.f32 %v261_v10, %v260_v9  ;;  %v267_v29 = vmul.f32 %v522_v21, %v522_v21 }
  0x18   : > { %v248_v18 = vadd.f32 %v514_v6, %v247_v14  ;;  %v269_v20 = vadd.f32 %v268_v16, %v262_v11 }
  0x1a   : > { %v249_v22 = vadd.f32 %v517_v7, %v248_v18  ;;  %v270_v24 = vadd.f32 %v269_v20, %v263_v15 }
  0x1c   : > { %v250_v25 = vadd.f32 %v518_v13, %v249_v22  ;;  %v271_v27 = vadd.f32 %v270_v24, %v264_v19 }
  0x1e   : > { %v251_v28 = vadd.f32 %v521_v17, %v250_v25  ;;  %v272_v30 = vadd.f32 %v271_v27, %v265_v23 }
  0x20   : > { %v252_v31 = vadd.f32 %v522_v21, %v251_v28  ;;  %v273_v32 = vadd.f32 %v272_v30, %v266_v26 }
  0x22   : > { %v253_v33 = vrot.slane %v252_v31, 4  ;;  %v274_v34 = vadd.f32 %v273_v32, %v267_v29 }
  0x24   : > { %v254_v35 = vadd.f32 %v253_v33, %v252_v31  ;;  %v275_v36 = vrot.slane %v274_v34, 4 }
  0x26   : > { %v255_v37 = vrot.slane %v254_v35, 2  ;;  %v276_v38 = vadd.f32 %v275_v36, %v274_v34 }
  0x28   : > { %v256_v39 = vadd.f32 %v255_v37, %v254_v35  ;;  %v277_v40 = vrot.slane %v276_v38, 2 }
  0x2a   : > { %v257_v41 = vrot.slane %v256_v39, 1  ;;  %v278_v42 = vadd.f32 %v277_v40, %v276_v38 }
  0x2c   : > { %v258_v43 = vadd.f32 %v257_v41, %v256_v39  ;;  %v279_v44 = vrot.slane %v278_v42, 1 }
  0x2e   : > { %v259_v45 = vmul.f32 0.015625, %v258_v43  ;;  %v280_v46 = vadd.f32 %v279_v44, %v278_v42 }
  0x30   : > { %v281_v47 = vmul.f32 0.015625, %v280_v46  ;;  %v282_v48 = vmul.f32 %v259_v45, %v259_v45 }
  0x32   : > { %v283_v49 = vsub.f32 %v281_v47, %v282_v48 }
  0x34   : > { %v284_v50 = vmax.f32 %v283_v49, 0.0 }
  0x36   : > { %v286_v51 = vadd.f32 1e-05, %v284_v50 }
  0x38   : > { %573 = vrsqrt.f32 %v286_v51 }
  0x42   : > { %v574_v56 = vpop.eup %573 }
  0x43   : > { %v288_v57 = vmul.f32 %v574_v56, %v285_v54 }
  0x45   : > { %v290_v59 = vmul.f32 %v288_v57, %v259_v45  ;;  %v296_v60 = vrot.slane %v288_v57, %v295_v55 }
  0x47   : > { %v291_v61 = vsub.f32 %v289_v58, %v290_v59  ;;  %v298_v62 = vmul.f32 %v509_v3, %v296_v60  ;;  %v299_v63 = vmul.f32 %v510_v4, %v296_v60  ;;  %v300_v0 = vmul.f32 %v513_v5, %v296_v60 }
  0x48   : > { %v301_v1 = vmul.f32 %v514_v6, %v296_v60  ;;  %v302_v2 = vmul.f32 %v517_v7, %v296_v60  ;;  %v303_v8 = vmul.f32 %v518_v13, %v296_v60  ;;  %v304_v9 = vmul.f32 %v521_v17, %v296_v60 }
  0x49   : > { %v310_v10 = vrot.slane %v291_v61, %v295_v55  ;;  %v305_v11 = vmul.f32 %v522_v21, %v296_v60 }
  0x4b   : > { %v312_v12 = vadd.f32 %v310_v10, %v298_v62  ;;  %v313_v14 = vadd.f32 %v310_v10, %v299_v63  ;;  %v314_v15 = vadd.f32 %v310_v10, %v300_v0  ;;  %v315_v16 = vadd.f32 %v310_v10, %v301_v1 }
  0x4c   : > { %v316_v18 = vadd.f32 %v310_v10, %v302_v2  ;;  %v317_v19 = vadd.f32 %v310_v10, %v303_v8  ;;  %v318_v20 = vadd.f32 %v310_v10, %v304_v9  ;;  %v319_v22 = vadd.f32 %v310_v10, %v305_v11 }
  0x4d   : > { %v320_v23 = vmax.f32 %v312_v12, 0.0  ;;  %v321_v24 = vmax.f32 %v313_v14, 0.0  ;;  %v322_v3 = vmax.f32 %v314_v15, 0.0  ;;  %v323_v4 = vmax.f32 %v315_v16, 0.0 }
  0x4e   : > { %v324_v5 = vmax.f32 %v316_v18, 0.0  ;;  %v325_v6 = vmax.f32 %v317_v19, 0.0  ;;  %v326_v7 = vmax.f32 %v318_v20, 0.0  ;;  %v327_v13 = vmax.f32 %v319_v22, 0.0 }
  0x4f   : > { %v526_v17 = vpack.c.bf16 %v321_v24, %v320_v23  ;;  %v531_v21 = vpack.c.bf16 %v323_v4, %v322_v3 }
  0x50   : > { %v536_v25 = vpack.c.bf16 %v325_v6, %v324_v5  ;;  %v541_v26 = vpack.c.bf16 %v327_v13, %v326_v7 }
  0x51   : > { %527 = vst [vmem:[%s229_s26] sm:$0xff] %v526_v17   ;;  %546 = vst [vmem:[%s229_s26 + $0x8] sm:$0xff] %v531_v21  }
  0x52   : > { %547 = vst [vmem:[%s229_s26 + $0x10] sm:$0xff] %v536_v25   ;;  %548 = vst [vmem:[%s229_s26 + $0x18] sm:$0xff] %v541_v26  }
  0x53 PF: > { %s13_s14 = sadd.s32 1, %s597_s14   ;;  %s669_s12 = smov %s593_s13 }
  0x54   : > { %p10_p5 = scmp.ge.s32.totalorder %s13_s14, 4   ;;  %s670_s13 = smov %s672_s15 }
  0x56   :  { %12 = sbr.rel (!%p10_p5) target bundleno = 2 (0x2), region = 68 }

// kernel: generator_resnet_forward.23
= control target key start
LH: loop header
LB: loop body
LE: loop exit
PB: predicated region body
PF: predicated region fallthrough
CT: control target
= control target key end

     0   :  { %s1380_s12 = smov 0   ;;  %s1382_s13 = smov 0   ;;  %s1538_s0 = inlined_call_operand.vmem [shape: bf16[32,2048], index: 0, kind: input, shape index: {}]   ;;  %s1539_s1 = inlined_call_operand.vmem [shape: bf16[2048,256], index: 1, kind: input, shape index: {}]   ;;  %s1540_s2 = inlined_call_operand.vmem [shape: f32[1,256], index: 2, kind: input, shape index: {}]   ;;  %s1541_s3 = inlined_call_operand.vmem [shape: bf16[32,256], index: 3, kind: output, shape index: {}]  }
   0x1   :  { %s1384_s14 = smov 0   ;;  %s1386_s15 = smov 0  }
   0x2   :  { %s1388_s16 = smov 0  }
   0x3 LB: > { %s25_s17 = sadd.s32 1, %s1353_s15  ;;  %p48_p1 = scmp.ne.s32.totalorder %s1345_s13, %s1341_s12  ;;  %s1357_s16 = sphi %s1388_s16, %s13_s16   ;;  %s1353_s15 = sphi %s1386_s15, %s1545_s15   ;;  %s1349_s14 = sphi %s1384_s14, %s1544_s14   ;;  %s1345_s13 = sphi %s1382_s13, %s1543_s13   ;;  %s1341_s12 = sphi %s1380_s12, %s1542_s12  }
   0x4   : > { %p26_p0 = scmp.ge.s32.totalorder %s25_s17, 4  ;;  %p49_p2 = scmp.eq.s32.totalorder %s1357_s16, 0 }
   0x5   : > { %s41_s19 = sadd.s32 1, %s1345_s13  ;;  %p1065_p5 = scmp.ge.s32.totalorder %s1357_s16, 4 }
   0x6   : > { %s1547_s17 = smov (%p26_p0, %s25_s17), 0  ;;  %p50_p3 = por %p49_p2, %p48_p1 }
   0x7   : > { %s37_s18 = ssub.s32 %s1353_s15, %s1547_s17  ;;  %164 = sbr.rel (%p1065_p5) target bundleno = 22 (0x16), region = 20 }
   0x8   : > { %p39_p4 = scmp.eq.s32.totalorder %s37_s18, 0 }
   0xa   : > { %s1415_s20 = scalar_select %p39_p4, %s1345_s13, %s41_s19  }
   0xe   : > { %167 = sbr.rel (!%p50_p3) target bundleno = 22 (0x16), region = 24  ;;  %s169_s21 = sand.u32 (%p50_p3), 1, %s1345_s13  }
   0xf   : > { %s1156_s22 = sshll.u32 (%p50_p3), %s1353_s15, 4  ;;  %s1066_s23 = sshll.u32 (%p50_p3), %s169_s21, 6 }
  0x10   : > { %s177_s26 = scalar_lea.vmem (%p50_p3), %s1538_s0, %s1156_s22  ;;  %s171_s27 = scalar_lea.vmem (%p50_p3), [#allocation3], %s1066_s23 }
  0x11   : > { %v190_v0 = vld [vmem:[%s177_s26] sm:$0xff] (%p50_p3)  ;;  %v192_v1 = vld [vmem:[%s177_s26 + $0x8] sm:$0xff] (%p50_p3) }
  0x12   : > { %v194_v2 = vld [vmem:[%s177_s26 + $0x40] sm:$0xff] (%p50_p3)  ;;  %191 = vst [vmem:[%s171_s27] sm:$0xff] (%p50_p3), %v190_v0  ;;  %193 = vst [vmem:[%s171_s27 + $0x8] sm:$0xff] (%p50_p3), %v192_v1  ;;  %v196_v3 = vld [vmem:[%s177_s26 + $0x48] sm:$0xff] (%p50_p3) }
  0x13   : > { %195 = vst [vmem:[%s171_s27 + $0x10] sm:$0xff] (%p50_p3), %v194_v2  ;;  %v198_v4 = vld [vmem:[%s177_s26 + $0x80] sm:$0xff] (%p50_p3)  ;;  %v200_v5 = vld [vmem:[%s177_s26 + $0x88] sm:$0xff] (%p50_p3)  ;;  %197 = vst [vmem:[%s171_s27 + $0x18] sm:$0xff] (%p50_p3), %v196_v3 }
  0x14   : > { %199 = vst [vmem:[%s171_s27 + $0x20] sm:$0xff] (%p50_p3), %v198_v4  ;;  %201 = vst [vmem:[%s171_s27 + $0x28] sm:$0xff] (%p50_p3), %v200_v5  ;;  %v202_v6 = vld [vmem:[%s177_s26 + $0xc0] sm:$0xff] (%p50_p3)  ;;  %v204_v7 = vld [vmem:[%s177_s26 + $0xc8] sm:$0xff] (%p50_p3) }
  0x15   : > { %203 = vst [vmem:[%s171_s27 + $0x30] sm:$0xff] %v202_v6  ;;  %205 = vst [vmem:[%s171_s27 + $0x38] sm:$0xff] %v204_v7 }
  0x16 PF: > { %p1069_p6 = scmp.ge.s32.totalorder %s1357_s16, 1  ;;  %p225_p7 = scmp.lt.s32.totalorder %s1357_s16, 5 }
  0x18   : > { %p226_p8 = pnand %p1069_p6, %p225_p7 }
  0x19   : > { %s232_s28 = sand.u32 (!%p226_p8), 1, %s1341_s12   ;;  %s1071_s29 = sshll.u32 (!%p226_p8), %s1349_s14, 6 }
  0x1a   : > { %229 = sbr.rel (%p226_p8) target bundleno = 346 (0x15a), region = 51  ;;  %s1070_s30 = sshll.u32 (!%p226_p8), %s232_s28, 6 }
  0x1b   : > { %p278_p9 = scmp.lt.s32.totalorder (!%p226_p8), %s1071_s29, 255  ;;  %s1432_s8 = scalar_lea.vmem (!%p226_p8), [#allocation3], %s1070_s30 }
  0x1c   : > { %p1074_p10 = scmp.ne.s32.totalorder (!%p226_p8), %s1349_s14, 0 }
  0x21   : > { %s1549_s29 = smov (!%p278_p9, %s1071_s29), 255  ;;  %308 = sbr.rel (%p1074_p10) target bundleno = 40 (0x28), region = 59 }
  0x22   : > { %s1157_s4 = sshll.u32 %s1549_s29, 3  ;;  %v1359_v8 = vmov (!%p1074_p10), 0.0  }
  0x23   : > { %s1430_s7 = scalar_lea.vmem %s1539_s1, %s1157_s4  ;;  %309 = vst [vmem:[#allocation2] sm:$0xff] (!%p1074_p10), %v1359_v8  ;;  %310 = vst [vmem:[#allocation2 + $0x8] sm:$0xff] (!%p1074_p10), %v1359_v8 }
  0x24   : > { %311 = vst [vmem:[#allocation2 + $0x10] sm:$0xff] (!%p1074_p10), %v1359_v8  ;;  %312 = vst [vmem:[#allocation2 + $0x18] sm:$0xff] (!%p1074_p10), %v1359_v8 }
  0x25   : > { %313 = vst [vmem:[#allocation2 + $0x20] sm:$0xff] (!%p1074_p10), %v1359_v8  ;;  %314 = vst [vmem:[#allocation2 + $0x28] sm:$0xff] (!%p1074_p10), %v1359_v8 }
  0x26   : > { %315 = vst [vmem:[#allocation2 + $0x30] sm:$0xff] (!%p1074_p10), %v1359_v8  ;;  %316 = vst [vmem:[#allocation2 + $0x38] sm:$0xff] (!%p1074_p10), %v1359_v8 }
  0x28 PF: > { %v1211_v9 = vld [vmem:[%s1430_s7 + $0x4] ss:$8 sps:$4 sm:$0xff]   ;;  %v1215_v11 = vld [vmem:[%s1430_s7] ss:$8 sps:$4 sm:$0xff]   ;;  %v1217_v13 = vld [vmem:[%s1430_s7 + $0x14] ss:$8 sps:$4 sm:$0xff]  }
  0x29   : > { %v1213_v10 = vld [vmem:[%s1430_s7 + $0x104] ss:$8 sps:$4 sm:$0xff]   ;;  %757 = vmatprep.subr.bf16.mxu1 %v1211_v9  ;;  %v1216_v12 = vld [vmem:[%s1430_s7 + $0x100] ss:$8 sps:$4 sm:$0xff]   ;;  %v1219_v14 = vld [vmem:[%s1430_s7 + $0x114] ss:$8 sps:$4 sm:$0xff]  }
  0x2a   : > { %810 = vmatprep.subr.bf16.mxu0 %v1213_v10  ;;  %758 = vmatpush1.bf16.msra.mxu1 %v1215_v11  ;;  %v1221_v15 = vld [vmem:[%s1430_s7 + $0x10] ss:$8 sps:$4 sm:$0xff]   ;;  %v1223_v17 = vld [vmem:[%s1430_s7 + $0x24] ss:$8 sps:$4 sm:$0xff]   ;;  %v1227_v19 = vld [vmem:[%s1430_s7 + $0x20] ss:$8 sps:$4 sm:$0xff]  }
  0x2b   : > { %811 = vmatpush1.bf16.msra.mxu0 %v1216_v12  ;;  %759 = vmatprep.subr.bf16.mxu1 %v1217_v13  ;;  %v1222_v16 = vld [vmem:[%s1430_s7 + $0x110] ss:$8 sps:$4 sm:$0xff]   ;;  %v1225_v18 = vld [vmem:[%s1430_s7 + $0x124] ss:$8 sps:$4 sm:$0xff]   ;;  %v1228_v20 = vld [vmem:[%s1430_s7 + $0x120] ss:$8 sps:$4 sm:$0xff]  }
  0x2c   : > { %812 = vmatprep.subr.bf16.mxu0 %v1219_v14  ;;  %v1229_v21 = vld [vmem:[%s1430_s7 + $0x34] ss:$8 sps:$4 sm:$0xff]   ;;  %v1233_v23 = vld [vmem:[%s1430_s7 + $0x30] ss:$8 sps:$4 sm:$0xff]   ;;  %v1235_v25 = vld [vmem:[%s1430_s7 + $0x44] ss:$8 sps:$4 sm:$0xff]  }
  0x2d   : > { %v1231_v22 = vld [vmem:[%s1430_s7 + $0x134] ss:$8 sps:$4 sm:$0xff]   ;;  %v1234_v24 = vld [vmem:[%s1430_s7 + $0x130] ss:$8 sps:$4 sm:$0xff]   ;;  %v1237_v26 = vld [vmem:[%s1430_s7 + $0x144] ss:$8 sps:$4 sm:$0xff]  }
  0x2e   : > { %760 = vmatpush1.bf16.msra.mxu1 %v1221_v15  ;;  %v1239_v27 = vld [vmem:[%s1430_s7 + $0x40] ss:$8 sps:$4 sm:$0xff]   ;;  %v1241_v29 = vld [vmem:[%s1430_s7 + $0x54] ss:$8 sps:$4 sm:$0xff]   ;;  %v1245_v31 = vld [vmem:[%s1430_s7 + $0x50] ss:$8 sps:$4 sm:$0xff]  }
  0x2f   : > { %813 = vmatpush1.bf16.msra.mxu0 %v1222_v16  ;;  %761 = vmatprep.subr.bf16.mxu1 %v1223_v17  ;;  %v1240_v28 = vld [vmem:[%s1430_s7 + $0x140] ss:$8 sps:$4 sm:$0xff]   ;;  %v1243_v30 = vld [vmem:[%s1430_s7 + $0x154] ss:$8 sps:$4 sm:$0xff]   ;;  %v1246_v32 = vld [vmem:[%s1430_s7 + $0x150] ss:$8 sps:$4 sm:$0xff]  }
  0x30   : > { %814 = vmatprep.subr.bf16.mxu0 %v1225_v18  ;;  %v1247_v33 = vld [vmem:[%s1430_s7 + $0x64] ss:$8 sps:$4 sm:$0xff]   ;;  %v1251_v35 = vld [vmem:[%s1430_s7 + $0x60] ss:$8 sps:$4 sm:$0xff]   ;;  %v1253_v37 = vld [vmem:[%s1430_s7 + $0x74] ss:$8 sps:$4 sm:$0xff]  }
  0x31   : > { %v1249_v34 = vld [vmem:[%s1430_s7 + $0x164] ss:$8 sps:$4 sm:$0xff]   ;;  %v1252_v36 = vld [vmem:[%s1430_s7 + $0x160] ss:$8 sps:$4 sm:$0xff]   ;;  %v1255_v38 = vld [vmem:[%s1430_s7 + $0x174] ss:$8 sps:$4 sm:$0xff]  }
  0x32   : > { %762 = vmatpush1.bf16.msra.mxu1 %v1227_v19  ;;  %v1257_v39 = vld [vmem:[%s1430_s7 + $0x70] ss:$8 sps:$4 sm:$0xff]   ;;  %v1259_v41 = vld [vmem:[%s1430_s7 + $0x84] ss:$8 sps:$4 sm:$0xff]   ;;  %v1263_v43 = vld [vmem:[%s1430_s7 + $0x80] ss:$8 sps:$4 sm:$0xff]  }
  0x33   : > { %815 = vmatpush1.bf16.msra.mxu0 %v1228_v20  ;;  %763 = vmatprep.subr.bf16.mxu1 %v1229_v21  ;;  %v1258_v40 = vld [vmem:[%s1430_s7 + $0x170] ss:$8 sps:$4 sm:$0xff]   ;;  %v1261_v42 = vld [vmem:[%s1430_s7 + $0x184] ss:$8 sps:$4 sm:$0xff]   ;;  %v1264_v44 = vld [vmem:[%s1430_s7 + $0x180] ss:$8 sps:$4 sm:$0xff]  }
  0x34   : > { %816 = vmatprep.subr.bf16.mxu0 %v1231_v22  ;;  %v1265_v45 = vld [vmem:[%s1430_s7 + $0x94] ss:$8 sps:$4 sm:$0xff]   ;;  %v1269_v47 = vld [vmem:[%s1430_s7 + $0x90] ss:$8 sps:$4 sm:$0xff]   ;;  %v1271_v49 = vld [vmem:[%s1430_s7 + $0xa4] ss:$8 sps:$4 sm:$0xff]  }
  0x35   : > { %v1267_v46 = vld [vmem:[%s1430_s7 + $0x194] ss:$8 sps:$4 sm:$0xff]   ;;  %v1270_v48 = vld [vmem:[%s1430_s7 + $0x190] ss:$8 sps:$4 sm:$0xff]   ;;  %v1273_v50 = vld [vmem:[%s1430_s7 + $0x1a4] ss:$8 sps:$4 sm:$0xff]  }
  0x36   : > { %764 = vmatpush1.bf16.msra.mxu1 %v1233_v23  ;;  %v1275_v51 = vld [vmem:[%s1430_s7 + $0xa0] ss:$8 sps:$4 sm:$0xff]   ;;  %v1277_v53 = vld [vmem:[%s1430_s7 + $0xb4] ss:$8 sps:$4 sm:$0xff]   ;;  %v1281_v55 = vld [vmem:[%s1430_s7 + $0xb0] ss:$8 sps:$4 sm:$0xff]  }
  0x37   : > { %817 = vmatpush1.bf16.msra.mxu0 %v1234_v24  ;;  %765 = vmatprep.subr.bf16.mxu1 %v1235_v25  ;;  %v1276_v52 = vld [vmem:[%s1430_s7 + $0x1a0] ss:$8 sps:$4 sm:$0xff]   ;;  %v1279_v54 = vld [vmem:[%s1430_s7 + $0x1b4] ss:$8 sps:$4 sm:$0xff]   ;;  %v1282_v56 = vld [vmem:[%s1430_s7 + $0x1b0] ss:$8 sps:$4 sm:$0xff]  }
  0x38   : > { %818 = vmatprep.subr.bf16.mxu0 %v1237_v26  ;;  %v1283_v57 = vld [vmem:[%s1430_s7 + $0xc4] ss:$8 sps:$4 sm:$0xff]   ;;  %v1287_v61 = vld [vmem:[%s1430_s7 + $0xc0] ss:$8 sps:$4 sm:$0xff]   ;;  %v1289_v63 = vld [vmem:[%s1430_s7 + $0xd4] ss:$8 sps:$4 sm:$0xff]  }
  0x39   : > { %v1309_v58 = vld [vmem:[%s1432_s8 + $0x4] ss:$16 sps:$4 sm:$0xff]   ;;  %v1312_v60 = vld [vmem:[%s1432_s8 + $0xc] ss:$16 sps:$4 sm:$0xff]   ;;  %v1288_v62 = vld [vmem:[%s1430_s7 + $0x1c0] ss:$8 sps:$4 sm:$0xff]  }
  0x3a   : > { %766 = vmatpush1.bf16.msra.mxu1 %v1239_v27  ;;  %v1285_v59 = vld [vmem:[%s1430_s7 + $0x1c4] ss:$8 sps:$4 sm:$0xff]   ;;  %789 = vmatprep.mubr.bf16.mxu1 %v1309_v58  ;;  %v1291_v0 = vld [vmem:[%s1430_s7 + $0x1d4] ss:$8 sps:$4 sm:$0xff]   ;;  %v1293_v1 = vld [vmem:[%s1430_s7 + $0xd0] ss:$8 sps:$4 sm:$0xff]  }
  0x3b   : > { %819 = vmatpush1.bf16.msra.mxu0 %v1240_v28  ;;  %767 = vmatprep.subr.bf16.mxu1 %v1241_v29  ;;  %v1294_v2 = vld [vmem:[%s1430_s7 + $0x1d0] ss:$8 sps:$4 sm:$0xff]   ;;  %v1295_v3 = vld [vmem:[%s1430_s7 + $0xe4] ss:$8 sps:$4 sm:$0xff]   ;;  %v1299_v5 = vld [vmem:[%s1430_s7 + $0xe0] ss:$8 sps:$4 sm:$0xff]  }
  0x3c   : > { %820 = vmatprep.subr.bf16.mxu0 %v1243_v30  ;;  %842 = vmatprep.mubr.bf16.mxu0 %v1312_v60  ;;  %v1297_v4 = vld [vmem:[%s1430_s7 + $0x1e4] ss:$8 sps:$4 sm:$0xff]   ;;  %v1300_v6 = vld [vmem:[%s1430_s7 + $0x1e0] ss:$8 sps:$4 sm:$0xff]   ;;  %v1301_v7 = vld [vmem:[%s1430_s7 + $0xf4] ss:$8 sps:$4 sm:$0xff]  }
  0x3d   : > { %v1303_v8 = vld [vmem:[%s1430_s7 + $0x1f4] ss:$8 sps:$4 sm:$0xff]   ;;  %v1305_v9 = vld [vmem:[%s1430_s7 + $0xf0] ss:$8 sps:$4 sm:$0xff]   ;;  %v317_v18 = vld [vmem:[#allocation2] sm:$0xff]  ;;  %p1147_p11 = scmp.ne.s32.totalorder %s1349_s14, 3 }
  0x3e   : > { %768 = vmatpush1.bf16.msra.mxu1 %v1245_v31  ;;  %v1306_v10 = vld [vmem:[%s1430_s7 + $0x1f0] ss:$8 sps:$4 sm:$0xff]   ;;  %v1313_v13 = vld [vmem:[%s1432_s8 + $0x24] ss:$16 sps:$4 sm:$0xff]   ;;  %v1315_v14 = vld [vmem:[%s1432_s8 + $0x2c] ss:$16 sps:$4 sm:$0xff]  }
  0x3f   : > { %821 = vmatpush1.bf16.msra.mxu0 %v1246_v32  ;;  %769 = vmatprep.subr.bf16.mxu1 %v1247_v33  ;;  %v1307_v11 = vld [vmem:[%s1432_s8] ss:$16 sps:$4 sm:$0xff]   ;;  %v1310_v12 = vld [vmem:[%s1432_s8 + $0x8] ss:$16 sps:$4 sm:$0xff]  }
  0x40   : > { %822 = vmatprep.subr.bf16.mxu0 %v1249_v34  ;;  %v1317_v15 = vld [vmem:[%s1432_s8 + $0x20] ss:$16 sps:$4 sm:$0xff]   ;;  %v1318_v16 = vld [vmem:[%s1432_s8 + $0x28] ss:$16 sps:$4 sm:$0xff]  }
  0x41   : > { %v318_v22 = vld [vmem:[#allocation2 + $0x8] sm:$0xff]  ;;  %v319_v26 = vld [vmem:[#allocation2 + $0x10] sm:$0xff]  ;;  %v320_v31 = vld [vmem:[#allocation2 + $0x18] sm:$0xff] }
  0x42   : > { %770 = vmatpush1.bf16.msra.mxu1 %v1251_v35 }
  0x43   : > { %823 = vmatpush1.bf16.msra.mxu0 %v1252_v36  ;;  %771 = vmatprep.subr.bf16.mxu1 %v1253_v37 }
  0x44   : > { %824 = vmatprep.subr.bf16.mxu0 %v1255_v38  ;;  %v321_v38 = vld [vmem:[#allocation2 + $0x20] sm:$0xff] }
  0x46   : > { %772 = vmatpush1.bf16.msra.mxu1 %v1257_v39 }
  0x47   : > { %825 = vmatpush1.bf16.msra.mxu0 %v1258_v40  ;;  %773 = vmatprep.subr.bf16.mxu1 %v1259_v41 }
  0x48   : > { %826 = vmatprep.subr.bf16.mxu0 %v1261_v42  ;;  %v322_v42 = vld [vmem:[#allocation2 + $0x28] sm:$0xff] }
  0x4a   : > { %774 = vmatpush1.bf16.msra.mxu1 %v1263_v43 }
  0x4b   : > { %827 = vmatpush1.bf16.msra.mxu0 %v1264_v44  ;;  %775 = vmatprep.subr.bf16.mxu1 %v1265_v45 }
  0x4c   : > { %828 = vmatprep.subr.bf16.mxu0 %v1267_v46  ;;  %v323_v46 = vld [vmem:[#allocation2 + $0x30] sm:$0xff] }
  0x4e   : > { %776 = vmatpush1.bf16.msra.mxu1 %v1269_v47 }
  0x4f   : > { %829 = vmatpush1.bf16.msra.mxu0 %v1270_v48  ;;  %777 = vmatprep.subr.bf16.mxu1 %v1271_v49 }
  0x50   : > { %830 = vmatprep.subr.bf16.mxu0 %v1273_v50 }
  0x52   : > { %778 = vmatpush1.bf16.msra.mxu1 %v1275_v51  ;;  %v324_v51 = vld [vmem:[#allocation2 + $0x38] sm:$0xff] }
  0x53   : > { %831 = vmatpush1.bf16.msra.mxu0 %v1276_v52  ;;  %779 = vmatprep.subr.bf16.mxu1 %v1277_v53 }
  0x54   : > { %832 = vmatprep.subr.bf16.mxu0 %v1279_v54 }
  0x56   : > { %780 = vmatpush1.bf16.msra.mxu1 %v1281_v55 }
  0x57   : > { %833 = vmatpush1.bf16.msra.mxu0 %v1282_v56  ;;  %781 = vmatprep.subr.bf16.mxu1 %v1283_v57  ;;  %v893_v57 = vlaneseq (!%p1147_p11) }
  0x58   : > { %834 = vmatprep.subr.bf16.mxu0 %v1285_v59  ;;  %v891_v59 = vld [vmem:[%s1540_s2] sm:$0x3] (!%p1147_p11) }
  0x59   : > { %v894_v58 = vshrl.u32 (!%p1147_p11), %v893_v57, 7 }
  0x5a   : > { %782 = vmatpush1.bf16.msra.mxu1 %v1287_v61 }
  0x5b   : > { %835 = vmatpush1.bf16.msra.mxu0 %v1288_v62  ;;  %783 = vmatprep.subr.bf16.mxu1 %v1289_v63  ;;  %v895_v62 = vsub.s32 (!%p1147_p11), 0, %v894_v58  ;;  %v899_v63 = vsub.s32 (!%p1147_p11), 1, %v894_v58 }
  0x5c   : > { %836 = vmatprep.subr.bf16.mxu0 %v1291_v0 }
  0x5e   : > { %784 = vmatpush1.bf16.msra.mxu1 %v1293_v1 }
  0x5f   : > { %837 = vmatpush1.bf16.msra.mxu0 %v1294_v2  ;;  %785 = vmatprep.subr.bf16.mxu1 %v1295_v3  ;;  %v896_v3 = vrot.slane (!%p1147_p11), %v891_v59, %v895_v62 }
  0x60   : > { %838 = vmatprep.subr.bf16.mxu0 %v1297_v4  ;;  %v900_v4 = vrot.slane (!%p1147_p11), %v891_v59, %v899_v63 }
  0x62   : > { %786 = vmatpush1.bf16.msra.mxu1 %v1299_v5 }
  0x63   : > { %839 = vmatpush1.bf16.msra.mxu0 %v1300_v6  ;;  %787 = vmatprep.subr.bf16.mxu1 %v1301_v7 }
  0x64   : > { %840 = vmatprep.subr.bf16.mxu0 %v1303_v8 }
  0x66   : > { %788 = vmatpush1.bf16.msra.mxu1 %v1305_v9 }
  0x67   : > { %841 = vmatpush1.bf16.msra.mxu0 %v1306_v10 }
  0x69   : > { %790 = vmatmul.mubr.bf16.vlgmr.msra.gmra.mrb[0].mxu1 %v1307_v11 }
  0x6a   : > { %843 = vmatmul.mubr.bf16.vlgmr.msra.gmra.mrb[0].mxu0 %v1310_v12  ;;  %799 = vmatprep.mubr.bf16.mxu1 %v1313_v13 }
  0x6b   : > { %852 = vmatprep.mubr.bf16.mxu0 %v1315_v14 }
  0x71   : > { %800 = vmatmul.mubr.bf16.gmra.mrb[4].mxu1 %v1317_v15 }
  0x72   : > { %853 = vmatmul.mubr.bf16.gmra.mrb[4].mxu0 %v1318_v16 }
 0x13c   : > { %v791_v17 = vpop.f32.mrb[0].mxu1 }
 0x13d   : > { %v844_v19 = vpop.f32.mrb[0].mxu0  ;;  %v793_v21 = vpop.f32.mrb[1].mxu1 }
 0x13e   : > { %v845_v20 = vadd.f32 %v844_v19, %v791_v17  ;;  %v846_v23 = vpop.f32.mrb[1].mxu0  ;;  %v795_v25 = vpop.f32.mrb[2].mxu1 }
 0x13f   : > { %v847_v24 = vadd.f32 %v846_v23, %v793_v21  ;;  %v848_v27 = vpop.f32.mrb[2].mxu0  ;;  %v797_v30 = vpop.f32.mrb[3].mxu1 }
 0x140   : > { %v863_v28 = vadd.f32 %v845_v20, %v317_v18  ;;  %v849_v29 = vadd.f32 %v848_v27, %v795_v25  ;;  %v850_v32 = vpop.f32.mrb[3].mxu0 }
 0x141   : > { %v864_v33 = vadd.f32 %v847_v24, %v318_v22  ;;  %v851_v34 = vadd.f32 %v850_v32, %v797_v30 }
 0x142   : > { %871 = vst [vmem:[#allocation2] sm:$0xff] %v863_v28  ;;  %v865_v35 = vadd.f32 %v849_v29, %v319_v26 }
 0x143   : > { %872 = vst [vmem:[#allocation2 + $0x8] sm:$0xff] %v864_v33  ;;  %v866_v36 = vadd.f32 %v851_v34, %v320_v31 }
 0x144   : > { %873 = vst [vmem:[#allocation2 + $0x10] sm:$0xff] %v865_v35  ;;  %v801_v37 = vpop.f32.mrb[4].mxu1 }
 0x145   : > { %874 = vst [vmem:[#allocation2 + $0x18] sm:$0xff] %v866_v36  ;;  %v854_v39 = vpop.f32.mrb[4].mxu0  ;;  %v803_v41 = vpop.f32.mrb[5].mxu1 }
 0x146   : > { %v855_v40 = vadd.f32 %v854_v39, %v801_v37  ;;  %v856_v43 = vpop.f32.mrb[5].mxu0  ;;  %v805_v45 = vpop.f32.mrb[6].mxu1 }
 0x147   : > { %v857_v44 = vadd.f32 %v856_v43, %v803_v41  ;;  %v858_v47 = vpop.f32.mrb[6].mxu0  ;;  %v807_v50 = vpop.f32.mrb[7].mxu1  ;;  %882 = sbr.rel (%p1147_p11) target bundleno = 346 (0x15a), region = 63 }
 0x148   : > { %v867_v48 = vadd.f32 %v855_v40, %v321_v38  ;;  %v859_v49 = vadd.f32 %v858_v47, %v805_v45  ;;  %v860_v52 = vpop.f32.mrb[7].mxu0 }
 0x149   : > { %v868_v53 = vadd.f32 %v857_v44, %v322_v42  ;;  %v861_v54 = vadd.f32 %v860_v52, %v807_v50  ;;  %v883_v60 = vld [vmem:[#allocation2] sm:$0xff] (!%p1147_p11) }
 0x14a   : > { %875 = vst [vmem:[#allocation2 + $0x20] sm:$0xff] %v867_v48  ;;  %v869_v55 = vadd.f32 %v859_v49, %v323_v46  ;;  %v884_v61 = vld [vmem:[#allocation2 + $0x8] sm:$0xff] (!%p1147_p11)  ;;  %v903_v8 = vadd.f32 (!%p1147_p11), %v896_v3, %v883_v60 }
 0x14b   : > { %876 = vst [vmem:[#allocation2 + $0x28] sm:$0xff] %v868_v53  ;;  %v870_v56 = vadd.f32 %v861_v54, %v324_v51  ;;  %v885_v0 = vld [vmem:[#allocation2 + $0x10] sm:$0xff] (!%p1147_p11)  ;;  %v904_v9 = vadd.f32 (!%p1147_p11), %v900_v4, %v884_v61 }
 0x14c   : > { %877 = vst [vmem:[#allocation2 + $0x30] sm:$0xff] %v869_v55  ;;  %v886_v1 = vld [vmem:[#allocation2 + $0x18] sm:$0xff] (!%p1147_p11)  ;;  %v905_v10 = vadd.f32 (!%p1147_p11), %v896_v3, %v885_v0 }
 0x14d   : > { %878 = vst [vmem:[#allocation2 + $0x38] sm:$0xff] %v870_v56  ;;  %v906_v11 = vadd.f32 (!%p1147_p11), %v900_v4, %v886_v1  ;;  %v1158_v16 = vpack.c.bf16 (!%p1147_p11), %v904_v9, %v903_v8 }
 0x14f   : > { %v1159_v17 = vpack.c.bf16 %v906_v11, %v905_v10  ;;  %935 = vst [vmem:[%s1541_s3] sm:$0xff] %v1158_v16 }
 0x151   : > { %v887_v2 = vld [vmem:[#allocation2 + $0x20] sm:$0xff]  ;;  %936 = vst [vmem:[%s1541_s3 + $0x8] sm:$0xff] %v1159_v17 }
 0x152   : > { %v888_v5 = vld [vmem:[#allocation2 + $0x28] sm:$0xff]  ;;  %v907_v12 = vadd.f32 %v896_v3, %v887_v2 }
 0x153   : > { %v889_v6 = vld [vmem:[#allocation2 + $0x30] sm:$0xff]  ;;  %v908_v13 = vadd.f32 %v900_v4, %v888_v5 }
 0x154   : > { %v890_v7 = vld [vmem:[#allocation2 + $0x38] sm:$0xff]  ;;  %v909_v14 = vadd.f32 %v896_v3, %v889_v6 }
 0x155   : > { %v910_v15 = vadd.f32 %v900_v4, %v890_v7  ;;  %v1160_v18 = vpack.c.bf16 %v908_v13, %v907_v12 }
 0x157   : > { %v1161_v19 = vpack.c.bf16 %v910_v15, %v909_v14  ;;  %937 = vst [vmem:[%s1541_s3 + $0x10] sm:$0xff] %v1160_v18 }
 0x159   : > { %938 = vst [vmem:[%s1541_s3 + $0x18] sm:$0xff] %v1161_v19 }
 0x15a PF: > { %s13_s16 = sadd.s32 1, %s1357_s16   ;;  %s1542_s12 = smov %s1345_s13 }
 0x15b   : > { %p10_p12 = scmp.ge.s32.totalorder %s13_s16, 6   ;;  %s1543_s13 = smov %s1415_s20 }
 0x15c   : > { %s1544_s14 = smov %s1353_s15  ;;  %s1545_s15 = smov %s1547_s17 }
 0x15d   :  { %12 = sbr.rel (!%p10_p12) target bundleno = 3 (0x3), region = 104 }

// kernel: generator_resnet_forward.24
= control target key start
LH: loop header
LB: loop body
LE: loop exit
PB: predicated region body
PF: predicated region fallthrough
CT: control target
= control target key end

     0   :  { %s622_s12 = smov 0   ;;  %s624_s13 = smov 0   ;;  %s730_s0 = inlined_call_operand.vmem [shape: bf16[2,16,256], index: 0, kind: input, shape index: {}]   ;;  %s731_s1 = inlined_call_operand.vmem [shape: f32[1,1,256], index: 1, kind: input, shape index: {}]   ;;  %s732_s2 = inlined_call_operand.vmem [shape: f32[1,1,256], index: 2, kind: input, shape index: {}]   ;;  %s733_s3 = inlined_call_operand.vmem [shape: bf16[2,16,256], index: 3, kind: output, shape index: {}]  }
   0x1   :  { %s626_s14 = smov 0   ;;  %s628_s15 = smov 0  }
   0x2   :  { %s630_s16 = smov 0   ;;  %s632_s17 = smov 0  }
   0x3   :  { %s634_s18 = smov 0  }
   0x4 LB: > { %s22_s19 = sadd.s32 1, %s592_s16  ;;  %s25_s20 = sadd.s32 1, %s596_s17  ;;  %s600_s18 = sphi %s634_s18, %s13_s18   ;;  %s596_s17 = sphi %s632_s17, %s740_s17   ;;  %s592_s16 = sphi %s630_s16, %s739_s16   ;;  %s588_s15 = sphi %s628_s15, %s738_s15   ;;  %s584_s14 = sphi %s626_s14, %s737_s14   ;;  %s580_s13 = sphi %s624_s13, %s736_s13   ;;  %s576_s12 = sphi %s622_s12, %s735_s12  }
   0x5   : > { %p23_p0 = scmp.ge.s32.totalorder %s22_s19, 2  ;;  %s460_s21 = sadd.s32 4294967295, %s600_s18  }
   0x6   : > { %p41_p1 = scmp.ne.s32.totalorder %s580_s13, %s576_s12  ;;  %p42_p2 = scmp.eq.s32.totalorder %s600_s18, 0 }
   0x7   : > { %s742_s19 = smov (%p23_p0, %s22_s19), 0  ;;  %s744_s20 = smov (!%p23_p0, %s25_s20), %s596_s17 }
   0x8   : > { %p27_p3 = scmp.ge.s32.totalorder %s744_s20, 2  ;;  %p125_p4 = scmp.eq.s32.totalorder %s460_s21, 3 }
   0x9   : > { %s30_s22 = ssub.s32 %s592_s16, %s742_s19  ;;  %p43_p5 = por %p42_p2, %p41_p1 }
   0xa   : > { %s746_s20 = smov (%p27_p3, %s744_s20), 0  ;;  %p670_p6 = por %p125_p4, %p41_p1 }
   0xb   : > { %s29_s24 = ssub.s32 %s596_s17, %s746_s20  ;;  %s34_s26 = sadd.s32 1, %s580_s13 }
   0xc   : > { %s31_s25 = sor.u32 %s30_s22, %s29_s24  ;;  %p463_p8 = scmp.ge.s32.totalorder %s600_s18, 4 }
   0xd   : > { %p32_p7 = scmp.eq.s32.totalorder %s31_s25, 0 }
   0xe   : > { %147 = sbr.rel (%p463_p8) target bundleno = 28 (0x1c), region = 16 }
   0xf   : > { %s678_s27 = scalar_select %p32_p7, %s580_s13, %s34_s26  }
  0x15   : > { %150 = sbr.rel (!%p43_p5) target bundleno = 28 (0x1c), region = 20  ;;  %s152_s28 = sand.u32 (%p43_p5), 1, %s580_s13  }
  0x16   : > { %s465_s29 = sshll.u32 (%p43_p5), %s596_s17, 2  ;;  %s464_s30 = sshll.u32 (%p43_p5), %s152_s28, 3 }
  0x17   : > { %s156_s4 = sadd.s32 (%p43_p5), %s592_s16, %s465_s29  ;;  %s154_s9 = scalar_lea.vmem (%p43_p5), [#allocation2], %s464_s30 }
  0x18   : > { %s466_s5 = sshll.u32 (%p43_p5), %s156_s4, 2 }
  0x19   : > { %s158_s8 = scalar_lea.vmem (%p43_p5), %s730_s0, %s466_s5 }
  0x1a   : > { %v174_v0 = vld [vmem:[%s158_s8] sm:$0xf] (%p43_p5)  ;;  %v176_v1 = vld [vmem:[%s158_s8 + $0x8] sm:$0xf] (%p43_p5) }
  0x1b   : > { %175 = vst [vmem:[%s154_s9] sm:$0xf] (%p43_p5), %v174_v0  ;;  %177 = vst [vmem:[%s154_s9 + $0x4] sm:$0xf] (%p43_p5), %v176_v1 }
  0x1c PF: > { %p467_p9 = scmp.ge.s32.totalorder %s600_s18, 1  ;;  %p215_p10 = scmp.lt.s32.totalorder %s600_s18, 5 }
  0x1e   : > { %p216_p11 = pnand %p467_p9, %p215_p10 }
  0x1f   : > { %s222_s10 = sand.u32 (!%p216_p11), 1, %s576_s12   ;;  %p250_p12 = scmp.lt.s32.totalorder (!%p216_p11), %s584_s14, 1  ;;  %v289_v27 = vlaneseq (!%p216_p11) }
  0x20   : > { %219 = sbr.rel (%p216_p11) target bundleno = 95 (0x5f), region = 69  ;;  %s690_s11 = sshll.u32 (!%p216_p11), %s222_s10, 3 }
  0x21   : > { %s224_s21 = scalar_lea.vmem (!%p216_p11), [#allocation2], %s690_s11  ;;  %v290_v28 = vshrl.u32 (!%p216_p11), %v289_v27, 7  ;;  %s249_s30 = scalar_lea.vmem (!%p216_p11), [#allocation3], %s690_s11 }
  0x22   : > { %v480_v2 = vld [vmem:[%s224_s21] sm:$0xff] (!%p216_p11)  }
  0x23   : > { %v481_v3 = vunpack.c.l.bf16 (!%p216_p11), %v480_v2  ;;  %v482_v4 = vunpack.c.h.bf16 (!%p216_p11), %v480_v2  ;;  %v291_v30 = vsub.s32 (!%p216_p11), 0, %v290_v28 }
  0x25   : > { %v260_v5 = vadd.f32 (!%p216_p11), %v482_v4, %v481_v3  ;;  %v268_v6 = vmul.f32 (!%p216_p11), %v481_v3, %v481_v3  ;;  %v269_v7 = vmul.f32 (!%p216_p11), %v482_v4, %v482_v4 }
  0x27   : > { %v261_v8 = vrot.slane %v260_v5, 4  ;;  %v270_v9 = vadd.f32 %v269_v7, %v268_v6  ;;  %s251_s12 = scalar_select %p250_p12, %s584_s14, 1 }
  0x28   : > { %s473_s4 = sshll.u32 (%p670_p6), %s588_s15, 2 }
  0x29   : > { %v262_v10 = vadd.f32 %v261_v8, %v260_v5  ;;  %v271_v11 = vrot.slane %v270_v9, 4  ;;  %s252_s25 = scalar_lea.vmem %s731_s1, %s251_s12  ;;  %s255_s29 = scalar_lea.vmem %s732_s2, %s251_s12 }
  0x2a   : > { %v281_v29 = vld [vmem:[%s252_s25] sm:$0x1]  ;;  %s324_s5 = sadd.s32 (%p670_p6), %s584_s14, %s473_s4 }
  0x2b   : > { %v263_v12 = vrot.slane %v262_v10, 2  ;;  %v272_v13 = vadd.f32 %v271_v11, %v270_v9  ;;  %v285_v33 = vld [vmem:[%s255_s29] sm:$0x1]  ;;  %s474_s6 = sshll.u32 (%p670_p6), %s324_s5, 2 }
  0x2c   : > { %s326_s9 = scalar_lea.vmem (%p670_p6), %s733_s3, %s474_s6 }
  0x2d   : > { %v264_v14 = vadd.f32 %v263_v12, %v262_v10  ;;  %v273_v15 = vrot.slane %v272_v13, 2 }
  0x2f   : > { %v265_v16 = vrot.slane %v264_v14, 1  ;;  %v274_v17 = vadd.f32 %v273_v15, %v272_v13 }
  0x31   : > { %v266_v18 = vadd.f32 %v265_v16, %v264_v14  ;;  %v275_v19 = vrot.slane %v274_v17, 1 }
  0x33   : > { %v267_v20 = vmul.f32 0.0625, %v266_v18  ;;  %v276_v21 = vadd.f32 %v275_v19, %v274_v17 }
  0x35   : > { %v277_v22 = vmul.f32 0.0625, %v276_v21  ;;  %v278_v23 = vmul.f32 %v267_v20, %v267_v20 }
  0x37   : > { %v279_v24 = vsub.f32 %v277_v22, %v278_v23 }
  0x39   : > { %v280_v25 = vmax.f32 %v279_v24, 0.0 }
  0x3b   : > { %v282_v26 = vadd.f32 1e-05, %v280_v25 }
  0x3d   : > { %544 = vrsqrt.f32 %v282_v26 }
  0x47   : > { %v545_v31 = vpop.eup %544 }
  0x48   : > { %v284_v32 = vmul.f32 %v545_v31, %v281_v29 }
  0x4a   : > { %v286_v34 = vmul.f32 %v284_v32, %v267_v20  ;;  %v292_v35 = vrot.slane %v284_v32, %v291_v30 }
  0x4c   : > { %v287_v36 = vsub.f32 %v285_v33, %v286_v34  ;;  %v294_v37 = vmul.f32 %v481_v3, %v292_v35  ;;  %v295_v38 = vmul.f32 %v482_v4, %v292_v35 }
  0x4e   : > { %v300_v39 = vrot.slane %v287_v36, %v291_v30 }
  0x50   : > { %v302_v40 = vadd.f32 %v300_v39, %v294_v37  ;;  %v303_v41 = vadd.f32 %v300_v39, %v295_v38  ;;  %322 = sbr.rel (!%p670_p6) target bundleno = 95 (0x5f), region = 77 }
  0x52   : > { %v304_v42 = vmax.f32 %v302_v40, 0.0  ;;  %v305_v43 = vmax.f32 %v303_v41, 0.0 }
  0x54   : > { %v486_v44 = vpack.c.bf16 %v305_v43, %v304_v42 }
  0x56   : > { %487 = vst [vmem:[%s249_s30] sm:$0xff] %v486_v44  }
  0x5d   : > { %v342_v45 = vld [vmem:[%s249_s30] sm:$0xf]  ;;  %v344_v46 = vld [vmem:[%s249_s30 + $0x4] sm:$0xf] }
  0x5e   : > { %343 = vst [vmem:[%s326_s9] sm:$0xf] %v342_v45  ;;  %345 = vst [vmem:[%s326_s9 + $0x8] sm:$0xf] %v344_v46 }
  0x5f PF: > { %s13_s18 = sadd.s32 1, %s600_s18   ;;  %s735_s12 = smov %s580_s13 }
  0x60   : > { %p10_p13 = scmp.ge.s32.totalorder %s13_s18, 6   ;;  %s736_s13 = smov %s678_s27 }
  0x61   : > { %s737_s14 = smov %s592_s16  ;;  %s738_s15 = smov %s596_s17 }
  0x62   : > { %s739_s16 = smov %s742_s19  ;;  %s740_s17 = smov %s746_s20 }
  0x63   :  { %12 = sbr.rel (!%p10_p13) target bundleno = 4 (0x4), region = 155 }

// kernel: generator_resnet_forward.28
= control target key start
LH: loop header
LB: loop body
LE: loop exit
PB: predicated region body
PF: predicated region fallthrough
CT: control target
= control target key end

     0   :  { %s755_s15 = smov 0   ;;  %s757_s16 = smov 0   ;;  %s878_s0 = inlined_call_operand.vmem [shape: bf16[2,16,256], index: 0, kind: input, shape index: {}]   ;;  %s879_s1 = inlined_call_operand.vmem [shape: f32[1,1,256], index: 1, kind: input, shape index: {}]   ;;  %s880_s2 = inlined_call_operand.vmem [shape: f32[1,1,256], index: 2, kind: input, shape index: {}]   ;;  %s881_s3 = inlined_call_operand.vmem [shape: bf16[2,16,256], index: 3, kind: input, shape index: {}]   ;;  %s882_s4 = inlined_call_operand.vmem [shape: bf16[2,16,256], index: 4, kind: output, shape index: {}]  }
   0x1   :  { %s759_s17 = smov 0   ;;  %s761_s18 = smov 0  }
   0x2   :  { %s763_s19 = smov 0   ;;  %s765_s20 = smov 0  }
   0x3   :  { %s767_s21 = smov 0  }
   0x4 LB: > { %s23_s22 = sadd.s32 1, %s720_s19  ;;  %s26_s23 = sadd.s32 1, %s724_s20  ;;  %s728_s21 = sphi %s767_s21, %s14_s21   ;;  %s724_s20 = sphi %s765_s20, %s890_s20   ;;  %s720_s19 = sphi %s763_s19, %s889_s19   ;;  %s716_s18 = sphi %s761_s18, %s888_s18   ;;  %s712_s17 = sphi %s759_s17, %s887_s17   ;;  %s708_s16 = sphi %s757_s16, %s886_s16   ;;  %s704_s15 = sphi %s755_s15, %s885_s15  }
   0x5   : > { %p24_p0 = scmp.ge.s32.totalorder %s23_s22, 2  ;;  %s580_s24 = sadd.s32 4294967295, %s728_s21  }
   0x6   : > { %p42_p1 = scmp.ne.s32.totalorder %s708_s16, %s704_s15  ;;  %p43_p2 = scmp.eq.s32.totalorder %s728_s21, 0 }
   0x7   : > { %s892_s22 = smov (%p24_p0, %s23_s22), 0  ;;  %s894_s23 = smov (!%p24_p0, %s26_s23), %s724_s20 }
   0x8   : > { %p28_p3 = scmp.ge.s32.totalorder %s894_s23, 2  ;;  %p154_p4 = scmp.eq.s32.totalorder %s580_s24, 3 }
   0x9   : > { %s31_s25 = ssub.s32 %s720_s19, %s892_s22  ;;  %p801_p5 = por %p43_p2, %p42_p1 }
   0xa   : > { %s896_s23 = smov (%p28_p3, %s894_s23), 0  ;;  %p807_p6 = por %p154_p4, %p42_p1 }
   0xb   : > { %s30_s28 = ssub.s32 %s724_s20, %s896_s23  ;;  %s35_s30 = sadd.s32 1, %s708_s16 }
   0xc   : > { %s32_s29 = sor.u32 %s31_s25, %s30_s28  ;;  %p583_p8 = scmp.ge.s32.totalorder %s728_s21, 4 }
   0xd   : > { %p33_p7 = scmp.eq.s32.totalorder %s32_s29, 0 }
   0xe   : > { %176 = sbr.rel (%p583_p8) target bundleno = 35 (0x23), region = 16 }
   0xf   : > { %s815_s5 = scalar_select %p33_p7, %s708_s16, %s35_s30  }
  0x15   : > { %179 = sbr.rel (!%p801_p5) target bundleno = 28 (0x1c), region = 20  ;;  %s181_s6 = sand.u32 (%p801_p5), 1, %s708_s16  }
  0x16   : > { %s585_s7 = sshll.u32 (%p801_p5), %s724_s20, 2  ;;  %s584_s8 = sshll.u32 (%p801_p5), %s181_s6, 3 }
  0x17   : > { %s185_s9 = sadd.s32 (%p801_p5), %s720_s19, %s585_s7  ;;  %s183_s14 = scalar_lea.vmem (%p801_p5), [#allocation2], %s584_s8 }
  0x18   : > { %s586_s10 = sshll.u32 (%p801_p5), %s185_s9, 2 }
  0x19   : > { %s187_s13 = scalar_lea.vmem (%p801_p5), %s878_s0, %s586_s10 }
  0x1a   : > { %v203_v0 = vld [vmem:[%s187_s13] sm:$0xf] (%p801_p5)  ;;  %v205_v1 = vld [vmem:[%s187_s13 + $0x8] sm:$0xf] (%p801_p5) }
  0x1b   : > { %204 = vst [vmem:[%s183_s14] sm:$0xf] (%p801_p5), %v203_v0  ;;  %206 = vst [vmem:[%s183_s14 + $0x4] sm:$0xf] (%p801_p5), %v205_v1 }
  0x1c PF: > { %245 = sbr.rel (!%p801_p5) target bundleno = 35 (0x23), region = 69  ;;  %s247_s24 = sand.u32 (%p801_p5), 1, %s708_s16  }
  0x1d   : > { %s588_s25 = sshll.u32 (%p801_p5), %s724_s20, 2  ;;  %s587_s28 = sshll.u32 (%p801_p5), %s247_s24, 3 }
  0x1e   : > { %s251_s29 = sadd.s32 (%p801_p5), %s720_s19, %s588_s25  ;;  %s249_s8 = scalar_lea.vmem (%p801_p5), [#allocation3], %s587_s28 }
  0x1f   : > { %s589_s30 = sshll.u32 (%p801_p5), %s251_s29, 2 }
  0x20   : > { %s253_s9 = scalar_lea.vmem (%p801_p5), %s881_s3, %s589_s30 }
  0x21   : > { %v269_v2 = vld [vmem:[%s253_s9] sm:$0xf] (%p801_p5)  ;;  %v271_v3 = vld [vmem:[%s253_s9 + $0x8] sm:$0xf] (%p801_p5) }
  0x22   : > { %270 = vst [vmem:[%s249_s8] sm:$0xf] (%p801_p5), %v269_v2  ;;  %272 = vst [vmem:[%s249_s8 + $0x4] sm:$0xf] (%p801_p5), %v271_v3 }
  0x23 PF: > { %p590_p9 = scmp.ge.s32.totalorder %s728_s21, 1  ;;  %p298_p10 = scmp.lt.s32.totalorder %s728_s21, 5 }
  0x25   : > { %p299_p11 = pnand %p590_p9, %p298_p10 }
  0x26   : > { %s305_s26 = sand.u32 (!%p299_p11), 1, %s704_s15   ;;  %p346_p12 = scmp.lt.s32.totalorder (!%p299_p11), %s712_s17, 1  ;;  %v385_v29 = vlaneseq (!%p299_p11) }
  0x27   : > { %302 = sbr.rel (%p299_p11) target bundleno = 102 (0x66), region = 110  ;;  %s837_s10 = sshll.u32 (!%p299_p11), %s305_s26, 3 }
  0x28   : > { %s307_s11 = scalar_lea.vmem (!%p299_p11), [#allocation2], %s837_s10  ;;  %v386_v30 = vshrl.u32 (!%p299_p11), %v385_v29, 7  ;;  %s314_s29 = scalar_lea.vmem (!%p299_p11), [#allocation3], %s837_s10 }
  0x29   : > { %v604_v4 = vld [vmem:[%s307_s11] sm:$0xff] (!%p299_p11)   ;;  %v608_v38 = vld [vmem:[%s314_s29] sm:$0xff] (!%p299_p11)   ;;  %s345_s30 = scalar_lea.vmem (!%p299_p11), [#allocation4], %s837_s10 }
  0x2a   : > { %v605_v5 = vunpack.c.l.bf16 (!%p299_p11), %v604_v4  ;;  %v606_v6 = vunpack.c.h.bf16 (!%p299_p11), %v604_v4  ;;  %v387_v32 = vsub.s32 (!%p299_p11), 0, %v386_v30  ;;  %v609_v43 = vunpack.c.l.bf16 (!%p299_p11), %v608_v38 }
  0x2b   : > { %v610_v44 = vunpack.c.h.bf16 (!%p299_p11), %v608_v38 }
  0x2c   : > { %v356_v7 = vadd.f32 (!%p299_p11), %v606_v6, %v605_v5  ;;  %v364_v8 = vmul.f32 (!%p299_p11), %v605_v5, %v605_v5  ;;  %v365_v9 = vmul.f32 (!%p299_p11), %v606_v6, %v606_v6 }
  0x2e   : > { %v357_v10 = vrot.slane %v356_v7, 4  ;;  %v366_v11 = vadd.f32 %v365_v9, %v364_v8  ;;  %s347_s15 = scalar_select %p346_p12, %s712_s17, 1 }
  0x2f   : > { %s597_s6 = sshll.u32 (%p807_p6), %s716_s18, 2 }
  0x30   : > { %v358_v12 = vadd.f32 %v357_v10, %v356_v7  ;;  %v367_v13 = vrot.slane %v366_v11, 4  ;;  %s348_s14 = scalar_lea.vmem %s879_s1, %s347_s15  ;;  %s351_s28 = scalar_lea.vmem %s880_s2, %s347_s15 }
  0x31   : > { %v377_v31 = vld [vmem:[%s348_s14] sm:$0x1]  ;;  %s424_s7 = sadd.s32 (%p807_p6), %s712_s17, %s597_s6 }
  0x32   : > { %v359_v14 = vrot.slane %v358_v12, 2  ;;  %v368_v15 = vadd.f32 %v367_v13, %v366_v11  ;;  %v381_v35 = vld [vmem:[%s351_s28] sm:$0x1]  ;;  %s598_s9 = sshll.u32 (%p807_p6), %s424_s7, 2 }
  0x33   : > { %s426_s11 = scalar_lea.vmem (%p807_p6), %s882_s4, %s598_s9 }
  0x34   : > { %v360_v16 = vadd.f32 %v359_v14, %v358_v12  ;;  %v369_v17 = vrot.slane %v368_v15, 2 }
  0x36   : > { %v361_v18 = vrot.slane %v360_v16, 1  ;;  %v370_v19 = vadd.f32 %v369_v17, %v368_v15 }
  0x38   : > { %v362_v20 = vadd.f32 %v361_v18, %v360_v16  ;;  %v371_v21 = vrot.slane %v370_v19, 1 }
  0x3a   : > { %v363_v22 = vmul.f32 0.0625, %v362_v20  ;;  %v372_v23 = vadd.f32 %v371_v21, %v370_v19 }
  0x3c   : > { %v373_v24 = vmul.f32 0.0625, %v372_v23  ;;  %v374_v25 = vmul.f32 %v363_v22, %v363_v22 }
  0x3e   : > { %v375_v26 = vsub.f32 %v373_v24, %v374_v25 }
  0x40   : > { %v376_v27 = vmax.f32 %v375_v26, 0.0 }
  0x42   : > { %v378_v28 = vadd.f32 1e-05, %v376_v27 }
  0x44   : > { %672 = vrsqrt.f32 %v378_v28 }
  0x4e   : > { %v673_v33 = vpop.eup %672 }
  0x4f   : > { %v380_v34 = vmul.f32 %v673_v33, %v377_v31 }
  0x51   : > { %v382_v36 = vmul.f32 %v380_v34, %v363_v22  ;;  %v388_v37 = vrot.slane %v380_v34, %v387_v32 }
  0x53   : > { %v383_v39 = vsub.f32 %v381_v35, %v382_v36  ;;  %v390_v40 = vmul.f32 %v605_v5, %v388_v37  ;;  %v391_v41 = vmul.f32 %v606_v6, %v388_v37 }
  0x55   : > { %v396_v42 = vrot.slane %v383_v39, %v387_v32 }
  0x57   : > { %v398_v45 = vadd.f32 %v396_v42, %v390_v40  ;;  %v399_v46 = vadd.f32 %v396_v42, %v391_v41  ;;  %422 = sbr.rel (!%p807_p6) target bundleno = 102 (0x66), region = 122 }
  0x59   : > { %v404_v47 = vadd.f32 %v609_v43, %v398_v45  ;;  %v405_v48 = vadd.f32 %v610_v44, %v399_v46 }
  0x5b   : > { %v614_v49 = vpack.c.bf16 %v405_v48, %v404_v47 }
  0x5d   : > { %615 = vst [vmem:[%s345_s30] sm:$0xff] %v614_v49  }
  0x64   : > { %v442_v50 = vld [vmem:[%s345_s30] sm:$0xf]  ;;  %v444_v51 = vld [vmem:[%s345_s30 + $0x4] sm:$0xf] }
  0x65   : > { %443 = vst [vmem:[%s426_s11] sm:$0xf] %v442_v50  ;;  %445 = vst [vmem:[%s426_s11 + $0x8] sm:$0xf] %v444_v51 }
  0x66 PF: > { %s14_s21 = sadd.s32 1, %s728_s21   ;;  %s885_s15 = smov %s708_s16 }
  0x67   : > { %p11_p13 = scmp.ge.s32.totalorder %s14_s21, 6   ;;  %s886_s16 = smov %s815_s5 }
  0x68   : > { %s887_s17 = smov %s720_s19  ;;  %s888_s18 = smov %s724_s20 }
  0x69   : > { %s889_s19 = smov %s892_s22  ;;  %s890_s20 = smov %s896_s23 }
  0x6a   :  { %13 = sbr.rel (!%p11_p13) target bundleno = 4 (0x4), region = 208 }

// kernel: generator_resnet_forward.25
= control target key start
LH: loop header
LB: loop body
LE: loop exit
PB: predicated region body
PF: predicated region fallthrough
CT: control target
= control target key end

     0   :  { %s1380_s12 = smov 0   ;;  %s1382_s13 = smov 0   ;;  %s1538_s0 = inlined_call_operand.vmem [shape: bf16[32,2560], index: 0, kind: input, shape index: {}]   ;;  %s1539_s1 = inlined_call_operand.vmem [shape: bf16[2560,256], index: 1, kind: input, shape index: {}]   ;;  %s1540_s2 = inlined_call_operand.vmem [shape: f32[1,256], index: 2, kind: input, shape index: {}]   ;;  %s1541_s3 = inlined_call_operand.vmem [shape: bf16[32,256], index: 3, kind: output, shape index: {}]  }
   0x1   :  { %s1384_s14 = smov 0   ;;  %s1386_s15 = smov 0  }
   0x2   :  { %s1388_s16 = smov 0  }
   0x3 LB: > { %s25_s17 = sadd.s32 1, %s1353_s15  ;;  %p48_p1 = scmp.ne.s32.totalorder %s1345_s13, %s1341_s12  ;;  %s1357_s16 = sphi %s1388_s16, %s13_s16   ;;  %s1353_s15 = sphi %s1386_s15, %s1545_s15   ;;  %s1349_s14 = sphi %s1384_s14, %s1544_s14   ;;  %s1345_s13 = sphi %s1382_s13, %s1543_s13   ;;  %s1341_s12 = sphi %s1380_s12, %s1542_s12  }
   0x4   : > { %p26_p0 = scmp.ge.s32.totalorder %s25_s17, 5  ;;  %p49_p2 = scmp.eq.s32.totalorder %s1357_s16, 0 }
   0x5   : > { %s41_s19 = sadd.s32 1, %s1345_s13  ;;  %p1065_p5 = scmp.ge.s32.totalorder %s1357_s16, 5 }
   0x6   : > { %s1547_s17 = smov (%p26_p0, %s25_s17), 0  ;;  %p50_p3 = por %p49_p2, %p48_p1 }
   0x7   : > { %s37_s18 = ssub.s32 %s1353_s15, %s1547_s17  ;;  %164 = sbr.rel (%p1065_p5) target bundleno = 22 (0x16), region = 20 }
   0x8   : > { %p39_p4 = scmp.eq.s32.totalorder %s37_s18, 0 }
   0xa   : > { %s1415_s20 = scalar_select %p39_p4, %s1345_s13, %s41_s19  }
   0xe   : > { %167 = sbr.rel (!%p50_p3) target bundleno = 22 (0x16), region = 24  ;;  %s169_s21 = sand.u32 (%p50_p3), 1, %s1345_s13  }
   0xf   : > { %s1156_s22 = sshll.u32 (%p50_p3), %s1353_s15, 4  ;;  %s1066_s23 = sshll.u32 (%p50_p3), %s169_s21, 6 }
  0x10   : > { %s177_s26 = scalar_lea.vmem (%p50_p3), %s1538_s0, %s1156_s22  ;;  %s171_s27 = scalar_lea.vmem (%p50_p3), [#allocation3], %s1066_s23 }
  0x11   : > { %v190_v0 = vld [vmem:[%s177_s26] sm:$0xff] (%p50_p3)  ;;  %v192_v1 = vld [vmem:[%s177_s26 + $0x8] sm:$0xff] (%p50_p3)  ;;  %v194_v2 = vld [vmem:[%s177_s26 + $0x50] sm:$0xff] (%p50_p3) }
  0x12   : > { %191 = vst [vmem:[%s171_s27] sm:$0xff] (%p50_p3), %v190_v0  ;;  %193 = vst [vmem:[%s171_s27 + $0x8] sm:$0xff] (%p50_p3), %v192_v1  ;;  %v196_v3 = vld [vmem:[%s177_s26 + $0x58] sm:$0xff] (%p50_p3)  ;;  %v198_v4 = vld [vmem:[%s177_s26 + $0xa0] sm:$0xff] (%p50_p3) }
  0x13   : > { %195 = vst [vmem:[%s171_s27 + $0x10] sm:$0xff] (%p50_p3), %v194_v2  ;;  %v200_v5 = vld [vmem:[%s177_s26 + $0xa8] sm:$0xff] (%p50_p3)  ;;  %197 = vst [vmem:[%s171_s27 + $0x18] sm:$0xff] (%p50_p3), %v196_v3  ;;  %v202_v6 = vld [vmem:[%s177_s26 + $0xf0] sm:$0xff] (%p50_p3) }
  0x14   : > { %199 = vst [vmem:[%s171_s27 + $0x20] sm:$0xff] (%p50_p3), %v198_v4  ;;  %201 = vst [vmem:[%s171_s27 + $0x28] sm:$0xff] (%p50_p3), %v200_v5  ;;  %v204_v7 = vld [vmem:[%s177_s26 + $0xf8] sm:$0xff] (%p50_p3) }
  0x15   : > { %203 = vst [vmem:[%s171_s27 + $0x30] sm:$0xff] %v202_v6  ;;  %205 = vst [vmem:[%s171_s27 + $0x38] sm:$0xff] %v204_v7 }
  0x16 PF: > { %p1069_p6 = scmp.ge.s32.totalorder %s1357_s16, 1  ;;  %p225_p7 = scmp.lt.s32.totalorder %s1357_s16, 6 }
  0x18   : > { %p226_p8 = pnand %p1069_p6, %p225_p7 }
  0x19   : > { %s232_s28 = sand.u32 (!%p226_p8), 1, %s1341_s12   ;;  %s1071_s29 = sshll.u32 (!%p226_p8), %s1349_s14, 6 }
  0x1a   : > { %229 = sbr.rel (%p226_p8) target bundleno = 346 (0x15a), region = 51  ;;  %s1070_s30 = sshll.u32 (!%p226_p8), %s232_s28, 6 }
  0x1b   : > { %p278_p9 = scmp.lt.s32.totalorder (!%p226_p8), %s1071_s29, 319  ;;  %s1432_s8 = scalar_lea.vmem (!%p226_p8), [#allocation3], %s1070_s30 }
  0x1c   : > { %p1074_p10 = scmp.ne.s32.totalorder (!%p226_p8), %s1349_s14, 0 }
  0x21   : > { %s1549_s29 = smov (!%p278_p9, %s1071_s29), 319  ;;  %308 = sbr.rel (%p1074_p10) target bundleno = 40 (0x28), region = 59 }
  0x22   : > { %s1157_s4 = sshll.u32 %s1549_s29, 3  ;;  %v1359_v8 = vmov (!%p1074_p10), 0.0  }
  0x23   : > { %s1430_s7 = scalar_lea.vmem %s1539_s1, %s1157_s4  ;;  %309 = vst [vmem:[#allocation2] sm:$0xff] (!%p1074_p10), %v1359_v8  ;;  %310 = vst [vmem:[#allocation2 + $0x8] sm:$0xff] (!%p1074_p10), %v1359_v8 }
  0x24   : > { %311 = vst [vmem:[#allocation2 + $0x10] sm:$0xff] (!%p1074_p10), %v1359_v8  ;;  %312 = vst [vmem:[#allocation2 + $0x18] sm:$0xff] (!%p1074_p10), %v1359_v8 }
  0x25   : > { %313 = vst [vmem:[#allocation2 + $0x20] sm:$0xff] (!%p1074_p10), %v1359_v8  ;;  %314 = vst [vmem:[#allocation2 + $0x28] sm:$0xff] (!%p1074_p10), %v1359_v8 }
  0x26   : > { %315 = vst [vmem:[#allocation2 + $0x30] sm:$0xff] (!%p1074_p10), %v1359_v8  ;;  %316 = vst [vmem:[#allocation2 + $0x38] sm:$0xff] (!%p1074_p10), %v1359_v8 }
  0x28 PF: > { %v1211_v9 = vld [vmem:[%s1430_s7 + $0x4] ss:$8 sps:$4 sm:$0xff]   ;;  %v1215_v11 = vld [vmem:[%s1430_s7] ss:$8 sps:$4 sm:$0xff]   ;;  %v1217_v13 = vld [vmem:[%s1430_s7 + $0x14] ss:$8 sps:$4 sm:$0xff]  }
  0x29   : > { %v1213_v10 = vld [vmem:[%s1430_s7 + $0x104] ss:$8 sps:$4 sm:$0xff]   ;;  %757 = vmatprep.subr.bf16.mxu1 %v1211_v9  ;;  %v1216_v12 = vld [vmem:[%s1430_s7 + $0x100] ss:$8 sps:$4 sm:$0xff]   ;;  %v1219_v14 = vld [vmem:[%s1430_s7 + $0x114] ss:$8 sps:$4 sm:$0xff]  }
  0x2a   : > { %810 = vmatprep.subr.bf16.mxu0 %v1213_v10  ;;  %758 = vmatpush1.bf16.msra.mxu1 %v1215_v11  ;;  %v1221_v15 = vld [vmem:[%s1430_s7 + $0x10] ss:$8 sps:$4 sm:$0xff]   ;;  %v1223_v17 = vld [vmem:[%s1430_s7 + $0x24] ss:$8 sps:$4 sm:$0xff]   ;;  %v1227_v19 = vld [vmem:[%s1430_s7 + $0x20] ss:$8 sps:$4 sm:$0xff]  }
  0x2b   : > { %811 = vmatpush1.bf16.msra.mxu0 %v1216_v12  ;;  %759 = vmatprep.subr.bf16.mxu1 %v1217_v13  ;;  %v1222_v16 = vld [vmem:[%s1430_s7 + $0x110] ss:$8 sps:$4 sm:$0xff]   ;;  %v1225_v18 = vld [vmem:[%s1430_s7 + $0x124] ss:$8 sps:$4 sm:$0xff]   ;;  %v1228_v20 = vld [vmem:[%s1430_s7 + $0x120] ss:$8 sps:$4 sm:$0xff]  }
  0x2c   : > { %812 = vmatprep.subr.bf16.mxu0 %v1219_v14  ;;  %v1229_v21 = vld [vmem:[%s1430_s7 + $0x34] ss:$8 sps:$4 sm:$0xff]   ;;  %v1233_v23 = vld [vmem:[%s1430_s7 + $0x30] ss:$8 sps:$4 sm:$0xff]   ;;  %v1235_v25 = vld [vmem:[%s1430_s7 + $0x44] ss:$8 sps:$4 sm:$0xff]  }
  0x2d   : > { %v1231_v22 = vld [vmem:[%s1430_s7 + $0x134] ss:$8 sps:$4 sm:$0xff]   ;;  %v1234_v24 = vld [vmem:[%s1430_s7 + $0x130] ss:$8 sps:$4 sm:$0xff]   ;;  %v1237_v26 = vld [vmem:[%s1430_s7 + $0x144] ss:$8 sps:$4 sm:$0xff]  }
  0x2e   : > { %760 = vmatpush1.bf16.msra.mxu1 %v1221_v15  ;;  %v1239_v27 = vld [vmem:[%s1430_s7 + $0x40] ss:$8 sps:$4 sm:$0xff]   ;;  %v1241_v29 = vld [vmem:[%s1430_s7 + $0x54] ss:$8 sps:$4 sm:$0xff]   ;;  %v1245_v31 = vld [vmem:[%s1430_s7 + $0x50] ss:$8 sps:$4 sm:$0xff]  }
  0x2f   : > { %813 = vmatpush1.bf16.msra.mxu0 %v1222_v16  ;;  %761 = vmatprep.subr.bf16.mxu1 %v1223_v17  ;;  %v1240_v28 = vld [vmem:[%s1430_s7 + $0x140] ss:$8 sps:$4 sm:$0xff]   ;;  %v1243_v30 = vld [vmem:[%s1430_s7 + $0x154] ss:$8 sps:$4 sm:$0xff]   ;;  %v1246_v32 = vld [vmem:[%s1430_s7 + $0x150] ss:$8 sps:$4 sm:$0xff]  }
  0x30   : > { %814 = vmatprep.subr.bf16.mxu0 %v1225_v18  ;;  %v1247_v33 = vld [vmem:[%s1430_s7 + $0x64] ss:$8 sps:$4 sm:$0xff]   ;;  %v1251_v35 = vld [vmem:[%s1430_s7 + $0x60] ss:$8 sps:$4 sm:$0xff]   ;;  %v1253_v37 = vld [vmem:[%s1430_s7 + $0x74] ss:$8 sps:$4 sm:$0xff]  }
  0x31   : > { %v1249_v34 = vld [vmem:[%s1430_s7 + $0x164] ss:$8 sps:$4 sm:$0xff]   ;;  %v1252_v36 = vld [vmem:[%s1430_s7 + $0x160] ss:$8 sps:$4 sm:$0xff]   ;;  %v1255_v38 = vld [vmem:[%s1430_s7 + $0x174] ss:$8 sps:$4 sm:$0xff]  }
  0x32   : > { %762 = vmatpush1.bf16.msra.mxu1 %v1227_v19  ;;  %v1257_v39 = vld [vmem:[%s1430_s7 + $0x70] ss:$8 sps:$4 sm:$0xff]   ;;  %v1259_v41 = vld [vmem:[%s1430_s7 + $0x84] ss:$8 sps:$4 sm:$0xff]   ;;  %v1263_v43 = vld [vmem:[%s1430_s7 + $0x80] ss:$8 sps:$4 sm:$0xff]  }
  0x33   : > { %815 = vmatpush1.bf16.msra.mxu0 %v1228_v20  ;;  %763 = vmatprep.subr.bf16.mxu1 %v1229_v21  ;;  %v1258_v40 = vld [vmem:[%s1430_s7 + $0x170] ss:$8 sps:$4 sm:$0xff]   ;;  %v1261_v42 = vld [vmem:[%s1430_s7 + $0x184] ss:$8 sps:$4 sm:$0xff]   ;;  %v1264_v44 = vld [vmem:[%s1430_s7 + $0x180] ss:$8 sps:$4 sm:$0xff]  }
  0x34   : > { %816 = vmatprep.subr.bf16.mxu0 %v1231_v22  ;;  %v1265_v45 = vld [vmem:[%s1430_s7 + $0x94] ss:$8 sps:$4 sm:$0xff]   ;;  %v1269_v47 = vld [vmem:[%s1430_s7 + $0x90] ss:$8 sps:$4 sm:$0xff]   ;;  %v1271_v49 = vld [vmem:[%s1430_s7 + $0xa4] ss:$8 sps:$4 sm:$0xff]  }
  0x35   : > { %v1267_v46 = vld [vmem:[%s1430_s7 + $0x194] ss:$8 sps:$4 sm:$0xff]   ;;  %v1270_v48 = vld [vmem:[%s1430_s7 + $0x190] ss:$8 sps:$4 sm:$0xff]   ;;  %v1273_v50 = vld [vmem:[%s1430_s7 + $0x1a4] ss:$8 sps:$4 sm:$0xff]  }
  0x36   : > { %764 = vmatpush1.bf16.msra.mxu1 %v1233_v23  ;;  %v1275_v51 = vld [vmem:[%s1430_s7 + $0xa0] ss:$8 sps:$4 sm:$0xff]   ;;  %v1277_v53 = vld [vmem:[%s1430_s7 + $0xb4] ss:$8 sps:$4 sm:$0xff]   ;;  %v1281_v55 = vld [vmem:[%s1430_s7 + $0xb0] ss:$8 sps:$4 sm:$0xff]  }
  0x37   : > { %817 = vmatpush1.bf16.msra.mxu0 %v1234_v24  ;;  %765 = vmatprep.subr.bf16.mxu1 %v1235_v25  ;;  %v1276_v52 = vld [vmem:[%s1430_s7 + $0x1a0] ss:$8 sps:$4 sm:$0xff]   ;;  %v1279_v54 = vld [vmem:[%s1430_s7 + $0x1b4] ss:$8 sps:$4 sm:$0xff]   ;;  %v1282_v56 = vld [vmem:[%s1430_s7 + $0x1b0] ss:$8 sps:$4 sm:$0xff]  }
  0x38   : > { %818 = vmatprep.subr.bf16.mxu0 %v1237_v26  ;;  %v1283_v57 = vld [vmem:[%s1430_s7 + $0xc4] ss:$8 sps:$4 sm:$0xff]   ;;  %v1287_v61 = vld [vmem:[%s1430_s7 + $0xc0] ss:$8 sps:$4 sm:$0xff]   ;;  %v1289_v63 = vld [vmem:[%s1430_s7 + $0xd4] ss:$8 sps:$4 sm:$0xff]  }
  0x39   : > { %v1309_v58 = vld [vmem:[%s1432_s8 + $0x4] ss:$16 sps:$4 sm:$0xff]   ;;  %v1312_v60 = vld [vmem:[%s1432_s8 + $0xc] ss:$16 sps:$4 sm:$0xff]   ;;  %v1288_v62 = vld [vmem:[%s1430_s7 + $0x1c0] ss:$8 sps:$4 sm:$0xff]  }
  0x3a   : > { %766 = vmatpush1.bf16.msra.mxu1 %v1239_v27  ;;  %v1285_v59 = vld [vmem:[%s1430_s7 + $0x1c4] ss:$8 sps:$4 sm:$0xff]   ;;  %789 = vmatprep.mubr.bf16.mxu1 %v1309_v58  ;;  %v1291_v0 = vld [vmem:[%s1430_s7 + $0x1d4] ss:$8 sps:$4 sm:$0xff]   ;;  %v1293_v1 = vld [vmem:[%s1430_s7 + $0xd0] ss:$8 sps:$4 sm:$0xff]  }
  0x3b   : > { %819 = vmatpush1.bf16.msra.mxu0 %v1240_v28  ;;  %767 = vmatprep.subr.bf16.mxu1 %v1241_v29  ;;  %v1294_v2 = vld [vmem:[%s1430_s7 + $0x1d0] ss:$8 sps:$4 sm:$0xff]   ;;  %v1295_v3 = vld [vmem:[%s1430_s7 + $0xe4] ss:$8 sps:$4 sm:$0xff]   ;;  %v1299_v5 = vld [vmem:[%s1430_s7 + $0xe0] ss:$8 sps:$4 sm:$0xff]  }
  0x3c   : > { %820 = vmatprep.subr.bf16.mxu0 %v1243_v30  ;;  %842 = vmatprep.mubr.bf16.mxu0 %v1312_v60  ;;  %v1297_v4 = vld [vmem:[%s1430_s7 + $0x1e4] ss:$8 sps:$4 sm:$0xff]   ;;  %v1300_v6 = vld [vmem:[%s1430_s7 + $0x1e0] ss:$8 sps:$4 sm:$0xff]   ;;  %v1301_v7 = vld [vmem:[%s1430_s7 + $0xf4] ss:$8 sps:$4 sm:$0xff]  }
  0x3d   : > { %v1303_v8 = vld [vmem:[%s1430_s7 + $0x1f4] ss:$8 sps:$4 sm:$0xff]   ;;  %v1305_v9 = vld [vmem:[%s1430_s7 + $0xf0] ss:$8 sps:$4 sm:$0xff]   ;;  %v317_v18 = vld [vmem:[#allocation2] sm:$0xff]  ;;  %p1147_p11 = scmp.ne.s32.totalorder %s1349_s14, 4 }
  0x3e   : > { %768 = vmatpush1.bf16.msra.mxu1 %v1245_v31  ;;  %v1306_v10 = vld [vmem:[%s1430_s7 + $0x1f0] ss:$8 sps:$4 sm:$0xff]   ;;  %v1313_v13 = vld [vmem:[%s1432_s8 + $0x24] ss:$16 sps:$4 sm:$0xff]   ;;  %v1315_v14 = vld [vmem:[%s1432_s8 + $0x2c] ss:$16 sps:$4 sm:$0xff]  }
  0x3f   : > { %821 = vmatpush1.bf16.msra.mxu0 %v1246_v32  ;;  %769 = vmatprep.subr.bf16.mxu1 %v1247_v33  ;;  %v1307_v11 = vld [vmem:[%s1432_s8] ss:$16 sps:$4 sm:$0xff]   ;;  %v1310_v12 = vld [vmem:[%s1432_s8 + $0x8] ss:$16 sps:$4 sm:$0xff]  }
  0x40   : > { %822 = vmatprep.subr.bf16.mxu0 %v1249_v34  ;;  %v1317_v15 = vld [vmem:[%s1432_s8 + $0x20] ss:$16 sps:$4 sm:$0xff]   ;;  %v1318_v16 = vld [vmem:[%s1432_s8 + $0x28] ss:$16 sps:$4 sm:$0xff]  }
  0x41   : > { %v318_v22 = vld [vmem:[#allocation2 + $0x8] sm:$0xff]  ;;  %v319_v26 = vld [vmem:[#allocation2 + $0x10] sm:$0xff]  ;;  %v320_v31 = vld [vmem:[#allocation2 + $0x18] sm:$0xff] }
  0x42   : > { %770 = vmatpush1.bf16.msra.mxu1 %v1251_v35 }
  0x43   : > { %823 = vmatpush1.bf16.msra.mxu0 %v1252_v36  ;;  %771 = vmatprep.subr.bf16.mxu1 %v1253_v37 }
  0x44   : > { %824 = vmatprep.subr.bf16.mxu0 %v1255_v38  ;;  %v321_v38 = vld [vmem:[#allocation2 + $0x20] sm:$0xff] }
  0x46   : > { %772 = vmatpush1.bf16.msra.mxu1 %v1257_v39 }
  0x47   : > { %825 = vmatpush1.bf16.msra.mxu0 %v1258_v40  ;;  %773 = vmatprep.subr.bf16.mxu1 %v1259_v41 }
  0x48   : > { %826 = vmatprep.subr.bf16.mxu0 %v1261_v42  ;;  %v322_v42 = vld [vmem:[#allocation2 + $0x28] sm:$0xff] }
  0x4a   : > { %774 = vmatpush1.bf16.msra.mxu1 %v1263_v43 }
  0x4b   : > { %827 = vmatpush1.bf16.msra.mxu0 %v1264_v44  ;;  %775 = vmatprep.subr.bf16.mxu1 %v1265_v45 }
  0x4c   : > { %828 = vmatprep.subr.bf16.mxu0 %v1267_v46  ;;  %v323_v46 = vld [vmem:[#allocation2 + $0x30] sm:$0xff] }
  0x4e   : > { %776 = vmatpush1.bf16.msra.mxu1 %v1269_v47 }
  0x4f   : > { %829 = vmatpush1.bf16.msra.mxu0 %v1270_v48  ;;  %777 = vmatprep.subr.bf16.mxu1 %v1271_v49 }
  0x50   : > { %830 = vmatprep.subr.bf16.mxu0 %v1273_v50 }
  0x52   : > { %778 = vmatpush1.bf16.msra.mxu1 %v1275_v51  ;;  %v324_v51 = vld [vmem:[#allocation2 + $0x38] sm:$0xff] }
  0x53   : > { %831 = vmatpush1.bf16.msra.mxu0 %v1276_v52  ;;  %779 = vmatprep.subr.bf16.mxu1 %v1277_v53 }
  0x54   : > { %832 = vmatprep.subr.bf16.mxu0 %v1279_v54 }
  0x56   : > { %780 = vmatpush1.bf16.msra.mxu1 %v1281_v55 }
  0x57   : > { %833 = vmatpush1.bf16.msra.mxu0 %v1282_v56  ;;  %781 = vmatprep.subr.bf16.mxu1 %v1283_v57  ;;  %v893_v57 = vlaneseq (!%p1147_p11) }
  0x58   : > { %834 = vmatprep.subr.bf16.mxu0 %v1285_v59  ;;  %v891_v59 = vld [vmem:[%s1540_s2] sm:$0x3] (!%p1147_p11) }
  0x59   : > { %v894_v58 = vshrl.u32 (!%p1147_p11), %v893_v57, 7 }
  0x5a   : > { %782 = vmatpush1.bf16.msra.mxu1 %v1287_v61 }
  0x5b   : > { %835 = vmatpush1.bf16.msra.mxu0 %v1288_v62  ;;  %783 = vmatprep.subr.bf16.mxu1 %v1289_v63  ;;  %v895_v62 = vsub.s32 (!%p1147_p11), 0, %v894_v58  ;;  %v899_v63 = vsub.s32 (!%p1147_p11), 1, %v894_v58 }
  0x5c   : > { %836 = vmatprep.subr.bf16.mxu0 %v1291_v0 }
  0x5e   : > { %784 = vmatpush1.bf16.msra.mxu1 %v1293_v1 }
  0x5f   : > { %837 = vmatpush1.bf16.msra.mxu0 %v1294_v2  ;;  %785 = vmatprep.subr.bf16.mxu1 %v1295_v3  ;;  %v896_v3 = vrot.slane (!%p1147_p11), %v891_v59, %v895_v62 }
  0x60   : > { %838 = vmatprep.subr.bf16.mxu0 %v1297_v4  ;;  %v900_v4 = vrot.slane (!%p1147_p11), %v891_v59, %v899_v63 }
  0x62   : > { %786 = vmatpush1.bf16.msra.mxu1 %v1299_v5 }
  0x63   : > { %839 = vmatpush1.bf16.msra.mxu0 %v1300_v6  ;;  %787 = vmatprep.subr.bf16.mxu1 %v1301_v7 }
  0x64   : > { %840 = vmatprep.subr.bf16.mxu0 %v1303_v8 }
  0x66   : > { %788 = vmatpush1.bf16.msra.mxu1 %v1305_v9 }
  0x67   : > { %841 = vmatpush1.bf16.msra.mxu0 %v1306_v10 }
  0x69   : > { %790 = vmatmul.mubr.bf16.vlgmr.msra.gmra.mrb[0].mxu1 %v1307_v11 }
  0x6a   : > { %843 = vmatmul.mubr.bf16.vlgmr.msra.gmra.mrb[0].mxu0 %v1310_v12  ;;  %799 = vmatprep.mubr.bf16.mxu1 %v1313_v13 }
  0x6b   : > { %852 = vmatprep.mubr.bf16.mxu0 %v1315_v14 }
  0x71   : > { %800 = vmatmul.mubr.bf16.gmra.mrb[4].mxu1 %v1317_v15 }
  0x72   : > { %853 = vmatmul.mubr.bf16.gmra.mrb[4].mxu0 %v1318_v16 }
 0x13c   : > { %v791_v17 = vpop.f32.mrb[0].mxu1 }
 0x13d   : > { %v844_v19 = vpop.f32.mrb[0].mxu0  ;;  %v793_v21 = vpop.f32.mrb[1].mxu1 }
 0x13e   : > { %v845_v20 = vadd.f32 %v844_v19, %v791_v17  ;;  %v846_v23 = vpop.f32.mrb[1].mxu0  ;;  %v795_v25 = vpop.f32.mrb[2].mxu1 }
 0x13f   : > { %v847_v24 = vadd.f32 %v846_v23, %v793_v21  ;;  %v848_v27 = vpop.f32.mrb[2].mxu0  ;;  %v797_v30 = vpop.f32.mrb[3].mxu1 }
 0x140   : > { %v863_v28 = vadd.f32 %v845_v20, %v317_v18  ;;  %v849_v29 = vadd.f32 %v848_v27, %v795_v25  ;;  %v850_v32 = vpop.f32.mrb[3].mxu0 }
 0x141   : > { %v864_v33 = vadd.f32 %v847_v24, %v318_v22  ;;  %v851_v34 = vadd.f32 %v850_v32, %v797_v30 }
 0x142   : > { %871 = vst [vmem:[#allocation2] sm:$0xff] %v863_v28  ;;  %v865_v35 = vadd.f32 %v849_v29, %v319_v26 }
 0x143   : > { %872 = vst [vmem:[#allocation2 + $0x8] sm:$0xff] %v864_v33  ;;  %v866_v36 = vadd.f32 %v851_v34, %v320_v31 }
 0x144   : > { %873 = vst [vmem:[#allocation2 + $0x10] sm:$0xff] %v865_v35  ;;  %v801_v37 = vpop.f32.mrb[4].mxu1 }
 0x145   : > { %874 = vst [vmem:[#allocation2 + $0x18] sm:$0xff] %v866_v36  ;;  %v854_v39 = vpop.f32.mrb[4].mxu0  ;;  %v803_v41 = vpop.f32.mrb[5].mxu1 }
 0x146   : > { %v855_v40 = vadd.f32 %v854_v39, %v801_v37  ;;  %v856_v43 = vpop.f32.mrb[5].mxu0  ;;  %v805_v45 = vpop.f32.mrb[6].mxu1 }
 0x147   : > { %v857_v44 = vadd.f32 %v856_v43, %v803_v41  ;;  %v858_v47 = vpop.f32.mrb[6].mxu0  ;;  %v807_v50 = vpop.f32.mrb[7].mxu1  ;;  %882 = sbr.rel (%p1147_p11) target bundleno = 346 (0x15a), region = 63 }
 0x148   : > { %v867_v48 = vadd.f32 %v855_v40, %v321_v38  ;;  %v859_v49 = vadd.f32 %v858_v47, %v805_v45  ;;  %v860_v52 = vpop.f32.mrb[7].mxu0 }
 0x149   : > { %v868_v53 = vadd.f32 %v857_v44, %v322_v42  ;;  %v861_v54 = vadd.f32 %v860_v52, %v807_v50  ;;  %v883_v60 = vld [vmem:[#allocation2] sm:$0xff] (!%p1147_p11) }
 0x14a   : > { %875 = vst [vmem:[#allocation2 + $0x20] sm:$0xff] %v867_v48  ;;  %v869_v55 = vadd.f32 %v859_v49, %v323_v46  ;;  %v884_v61 = vld [vmem:[#allocation2 + $0x8] sm:$0xff] (!%p1147_p11)  ;;  %v903_v8 = vadd.f32 (!%p1147_p11), %v896_v3, %v883_v60 }
 0x14b   : > { %876 = vst [vmem:[#allocation2 + $0x28] sm:$0xff] %v868_v53  ;;  %v870_v56 = vadd.f32 %v861_v54, %v324_v51  ;;  %v885_v0 = vld [vmem:[#allocation2 + $0x10] sm:$0xff] (!%p1147_p11)  ;;  %v904_v9 = vadd.f32 (!%p1147_p11), %v900_v4, %v884_v61 }
 0x14c   : > { %877 = vst [vmem:[#allocation2 + $0x30] sm:$0xff] %v869_v55  ;;  %v886_v1 = vld [vmem:[#allocation2 + $0x18] sm:$0xff] (!%p1147_p11)  ;;  %v905_v10 = vadd.f32 (!%p1147_p11), %v896_v3, %v885_v0 }
 0x14d   : > { %878 = vst [vmem:[#allocation2 + $0x38] sm:$0xff] %v870_v56  ;;  %v906_v11 = vadd.f32 (!%p1147_p11), %v900_v4, %v886_v1  ;;  %v1158_v16 = vpack.c.bf16 (!%p1147_p11), %v904_v9, %v903_v8 }
 0x14f   : > { %v1159_v17 = vpack.c.bf16 %v906_v11, %v905_v10  ;;  %935 = vst [vmem:[%s1541_s3] sm:$0xff] %v1158_v16 }
 0x151   : > { %v887_v2 = vld [vmem:[#allocation2 + $0x20] sm:$0xff]  ;;  %936 = vst [vmem:[%s1541_s3 + $0x8] sm:$0xff] %v1159_v17 }
 0x152   : > { %v888_v5 = vld [vmem:[#allocation2 + $0x28] sm:$0xff]  ;;  %v907_v12 = vadd.f32 %v896_v3, %v887_v2 }
 0x153   : > { %v889_v6 = vld [vmem:[#allocation2 + $0x30] sm:$0xff]  ;;  %v908_v13 = vadd.f32 %v900_v4, %v888_v5 }
 0x154   : > { %v890_v7 = vld [vmem:[#allocation2 + $0x38] sm:$0xff]  ;;  %v909_v14 = vadd.f32 %v896_v3, %v889_v6 }
 0x155   : > { %v910_v15 = vadd.f32 %v900_v4, %v890_v7  ;;  %v1160_v18 = vpack.c.bf16 %v908_v13, %v907_v12 }
 0x157   : > { %v1161_v19 = vpack.c.bf16 %v910_v15, %v909_v14  ;;  %937 = vst [vmem:[%s1541_s3 + $0x10] sm:$0xff] %v1160_v18 }
 0x159   : > { %938 = vst [vmem:[%s1541_s3 + $0x18] sm:$0xff] %v1161_v19 }
 0x15a PF: > { %s13_s16 = sadd.s32 1, %s1357_s16   ;;  %s1542_s12 = smov %s1345_s13 }
 0x15b   : > { %p10_p12 = scmp.ge.s32.totalorder %s13_s16, 7   ;;  %s1543_s13 = smov %s1415_s20 }
 0x15c   : > { %s1544_s14 = smov %s1353_s15  ;;  %s1545_s15 = smov %s1547_s17 }
 0x15d   :  { %12 = sbr.rel (!%p10_p12) target bundleno = 3 (0x3), region = 104 }

// kernel: generator_resnet_forward.33
= control target key start
LH: loop header
LB: loop body
LE: loop exit
PB: predicated region body
PF: predicated region fallthrough
CT: control target
= control target key end

     0   :  { %s2437_s0 = inlined_call_operand.vmem [shape: bf16[64,1024], index: 0, kind: input, shape index: {}]   ;;  %s2438_s1 = inlined_call_operand.vmem [shape: bf16[1024,512], index: 1, kind: input, shape index: {}]   ;;  %s2439_s2 = inlined_call_operand.vmem [shape: f32[1,512], index: 2, kind: input, shape index: {}]   ;;  %s2440_s3 = inlined_call_operand.vmem [shape: bf16[64,512], index: 3, kind: output, shape index: {}]  }
   0x1   :  { %2442 = sst [smem:[#allocation7_spill]] %s2437_s0 }
   0x2   :  { %2443 = sst [smem:[#allocation8_spill]] %s2438_s1 }
   0x3   :  { %s2013_s12 = smov 0   ;;  %s2015_s13 = smov 0  }
   0x4   :  { %s2017_s14 = smov 0   ;;  %s2019_s15 = smov 0  }
   0x5   :  { %s2021_s16 = smov 0   ;;  %s2023_s17 = smov 0  }
   0x6   :  { %s2025_s18 = smov 0   ;;  %s2027_s19 = smov 0  }
   0x7   :  { %s2029_s20 = smov 0   ;;  %s2031_s21 = smov 0  }
   0x8   :  { %s2033_s22 = smov 0  }
   0x9 LB: > { %s1556_s23 = sadd.s32 4294967295, %s1990_s22   ;;  %s25_s24 = sadd.s32 1, %s1982_s20  ;;  %s1990_s22 = sphi %s2033_s22, %s13_s22   ;;  %s1986_s21 = sphi %s2031_s21, %s2460_s21   ;;  %s1982_s20 = sphi %s2029_s20, %s2459_s20   ;;  %s1978_s19 = sphi %s2027_s19, %s2458_s19   ;;  %s1974_s18 = sphi %s2025_s18, %s2457_s18   ;;  %s1970_s17 = sphi %s2023_s17, %s2456_s17   ;;  %s1966_s16 = sphi %s2021_s16, %s2455_s16   ;;  %s1962_s15 = sphi %s2019_s15, %s2454_s15   ;;  %s1958_s14 = sphi %s2017_s14, %s2453_s14   ;;  %s1954_s13 = sphi %s2015_s13, %s2452_s13   ;;  %s1950_s12 = sphi %s2013_s12, %s2451_s12  }
   0xa   : > { %p26_p0 = scmp.ge.s32.totalorder %s25_s24, 2  ;;  %s28_s25 = sadd.s32 1, %s1986_s21 }
   0xb   : > { %s41_s26 = sadd.s32 1, %s1970_s17  ;;  %p48_p1 = scmp.ne.s32.totalorder %s1970_s17, %s1966_s16 }
   0xc   : > { %s2462_s24 = smov (%p26_p0, %s25_s24), 0  ;;  %s2464_s25 = smov (!%p26_p0, %s28_s25), %s1986_s21 }
   0xd   : > { %s37_s27 = ssub.s32 %s1982_s20, %s2462_s24  ;;  %p49_p2 = scmp.eq.s32.totalorder %s1990_s22, 0 }
   0xe   : > { %p30_p3 = scmp.ge.s32.totalorder %s2464_s25, 2  ;;  %p39_p4 = scmp.eq.s32.totalorder %s37_s27, 0 }
   0xf   : > { %p2080_p5 = por %p49_p2, %p48_p1  ;;  %s69_s29 = sadd.s32 1, %s1962_s15 }
  0x10   : > { %s2466_s25 = smov (%p30_p3, %s2464_s25), 0  ;;  %p76_p6 = scmp.ne.s32.totalorder %s1962_s15, %s1958_s14 }
  0x11   : > { %2445 = sst [smem:[#allocation6_spill]] %s2466_s25  ;;  %s65_s4 = ssub.s32 %s1986_s21, %s2466_s25 }
  0x12   : > { %s2088_s30 = scalar_select %p39_p4, %s1970_s17, %s41_s26  }
  0x13   : > { %s66_s5 = sor.u32 %s65_s4, %s37_s27  ;;  %p121_p7 = scmp.eq.s32.totalorder %s65_s4, 0 }
  0x14   : > { %p67_p8 = scmp.eq.s32.totalorder %s66_s5, 0  ;;  %p2094_p9 = por %p76_p6, %p49_p2 }
  0x15   : > { %s123_s7 = sadd.s32 1, %s1954_s13  ;;  %p133_p10 = scmp.ne.s32.totalorder %s1954_s13, %s1950_s12 }
  0x16   : > { %s2102_s8 = scalar_select %p67_p8, %s1962_s15, %s69_s29  }
  0x17   : > { %s2105_s9 = scalar_select %p121_p7, %s1954_s13, %s123_s7  }
  0x18   : > { %p134_p11 = scmp.eq.s32.totalorder %s1556_s23, 3  ;;  %p1559_p13 = scmp.ge.s32.totalorder %s1990_s22, 4 }
  0x1a   : > { %p2107_p12 = por %p134_p11, %p133_p10  ;;  %156 = sbr.rel (%p1559_p13) target bundleno = 93 (0x5d), region = 16 }
  0x21   : > { %159 = sbr.rel (!%p2080_p5) target bundleno = 51 (0x33), region = 20  ;;  %s161_s11 = sand.u32 (%p2080_p5), 1, %s1970_s17  }
  0x22   : > { %s1668_s26 = sshll.u32 (%p2080_p5), %s1982_s20, 4  ;;  %s1560_s27 = sshll.u32 (%p2080_p5), %s161_s11, 7 }
  0x23   : > { %s2448_s0 = sld [smem:[#allocation7_spill]] (%p2080_p5)  ;;  %s163_s23 = scalar_lea.vmem (%p2080_p5), [#allocation3], %s1560_s27 }
  0x29   : > { %s2119_s5 = scalar_lea.vmem %s2448_s0, %s1668_s26 }
  0x2a   : > { %v182_v0 = vld [vmem:[%s2119_s5] sm:$0xff]  ;;  %v184_v1 = vld [vmem:[%s2119_s5 + $0x8] sm:$0xff] }
  0x2b   : > { %v186_v2 = vld [vmem:[%s2119_s5 + $0x20] sm:$0xff]  ;;  %183 = vst [vmem:[%s163_s23] sm:$0xff] %v182_v0  ;;  %185 = vst [vmem:[%s163_s23 + $0x8] sm:$0xff] %v184_v1  ;;  %v188_v3 = vld [vmem:[%s2119_s5 + $0x28] sm:$0xff] }
  0x2c   : > { %187 = vst [vmem:[%s163_s23 + $0x10] sm:$0xff] %v186_v2  ;;  %v190_v4 = vld [vmem:[%s2119_s5 + $0x40] sm:$0xff]  ;;  %v192_v5 = vld [vmem:[%s2119_s5 + $0x48] sm:$0xff]  ;;  %189 = vst [vmem:[%s163_s23 + $0x18] sm:$0xff] %v188_v3 }
  0x2d   : > { %191 = vst [vmem:[%s163_s23 + $0x20] sm:$0xff] %v190_v4  ;;  %193 = vst [vmem:[%s163_s23 + $0x28] sm:$0xff] %v192_v5  ;;  %v194_v6 = vld [vmem:[%s2119_s5 + $0x60] sm:$0xff]  ;;  %v196_v7 = vld [vmem:[%s2119_s5 + $0x68] sm:$0xff] }
  0x2e   : > { %v198_v8 = vld [vmem:[%s2119_s5 + $0x80] sm:$0xff]  ;;  %195 = vst [vmem:[%s163_s23 + $0x30] sm:$0xff] %v194_v6  ;;  %197 = vst [vmem:[%s163_s23 + $0x38] sm:$0xff] %v196_v7  ;;  %v200_v9 = vld [vmem:[%s2119_s5 + $0x88] sm:$0xff] }
  0x2f   : > { %199 = vst [vmem:[%s163_s23 + $0x40] sm:$0xff] %v198_v8  ;;  %v202_v10 = vld [vmem:[%s2119_s5 + $0xa0] sm:$0xff]  ;;  %v204_v11 = vld [vmem:[%s2119_s5 + $0xa8] sm:$0xff]  ;;  %201 = vst [vmem:[%s163_s23 + $0x48] sm:$0xff] %v200_v9 }
  0x30   : > { %203 = vst [vmem:[%s163_s23 + $0x50] sm:$0xff] %v202_v10  ;;  %205 = vst [vmem:[%s163_s23 + $0x58] sm:$0xff] %v204_v11  ;;  %v206_v12 = vld [vmem:[%s2119_s5 + $0xc0] sm:$0xff]  ;;  %v208_v13 = vld [vmem:[%s2119_s5 + $0xc8] sm:$0xff] }
  0x31   : > { %v210_v14 = vld [vmem:[%s2119_s5 + $0xe0] sm:$0xff]  ;;  %207 = vst [vmem:[%s163_s23 + $0x60] sm:$0xff] %v206_v12  ;;  %209 = vst [vmem:[%s163_s23 + $0x68] sm:$0xff] %v208_v13  ;;  %v212_v15 = vld [vmem:[%s2119_s5 + $0xe8] sm:$0xff] }
  0x32   : > { %211 = vst [vmem:[%s163_s23 + $0x70] sm:$0xff] %v210_v14  ;;  %213 = vst [vmem:[%s163_s23 + $0x78] sm:$0xff] %v212_v15 }
  0x33 PF: > { %219 = sbr.rel (!%p2094_p9) target bundleno = 93 (0x5d), region = 43  ;;  %s221_s28 = sand.u32 (%p2094_p9), 1, %s1962_s15  }
  0x34   : > { %s1565_s7 = sshll.u32 (%p2094_p9), %s1986_s21, 1  ;;  %s1563_s11 = sshll.u32 (%p2094_p9), %s221_s28, 9 }
  0x35   : > { %s1669_s26 = sshll.u32 (%p2094_p9), %s1982_s20, 8  ;;  %s2449_s1 = sld [smem:[#allocation8_spill]] (%p2094_p9) }
  0x36   : > { %s227_s27 = sadd.s32 (%p2094_p9), %s1669_s26, %s1565_s7  ;;  %s2150_s6 = scalar_lea.vmem (%p2094_p9), [#allocation4], %s1563_s11 }
  0x37   : > { %s1567_s29 = sshll.u32 (%p2094_p9), %s227_s27, 2 }
  0x3b   : > { %s2145_s25 = scalar_lea.vmem %s2449_s1, %s1567_s29 }
  0x3c   : > { %v383_v16 = vld [vmem:[%s2145_s25] sm:$0xff]  ;;  %v385_v17 = vld [vmem:[%s2145_s25 + $0x10] sm:$0xff] }
  0x3d   : > { %v387_v18 = vld [vmem:[%s2145_s25 + $0x20] sm:$0xff]  ;;  %384 = vst [vmem:[%s2150_s6] sm:$0xff] %v383_v16  ;;  %386 = vst [vmem:[%s2150_s6 + $0x8] sm:$0xff] %v385_v17  ;;  %v389_v19 = vld [vmem:[%s2145_s25 + $0x30] sm:$0xff] }
  0x3e   : > { %388 = vst [vmem:[%s2150_s6 + $0x10] sm:$0xff] %v387_v18  ;;  %v391_v20 = vld [vmem:[%s2145_s25 + $0x40] sm:$0xff]  ;;  %v393_v21 = vld [vmem:[%s2145_s25 + $0x50] sm:$0xff]  ;;  %390 = vst [vmem:[%s2150_s6 + $0x18] sm:$0xff] %v389_v19 }
  0x3f   : > { %392 = vst [vmem:[%s2150_s6 + $0x20] sm:$0xff] %v391_v20  ;;  %394 = vst [vmem:[%s2150_s6 + $0x28] sm:$0xff] %v393_v21  ;;  %v395_v22 = vld [vmem:[%s2145_s25 + $0x60] sm:$0xff]  ;;  %v397_v23 = vld [vmem:[%s2145_s25 + $0x70] sm:$0xff] }
  0x40   : > { %v399_v24 = vld [vmem:[%s2145_s25 + $0x80] sm:$0xff]  ;;  %396 = vst [vmem:[%s2150_s6 + $0x30] sm:$0xff] %v395_v22  ;;  %398 = vst [vmem:[%s2150_s6 + $0x38] sm:$0xff] %v397_v23  ;;  %v401_v25 = vld [vmem:[%s2145_s25 + $0x90] sm:$0xff] }
  0x41   : > { %400 = vst [vmem:[%s2150_s6 + $0x40] sm:$0xff] %v399_v24  ;;  %v403_v26 = vld [vmem:[%s2145_s25 + $0xa0] sm:$0xff]  ;;  %v405_v27 = vld [vmem:[%s2145_s25 + $0xb0] sm:$0xff]  ;;  %402 = vst [vmem:[%s2150_s6 + $0x48] sm:$0xff] %v401_v25 }
  0x42   : > { %404 = vst [vmem:[%s2150_s6 + $0x50] sm:$0xff] %v403_v26  ;;  %406 = vst [vmem:[%s2150_s6 + $0x58] sm:$0xff] %v405_v27  ;;  %v407_v28 = vld [vmem:[%s2145_s25 + $0xc0] sm:$0xff]  ;;  %v409_v29 = vld [vmem:[%s2145_s25 + $0xd0] sm:$0xff] }
  0x43   : > { %v411_v30 = vld [vmem:[%s2145_s25 + $0xe0] sm:$0xff]  ;;  %408 = vst [vmem:[%s2150_s6 + $0x60] sm:$0xff] %v407_v28  ;;  %410 = vst [vmem:[%s2150_s6 + $0x68] sm:$0xff] %v409_v29  ;;  %v413_v31 = vld [vmem:[%s2145_s25 + $0xf0] sm:$0xff] }
  0x44   : > { %412 = vst [vmem:[%s2150_s6 + $0x70] sm:$0xff] %v411_v30  ;;  %v415_v32 = vld [vmem:[%s2145_s25 + $0x100] sm:$0xff]  ;;  %v417_v33 = vld [vmem:[%s2145_s25 + $0x110] sm:$0xff]  ;;  %414 = vst [vmem:[%s2150_s6 + $0x78] sm:$0xff] %v413_v31 }
  0x45   : > { %416 = vst [vmem:[%s2150_s6 + $0x80] sm:$0xff] %v415_v32  ;;  %418 = vst [vmem:[%s2150_s6 + $0x88] sm:$0xff] %v417_v33  ;;  %v419_v34 = vld [vmem:[%s2145_s25 + $0x120] sm:$0xff]  ;;  %v421_v35 = vld [vmem:[%s2145_s25 + $0x130] sm:$0xff] }
  0x46   : > { %v423_v36 = vld [vmem:[%s2145_s25 + $0x140] sm:$0xff]  ;;  %420 = vst [vmem:[%s2150_s6 + $0x90] sm:$0xff] %v419_v34  ;;  %422 = vst [vmem:[%s2150_s6 + $0x98] sm:$0xff] %v421_v35  ;;  %v425_v37 = vld [vmem:[%s2145_s25 + $0x150] sm:$0xff] }
  0x47   : > { %424 = vst [vmem:[%s2150_s6 + $0xa0] sm:$0xff] %v423_v36  ;;  %v427_v38 = vld [vmem:[%s2145_s25 + $0x160] sm:$0xff]  ;;  %v429_v39 = vld [vmem:[%s2145_s25 + $0x170] sm:$0xff]  ;;  %426 = vst [vmem:[%s2150_s6 + $0xa8] sm:$0xff] %v425_v37 }
  0x48   : > { %428 = vst [vmem:[%s2150_s6 + $0xb0] sm:$0xff] %v427_v38  ;;  %430 = vst [vmem:[%s2150_s6 + $0xb8] sm:$0xff] %v429_v39  ;;  %v431_v40 = vld [vmem:[%s2145_s25 + $0x180] sm:$0xff]  ;;  %v433_v41 = vld [vmem:[%s2145_s25 + $0x190] sm:$0xff] }
  0x49   : > { %v435_v42 = vld [vmem:[%s2145_s25 + $0x1a0] sm:$0xff]  ;;  %432 = vst [vmem:[%s2150_s6 + $0xc0] sm:$0xff] %v431_v40  ;;  %434 = vst [vmem:[%s2150_s6 + $0xc8] sm:$0xff] %v433_v41  ;;  %v437_v43 = vld [vmem:[%s2145_s25 + $0x1b0] sm:$0xff] }
  0x4a   : > { %436 = vst [vmem:[%s2150_s6 + $0xd0] sm:$0xff] %v435_v42  ;;  %v439_v44 = vld [vmem:[%s2145_s25 + $0x1c0] sm:$0xff]  ;;  %v441_v45 = vld [vmem:[%s2145_s25 + $0x1d0] sm:$0xff]  ;;  %438 = vst [vmem:[%s2150_s6 + $0xd8] sm:$0xff] %v437_v43 }
  0x4b   : > { %440 = vst [vmem:[%s2150_s6 + $0xe0] sm:$0xff] %v439_v44  ;;  %442 = vst [vmem:[%s2150_s6 + $0xe8] sm:$0xff] %v441_v45  ;;  %v443_v46 = vld [vmem:[%s2145_s25 + $0x1e0] sm:$0xff]  ;;  %v445_v47 = vld [vmem:[%s2145_s25 + $0x1f0] sm:$0xff] }
  0x4c   : > { %v447_v48 = vld [vmem:[%s2145_s25 + $0x200] sm:$0xff]  ;;  %444 = vst [vmem:[%s2150_s6 + $0xf0] sm:$0xff] %v443_v46  ;;  %446 = vst [vmem:[%s2150_s6 + $0xf8] sm:$0xff] %v445_v47  ;;  %v449_v49 = vld [vmem:[%s2145_s25 + $0x210] sm:$0xff] }
  0x4d   : > { %448 = vst [vmem:[%s2150_s6 + $0x100] sm:$0xff] %v447_v48  ;;  %v451_v50 = vld [vmem:[%s2145_s25 + $0x220] sm:$0xff]  ;;  %v453_v51 = vld [vmem:[%s2145_s25 + $0x230] sm:$0xff]  ;;  %450 = vst [vmem:[%s2150_s6 + $0x108] sm:$0xff] %v449_v49 }
  0x4e   : > { %452 = vst [vmem:[%s2150_s6 + $0x110] sm:$0xff] %v451_v50  ;;  %454 = vst [vmem:[%s2150_s6 + $0x118] sm:$0xff] %v453_v51  ;;  %v455_v52 = vld [vmem:[%s2145_s25 + $0x240] sm:$0xff]  ;;  %v457_v53 = vld [vmem:[%s2145_s25 + $0x250] sm:$0xff] }
  0x4f   : > { %v459_v54 = vld [vmem:[%s2145_s25 + $0x260] sm:$0xff]  ;;  %456 = vst [vmem:[%s2150_s6 + $0x120] sm:$0xff] %v455_v52  ;;  %458 = vst [vmem:[%s2150_s6 + $0x128] sm:$0xff] %v457_v53  ;;  %v461_v55 = vld [vmem:[%s2145_s25 + $0x270] sm:$0xff] }
  0x50   : > { %460 = vst [vmem:[%s2150_s6 + $0x130] sm:$0xff] %v459_v54  ;;  %v463_v56 = vld [vmem:[%s2145_s25 + $0x280] sm:$0xff]  ;;  %v465_v57 = vld [vmem:[%s2145_s25 + $0x290] sm:$0xff]  ;;  %462 = vst [vmem:[%s2150_s6 + $0x138] sm:$0xff] %v461_v55 }
  0x51   : > { %464 = vst [vmem:[%s2150_s6 + $0x140] sm:$0xff] %v463_v56  ;;  %466 = vst [vmem:[%s2150_s6 + $0x148] sm:$0xff] %v465_v57  ;;  %v467_v58 = vld [vmem:[%s2145_s25 + $0x2a0] sm:$0xff]  ;;  %v469_v59 = vld [vmem:[%s2145_s25 + $0x2b0] sm:$0xff] }
  0x52   : > { %v471_v60 = vld [vmem:[%s2145_s25 + $0x2c0] sm:$0xff]  ;;  %468 = vst [vmem:[%s2150_s6 + $0x150] sm:$0xff] %v467_v58  ;;  %470 = vst [vmem:[%s2150_s6 + $0x158] sm:$0xff] %v469_v59  ;;  %v473_v61 = vld [vmem:[%s2145_s25 + $0x2d0] sm:$0xff] }
  0x53   : > { %472 = vst [vmem:[%s2150_s6 + $0x160] sm:$0xff] %v471_v60  ;;  %v475_v62 = vld [vmem:[%s2145_s25 + $0x2e0] sm:$0xff]  ;;  %v477_v63 = vld [vmem:[%s2145_s25 + $0x2f0] sm:$0xff]  ;;  %474 = vst [vmem:[%s2150_s6 + $0x168] sm:$0xff] %v473_v61 }
  0x54   : > { %476 = vst [vmem:[%s2150_s6 + $0x170] sm:$0xff] %v475_v62  ;;  %478 = vst [vmem:[%s2150_s6 + $0x178] sm:$0xff] %v477_v63  ;;  %v479_v0 = vld [vmem:[%s2145_s25 + $0x300] sm:$0xff]  ;;  %v481_v1 = vld [vmem:[%s2145_s25 + $0x310] sm:$0xff] }
  0x55   : > { %v483_v2 = vld [vmem:[%s2145_s25 + $0x320] sm:$0xff]  ;;  %480 = vst [vmem:[%s2150_s6 + $0x180] sm:$0xff] %v479_v0  ;;  %482 = vst [vmem:[%s2150_s6 + $0x188] sm:$0xff] %v481_v1  ;;  %v485_v3 = vld [vmem:[%s2145_s25 + $0x330] sm:$0xff] }
  0x56   : > { %484 = vst [vmem:[%s2150_s6 + $0x190] sm:$0xff] %v483_v2  ;;  %v487_v4 = vld [vmem:[%s2145_s25 + $0x340] sm:$0xff]  ;;  %v489_v5 = vld [vmem:[%s2145_s25 + $0x350] sm:$0xff]  ;;  %486 = vst [vmem:[%s2150_s6 + $0x198] sm:$0xff] %v485_v3 }
  0x57   : > { %488 = vst [vmem:[%s2150_s6 + $0x1a0] sm:$0xff] %v487_v4  ;;  %490 = vst [vmem:[%s2150_s6 + $0x1a8] sm:$0xff] %v489_v5  ;;  %v491_v6 = vld [vmem:[%s2145_s25 + $0x360] sm:$0xff]  ;;  %v493_v7 = vld [vmem:[%s2145_s25 + $0x370] sm:$0xff] }
  0x58   : > { %v495_v8 = vld [vmem:[%s2145_s25 + $0x380] sm:$0xff]  ;;  %492 = vst [vmem:[%s2150_s6 + $0x1b0] sm:$0xff] %v491_v6  ;;  %494 = vst [vmem:[%s2150_s6 + $0x1b8] sm:$0xff] %v493_v7  ;;  %v497_v9 = vld [vmem:[%s2145_s25 + $0x390] sm:$0xff] }
  0x59   : > { %496 = vst [vmem:[%s2150_s6 + $0x1c0] sm:$0xff] %v495_v8  ;;  %v499_v10 = vld [vmem:[%s2145_s25 + $0x3a0] sm:$0xff]  ;;  %v501_v11 = vld [vmem:[%s2145_s25 + $0x3b0] sm:$0xff]  ;;  %498 = vst [vmem:[%s2150_s6 + $0x1c8] sm:$0xff] %v497_v9 }
  0x5a   : > { %500 = vst [vmem:[%s2150_s6 + $0x1d0] sm:$0xff] %v499_v10  ;;  %502 = vst [vmem:[%s2150_s6 + $0x1d8] sm:$0xff] %v501_v11  ;;  %v503_v12 = vld [vmem:[%s2145_s25 + $0x3c0] sm:$0xff]  ;;  %v505_v13 = vld [vmem:[%s2145_s25 + $0x3d0] sm:$0xff] }
  0x5b   : > { %v507_v14 = vld [vmem:[%s2145_s25 + $0x3e0] sm:$0xff]  ;;  %504 = vst [vmem:[%s2150_s6 + $0x1e0] sm:$0xff] %v503_v12  ;;  %506 = vst [vmem:[%s2150_s6 + $0x1e8] sm:$0xff] %v505_v13  ;;  %v509_v15 = vld [vmem:[%s2145_s25 + $0x3f0] sm:$0xff] }
  0x5c   : > { %508 = vst [vmem:[%s2150_s6 + $0x1f0] sm:$0xff] %v507_v14  ;;  %510 = vst [vmem:[%s2150_s6 + $0x1f8] sm:$0xff] %v509_v15 }
  0x5d PF: > { %p1568_p0 = scmp.ge.s32.totalorder %s1990_s22, 1  ;;  %p523_p1 = scmp.lt.s32.totalorder %s1990_s22, 5 }
  0x5f   : > { %p524_p2 = pnand %p1568_p0, %p523_p1 }
  0x60   : > { %s530_s0 = sand.u32 (!%p524_p2), 1, %s1966_s16   ;;  %s537_s5 = sand.u32 (!%p524_p2), 1, %s1958_s14  }
  0x61   : > { %527 = sbr.rel (%p524_p2) target bundleno = 444 (0x1bc), region = 85  ;;  %s1569_s23 = sshll.u32 (!%p524_p2), %s530_s0, 7 }
  0x62   : > { %s1570_s28 = sshll.u32 (!%p524_p2), %s537_s5, 9  ;;  %s564_s7 = sand.u32 (!%p524_p2), 1, %s1950_s12  }
  0x63   : > { %s1572_s11 = sshll.u32 (!%p524_p2), %s1978_s19, 1  ;;  %s1571_s25 = sshll.u32 (!%p524_p2), %s564_s7, 6 }
  0x64   : > { %p572_p3 = scmp.lt.s32.totalorder (!%p524_p2), %s1572_s11, 3  ;;  %s2289_s4 = scalar_lea.vmem (!%p524_p2), [#allocation3], %s1569_s23 }
  0x65   : > { %s2291_s6 = scalar_lea.vmem (!%p524_p2), [#allocation4], %s1570_s28  ;;  %s2293_s1 = scalar_lea.vmem (!%p524_p2), [#allocation5], %s1571_s25 }
  0x66   : > { %p1573_p4 = scmp.ne.s32.totalorder (!%p524_p2), %s1974_s18, 0 }
  0x68   : > { %s2468_s11 = smov (!%p572_p3, %s1572_s11), 3  ;;  %581 = sbr.rel (%p1573_p4) target bundleno = 114 (0x72), region = 97 }
  0x69   : > { %s574_s29 = scalar_lea.vmem %s2439_s2, %s2468_s11  ;;  %v1992_v16 = vmov (!%p1573_p4), 0.0  }
  0x6a   : > { %582 = vst [vmem:[#allocation2] sm:$0xff] (!%p1573_p4), %v1992_v16  ;;  %583 = vst [vmem:[#allocation2 + $0x8] sm:$0xff] (!%p1573_p4), %v1992_v16 }
  0x6b   : > { %584 = vst [vmem:[#allocation2 + $0x10] sm:$0xff] (!%p1573_p4), %v1992_v16  ;;  %585 = vst [vmem:[#allocation2 + $0x18] sm:$0xff] (!%p1573_p4), %v1992_v16 }
  0x6c   : > { %586 = vst [vmem:[#allocation2 + $0x20] sm:$0xff] (!%p1573_p4), %v1992_v16  ;;  %587 = vst [vmem:[#allocation2 + $0x28] sm:$0xff] (!%p1573_p4), %v1992_v16 }
  0x6d   : > { %588 = vst [vmem:[#allocation2 + $0x30] sm:$0xff] (!%p1573_p4), %v1992_v16  ;;  %589 = vst [vmem:[#allocation2 + $0x38] sm:$0xff] (!%p1573_p4), %v1992_v16 }
  0x6e   : > { %590 = vst [vmem:[#allocation2 + $0x40] sm:$0xff] (!%p1573_p4), %v1992_v16  ;;  %591 = vst [vmem:[#allocation2 + $0x48] sm:$0xff] (!%p1573_p4), %v1992_v16 }
  0x6f   : > { %592 = vst [vmem:[#allocation2 + $0x50] sm:$0xff] %v1992_v16  ;;  %593 = vst [vmem:[#allocation2 + $0x58] sm:$0xff] %v1992_v16 }
  0x70   : > { %594 = vst [vmem:[#allocation2 + $0x60] sm:$0xff] %v1992_v16  ;;  %595 = vst [vmem:[#allocation2 + $0x68] sm:$0xff] %v1992_v16 }
  0x71   : > { %596 = vst [vmem:[#allocation2 + $0x70] sm:$0xff] %v1992_v16  ;;  %597 = vst [vmem:[#allocation2 + $0x78] sm:$0xff] %v1992_v16 }
  0x72 PF: > { %v1784_v17 = vld [vmem:[%s2291_s6 + $0x4] ss:$8 sps:$4 sm:$0xff]   ;;  %v1788_v19 = vld [vmem:[%s2291_s6] ss:$8 sps:$4 sm:$0xff]   ;;  %v1790_v21 = vld [vmem:[%s2291_s6 + $0x14] ss:$8 sps:$4 sm:$0xff]  }
  0x73   : > { %v1786_v18 = vld [vmem:[%s2291_s6 + $0x104] ss:$8 sps:$4 sm:$0xff]   ;;  %1094 = vmatprep.subr.bf16.mxu1 %v1784_v17  ;;  %v1789_v20 = vld [vmem:[%s2291_s6 + $0x100] ss:$8 sps:$4 sm:$0xff]   ;;  %v1792_v22 = vld [vmem:[%s2291_s6 + $0x114] ss:$8 sps:$4 sm:$0xff]  }
  0x74   : > { %1167 = vmatprep.subr.bf16.mxu0 %v1786_v18  ;;  %1095 = vmatpush1.bf16.msra.mxu1 %v1788_v19  ;;  %v1794_v23 = vld [vmem:[%s2291_s6 + $0x10] ss:$8 sps:$4 sm:$0xff]   ;;  %v1796_v25 = vld [vmem:[%s2291_s6 + $0x24] ss:$8 sps:$4 sm:$0xff]   ;;  %v1800_v27 = vld [vmem:[%s2291_s6 + $0x20] ss:$8 sps:$4 sm:$0xff]  }
  0x75   : > { %1168 = vmatpush1.bf16.msra.mxu0 %v1789_v20  ;;  %1096 = vmatprep.subr.bf16.mxu1 %v1790_v21  ;;  %v1795_v24 = vld [vmem:[%s2291_s6 + $0x110] ss:$8 sps:$4 sm:$0xff]   ;;  %v1798_v26 = vld [vmem:[%s2291_s6 + $0x124] ss:$8 sps:$4 sm:$0xff]   ;;  %v1801_v28 = vld [vmem:[%s2291_s6 + $0x120] ss:$8 sps:$4 sm:$0xff]  }
  0x76   : > { %1169 = vmatprep.subr.bf16.mxu0 %v1792_v22  ;;  %v1802_v29 = vld [vmem:[%s2291_s6 + $0x34] ss:$8 sps:$4 sm:$0xff]   ;;  %v1806_v31 = vld [vmem:[%s2291_s6 + $0x30] ss:$8 sps:$4 sm:$0xff]   ;;  %v1808_v33 = vld [vmem:[%s2291_s6 + $0x44] ss:$8 sps:$4 sm:$0xff]  }
  0x77   : > { %v1804_v30 = vld [vmem:[%s2291_s6 + $0x134] ss:$8 sps:$4 sm:$0xff]   ;;  %v1807_v32 = vld [vmem:[%s2291_s6 + $0x130] ss:$8 sps:$4 sm:$0xff]   ;;  %v1810_v34 = vld [vmem:[%s2291_s6 + $0x144] ss:$8 sps:$4 sm:$0xff]  }
  0x78   : > { %1097 = vmatpush1.bf16.msra.mxu1 %v1794_v23  ;;  %v1812_v35 = vld [vmem:[%s2291_s6 + $0x40] ss:$8 sps:$4 sm:$0xff]   ;;  %v1814_v37 = vld [vmem:[%s2291_s6 + $0x54] ss:$8 sps:$4 sm:$0xff]   ;;  %v1818_v39 = vld [vmem:[%s2291_s6 + $0x50] ss:$8 sps:$4 sm:$0xff]  }
  0x79   : > { %1170 = vmatpush1.bf16.msra.mxu0 %v1795_v24  ;;  %1098 = vmatprep.subr.bf16.mxu1 %v1796_v25  ;;  %v1813_v36 = vld [vmem:[%s2291_s6 + $0x140] ss:$8 sps:$4 sm:$0xff]   ;;  %v1816_v38 = vld [vmem:[%s2291_s6 + $0x154] ss:$8 sps:$4 sm:$0xff]   ;;  %v1819_v40 = vld [vmem:[%s2291_s6 + $0x150] ss:$8 sps:$4 sm:$0xff]  }
  0x7a   : > { %1171 = vmatprep.subr.bf16.mxu0 %v1798_v26  ;;  %v1820_v41 = vld [vmem:[%s2291_s6 + $0x64] ss:$8 sps:$4 sm:$0xff]   ;;  %v1824_v43 = vld [vmem:[%s2291_s6 + $0x60] ss:$8 sps:$4 sm:$0xff]   ;;  %v1826_v45 = vld [vmem:[%s2291_s6 + $0x74] ss:$8 sps:$4 sm:$0xff]  }
  0x7b   : > { %v1822_v42 = vld [vmem:[%s2291_s6 + $0x164] ss:$8 sps:$4 sm:$0xff]   ;;  %v1825_v44 = vld [vmem:[%s2291_s6 + $0x160] ss:$8 sps:$4 sm:$0xff]   ;;  %v1828_v46 = vld [vmem:[%s2291_s6 + $0x174] ss:$8 sps:$4 sm:$0xff]  }
  0x7c   : > { %1099 = vmatpush1.bf16.msra.mxu1 %v1800_v27  ;;  %v1830_v47 = vld [vmem:[%s2291_s6 + $0x70] ss:$8 sps:$4 sm:$0xff]   ;;  %v1832_v49 = vld [vmem:[%s2291_s6 + $0x84] ss:$8 sps:$4 sm:$0xff]   ;;  %v1836_v51 = vld [vmem:[%s2291_s6 + $0x80] ss:$8 sps:$4 sm:$0xff]  }
  0x7d   : > { %1172 = vmatpush1.bf16.msra.mxu0 %v1801_v28  ;;  %1100 = vmatprep.subr.bf16.mxu1 %v1802_v29  ;;  %v1831_v48 = vld [vmem:[%s2291_s6 + $0x170] ss:$8 sps:$4 sm:$0xff]   ;;  %v1834_v50 = vld [vmem:[%s2291_s6 + $0x184] ss:$8 sps:$4 sm:$0xff]   ;;  %v1837_v52 = vld [vmem:[%s2291_s6 + $0x180] ss:$8 sps:$4 sm:$0xff]  }
  0x7e   : > { %1173 = vmatprep.subr.bf16.mxu0 %v1804_v30  ;;  %v1838_v53 = vld [vmem:[%s2291_s6 + $0x94] ss:$8 sps:$4 sm:$0xff]   ;;  %v1842_v55 = vld [vmem:[%s2291_s6 + $0x90] ss:$8 sps:$4 sm:$0xff]   ;;  %v1844_v57 = vld [vmem:[%s2291_s6 + $0xa4] ss:$8 sps:$4 sm:$0xff]  }
  0x7f   : > { %v1840_v54 = vld [vmem:[%s2291_s6 + $0x194] ss:$8 sps:$4 sm:$0xff]   ;;  %v1843_v56 = vld [vmem:[%s2291_s6 + $0x190] ss:$8 sps:$4 sm:$0xff]   ;;  %v1846_v58 = vld [vmem:[%s2291_s6 + $0x1a4] ss:$8 sps:$4 sm:$0xff]  }
  0x80   : > { %1101 = vmatpush1.bf16.msra.mxu1 %v1806_v31  ;;  %v1848_v59 = vld [vmem:[%s2291_s6 + $0xa0] ss:$8 sps:$4 sm:$0xff]   ;;  %v1850_v61 = vld [vmem:[%s2291_s6 + $0xb4] ss:$8 sps:$4 sm:$0xff]   ;;  %v1854_v63 = vld [vmem:[%s2291_s6 + $0xb0] ss:$8 sps:$4 sm:$0xff]  }
  0x81   : > { %1174 = vmatpush1.bf16.msra.mxu0 %v1807_v32  ;;  %1102 = vmatprep.subr.bf16.mxu1 %v1808_v33  ;;  %v1849_v60 = vld [vmem:[%s2291_s6 + $0x1a0] ss:$8 sps:$4 sm:$0xff]   ;;  %v1852_v62 = vld [vmem:[%s2291_s6 + $0x1b4] ss:$8 sps:$4 sm:$0xff]   ;;  %v1855_v0 = vld [vmem:[%s2291_s6 + $0x1b0] ss:$8 sps:$4 sm:$0xff]  }
  0x82   : > { %1175 = vmatprep.subr.bf16.mxu0 %v1810_v34  ;;  %v1856_v1 = vld [vmem:[%s2291_s6 + $0xc4] ss:$8 sps:$4 sm:$0xff]   ;;  %v1860_v5 = vld [vmem:[%s2291_s6 + $0xc0] ss:$8 sps:$4 sm:$0xff]   ;;  %v1862_v7 = vld [vmem:[%s2291_s6 + $0xd4] ss:$8 sps:$4 sm:$0xff]  }
  0x83   : > { %v1882_v2 = vld [vmem:[%s2289_s4 + $0x4] ss:$16 sps:$4 sm:$0xff]   ;;  %v1885_v4 = vld [vmem:[%s2289_s4 + $0xc] ss:$16 sps:$4 sm:$0xff]   ;;  %v1861_v6 = vld [vmem:[%s2291_s6 + $0x1c0] ss:$8 sps:$4 sm:$0xff]  }
  0x84   : > { %1103 = vmatpush1.bf16.msra.mxu1 %v1812_v35  ;;  %v1858_v3 = vld [vmem:[%s2291_s6 + $0x1c4] ss:$8 sps:$4 sm:$0xff]   ;;  %1126 = vmatprep.mubr.bf16.mxu1 %v1882_v2  ;;  %v1864_v8 = vld [vmem:[%s2291_s6 + $0x1d4] ss:$8 sps:$4 sm:$0xff]   ;;  %v1866_v9 = vld [vmem:[%s2291_s6 + $0xd0] ss:$8 sps:$4 sm:$0xff]  }
  0x85   : > { %1176 = vmatpush1.bf16.msra.mxu0 %v1813_v36  ;;  %1104 = vmatprep.subr.bf16.mxu1 %v1814_v37  ;;  %v1867_v10 = vld [vmem:[%s2291_s6 + $0x1d0] ss:$8 sps:$4 sm:$0xff]   ;;  %v1868_v11 = vld [vmem:[%s2291_s6 + $0xe4] ss:$8 sps:$4 sm:$0xff]   ;;  %v1872_v13 = vld [vmem:[%s2291_s6 + $0xe0] ss:$8 sps:$4 sm:$0xff]  }
  0x86   : > { %1177 = vmatprep.subr.bf16.mxu0 %v1816_v38  ;;  %1199 = vmatprep.mubr.bf16.mxu0 %v1885_v4  ;;  %v1870_v12 = vld [vmem:[%s2291_s6 + $0x1e4] ss:$8 sps:$4 sm:$0xff]   ;;  %v1873_v14 = vld [vmem:[%s2291_s6 + $0x1e0] ss:$8 sps:$4 sm:$0xff]   ;;  %v1874_v15 = vld [vmem:[%s2291_s6 + $0xf4] ss:$8 sps:$4 sm:$0xff]  }
  0x87   : > { %v1876_v16 = vld [vmem:[%s2291_s6 + $0x1f4] ss:$8 sps:$4 sm:$0xff]   ;;  %v1878_v17 = vld [vmem:[%s2291_s6 + $0xf0] ss:$8 sps:$4 sm:$0xff]   ;;  %v598_v34 = vld [vmem:[#allocation2] sm:$0xff]  ;;  %p1654_p5 = scmp.ne.s32.totalorder %s1974_s18, 1 }
  0x88   : > { %1105 = vmatpush1.bf16.msra.mxu1 %v1818_v39  ;;  %v1879_v18 = vld [vmem:[%s2291_s6 + $0x1f0] ss:$8 sps:$4 sm:$0xff]   ;;  %v1886_v21 = vld [vmem:[%s2289_s4 + $0x24] ss:$16 sps:$4 sm:$0xff]   ;;  %v1888_v22 = vld [vmem:[%s2289_s4 + $0x2c] ss:$16 sps:$4 sm:$0xff]  }
  0x89   : > { %1178 = vmatpush1.bf16.msra.mxu0 %v1819_v40  ;;  %1106 = vmatprep.subr.bf16.mxu1 %v1820_v41  ;;  %v1880_v19 = vld [vmem:[%s2289_s4] ss:$16 sps:$4 sm:$0xff]   ;;  %v1883_v20 = vld [vmem:[%s2289_s4 + $0x8] ss:$16 sps:$4 sm:$0xff]   ;;  %v1892_v25 = vld [vmem:[%s2289_s4 + $0x44] ss:$16 sps:$4 sm:$0xff]  }
  0x8a   : > { %1179 = vmatprep.subr.bf16.mxu0 %v1822_v42  ;;  %v1890_v23 = vld [vmem:[%s2289_s4 + $0x20] ss:$16 sps:$4 sm:$0xff]   ;;  %v1891_v24 = vld [vmem:[%s2289_s4 + $0x28] ss:$16 sps:$4 sm:$0xff]   ;;  %v1894_v26 = vld [vmem:[%s2289_s4 + $0x4c] ss:$16 sps:$4 sm:$0xff]  }
  0x8b   : > { %v1896_v27 = vld [vmem:[%s2289_s4 + $0x40] ss:$16 sps:$4 sm:$0xff]   ;;  %v1897_v28 = vld [vmem:[%s2289_s4 + $0x48] ss:$16 sps:$4 sm:$0xff]   ;;  %v1898_v29 = vld [vmem:[%s2289_s4 + $0x64] ss:$16 sps:$4 sm:$0xff]  }
  0x8c   : > { %1107 = vmatpush1.bf16.msra.mxu1 %v1824_v43  ;;  %v1900_v30 = vld [vmem:[%s2289_s4 + $0x6c] ss:$16 sps:$4 sm:$0xff]   ;;  %v1902_v31 = vld [vmem:[%s2289_s4 + $0x60] ss:$16 sps:$4 sm:$0xff]   ;;  %v1903_v32 = vld [vmem:[%s2289_s4 + $0x68] ss:$16 sps:$4 sm:$0xff]  }
  0x8d   : > { %1180 = vmatpush1.bf16.msra.mxu0 %v1825_v44  ;;  %1108 = vmatprep.subr.bf16.mxu1 %v1826_v45  ;;  %v599_v38 = vld [vmem:[#allocation2 + $0x8] sm:$0xff]  ;;  %v600_v42 = vld [vmem:[#allocation2 + $0x10] sm:$0xff] }
  0x8e   : > { %1181 = vmatprep.subr.bf16.mxu0 %v1828_v46 }
  0x90   : > { %1109 = vmatpush1.bf16.msra.mxu1 %v1830_v47  ;;  %v601_v47 = vld [vmem:[#allocation2 + $0x18] sm:$0xff] }
  0x91   : > { %1182 = vmatpush1.bf16.msra.mxu0 %v1831_v48  ;;  %1110 = vmatprep.subr.bf16.mxu1 %v1832_v49 }
  0x92   : > { %1183 = vmatprep.subr.bf16.mxu0 %v1834_v50 }
  0x94   : > { %1111 = vmatpush1.bf16.msra.mxu1 %v1836_v51 }
  0x95   : > { %1184 = vmatpush1.bf16.msra.mxu0 %v1837_v52  ;;  %1112 = vmatprep.subr.bf16.mxu1 %v1838_v53 }
  0x96   : > { %1185 = vmatprep.subr.bf16.mxu0 %v1840_v54  ;;  %v602_v54 = vld [vmem:[#allocation2 + $0x20] sm:$0xff] }
  0x98   : > { %1113 = vmatpush1.bf16.msra.mxu1 %v1842_v55 }
  0x99   : > { %1186 = vmatpush1.bf16.msra.mxu0 %v1843_v56  ;;  %1114 = vmatprep.subr.bf16.mxu1 %v1844_v57 }
  0x9a   : > { %1187 = vmatprep.subr.bf16.mxu0 %v1846_v58  ;;  %v603_v58 = vld [vmem:[#allocation2 + $0x28] sm:$0xff] }
  0x9c   : > { %1115 = vmatpush1.bf16.msra.mxu1 %v1848_v59 }
  0x9d   : > { %1188 = vmatpush1.bf16.msra.mxu0 %v1849_v60  ;;  %1116 = vmatprep.subr.bf16.mxu1 %v1850_v61 }
  0x9e   : > { %1189 = vmatprep.subr.bf16.mxu0 %v1852_v62  ;;  %v604_v62 = vld [vmem:[#allocation2 + $0x30] sm:$0xff] }
  0xa0   : > { %1117 = vmatpush1.bf16.msra.mxu1 %v1854_v63 }
  0xa1   : > { %1190 = vmatpush1.bf16.msra.mxu0 %v1855_v0  ;;  %1118 = vmatprep.subr.bf16.mxu1 %v1856_v1 }
  0xa2   : > { %1191 = vmatprep.subr.bf16.mxu0 %v1858_v3  ;;  %v605_v3 = vld [vmem:[#allocation2 + $0x38] sm:$0xff] }
  0xa4   : > { %1119 = vmatpush1.bf16.msra.mxu1 %v1860_v5 }
  0xa5   : > { %1192 = vmatpush1.bf16.msra.mxu0 %v1861_v6  ;;  %1120 = vmatprep.subr.bf16.mxu1 %v1862_v7 }
  0xa6   : > { %1193 = vmatprep.subr.bf16.mxu0 %v1864_v8 }
  0xa8   : > { %1121 = vmatpush1.bf16.msra.mxu1 %v1866_v9 }
  0xa9   : > { %1194 = vmatpush1.bf16.msra.mxu0 %v1867_v10  ;;  %1122 = vmatprep.subr.bf16.mxu1 %v1868_v11  ;;  %v606_v10 = vld [vmem:[#allocation2 + $0x40] sm:$0xff] }
  0xaa   : > { %1195 = vmatprep.subr.bf16.mxu0 %v1870_v12 }
  0xac   : > { %1123 = vmatpush1.bf16.msra.mxu1 %v1872_v13 }
  0xad   : > { %1196 = vmatpush1.bf16.msra.mxu0 %v1873_v14  ;;  %1124 = vmatprep.subr.bf16.mxu1 %v1874_v15  ;;  %v607_v14 = vld [vmem:[#allocation2 + $0x48] sm:$0xff] }
  0xae   : > { %1197 = vmatprep.subr.bf16.mxu0 %v1876_v16 }
  0xb0   : > { %1125 = vmatpush1.bf16.msra.mxu1 %v1878_v17 }
  0xb1   : > { %1198 = vmatpush1.bf16.msra.mxu0 %v1879_v18  ;;  %v608_v18 = vld [vmem:[#allocation2 + $0x50] sm:$0xff] }
  0xb3   : > { %1127 = vmatmul.mubr.bf16.vlgmr.msra.gmra.mrb[0].mxu1 %v1880_v19 }
  0xb4   : > { %1200 = vmatmul.mubr.bf16.vlgmr.msra.gmra.mrb[0].mxu0 %v1883_v20  ;;  %1136 = vmatprep.mubr.bf16.mxu1 %v1886_v21 }
  0xb5   : > { %1209 = vmatprep.mubr.bf16.mxu0 %v1888_v22 }
  0xbb   : > { %1137 = vmatmul.mubr.bf16.gmra.mrb[4].mxu1 %v1890_v23  ;;  %v609_v23 = vld [vmem:[#allocation2 + $0x58] sm:$0xff] }
  0xbc   : > { %1210 = vmatmul.mubr.bf16.gmra.mrb[4].mxu0 %v1891_v24  ;;  %1146 = vmatprep.mubr.bf16.mxu1 %v1892_v25 }
  0xbd   : > { %1219 = vmatprep.mubr.bf16.mxu0 %v1894_v26 }
  0xc3   : > { %1147 = vmatmul.mubr.bf16.gmra.mrb[8].mxu1 %v1896_v27 }
  0xc4   : > { %1220 = vmatmul.mubr.bf16.gmra.mrb[8].mxu0 %v1897_v28  ;;  %1156 = vmatprep.mubr.bf16.mxu1 %v1898_v29 }
  0xc5   : > { %1229 = vmatprep.mubr.bf16.mxu0 %v1900_v30  ;;  %v610_v30 = vld [vmem:[#allocation2 + $0x60] sm:$0xff] }
  0xcb   : > { %1157 = vmatmul.mubr.bf16.gmra.mrb[12].mxu1 %v1902_v31 }
  0xcc   : > { %1230 = vmatmul.mubr.bf16.gmra.mrb[12].mxu0 %v1903_v32 }
 0x186   : > { %v1128_v33 = vpop.f32.mrb[0].mxu1 }
 0x187   : > { %v1201_v35 = vpop.f32.mrb[0].mxu0  ;;  %v1130_v37 = vpop.f32.mrb[1].mxu1 }
 0x188   : > { %v1202_v36 = vadd.f32 %v1201_v35, %v1128_v33  ;;  %v1203_v39 = vpop.f32.mrb[1].mxu0  ;;  %v1132_v41 = vpop.f32.mrb[2].mxu1 }
 0x189   : > { %v1204_v40 = vadd.f32 %v1203_v39, %v1130_v37  ;;  %v1205_v43 = vpop.f32.mrb[2].mxu0  ;;  %v1134_v46 = vpop.f32.mrb[3].mxu1 }
 0x18a   : > { %v1240_v44 = vadd.f32 %v1202_v36, %v598_v34  ;;  %v1206_v45 = vadd.f32 %v1205_v43, %v1132_v41  ;;  %v1207_v48 = vpop.f32.mrb[3].mxu0  ;;  %v611_v34 = vld [vmem:[#allocation2 + $0x68] sm:$0xff]  ;;  %v613_v43 = vld [vmem:[#allocation2 + $0x78] sm:$0xff] }
 0x18b   : > { %v1241_v49 = vadd.f32 %v1204_v40, %v599_v38  ;;  %v1208_v50 = vadd.f32 %v1207_v48, %v1134_v46  ;;  %v612_v38 = vld [vmem:[#allocation2 + $0x70] sm:$0xff] }
 0x18c   : > { %1256 = vst [vmem:[#allocation2] sm:$0xff] %v1240_v44  ;;  %v1242_v51 = vadd.f32 %v1206_v45, %v600_v42 }
 0x18d   : > { %1257 = vst [vmem:[#allocation2 + $0x8] sm:$0xff] %v1241_v49  ;;  %v1243_v52 = vadd.f32 %v1208_v50, %v601_v47  ;;  %v1294_v49 = vlaneseq (!%p1654_p5) }
 0x18e   : > { %1258 = vst [vmem:[#allocation2 + $0x10] sm:$0xff] %v1242_v51  ;;  %v1138_v53 = vpop.f32.mrb[4].mxu1  ;;  %v1292_v51 = vld [vmem:[%s574_s29] sm:$0x3] (!%p1654_p5) }
 0x18f   : > { %1259 = vst [vmem:[#allocation2 + $0x18] sm:$0xff] %v1243_v52  ;;  %v1211_v55 = vpop.f32.mrb[4].mxu0  ;;  %v1140_v57 = vpop.f32.mrb[5].mxu1  ;;  %v1295_v50 = vshrl.u32 (!%p1654_p5), %v1294_v49, 7 }
 0x190   : > { %v1212_v56 = vadd.f32 %v1211_v55, %v1138_v53  ;;  %v1213_v59 = vpop.f32.mrb[5].mxu0  ;;  %v1142_v61 = vpop.f32.mrb[6].mxu1 }
 0x191   : > { %v1214_v60 = vadd.f32 %v1213_v59, %v1140_v57  ;;  %v1215_v63 = vpop.f32.mrb[6].mxu0  ;;  %v1144_v2 = vpop.f32.mrb[7].mxu1  ;;  %v1300_v55 = vsub.s32 (!%p1654_p5), 1, %v1295_v50 }
 0x192   : > { %v1244_v0 = vadd.f32 %v1212_v56, %v602_v54  ;;  %v1216_v1 = vadd.f32 %v1215_v63, %v1142_v61  ;;  %v1217_v4 = vpop.f32.mrb[7].mxu0  ;;  %v1296_v54 = vsub.s32 (!%p1654_p5), 0, %v1295_v50 }
 0x193   : > { %v1245_v5 = vadd.f32 %v1214_v60, %v603_v58  ;;  %v1218_v6 = vadd.f32 %v1217_v4, %v1144_v2  ;;  %v1276_v52 = vld [vmem:[#allocation2] sm:$0xff] (!%p1654_p5)  ;;  %v1301_v60 = vrot.slane (!%p1654_p5), %v1292_v51, %v1300_v55 }
 0x194   : > { %1260 = vst [vmem:[#allocation2 + $0x20] sm:$0xff] %v1244_v0  ;;  %v1246_v7 = vadd.f32 %v1216_v1, %v604_v62  ;;  %v1277_v53 = vld [vmem:[#allocation2 + $0x8] sm:$0xff] (!%p1654_p5)  ;;  %v1297_v59 = vrot.slane (!%p1654_p5), %v1292_v51, %v1296_v54 }
 0x195   : > { %1261 = vst [vmem:[#allocation2 + $0x28] sm:$0xff] %v1245_v5  ;;  %v1247_v8 = vadd.f32 %v1218_v6, %v605_v3  ;;  %v1278_v56 = vld [vmem:[#allocation2 + $0x10] sm:$0xff] (!%p1654_p5)  ;;  %v1305_v3 = vadd.f32 (!%p1654_p5), %v1301_v60, %v1277_v53 }
 0x196   : > { %1262 = vst [vmem:[#allocation2 + $0x30] sm:$0xff] %v1246_v7  ;;  %v1148_v9 = vpop.f32.mrb[8].mxu1  ;;  %v1279_v57 = vld [vmem:[#allocation2 + $0x18] sm:$0xff] (!%p1654_p5)  ;;  %v1304_v2 = vadd.f32 (!%p1654_p5), %v1297_v59, %v1276_v52  ;;  %v1306_v4 = vadd.f32 (!%p1654_p5), %v1297_v59, %v1278_v56 }
 0x197   : > { %1263 = vst [vmem:[#allocation2 + $0x38] sm:$0xff] %v1247_v8  ;;  %v1221_v11 = vpop.f32.mrb[8].mxu0  ;;  %v1150_v13 = vpop.f32.mrb[9].mxu1  ;;  %v1307_v5 = vadd.f32 (!%p1654_p5), %v1301_v60, %v1279_v57 }
 0x198   : > { %v1222_v12 = vadd.f32 %v1221_v11, %v1148_v9  ;;  %v1223_v15 = vpop.f32.mrb[9].mxu0  ;;  %v1152_v17 = vpop.f32.mrb[10].mxu1 }
 0x199   : > { %v1224_v16 = vadd.f32 %v1223_v15, %v1150_v13  ;;  %v1225_v19 = vpop.f32.mrb[10].mxu0  ;;  %v1154_v22 = vpop.f32.mrb[11].mxu1  ;;  %v1670_v15 = vpack.c.bf16 (!%p1654_p5), %v1305_v3, %v1304_v2 }
 0x19a   : > { %v1248_v20 = vadd.f32 %v1222_v12, %v606_v10  ;;  %v1226_v21 = vadd.f32 %v1225_v19, %v1152_v17  ;;  %v1227_v24 = vpop.f32.mrb[11].mxu0 }
 0x19b   : > { %v1249_v25 = vadd.f32 %v1224_v16, %v607_v14  ;;  %v1228_v26 = vadd.f32 %v1227_v24, %v1154_v22  ;;  %v1280_v58 = vld [vmem:[#allocation2 + $0x20] sm:$0xff] (!%p1654_p5)  ;;  %v1671_v16 = vpack.c.bf16 (!%p1654_p5), %v1307_v5, %v1306_v4  ;;  %1368 = vst [vmem:[%s2293_s1] sm:$0xff] (!%p1654_p5), %v1670_v15 }
 0x19c   : > { %1264 = vst [vmem:[#allocation2 + $0x40] sm:$0xff] %v1248_v20  ;;  %v1250_v27 = vadd.f32 %v1226_v21, %v608_v18  ;;  %v1281_v61 = vld [vmem:[#allocation2 + $0x28] sm:$0xff] (!%p1654_p5)  ;;  %v1308_v8 = vadd.f32 (!%p1654_p5), %v1297_v59, %v1280_v58 }
 0x19d   : > { %1265 = vst [vmem:[#allocation2 + $0x48] sm:$0xff] %v1249_v25  ;;  %v1251_v28 = vadd.f32 %v1228_v26, %v609_v23  ;;  %v1282_v62 = vld [vmem:[#allocation2 + $0x30] sm:$0xff] (!%p1654_p5)  ;;  %v1309_v9 = vadd.f32 (!%p1654_p5), %v1301_v60, %v1281_v61  ;;  %1369 = vst [vmem:[%s2293_s1 + $0x8] sm:$0xff] (!%p1654_p5), %v1671_v16 }
 0x19e   : > { %1266 = vst [vmem:[#allocation2 + $0x50] sm:$0xff] %v1250_v27  ;;  %v1158_v29 = vpop.f32.mrb[12].mxu1  ;;  %v1283_v63 = vld [vmem:[#allocation2 + $0x38] sm:$0xff] (!%p1654_p5)  ;;  %v1310_v10 = vadd.f32 (!%p1654_p5), %v1297_v59, %v1282_v62 }
 0x19f   : > { %1267 = vst [vmem:[#allocation2 + $0x58] sm:$0xff] %v1251_v28  ;;  %v1231_v31 = vpop.f32.mrb[12].mxu0  ;;  %v1160_v33 = vpop.f32.mrb[13].mxu1  ;;  %v1311_v11 = vadd.f32 (!%p1654_p5), %v1301_v60, %v1283_v63  ;;  %v1672_v20 = vpack.c.bf16 (!%p1654_p5), %v1309_v9, %v1308_v8 }
 0x1a0   : > { %v1232_v32 = vadd.f32 %v1231_v31, %v1158_v29  ;;  %v1233_v35 = vpop.f32.mrb[13].mxu0  ;;  %v1162_v37 = vpop.f32.mrb[14].mxu1 }
 0x1a1   : > { %v1234_v36 = vadd.f32 %v1233_v35, %v1160_v33  ;;  %v1235_v39 = vpop.f32.mrb[14].mxu0  ;;  %v1164_v42 = vpop.f32.mrb[15].mxu1  ;;  %1275 = sbr.rel (%p1654_p5) target bundleno = 436 (0x1b4), region = 101  ;;  %v1673_v21 = vpack.c.bf16 (!%p1654_p5), %v1311_v11, %v1310_v10  ;;  %1370 = vst [vmem:[%s2293_s1 + $0x10] sm:$0xff] (!%p1654_p5), %v1672_v20 }
 0x1a2   : > { %v1252_v40 = vadd.f32 %v1232_v32, %v610_v30  ;;  %v1236_v41 = vadd.f32 %v1235_v39, %v1162_v37  ;;  %v1237_v44 = vpop.f32.mrb[15].mxu0 }
 0x1a3   : > { %v1253_v45 = vadd.f32 %v1234_v36, %v611_v34  ;;  %v1238_v46 = vadd.f32 %v1237_v44, %v1164_v42  ;;  %v1284_v0 = vld [vmem:[#allocation2 + $0x40] sm:$0xff] (!%p1654_p5)  ;;  %1371 = vst [vmem:[%s2293_s1 + $0x18] sm:$0xff] (!%p1654_p5), %v1673_v21 }
 0x1a4   : > { %1268 = vst [vmem:[#allocation2 + $0x60] sm:$0xff] %v1252_v40  ;;  %v1254_v47 = vadd.f32 %v1236_v41, %v612_v38  ;;  %v1285_v1 = vld [vmem:[#allocation2 + $0x48] sm:$0xff] (!%p1654_p5)  ;;  %v1312_v17 = vadd.f32 (!%p1654_p5), %v1297_v59, %v1284_v0 }
 0x1a5   : > { %1269 = vst [vmem:[#allocation2 + $0x68] sm:$0xff] %v1253_v45  ;;  %v1255_v48 = vadd.f32 %v1238_v46, %v613_v43  ;;  %v1286_v6 = vld [vmem:[#allocation2 + $0x50] sm:$0xff] (!%p1654_p5)  ;;  %v1313_v18 = vadd.f32 (!%p1654_p5), %v1301_v60, %v1285_v1 }
 0x1a6   : > { %1270 = vst [vmem:[#allocation2 + $0x70] sm:$0xff] %v1254_v47  ;;  %v1287_v7 = vld [vmem:[#allocation2 + $0x58] sm:$0xff] (!%p1654_p5)  ;;  %v1314_v22 = vadd.f32 (!%p1654_p5), %v1297_v59, %v1286_v6 }
 0x1a7   : > { %1271 = vst [vmem:[#allocation2 + $0x78] sm:$0xff] %v1255_v48  ;;  %v1315_v23 = vadd.f32 (!%p1654_p5), %v1301_v60, %v1287_v7  ;;  %v1674_v24 = vpack.c.bf16 (!%p1654_p5), %v1313_v18, %v1312_v17 }
 0x1a9   : > { %v1675_v28 = vpack.c.bf16 %v1315_v23, %v1314_v22  ;;  %1372 = vst [vmem:[%s2293_s1 + $0x20] sm:$0xff] %v1674_v24 }
 0x1ab   : > { %v1288_v12 = vld [vmem:[#allocation2 + $0x60] sm:$0xff]  ;;  %1373 = vst [vmem:[%s2293_s1 + $0x28] sm:$0xff] %v1675_v28 }
 0x1ac   : > { %v1289_v13 = vld [vmem:[#allocation2 + $0x68] sm:$0xff]  ;;  %v1316_v25 = vadd.f32 %v1297_v59, %v1288_v12 }
 0x1ad   : > { %v1290_v14 = vld [vmem:[#allocation2 + $0x70] sm:$0xff]  ;;  %v1317_v26 = vadd.f32 %v1301_v60, %v1289_v13 }
 0x1ae   : > { %v1291_v19 = vld [vmem:[#allocation2 + $0x78] sm:$0xff]  ;;  %v1318_v27 = vadd.f32 %v1297_v59, %v1290_v14 }
 0x1af   : > { %v1319_v29 = vadd.f32 %v1301_v60, %v1291_v19  ;;  %v1676_v30 = vpack.c.bf16 %v1317_v26, %v1316_v25 }
 0x1b1   : > { %v1677_v31 = vpack.c.bf16 %v1319_v29, %v1318_v27  ;;  %1374 = vst [vmem:[%s2293_s1 + $0x30] sm:$0xff] %v1676_v30 }
 0x1b3   : > { %1375 = vst [vmem:[%s2293_s1 + $0x38] sm:$0xff] %v1677_v31 }
 0x1b4 PF: > { %1382 = sbr.rel (!%p2107_p12) target bundleno = 444 (0x1bc), region = 105  ;;  %s1678_s16 = sshll.u32 (%p2107_p12), %s1978_s19, 3  ;;  %v1430_v32 = vld [vmem:[%s2293_s1] sm:$0xff] (%p2107_p12)  ;;  %v1432_v33 = vld [vmem:[%s2293_s1 + $0x8] sm:$0xff] (%p2107_p12)  ;;  %v1434_v34 = vld [vmem:[%s2293_s1 + $0x10] sm:$0xff] (%p2107_p12) }
 0x1b5   : > { %s1388_s5 = scalar_lea.vmem (%p2107_p12), %s2440_s3, %s1678_s16  ;;  %v1438_v36 = vld [vmem:[%s2293_s1 + $0x20] sm:$0xff] (%p2107_p12)  ;;  %v1440_v37 = vld [vmem:[%s2293_s1 + $0x28] sm:$0xff] (%p2107_p12) }
 0x1b6   : > { %v1436_v35 = vld [vmem:[%s2293_s1 + $0x18] sm:$0xff] (%p2107_p12)  ;;  %1431 = vst [vmem:[%s1388_s5] sm:$0xff] (%p2107_p12), %v1430_v32  ;;  %1433 = vst [vmem:[%s1388_s5 + $0x10] sm:$0xff] (%p2107_p12), %v1432_v33 }
 0x1b7   : > { %1435 = vst [vmem:[%s1388_s5 + $0x20] sm:$0xff] (%p2107_p12), %v1434_v34  ;;  %1437 = vst [vmem:[%s1388_s5 + $0x30] sm:$0xff] (%p2107_p12), %v1436_v35 }
 0x1b8   : > { %1439 = vst [vmem:[%s1388_s5 + $0x40] sm:$0xff] (%p2107_p12), %v1438_v36  ;;  %1441 = vst [vmem:[%s1388_s5 + $0x50] sm:$0xff] (%p2107_p12), %v1440_v37  ;;  %v1442_v38 = vld [vmem:[%s2293_s1 + $0x30] sm:$0xff] (%p2107_p12) }
 0x1b9   : > { %1443 = vst [vmem:[%s1388_s5 + $0x60] sm:$0xff] (%p2107_p12), %v1442_v38 }
 0x1ba   : > { %v1444_v39 = vld [vmem:[%s2293_s1 + $0x38] sm:$0xff] (%p2107_p12) }
 0x1bb   : > { %1445 = vst [vmem:[%s1388_s5 + $0x70] sm:$0xff] %v1444_v39 }
 0x1bc PF: > { %s13_s22 = sadd.s32 1, %s1990_s22   ;;  %s2450_s10 = sld [smem:[#allocation6_spill]] }
 0x1bd   : > { %p10_p6 = scmp.ge.s32.totalorder %s13_s22, 6   ;;  %s2451_s12 = smov %s1954_s13 }
 0x1be   : > { %s2452_s13 = smov %s2105_s9  ;;  %s2453_s14 = smov %s1962_s15 }
 0x1bf   : > { %s2454_s15 = smov %s2102_s8  ;;  %s2455_s16 = smov %s1970_s17 }
 0x1c0   : > { %s2456_s17 = smov %s2088_s30  ;;  %s2457_s18 = smov %s1982_s20 }
 0x1c1   : > { %s2458_s19 = smov %s1986_s21  ;;  %s2459_s20 = smov %s2462_s24 }
 0x1c2   : > { %s2460_s21 = smov %s2450_s10  ;;  %12 = sbr.rel (!%p10_p6) target bundleno = 9 (0x9), region = 185 }

// kernel: generator_resnet_forward.35
= control target key start
LH: loop header
LB: loop body
LE: loop exit
PB: predicated region body
PF: predicated region fallthrough
CT: control target
= control target key end

     0   :  { %s2208_s1 = inlined_call_operand.vmem [shape: bf16[512,256], index: 1, kind: input, shape index: {}]   ;;  %s2209_s0 = inlined_call_operand.vmem [shape: bf16[176,512], index: 0, kind: input, shape index: {}]   ;;  %s2210_s2 = inlined_call_operand.vmem [shape: f32[1,256], index: 2, kind: input, shape index: {}]   ;;  %s2211_s3 = inlined_call_operand.vmem [shape: bf16[176,256], index: 3, kind: output, shape index: {}]  }
   0x1   :  { %v1585_v0 = vld [vmem:[%s2208_s1 + $0x4] ss:$8 sps:$4 sm:$0xff]   ;;  %v1589_v2 = vld [vmem:[%s2208_s1] ss:$8 sps:$4 sm:$0xff]   ;;  %v1591_v4 = vld [vmem:[%s2208_s1 + $0x14] ss:$8 sps:$4 sm:$0xff]  }
   0x2   :  { %v1587_v1 = vld [vmem:[%s2208_s1 + $0x104] ss:$8 sps:$4 sm:$0xff]   ;;  %754 = vmatprep.subr.bf16.mxu1 %v1585_v0  ;;  %v1590_v3 = vld [vmem:[%s2208_s1 + $0x100] ss:$8 sps:$4 sm:$0xff]   ;;  %v1593_v5 = vld [vmem:[%s2208_s1 + $0x114] ss:$8 sps:$4 sm:$0xff]  }
   0x3   :  { %897 = vmatprep.subr.bf16.mxu0 %v1587_v1  ;;  %755 = vmatpush1.bf16.msra.mxu1 %v1589_v2  ;;  %v1595_v6 = vld [vmem:[%s2208_s1 + $0x10] ss:$8 sps:$4 sm:$0xff]   ;;  %v1597_v8 = vld [vmem:[%s2208_s1 + $0x24] ss:$8 sps:$4 sm:$0xff]   ;;  %v1601_v10 = vld [vmem:[%s2208_s1 + $0x20] ss:$8 sps:$4 sm:$0xff]  }
   0x4   :  { %898 = vmatpush1.bf16.msra.mxu0 %v1590_v3  ;;  %756 = vmatprep.subr.bf16.mxu1 %v1591_v4  ;;  %v1596_v7 = vld [vmem:[%s2208_s1 + $0x110] ss:$8 sps:$4 sm:$0xff]   ;;  %v1599_v9 = vld [vmem:[%s2208_s1 + $0x124] ss:$8 sps:$4 sm:$0xff]   ;;  %v1602_v11 = vld [vmem:[%s2208_s1 + $0x120] ss:$8 sps:$4 sm:$0xff]  }
   0x5   :  { %899 = vmatprep.subr.bf16.mxu0 %v1593_v5  ;;  %v1603_v12 = vld [vmem:[%s2208_s1 + $0x34] ss:$8 sps:$4 sm:$0xff]   ;;  %v1607_v14 = vld [vmem:[%s2208_s1 + $0x30] ss:$8 sps:$4 sm:$0xff]   ;;  %v1609_v16 = vld [vmem:[%s2208_s1 + $0x44] ss:$8 sps:$4 sm:$0xff]  }
   0x6   :  { %v1605_v13 = vld [vmem:[%s2208_s1 + $0x134] ss:$8 sps:$4 sm:$0xff]   ;;  %v1608_v15 = vld [vmem:[%s2208_s1 + $0x130] ss:$8 sps:$4 sm:$0xff]   ;;  %v1611_v17 = vld [vmem:[%s2208_s1 + $0x144] ss:$8 sps:$4 sm:$0xff]  }
   0x7   :  { %757 = vmatpush1.bf16.msra.mxu1 %v1595_v6  ;;  %v1613_v18 = vld [vmem:[%s2208_s1 + $0x40] ss:$8 sps:$4 sm:$0xff]   ;;  %v1615_v20 = vld [vmem:[%s2208_s1 + $0x54] ss:$8 sps:$4 sm:$0xff]   ;;  %v1619_v22 = vld [vmem:[%s2208_s1 + $0x50] ss:$8 sps:$4 sm:$0xff]  }
   0x8   :  { %900 = vmatpush1.bf16.msra.mxu0 %v1596_v7  ;;  %758 = vmatprep.subr.bf16.mxu1 %v1597_v8  ;;  %v1614_v19 = vld [vmem:[%s2208_s1 + $0x140] ss:$8 sps:$4 sm:$0xff]   ;;  %v1617_v21 = vld [vmem:[%s2208_s1 + $0x154] ss:$8 sps:$4 sm:$0xff]   ;;  %v1620_v23 = vld [vmem:[%s2208_s1 + $0x150] ss:$8 sps:$4 sm:$0xff]  }
   0x9   :  { %901 = vmatprep.subr.bf16.mxu0 %v1599_v9  ;;  %v1621_v24 = vld [vmem:[%s2208_s1 + $0x64] ss:$8 sps:$4 sm:$0xff]   ;;  %v1625_v26 = vld [vmem:[%s2208_s1 + $0x60] ss:$8 sps:$4 sm:$0xff]   ;;  %v1627_v28 = vld [vmem:[%s2208_s1 + $0x74] ss:$8 sps:$4 sm:$0xff]  }
   0xa   :  { %v1623_v25 = vld [vmem:[%s2208_s1 + $0x164] ss:$8 sps:$4 sm:$0xff]   ;;  %v1626_v27 = vld [vmem:[%s2208_s1 + $0x160] ss:$8 sps:$4 sm:$0xff]   ;;  %v1629_v29 = vld [vmem:[%s2208_s1 + $0x174] ss:$8 sps:$4 sm:$0xff]  }
   0xb   :  { %759 = vmatpush1.bf16.msra.mxu1 %v1601_v10  ;;  %v1631_v30 = vld [vmem:[%s2208_s1 + $0x70] ss:$8 sps:$4 sm:$0xff]   ;;  %v1633_v32 = vld [vmem:[%s2208_s1 + $0x84] ss:$8 sps:$4 sm:$0xff]   ;;  %v1637_v34 = vld [vmem:[%s2208_s1 + $0x80] ss:$8 sps:$4 sm:$0xff]  }
   0xc   :  { %902 = vmatpush1.bf16.msra.mxu0 %v1602_v11  ;;  %760 = vmatprep.subr.bf16.mxu1 %v1603_v12  ;;  %v1632_v31 = vld [vmem:[%s2208_s1 + $0x170] ss:$8 sps:$4 sm:$0xff]   ;;  %v1635_v33 = vld [vmem:[%s2208_s1 + $0x184] ss:$8 sps:$4 sm:$0xff]   ;;  %v1638_v35 = vld [vmem:[%s2208_s1 + $0x180] ss:$8 sps:$4 sm:$0xff]  }
   0xd   :  { %903 = vmatprep.subr.bf16.mxu0 %v1605_v13  ;;  %v1639_v36 = vld [vmem:[%s2208_s1 + $0x94] ss:$8 sps:$4 sm:$0xff]   ;;  %v1643_v38 = vld [vmem:[%s2208_s1 + $0x90] ss:$8 sps:$4 sm:$0xff]   ;;  %v1645_v40 = vld [vmem:[%s2208_s1 + $0xa4] ss:$8 sps:$4 sm:$0xff]  }
   0xe   :  { %v1641_v37 = vld [vmem:[%s2208_s1 + $0x194] ss:$8 sps:$4 sm:$0xff]   ;;  %v1644_v39 = vld [vmem:[%s2208_s1 + $0x190] ss:$8 sps:$4 sm:$0xff]   ;;  %v1647_v41 = vld [vmem:[%s2208_s1 + $0x1a4] ss:$8 sps:$4 sm:$0xff]  }
   0xf   :  { %761 = vmatpush1.bf16.msra.mxu1 %v1607_v14  ;;  %v1649_v42 = vld [vmem:[%s2208_s1 + $0xa0] ss:$8 sps:$4 sm:$0xff]   ;;  %v1651_v44 = vld [vmem:[%s2208_s1 + $0xb4] ss:$8 sps:$4 sm:$0xff]   ;;  %v1655_v46 = vld [vmem:[%s2208_s1 + $0xb0] ss:$8 sps:$4 sm:$0xff]  }
  0x10   :  { %904 = vmatpush1.bf16.msra.mxu0 %v1608_v15  ;;  %762 = vmatprep.subr.bf16.mxu1 %v1609_v16  ;;  %v1650_v43 = vld [vmem:[%s2208_s1 + $0x1a0] ss:$8 sps:$4 sm:$0xff]   ;;  %v1653_v45 = vld [vmem:[%s2208_s1 + $0x1b4] ss:$8 sps:$4 sm:$0xff]   ;;  %v1656_v47 = vld [vmem:[%s2208_s1 + $0x1b0] ss:$8 sps:$4 sm:$0xff]  }
  0x11   :  { %905 = vmatprep.subr.bf16.mxu0 %v1611_v17  ;;  %v1657_v48 = vld [vmem:[%s2208_s1 + $0xc4] ss:$8 sps:$4 sm:$0xff]   ;;  %v1661_v52 = vld [vmem:[%s2208_s1 + $0xc0] ss:$8 sps:$4 sm:$0xff]   ;;  %v1663_v54 = vld [vmem:[%s2208_s1 + $0xd4] ss:$8 sps:$4 sm:$0xff]  }
  0x12   :  { %v1683_v49 = vld [vmem:[%s2209_s0 + $0x4] ss:$16 sps:$4 sm:$0xff]   ;;  %v1686_v51 = vld [vmem:[%s2209_s0 + $0xc] ss:$16 sps:$4 sm:$0xff]   ;;  %v1662_v53 = vld [vmem:[%s2208_s1 + $0x1c0] ss:$8 sps:$4 sm:$0xff]  }
  0x13   :  { %763 = vmatpush1.bf16.msra.mxu1 %v1613_v18  ;;  %v1659_v50 = vld [vmem:[%s2208_s1 + $0x1c4] ss:$8 sps:$4 sm:$0xff]   ;;  %786 = vmatprep.mubr.bf16.mxu1 %v1683_v49  ;;  %v1665_v55 = vld [vmem:[%s2208_s1 + $0x1d4] ss:$8 sps:$4 sm:$0xff]   ;;  %v1667_v56 = vld [vmem:[%s2208_s1 + $0xd0] ss:$8 sps:$4 sm:$0xff]  }
  0x14   :  { %906 = vmatpush1.bf16.msra.mxu0 %v1614_v19  ;;  %764 = vmatprep.subr.bf16.mxu1 %v1615_v20  ;;  %v1668_v57 = vld [vmem:[%s2208_s1 + $0x1d0] ss:$8 sps:$4 sm:$0xff]   ;;  %v1669_v58 = vld [vmem:[%s2208_s1 + $0xe4] ss:$8 sps:$4 sm:$0xff]   ;;  %v1673_v60 = vld [vmem:[%s2208_s1 + $0xe0] ss:$8 sps:$4 sm:$0xff]  }
  0x15   :  { %907 = vmatprep.subr.bf16.mxu0 %v1617_v21  ;;  %929 = vmatprep.mubr.bf16.mxu0 %v1686_v51  ;;  %v1671_v59 = vld [vmem:[%s2208_s1 + $0x1e4] ss:$8 sps:$4 sm:$0xff]   ;;  %v1674_v61 = vld [vmem:[%s2208_s1 + $0x1e0] ss:$8 sps:$4 sm:$0xff]   ;;  %v1675_v62 = vld [vmem:[%s2208_s1 + $0xf4] ss:$8 sps:$4 sm:$0xff]  }
  0x16   :  { %v1677_v63 = vld [vmem:[%s2208_s1 + $0x1f4] ss:$8 sps:$4 sm:$0xff]   ;;  %v1679_v0 = vld [vmem:[%s2208_s1 + $0xf0] ss:$8 sps:$4 sm:$0xff]  }
  0x17   :  { %765 = vmatpush1.bf16.msra.mxu1 %v1619_v22  ;;  %v1680_v1 = vld [vmem:[%s2208_s1 + $0x1f0] ss:$8 sps:$4 sm:$0xff]   ;;  %v1687_v4 = vld [vmem:[%s2209_s0 + $0x24] ss:$16 sps:$4 sm:$0xff]   ;;  %v1689_v5 = vld [vmem:[%s2209_s0 + $0x2c] ss:$16 sps:$4 sm:$0xff]  }
  0x18   :  { %908 = vmatpush1.bf16.msra.mxu0 %v1620_v23  ;;  %766 = vmatprep.subr.bf16.mxu1 %v1621_v24  ;;  %v1681_v2 = vld [vmem:[%s2209_s0] ss:$16 sps:$4 sm:$0xff]   ;;  %v1684_v3 = vld [vmem:[%s2209_s0 + $0x8] ss:$16 sps:$4 sm:$0xff]   ;;  %v1693_v8 = vld [vmem:[%s2209_s0 + $0x44] ss:$16 sps:$4 sm:$0xff]  }
  0x19   :  { %909 = vmatprep.subr.bf16.mxu0 %v1623_v25  ;;  %v1691_v6 = vld [vmem:[%s2209_s0 + $0x20] ss:$16 sps:$4 sm:$0xff]   ;;  %v1692_v7 = vld [vmem:[%s2209_s0 + $0x28] ss:$16 sps:$4 sm:$0xff]   ;;  %v1695_v9 = vld [vmem:[%s2209_s0 + $0x4c] ss:$16 sps:$4 sm:$0xff]  }
  0x1a   :  { %v1697_v10 = vld [vmem:[%s2209_s0 + $0x40] ss:$16 sps:$4 sm:$0xff]   ;;  %v1698_v11 = vld [vmem:[%s2209_s0 + $0x48] ss:$16 sps:$4 sm:$0xff]   ;;  %v1699_v12 = vld [vmem:[%s2209_s0 + $0x64] ss:$16 sps:$4 sm:$0xff]  }
  0x1b   :  { %767 = vmatpush1.bf16.msra.mxu1 %v1625_v26  ;;  %v1701_v13 = vld [vmem:[%s2209_s0 + $0x6c] ss:$16 sps:$4 sm:$0xff]   ;;  %v1703_v14 = vld [vmem:[%s2209_s0 + $0x60] ss:$16 sps:$4 sm:$0xff]   ;;  %v1704_v15 = vld [vmem:[%s2209_s0 + $0x68] ss:$16 sps:$4 sm:$0xff]  }
  0x1c   :  { %910 = vmatpush1.bf16.msra.mxu0 %v1626_v27  ;;  %768 = vmatprep.subr.bf16.mxu1 %v1627_v28  ;;  %v1705_v16 = vld [vmem:[%s2209_s0 + $0x84] ss:$16 sps:$4 sm:$0xff]   ;;  %v1707_v17 = vld [vmem:[%s2209_s0 + $0x8c] ss:$16 sps:$4 sm:$0xff]   ;;  %v1709_v18 = vld [vmem:[%s2209_s0 + $0x80] ss:$16 sps:$4 sm:$0xff]  }
  0x1d   :  { %911 = vmatprep.subr.bf16.mxu0 %v1629_v29  ;;  %v1710_v19 = vld [vmem:[%s2209_s0 + $0x88] ss:$16 sps:$4 sm:$0xff]   ;;  %v1711_v20 = vld [vmem:[%s2209_s0 + $0xa4] ss:$16 sps:$4 sm:$0xff]   ;;  %v1713_v21 = vld [vmem:[%s2209_s0 + $0xac] ss:$16 sps:$4 sm:$0xff]  }
  0x1e   :  { %v1715_v22 = vld [vmem:[%s2209_s0 + $0xa0] ss:$16 sps:$4 sm:$0xff]   ;;  %v1716_v23 = vld [vmem:[%s2209_s0 + $0xa8] ss:$16 sps:$4 sm:$0xff]   ;;  %v1717_v24 = vld [vmem:[%s2209_s0 + $0xc4] ss:$16 sps:$4 sm:$0xff]  }
  0x1f   :  { %769 = vmatpush1.bf16.msra.mxu1 %v1631_v30  ;;  %v1719_v25 = vld [vmem:[%s2209_s0 + $0xcc] ss:$16 sps:$4 sm:$0xff]   ;;  %v1721_v26 = vld [vmem:[%s2209_s0 + $0xc0] ss:$16 sps:$4 sm:$0xff]   ;;  %v1722_v27 = vld [vmem:[%s2209_s0 + $0xc8] ss:$16 sps:$4 sm:$0xff]  }
  0x20   :  { %912 = vmatpush1.bf16.msra.mxu0 %v1632_v31  ;;  %770 = vmatprep.subr.bf16.mxu1 %v1633_v32  ;;  %v1723_v28 = vld [vmem:[%s2209_s0 + $0xe4] ss:$16 sps:$4 sm:$0xff]   ;;  %v1725_v29 = vld [vmem:[%s2209_s0 + $0xec] ss:$16 sps:$4 sm:$0xff]   ;;  %v1727_v30 = vld [vmem:[%s2209_s0 + $0xe0] ss:$16 sps:$4 sm:$0xff]  }
  0x21   :  { %913 = vmatprep.subr.bf16.mxu0 %v1635_v33  ;;  %v1728_v31 = vld [vmem:[%s2209_s0 + $0xe8] ss:$16 sps:$4 sm:$0xff]   ;;  %v1729_v32 = vld [vmem:[%s2209_s0 + $0x104] ss:$16 sps:$4 sm:$0xff]   ;;  %v1731_v33 = vld [vmem:[%s2209_s0 + $0x10c] ss:$16 sps:$4 sm:$0xff]  }
  0x23   :  { %771 = vmatpush1.bf16.msra.mxu1 %v1637_v34  ;;  %v1733_v34 = vld [vmem:[%s2209_s0 + $0x100] ss:$16 sps:$4 sm:$0xff]  }
  0x24   :  { %914 = vmatpush1.bf16.msra.mxu0 %v1638_v35  ;;  %772 = vmatprep.subr.bf16.mxu1 %v1639_v36  ;;  %v1734_v35 = vld [vmem:[%s2209_s0 + $0x108] ss:$16 sps:$4 sm:$0xff]   ;;  %v1735_v36 = vld [vmem:[%s2209_s0 + $0x124] ss:$16 sps:$4 sm:$0xff]  }
  0x25   :  { %915 = vmatprep.subr.bf16.mxu0 %v1641_v37  ;;  %v1737_v37 = vld [vmem:[%s2209_s0 + $0x12c] ss:$16 sps:$4 sm:$0xff]  }
  0x27   :  { %773 = vmatpush1.bf16.msra.mxu1 %v1643_v38  ;;  %v1739_v38 = vld [vmem:[%s2209_s0 + $0x120] ss:$16 sps:$4 sm:$0xff]  }
  0x28   :  { %916 = vmatpush1.bf16.msra.mxu0 %v1644_v39  ;;  %774 = vmatprep.subr.bf16.mxu1 %v1645_v40  ;;  %v1740_v39 = vld [vmem:[%s2209_s0 + $0x128] ss:$16 sps:$4 sm:$0xff]   ;;  %v1741_v40 = vld [vmem:[%s2209_s0 + $0x144] ss:$16 sps:$4 sm:$0xff]  }
  0x29   :  { %917 = vmatprep.subr.bf16.mxu0 %v1647_v41  ;;  %v1743_v41 = vld [vmem:[%s2209_s0 + $0x14c] ss:$16 sps:$4 sm:$0xff]  }
  0x2b   :  { %775 = vmatpush1.bf16.msra.mxu1 %v1649_v42  ;;  %v1745_v42 = vld [vmem:[%s2209_s0 + $0x140] ss:$16 sps:$4 sm:$0xff]  }
  0x2c   :  { %918 = vmatpush1.bf16.msra.mxu0 %v1650_v43  ;;  %776 = vmatprep.subr.bf16.mxu1 %v1651_v44  ;;  %v1746_v43 = vld [vmem:[%s2209_s0 + $0x148] ss:$16 sps:$4 sm:$0xff]   ;;  %v1177_v44 = vlaneseq }
  0x2d   :  { %919 = vmatprep.subr.bf16.mxu0 %v1653_v45 }
  0x2e   :  { %v1178_v45 = vshrl.u32 %v1177_v44, 7 }
  0x2f   :  { %777 = vmatpush1.bf16.msra.mxu1 %v1655_v46 }
  0x30   :  { %920 = vmatpush1.bf16.msra.mxu0 %v1656_v47  ;;  %778 = vmatprep.subr.bf16.mxu1 %v1657_v48  ;;  %v1179_v46 = vsub.s32 0, %v1178_v45  ;;  %v1175_v47 = vld [vmem:[%s2210_s2] sm:$0x3]  ;;  %v1183_v48 = vsub.s32 1, %v1178_v45 }
  0x31   :  { %921 = vmatprep.subr.bf16.mxu0 %v1659_v50 }
  0x32   :  { %v2094_v49 = vrot.slane %v1175_v47, %v1179_v46 }
  0x33   :  { %779 = vmatpush1.bf16.msra.mxu1 %v1661_v52  ;;  %v2096_v52 = vrot.slane %v1175_v47, %v1183_v48 }
  0x34   :  { %922 = vmatpush1.bf16.msra.mxu0 %v1662_v53  ;;  %780 = vmatprep.subr.bf16.mxu1 %v1663_v54 }
  0x35   :  { %923 = vmatprep.subr.bf16.mxu0 %v1665_v55 }
  0x37   :  { %781 = vmatpush1.bf16.msra.mxu1 %v1667_v56 }
  0x38   :  { %924 = vmatpush1.bf16.msra.mxu0 %v1668_v57  ;;  %782 = vmatprep.subr.bf16.mxu1 %v1669_v58 }
  0x39   :  { %925 = vmatprep.subr.bf16.mxu0 %v1671_v59 }
  0x3b   :  { %783 = vmatpush1.bf16.msra.mxu1 %v1673_v60 }
  0x3c   :  { %926 = vmatpush1.bf16.msra.mxu0 %v1674_v61  ;;  %784 = vmatprep.subr.bf16.mxu1 %v1675_v62 }
  0x3d   :  { %927 = vmatprep.subr.bf16.mxu0 %v1677_v63 }
  0x3f   :  { %785 = vmatpush1.bf16.msra.mxu1 %v1679_v0 }
  0x40   :  { %928 = vmatpush1.bf16.msra.mxu0 %v1680_v1 }
  0x42   :  { %787 = vmatmul.mubr.bf16.vlgmr.msra.gmra.mrb[0].mxu1 %v1681_v2 }
  0x43   :  { %930 = vmatmul.mubr.bf16.vlgmr.msra.gmra.mrb[0].mxu0 %v1684_v3  ;;  %796 = vmatprep.mubr.bf16.mxu1 %v1687_v4 }
  0x44   :  { %939 = vmatprep.mubr.bf16.mxu0 %v1689_v5 }
  0x4a   :  { %797 = vmatmul.mubr.bf16.gmra.mrb[4].mxu1 %v1691_v6 }
  0x4b   :  { %940 = vmatmul.mubr.bf16.gmra.mrb[4].mxu0 %v1692_v7  ;;  %806 = vmatprep.mubr.bf16.mxu1 %v1693_v8 }
  0x4c   :  { %949 = vmatprep.mubr.bf16.mxu0 %v1695_v9 }
  0x52   :  { %807 = vmatmul.mubr.bf16.gmra.mrb[8].mxu1 %v1697_v10 }
  0x53   :  { %950 = vmatmul.mubr.bf16.gmra.mrb[8].mxu0 %v1698_v11  ;;  %816 = vmatprep.mubr.bf16.mxu1 %v1699_v12 }
  0x54   :  { %959 = vmatprep.mubr.bf16.mxu0 %v1701_v13 }
  0x5a   :  { %817 = vmatmul.mubr.bf16.gmra.mrb[12].mxu1 %v1703_v14 }
  0x5b   :  { %960 = vmatmul.mubr.bf16.gmra.mrb[12].mxu0 %v1704_v15  ;;  %826 = vmatprep.mubr.bf16.mxu1 %v1705_v16 }
  0x5c   :  { %969 = vmatprep.mubr.bf16.mxu0 %v1707_v17 }
  0x62   :  { %827 = vmatmul.mubr.bf16.gmra.mrb[16].mxu1 %v1709_v18 }
  0x63   :  { %970 = vmatmul.mubr.bf16.gmra.mrb[16].mxu0 %v1710_v19  ;;  %836 = vmatprep.mubr.bf16.mxu1 %v1711_v20 }
  0x64   :  { %979 = vmatprep.mubr.bf16.mxu0 %v1713_v21 }
  0x6a   :  { %837 = vmatmul.mubr.bf16.gmra.mrb[20].mxu1 %v1715_v22 }
  0x6b   :  { %980 = vmatmul.mubr.bf16.gmra.mrb[20].mxu0 %v1716_v23  ;;  %846 = vmatprep.mubr.bf16.mxu1 %v1717_v24 }
  0x6c   :  { %989 = vmatprep.mubr.bf16.mxu0 %v1719_v25 }
  0x72   :  { %847 = vmatmul.mubr.bf16.gmra.mrb[24].mxu1 %v1721_v26 }
  0x73   :  { %990 = vmatmul.mubr.bf16.gmra.mrb[24].mxu0 %v1722_v27  ;;  %856 = vmatprep.mubr.bf16.mxu1 %v1723_v28 }
  0x74   :  { %999 = vmatprep.mubr.bf16.mxu0 %v1725_v29 }
  0x7a   :  { %857 = vmatmul.mubr.bf16.gmra.mrb[28].mxu1 %v1727_v30 }
  0x7b   :  { %1000 = vmatmul.mubr.bf16.gmra.mrb[28].mxu0 %v1728_v31  ;;  %866 = vmatprep.mubr.bf16.mxu1 %v1729_v32 }
  0x7c   :  { %1009 = vmatprep.mubr.bf16.mxu0 %v1731_v33 }
  0x82   :  { %867 = vmatmul.mubr.bf16.gmra.mrb[32].mxu1 %v1733_v34 }
  0x83   :  { %1010 = vmatmul.mubr.bf16.gmra.mrb[32].mxu0 %v1734_v35  ;;  %876 = vmatprep.mubr.bf16.mxu1 %v1735_v36 }
  0x84   :  { %1019 = vmatprep.mubr.bf16.mxu0 %v1737_v37 }
  0x8a   :  { %877 = vmatmul.mubr.bf16.gmra.mrb[36].mxu1 %v1739_v38 }
  0x8b   :  { %1020 = vmatmul.mubr.bf16.gmra.mrb[36].mxu0 %v1740_v39  ;;  %886 = vmatprep.mubr.bf16.mxu1 %v1741_v40 }
  0x8c   :  { %1029 = vmatprep.mubr.bf16.mxu0 %v1743_v41 }
  0x92   :  { %887 = vmatmul.mubr.bf16.gmra.mrb[40].mxu1 %v1745_v42 }
  0x93   :  { %1030 = vmatmul.mubr.bf16.gmra.mrb[40].mxu0 %v1746_v43 }
 0x115   :  { %v788_v50 = vpop.f32.mrb[0].mxu1 }
 0x116   :  { %v931_v51 = vpop.f32.mrb[0].mxu0  ;;  %v790_v54 = vpop.f32.mrb[1].mxu1 }
 0x117   :  { %v932_v53 = vadd.f32 %v931_v51, %v788_v50  ;;  %v933_v55 = vpop.f32.mrb[1].mxu0  ;;  %v792_v57 = vpop.f32.mrb[2].mxu1 }
 0x118   :  { %v934_v56 = vadd.f32 %v933_v55, %v790_v54  ;;  %v935_v58 = vpop.f32.mrb[2].mxu0  ;;  %v794_v61 = vpop.f32.mrb[3].mxu1 }
 0x119   :  { %v1187_v59 = vadd.f32 %v2094_v49, %v932_v53  ;;  %v936_v60 = vadd.f32 %v935_v58, %v792_v57  ;;  %v937_v62 = vpop.f32.mrb[3].mxu0 }
 0x11a   :  { %v1188_v63 = vadd.f32 %v2096_v52, %v934_v56  ;;  %v938_v0 = vadd.f32 %v937_v62, %v794_v61 }
 0x11b   :  { %v1189_v1 = vadd.f32 %v2094_v49, %v936_v60 }
 0x11c   :  { %v1519_v2 = vpack.c.bf16 %v1188_v63, %v1187_v59  ;;  %v1190_v3 = vadd.f32 %v2096_v52, %v938_v0 }
 0x11d   :  { %v798_v5 = vpop.f32.mrb[4].mxu1 }
 0x11e   :  { %1363 = vst [vmem:[%s2211_s3] sm:$0xff] %v1519_v2  ;;  %v1520_v4 = vpack.c.bf16 %v1190_v3, %v1189_v1  ;;  %v941_v6 = vpop.f32.mrb[4].mxu0  ;;  %v800_v8 = vpop.f32.mrb[5].mxu1 }
 0x11f   :  { %v942_v7 = vadd.f32 %v941_v6, %v798_v5  ;;  %v943_v9 = vpop.f32.mrb[5].mxu0  ;;  %v802_v11 = vpop.f32.mrb[6].mxu1 }
 0x120   :  { %1364 = vst [vmem:[%s2211_s3 + $0x8] sm:$0xff] %v1520_v4  ;;  %v944_v10 = vadd.f32 %v943_v9, %v800_v8  ;;  %v945_v12 = vpop.f32.mrb[6].mxu0  ;;  %v804_v15 = vpop.f32.mrb[7].mxu1 }
 0x121   :  { %v1191_v13 = vadd.f32 %v2094_v49, %v942_v7  ;;  %v946_v14 = vadd.f32 %v945_v12, %v802_v11  ;;  %v947_v16 = vpop.f32.mrb[7].mxu0 }
 0x122   :  { %v1192_v17 = vadd.f32 %v2096_v52, %v944_v10  ;;  %v948_v18 = vadd.f32 %v947_v16, %v804_v15 }
 0x123   :  { %v1193_v19 = vadd.f32 %v2094_v49, %v946_v14 }
 0x124   :  { %v1521_v20 = vpack.c.bf16 %v1192_v17, %v1191_v13  ;;  %v1194_v21 = vadd.f32 %v2096_v52, %v948_v18 }
 0x125   :  { %v808_v23 = vpop.f32.mrb[8].mxu1 }
 0x126   :  { %1365 = vst [vmem:[%s2211_s3 + $0x10] sm:$0xff] %v1521_v20  ;;  %v1522_v22 = vpack.c.bf16 %v1194_v21, %v1193_v19  ;;  %v951_v24 = vpop.f32.mrb[8].mxu0  ;;  %v810_v26 = vpop.f32.mrb[9].mxu1 }
 0x127   :  { %v952_v25 = vadd.f32 %v951_v24, %v808_v23  ;;  %v953_v27 = vpop.f32.mrb[9].mxu0  ;;  %v812_v29 = vpop.f32.mrb[10].mxu1 }
 0x128   :  { %1366 = vst [vmem:[%s2211_s3 + $0x18] sm:$0xff] %v1522_v22  ;;  %v954_v28 = vadd.f32 %v953_v27, %v810_v26  ;;  %v955_v30 = vpop.f32.mrb[10].mxu0  ;;  %v814_v33 = vpop.f32.mrb[11].mxu1 }
 0x129   :  { %v1195_v31 = vadd.f32 %v2094_v49, %v952_v25  ;;  %v956_v32 = vadd.f32 %v955_v30, %v812_v29  ;;  %v957_v34 = vpop.f32.mrb[11].mxu0 }
 0x12a   :  { %v1196_v35 = vadd.f32 %v2096_v52, %v954_v28  ;;  %v958_v36 = vadd.f32 %v957_v34, %v814_v33 }
 0x12b   :  { %v1197_v37 = vadd.f32 %v2094_v49, %v956_v32 }
 0x12c   :  { %v1523_v38 = vpack.c.bf16 %v1196_v35, %v1195_v31  ;;  %v1198_v39 = vadd.f32 %v2096_v52, %v958_v36 }
 0x12d   :  { %v818_v41 = vpop.f32.mrb[12].mxu1 }
 0x12e   :  { %1367 = vst [vmem:[%s2211_s3 + $0x20] sm:$0xff] %v1523_v38  ;;  %v1524_v40 = vpack.c.bf16 %v1198_v39, %v1197_v37  ;;  %v961_v42 = vpop.f32.mrb[12].mxu0  ;;  %v820_v44 = vpop.f32.mrb[13].mxu1 }
 0x12f   :  { %v962_v43 = vadd.f32 %v961_v42, %v818_v41  ;;  %v963_v45 = vpop.f32.mrb[13].mxu0  ;;  %v822_v47 = vpop.f32.mrb[14].mxu1 }
 0x130   :  { %1368 = vst [vmem:[%s2211_s3 + $0x28] sm:$0xff] %v1524_v40  ;;  %v964_v46 = vadd.f32 %v963_v45, %v820_v44  ;;  %v965_v48 = vpop.f32.mrb[14].mxu0  ;;  %v824_v53 = vpop.f32.mrb[15].mxu1 }
 0x131   :  { %v1199_v50 = vadd.f32 %v2094_v49, %v962_v43  ;;  %v966_v51 = vadd.f32 %v965_v48, %v822_v47  ;;  %v967_v54 = vpop.f32.mrb[15].mxu0 }
 0x132   :  { %v1200_v55 = vadd.f32 %v2096_v52, %v964_v46  ;;  %v968_v56 = vadd.f32 %v967_v54, %v824_v53 }
 0x133   :  { %v1201_v57 = vadd.f32 %v2094_v49, %v966_v51 }
 0x134   :  { %v1525_v58 = vpack.c.bf16 %v1200_v55, %v1199_v50  ;;  %v1202_v59 = vadd.f32 %v2096_v52, %v968_v56 }
 0x135   :  { %v828_v61 = vpop.f32.mrb[16].mxu1 }
 0x136   :  { %1369 = vst [vmem:[%s2211_s3 + $0x30] sm:$0xff] %v1525_v58  ;;  %v1526_v60 = vpack.c.bf16 %v1202_v59, %v1201_v57  ;;  %v971_v62 = vpop.f32.mrb[16].mxu0  ;;  %v830_v0 = vpop.f32.mrb[17].mxu1 }
 0x137   :  { %v972_v63 = vadd.f32 %v971_v62, %v828_v61  ;;  %v973_v1 = vpop.f32.mrb[17].mxu0  ;;  %v832_v3 = vpop.f32.mrb[18].mxu1 }
 0x138   :  { %1370 = vst [vmem:[%s2211_s3 + $0x38] sm:$0xff] %v1526_v60  ;;  %v974_v2 = vadd.f32 %v973_v1, %v830_v0  ;;  %v975_v4 = vpop.f32.mrb[18].mxu0  ;;  %v834_v7 = vpop.f32.mrb[19].mxu1 }
 0x139   :  { %v1203_v5 = vadd.f32 %v2094_v49, %v972_v63  ;;  %v976_v6 = vadd.f32 %v975_v4, %v832_v3  ;;  %v977_v8 = vpop.f32.mrb[19].mxu0 }
 0x13a   :  { %v1204_v9 = vadd.f32 %v2096_v52, %v974_v2  ;;  %v978_v10 = vadd.f32 %v977_v8, %v834_v7 }
 0x13b   :  { %v1205_v11 = vadd.f32 %v2094_v49, %v976_v6 }
 0x13c   :  { %v1527_v12 = vpack.c.bf16 %v1204_v9, %v1203_v5  ;;  %v1206_v13 = vadd.f32 %v2096_v52, %v978_v10 }
 0x13d   :  { %v838_v15 = vpop.f32.mrb[20].mxu1 }
 0x13e   :  { %1371 = vst [vmem:[%s2211_s3 + $0x40] sm:$0xff] %v1527_v12  ;;  %v1528_v14 = vpack.c.bf16 %v1206_v13, %v1205_v11  ;;  %v981_v16 = vpop.f32.mrb[20].mxu0  ;;  %v840_v18 = vpop.f32.mrb[21].mxu1 }
 0x13f   :  { %v982_v17 = vadd.f32 %v981_v16, %v838_v15  ;;  %v983_v19 = vpop.f32.mrb[21].mxu0  ;;  %v842_v21 = vpop.f32.mrb[22].mxu1 }
 0x140   :  { %1372 = vst [vmem:[%s2211_s3 + $0x48] sm:$0xff] %v1528_v14  ;;  %v984_v20 = vadd.f32 %v983_v19, %v840_v18  ;;  %v985_v22 = vpop.f32.mrb[22].mxu0  ;;  %v844_v25 = vpop.f32.mrb[23].mxu1 }
 0x141   :  { %v1207_v23 = vadd.f32 %v2094_v49, %v982_v17  ;;  %v986_v24 = vadd.f32 %v985_v22, %v842_v21  ;;  %v987_v26 = vpop.f32.mrb[23].mxu0 }
 0x142   :  { %v1208_v27 = vadd.f32 %v2096_v52, %v984_v20  ;;  %v988_v28 = vadd.f32 %v987_v26, %v844_v25 }
 0x143   :  { %v1209_v29 = vadd.f32 %v2094_v49, %v986_v24 }
 0x144   :  { %v1529_v30 = vpack.c.bf16 %v1208_v27, %v1207_v23  ;;  %v1210_v31 = vadd.f32 %v2096_v52, %v988_v28 }
 0x145   :  { %v848_v33 = vpop.f32.mrb[24].mxu1 }
 0x146   :  { %1373 = vst [vmem:[%s2211_s3 + $0x50] sm:$0xff] %v1529_v30  ;;  %v1530_v32 = vpack.c.bf16 %v1210_v31, %v1209_v29  ;;  %v991_v34 = vpop.f32.mrb[24].mxu0  ;;  %v850_v36 = vpop.f32.mrb[25].mxu1 }
 0x147   :  { %v992_v35 = vadd.f32 %v991_v34, %v848_v33  ;;  %v993_v37 = vpop.f32.mrb[25].mxu0  ;;  %v852_v39 = vpop.f32.mrb[26].mxu1 }
 0x148   :  { %1374 = vst [vmem:[%s2211_s3 + $0x58] sm:$0xff] %v1530_v32  ;;  %v994_v38 = vadd.f32 %v993_v37, %v850_v36  ;;  %v995_v40 = vpop.f32.mrb[26].mxu0  ;;  %v854_v43 = vpop.f32.mrb[27].mxu1 }
 0x149   :  { %v1211_v41 = vadd.f32 %v2094_v49, %v992_v35  ;;  %v996_v42 = vadd.f32 %v995_v40, %v852_v39  ;;  %v997_v44 = vpop.f32.mrb[27].mxu0 }
 0x14a   :  { %v1212_v45 = vadd.f32 %v2096_v52, %v994_v38  ;;  %v998_v46 = vadd.f32 %v997_v44, %v854_v43 }
 0x14b   :  { %v1213_v47 = vadd.f32 %v2094_v49, %v996_v42 }
 0x14c   :  { %v1531_v48 = vpack.c.bf16 %v1212_v45, %v1211_v41  ;;  %v1214_v50 = vadd.f32 %v2096_v52, %v998_v46 }
 0x14d   :  { %v858_v53 = vpop.f32.mrb[28].mxu1 }
 0x14e   :  { %1375 = vst [vmem:[%s2211_s3 + $0x60] sm:$0xff] %v1531_v48  ;;  %v1532_v51 = vpack.c.bf16 %v1214_v50, %v1213_v47  ;;  %v1001_v54 = vpop.f32.mrb[28].mxu0  ;;  %v860_v56 = vpop.f32.mrb[29].mxu1 }
 0x14f   :  { %v1002_v55 = vadd.f32 %v1001_v54, %v858_v53  ;;  %v1003_v57 = vpop.f32.mrb[29].mxu0  ;;  %v862_v59 = vpop.f32.mrb[30].mxu1 }
 0x150   :  { %1376 = vst [vmem:[%s2211_s3 + $0x68] sm:$0xff] %v1532_v51  ;;  %v1004_v58 = vadd.f32 %v1003_v57, %v860_v56  ;;  %v1005_v60 = vpop.f32.mrb[30].mxu0  ;;  %v864_v63 = vpop.f32.mrb[31].mxu1 }
 0x151   :  { %v1215_v61 = vadd.f32 %v2094_v49, %v1002_v55  ;;  %v1006_v62 = vadd.f32 %v1005_v60, %v862_v59  ;;  %v1007_v0 = vpop.f32.mrb[31].mxu0 }
 0x152   :  { %v1216_v1 = vadd.f32 %v2096_v52, %v1004_v58  ;;  %v1008_v2 = vadd.f32 %v1007_v0, %v864_v63 }
 0x153   :  { %v1217_v3 = vadd.f32 %v2094_v49, %v1006_v62 }
 0x154   :  { %v1533_v4 = vpack.c.bf16 %v1216_v1, %v1215_v61  ;;  %v1218_v5 = vadd.f32 %v2096_v52, %v1008_v2 }
 0x155   :  { %v868_v7 = vpop.f32.mrb[32].mxu1 }
 0x156   :  { %1377 = vst [vmem:[%s2211_s3 + $0x70] sm:$0xff] %v1533_v4  ;;  %v1534_v6 = vpack.c.bf16 %v1218_v5, %v1217_v3  ;;  %v1011_v8 = vpop.f32.mrb[32].mxu0  ;;  %v870_v10 = vpop.f32.mrb[33].mxu1 }
 0x157   :  { %v1012_v9 = vadd.f32 %v1011_v8, %v868_v7  ;;  %v1013_v11 = vpop.f32.mrb[33].mxu0  ;;  %v872_v13 = vpop.f32.mrb[34].mxu1 }
 0x158   :  { %1378 = vst [vmem:[%s2211_s3 + $0x78] sm:$0xff] %v1534_v6  ;;  %v1014_v12 = vadd.f32 %v1013_v11, %v870_v10  ;;  %v1015_v14 = vpop.f32.mrb[34].mxu0  ;;  %v874_v17 = vpop.f32.mrb[35].mxu1 }
 0x159   :  { %v1219_v15 = vadd.f32 %v2094_v49, %v1012_v9  ;;  %v1016_v16 = vadd.f32 %v1015_v14, %v872_v13  ;;  %v1017_v18 = vpop.f32.mrb[35].mxu0 }
 0x15a   :  { %v1220_v19 = vadd.f32 %v2096_v52, %v1014_v12  ;;  %v1018_v20 = vadd.f32 %v1017_v18, %v874_v17 }
 0x15b   :  { %v1221_v21 = vadd.f32 %v2094_v49, %v1016_v16 }
 0x15c   :  { %v1535_v22 = vpack.c.bf16 %v1220_v19, %v1219_v15  ;;  %v1222_v23 = vadd.f32 %v2096_v52, %v1018_v20 }
 0x15d   :  { %v878_v25 = vpop.f32.mrb[36].mxu1 }
 0x15e   :  { %1379 = vst [vmem:[%s2211_s3 + $0x80] sm:$0xff] %v1535_v22  ;;  %v1536_v24 = vpack.c.bf16 %v1222_v23, %v1221_v21  ;;  %v1021_v26 = vpop.f32.mrb[36].mxu0  ;;  %v880_v28 = vpop.f32.mrb[37].mxu1 }
 0x15f   :  { %v1022_v27 = vadd.f32 %v1021_v26, %v878_v25  ;;  %v1023_v29 = vpop.f32.mrb[37].mxu0  ;;  %v882_v31 = vpop.f32.mrb[38].mxu1 }
 0x160   :  { %1380 = vst [vmem:[%s2211_s3 + $0x88] sm:$0xff] %v1536_v24  ;;  %v1024_v30 = vadd.f32 %v1023_v29, %v880_v28  ;;  %v1025_v32 = vpop.f32.mrb[38].mxu0  ;;  %v884_v35 = vpop.f32.mrb[39].mxu1 }
 0x161   :  { %v1223_v33 = vadd.f32 %v2094_v49, %v1022_v27  ;;  %v1026_v34 = vadd.f32 %v1025_v32, %v882_v31  ;;  %v1027_v36 = vpop.f32.mrb[39].mxu0 }
 0x162   :  { %v1224_v37 = vadd.f32 %v2096_v52, %v1024_v30  ;;  %v1028_v38 = vadd.f32 %v1027_v36, %v884_v35 }
 0x163   :  { %v1225_v39 = vadd.f32 %v2094_v49, %v1026_v34 }
 0x164   :  { %v1537_v40 = vpack.c.bf16 %v1224_v37, %v1223_v33  ;;  %v1226_v41 = vadd.f32 %v2096_v52, %v1028_v38 }
 0x165   :  { %v888_v43 = vpop.f32.mrb[40].mxu1 }
 0x166   :  { %1381 = vst [vmem:[%s2211_s3 + $0x90] sm:$0xff] %v1537_v40  ;;  %v1538_v42 = vpack.c.bf16 %v1226_v41, %v1225_v39  ;;  %v1031_v44 = vpop.f32.mrb[40].mxu0  ;;  %v890_v46 = vpop.f32.mrb[41].mxu1 }
 0x167   :  { %v1032_v45 = vadd.f32 %v1031_v44, %v888_v43  ;;  %v1033_v47 = vpop.f32.mrb[41].mxu0  ;;  %v892_v50 = vpop.f32.mrb[42].mxu1 }
 0x168   :  { %1382 = vst [vmem:[%s2211_s3 + $0x98] sm:$0xff] %v1538_v42  ;;  %v1034_v48 = vadd.f32 %v1033_v47, %v890_v46  ;;  %v1035_v51 = vpop.f32.mrb[42].mxu0  ;;  %v894_v55 = vpop.f32.mrb[43].mxu1 }
 0x169   :  { %v1227_v53 = vadd.f32 %v2094_v49, %v1032_v45  ;;  %v1036_v54 = vadd.f32 %v1035_v51, %v892_v50  ;;  %v1037_v56 = vpop.f32.mrb[43].mxu0 }
 0x16a   :  { %v1228_v57 = vadd.f32 %v2096_v52, %v1034_v48  ;;  %v1038_v58 = vadd.f32 %v1037_v56, %v894_v55 }
 0x16b   :  { %v1229_v59 = vadd.f32 %v2094_v49, %v1036_v54 }
 0x16c   :  { %v1539_v60 = vpack.c.bf16 %v1228_v57, %v1227_v53  ;;  %v1230_v61 = vadd.f32 %v2096_v52, %v1038_v58 }
 0x16e   :  { %1383 = vst [vmem:[%s2211_s3 + $0xa0] sm:$0xff] %v1539_v60  ;;  %v1540_v62 = vpack.c.bf16 %v1230_v61, %v1229_v59 }
 0x170   :  { %1384 = vst [vmem:[%s2211_s3 + $0xa8] sm:$0xff] %v1540_v62 }

// kernel: generator_resnet_forward.37
= control target key start
LH: loop header
LB: loop body
LE: loop exit
PB: predicated region body
PF: predicated region fallthrough
CT: control target
= control target key end

     0   :  { %s2418_s12 = smov 0   ;;  %s2420_s13 = smov 0   ;;  %s2815_s0 = inlined_call_operand.vmem [shape: bf16[512,3584], index: 0, kind: input, shape index: {}]   ;;  %s2816_s1 = inlined_call_operand.vmem [shape: bf16[3584,128], index: 1, kind: input, shape index: {}]   ;;  %s2817_s2 = inlined_call_operand.vmem [shape: f32[1,128], index: 2, kind: input, shape index: {}]   ;;  %s2818_s3 = inlined_call_operand.vmem [shape: f32[512,128], index: 3, kind: output, shape index: {}]  }
   0x1   :  { %s2422_s14 = smov 0   ;;  %s2424_s15 = smov 0  }
   0x2   :  { %s2426_s16 = smov 0   ;;  %s2428_s17 = smov 0  }
   0x3   :  { %s2430_s18 = smov 0  }
   0x4 LB: > { %s25_s19 = sadd.s32 1, %s2387_s16  ;;  %s32_s20 = sadd.s32 1, %s2391_s17  ;;  %s2395_s18 = sphi %s2430_s18, %s13_s18   ;;  %s2391_s17 = sphi %s2428_s17, %s2824_s17   ;;  %s2387_s16 = sphi %s2426_s16, %s2823_s16   ;;  %s2383_s15 = sphi %s2424_s15, %s2822_s15   ;;  %s2379_s14 = sphi %s2422_s14, %s2821_s14   ;;  %s2375_s13 = sphi %s2420_s13, %s2820_s13   ;;  %s2371_s12 = sphi %s2418_s12, %s2819_s12  }
   0x5   : > { %p26_p0 = scmp.ge.s32.totalorder %s25_s19, 7  ;;  %p48_p1 = scmp.ne.s32.totalorder %s2375_s13, %s2371_s12 }
   0x6   : > { %p49_p2 = scmp.eq.s32.totalorder %s2395_s18, 0  ;;  %s41_s24 = sadd.s32 1, %s2375_s13 }
   0x7   : > { %s2826_s19 = smov (%p26_p0, %s25_s19), 0  ;;  %s2828_s20 = smov (!%p26_p0, %s32_s20), %s2391_s17 }
   0x8   : > { %p50_p3 = por %p49_p2, %p48_p1  ;;  %p34_p4 = scmp.ge.s32.totalorder %s2828_s20, 2 }
   0x9   : > { %s37_s21 = ssub.s32 %s2387_s16, %s2826_s19  ;;  %p1754_p6 = scmp.ge.s32.totalorder %s2395_s18, 14 }
   0xa   : > { %s2830_s20 = smov (%p34_p4, %s2828_s20), 0 }
   0xb   : > { %s36_s22 = ssub.s32 %s2391_s17, %s2830_s20  ;;  %162 = sbr.rel (%p1754_p6) target bundleno = 58 (0x3a), region = 20 }
   0xc   : > { %s38_s23 = sor.u32 %s37_s21, %s36_s22 }
   0xd   : > { %p39_p5 = scmp.eq.s32.totalorder %s38_s23, 0 }
   0xf   : > { %s2469_s25 = scalar_select %p39_p5, %s2375_s13, %s41_s24  }
  0x12   : > { %165 = sbr.rel (!%p50_p3) target bundleno = 58 (0x3a), region = 24  ;;  %s167_s26 = sand.u32 (%p50_p3), 1, %s2375_s13  }
  0x13   : > { %s1757_s27 = sshll.u32 (%p50_p3), %s2387_s16, 2  ;;  %s1755_s28 = sshll.u32 (%p50_p3), %s167_s26, 9 }
  0x14   : > { %s2091_s29 = smul.u32 (%p50_p3), 896, %s2391_s17  ;;  %s2483_s8 = scalar_lea.vmem (%p50_p3), [#allocation3], %s1755_s28 }
  0x16   : > { %s173_s30 = sadd.s32 (%p50_p3), %s2091_s29, %s1757_s27 }
  0x17   : > { %s1759_s4 = sshll.u32 (%p50_p3), %s173_s30, 2 }
  0x18   : > { %s2478_s7 = scalar_lea.vmem (%p50_p3), %s2815_s0, %s1759_s4 }
  0x19   : > { %v188_v0 = vld [vmem:[%s2478_s7] sm:$0xff]  ;;  %v190_v1 = vld [vmem:[%s2478_s7 + $0x8] sm:$0xff]  ;;  %v192_v2 = vld [vmem:[%s2478_s7 + $0x70] sm:$0xff] }
  0x1a   : > { %189 = vst [vmem:[%s2483_s8] sm:$0xff] %v188_v0  ;;  %191 = vst [vmem:[%s2483_s8 + $0x8] sm:$0xff] %v190_v1  ;;  %v194_v3 = vld [vmem:[%s2478_s7 + $0x78] sm:$0xff]  ;;  %v196_v4 = vld [vmem:[%s2478_s7 + $0xe0] sm:$0xff] }
  0x1b   : > { %193 = vst [vmem:[%s2483_s8 + $0x10] sm:$0xff] %v192_v2  ;;  %v198_v5 = vld [vmem:[%s2478_s7 + $0xe8] sm:$0xff]  ;;  %195 = vst [vmem:[%s2483_s8 + $0x18] sm:$0xff] %v194_v3  ;;  %v200_v6 = vld [vmem:[%s2478_s7 + $0x150] sm:$0xff] }
  0x1c   : > { %197 = vst [vmem:[%s2483_s8 + $0x20] sm:$0xff] %v196_v4  ;;  %199 = vst [vmem:[%s2483_s8 + $0x28] sm:$0xff] %v198_v5  ;;  %v202_v7 = vld [vmem:[%s2478_s7 + $0x158] sm:$0xff]  ;;  %v204_v8 = vld [vmem:[%s2478_s7 + $0x1c0] sm:$0xff] }
  0x1d   : > { %201 = vst [vmem:[%s2483_s8 + $0x30] sm:$0xff] %v200_v6  ;;  %203 = vst [vmem:[%s2483_s8 + $0x38] sm:$0xff] %v202_v7  ;;  %v206_v9 = vld [vmem:[%s2478_s7 + $0x1c8] sm:$0xff]  ;;  %v208_v10 = vld [vmem:[%s2478_s7 + $0x230] sm:$0xff] }
  0x1e   : > { %205 = vst [vmem:[%s2483_s8 + $0x40] sm:$0xff] %v204_v8  ;;  %v210_v11 = vld [vmem:[%s2478_s7 + $0x238] sm:$0xff]  ;;  %207 = vst [vmem:[%s2483_s8 + $0x48] sm:$0xff] %v206_v9  ;;  %v212_v12 = vld [vmem:[%s2478_s7 + $0x2a0] sm:$0xff] }
  0x1f   : > { %209 = vst [vmem:[%s2483_s8 + $0x50] sm:$0xff] %v208_v10  ;;  %211 = vst [vmem:[%s2483_s8 + $0x58] sm:$0xff] %v210_v11  ;;  %v214_v13 = vld [vmem:[%s2478_s7 + $0x2a8] sm:$0xff]  ;;  %v216_v14 = vld [vmem:[%s2478_s7 + $0x310] sm:$0xff] }
  0x20   : > { %213 = vst [vmem:[%s2483_s8 + $0x60] sm:$0xff] %v212_v12  ;;  %215 = vst [vmem:[%s2483_s8 + $0x68] sm:$0xff] %v214_v13  ;;  %v218_v15 = vld [vmem:[%s2478_s7 + $0x318] sm:$0xff]  ;;  %v220_v16 = vld [vmem:[%s2478_s7 + $0x380] sm:$0xff] }
  0x21   : > { %217 = vst [vmem:[%s2483_s8 + $0x70] sm:$0xff] %v216_v14  ;;  %v222_v17 = vld [vmem:[%s2478_s7 + $0x388] sm:$0xff]  ;;  %219 = vst [vmem:[%s2483_s8 + $0x78] sm:$0xff] %v218_v15  ;;  %v224_v18 = vld [vmem:[%s2478_s7 + $0x3f0] sm:$0xff] }
  0x22   : > { %221 = vst [vmem:[%s2483_s8 + $0x80] sm:$0xff] %v220_v16  ;;  %223 = vst [vmem:[%s2483_s8 + $0x88] sm:$0xff] %v222_v17  ;;  %v226_v19 = vld [vmem:[%s2478_s7 + $0x3f8] sm:$0xff]  ;;  %v228_v20 = vld [vmem:[%s2478_s7 + $0x460] sm:$0xff] }
  0x23   : > { %225 = vst [vmem:[%s2483_s8 + $0x90] sm:$0xff] %v224_v18  ;;  %227 = vst [vmem:[%s2483_s8 + $0x98] sm:$0xff] %v226_v19  ;;  %v230_v21 = vld [vmem:[%s2478_s7 + $0x468] sm:$0xff]  ;;  %v232_v22 = vld [vmem:[%s2478_s7 + $0x4d0] sm:$0xff] }
  0x24   : > { %229 = vst [vmem:[%s2483_s8 + $0xa0] sm:$0xff] %v228_v20  ;;  %v234_v23 = vld [vmem:[%s2478_s7 + $0x4d8] sm:$0xff]  ;;  %231 = vst [vmem:[%s2483_s8 + $0xa8] sm:$0xff] %v230_v21  ;;  %v236_v24 = vld [vmem:[%s2478_s7 + $0x540] sm:$0xff] }
  0x25   : > { %233 = vst [vmem:[%s2483_s8 + $0xb0] sm:$0xff] %v232_v22  ;;  %235 = vst [vmem:[%s2483_s8 + $0xb8] sm:$0xff] %v234_v23  ;;  %v238_v25 = vld [vmem:[%s2478_s7 + $0x548] sm:$0xff]  ;;  %v240_v26 = vld [vmem:[%s2478_s7 + $0x5b0] sm:$0xff] }
  0x26   : > { %237 = vst [vmem:[%s2483_s8 + $0xc0] sm:$0xff] %v236_v24  ;;  %239 = vst [vmem:[%s2483_s8 + $0xc8] sm:$0xff] %v238_v25  ;;  %v242_v27 = vld [vmem:[%s2478_s7 + $0x5b8] sm:$0xff]  ;;  %v244_v28 = vld [vmem:[%s2478_s7 + $0x620] sm:$0xff] }
  0x27   : > { %241 = vst [vmem:[%s2483_s8 + $0xd0] sm:$0xff] %v240_v26  ;;  %v246_v29 = vld [vmem:[%s2478_s7 + $0x628] sm:$0xff]  ;;  %243 = vst [vmem:[%s2483_s8 + $0xd8] sm:$0xff] %v242_v27  ;;  %v248_v30 = vld [vmem:[%s2478_s7 + $0x690] sm:$0xff] }
  0x28   : > { %245 = vst [vmem:[%s2483_s8 + $0xe0] sm:$0xff] %v244_v28  ;;  %247 = vst [vmem:[%s2483_s8 + $0xe8] sm:$0xff] %v246_v29  ;;  %v250_v31 = vld [vmem:[%s2478_s7 + $0x698] sm:$0xff]  ;;  %v252_v32 = vld [vmem:[%s2478_s7 + $0x700] sm:$0xff] }
  0x29   : > { %249 = vst [vmem:[%s2483_s8 + $0xf0] sm:$0xff] %v248_v30  ;;  %251 = vst [vmem:[%s2483_s8 + $0xf8] sm:$0xff] %v250_v31  ;;  %v254_v33 = vld [vmem:[%s2478_s7 + $0x708] sm:$0xff]  ;;  %v256_v34 = vld [vmem:[%s2478_s7 + $0x770] sm:$0xff] }
  0x2a   : > { %253 = vst [vmem:[%s2483_s8 + $0x100] sm:$0xff] %v252_v32  ;;  %v258_v35 = vld [vmem:[%s2478_s7 + $0x778] sm:$0xff]  ;;  %255 = vst [vmem:[%s2483_s8 + $0x108] sm:$0xff] %v254_v33  ;;  %v260_v36 = vld [vmem:[%s2478_s7 + $0x7e0] sm:$0xff] }
  0x2b   : > { %257 = vst [vmem:[%s2483_s8 + $0x110] sm:$0xff] %v256_v34  ;;  %259 = vst [vmem:[%s2483_s8 + $0x118] sm:$0xff] %v258_v35  ;;  %v262_v37 = vld [vmem:[%s2478_s7 + $0x7e8] sm:$0xff]  ;;  %v264_v38 = vld [vmem:[%s2478_s7 + $0x850] sm:$0xff] }
  0x2c   : > { %261 = vst [vmem:[%s2483_s8 + $0x120] sm:$0xff] %v260_v36  ;;  %263 = vst [vmem:[%s2483_s8 + $0x128] sm:$0xff] %v262_v37  ;;  %v266_v39 = vld [vmem:[%s2478_s7 + $0x858] sm:$0xff]  ;;  %v268_v40 = vld [vmem:[%s2478_s7 + $0x8c0] sm:$0xff] }
  0x2d   : > { %265 = vst [vmem:[%s2483_s8 + $0x130] sm:$0xff] %v264_v38  ;;  %v270_v41 = vld [vmem:[%s2478_s7 + $0x8c8] sm:$0xff]  ;;  %267 = vst [vmem:[%s2483_s8 + $0x138] sm:$0xff] %v266_v39  ;;  %v272_v42 = vld [vmem:[%s2478_s7 + $0x930] sm:$0xff] }
  0x2e   : > { %269 = vst [vmem:[%s2483_s8 + $0x140] sm:$0xff] %v268_v40  ;;  %271 = vst [vmem:[%s2483_s8 + $0x148] sm:$0xff] %v270_v41  ;;  %v274_v43 = vld [vmem:[%s2478_s7 + $0x938] sm:$0xff]  ;;  %v276_v44 = vld [vmem:[%s2478_s7 + $0x9a0] sm:$0xff] }
  0x2f   : > { %273 = vst [vmem:[%s2483_s8 + $0x150] sm:$0xff] %v272_v42  ;;  %275 = vst [vmem:[%s2483_s8 + $0x158] sm:$0xff] %v274_v43  ;;  %v278_v45 = vld [vmem:[%s2478_s7 + $0x9a8] sm:$0xff]  ;;  %v280_v46 = vld [vmem:[%s2478_s7 + $0xa10] sm:$0xff] }
  0x30   : > { %277 = vst [vmem:[%s2483_s8 + $0x160] sm:$0xff] %v276_v44  ;;  %v282_v47 = vld [vmem:[%s2478_s7 + $0xa18] sm:$0xff]  ;;  %279 = vst [vmem:[%s2483_s8 + $0x168] sm:$0xff] %v278_v45  ;;  %v284_v48 = vld [vmem:[%s2478_s7 + $0xa80] sm:$0xff] }
  0x31   : > { %281 = vst [vmem:[%s2483_s8 + $0x170] sm:$0xff] %v280_v46  ;;  %283 = vst [vmem:[%s2483_s8 + $0x178] sm:$0xff] %v282_v47  ;;  %v286_v49 = vld [vmem:[%s2478_s7 + $0xa88] sm:$0xff]  ;;  %v288_v50 = vld [vmem:[%s2478_s7 + $0xaf0] sm:$0xff] }
  0x32   : > { %285 = vst [vmem:[%s2483_s8 + $0x180] sm:$0xff] %v284_v48  ;;  %287 = vst [vmem:[%s2483_s8 + $0x188] sm:$0xff] %v286_v49  ;;  %v290_v51 = vld [vmem:[%s2478_s7 + $0xaf8] sm:$0xff]  ;;  %v292_v52 = vld [vmem:[%s2478_s7 + $0xb60] sm:$0xff] }
  0x33   : > { %289 = vst [vmem:[%s2483_s8 + $0x190] sm:$0xff] %v288_v50  ;;  %v294_v53 = vld [vmem:[%s2478_s7 + $0xb68] sm:$0xff]  ;;  %291 = vst [vmem:[%s2483_s8 + $0x198] sm:$0xff] %v290_v51  ;;  %v296_v54 = vld [vmem:[%s2478_s7 + $0xbd0] sm:$0xff] }
  0x34   : > { %293 = vst [vmem:[%s2483_s8 + $0x1a0] sm:$0xff] %v292_v52  ;;  %295 = vst [vmem:[%s2483_s8 + $0x1a8] sm:$0xff] %v294_v53  ;;  %v298_v55 = vld [vmem:[%s2478_s7 + $0xbd8] sm:$0xff]  ;;  %v300_v56 = vld [vmem:[%s2478_s7 + $0xc40] sm:$0xff] }
  0x35   : > { %297 = vst [vmem:[%s2483_s8 + $0x1b0] sm:$0xff] %v296_v54  ;;  %299 = vst [vmem:[%s2483_s8 + $0x1b8] sm:$0xff] %v298_v55  ;;  %v302_v57 = vld [vmem:[%s2478_s7 + $0xc48] sm:$0xff]  ;;  %v304_v58 = vld [vmem:[%s2478_s7 + $0xcb0] sm:$0xff] }
  0x36   : > { %301 = vst [vmem:[%s2483_s8 + $0x1c0] sm:$0xff] %v300_v56  ;;  %v306_v59 = vld [vmem:[%s2478_s7 + $0xcb8] sm:$0xff]  ;;  %303 = vst [vmem:[%s2483_s8 + $0x1c8] sm:$0xff] %v302_v57  ;;  %v308_v60 = vld [vmem:[%s2478_s7 + $0xd20] sm:$0xff] }
  0x37   : > { %305 = vst [vmem:[%s2483_s8 + $0x1d0] sm:$0xff] %v304_v58  ;;  %307 = vst [vmem:[%s2483_s8 + $0x1d8] sm:$0xff] %v306_v59  ;;  %v310_v61 = vld [vmem:[%s2478_s7 + $0xd28] sm:$0xff]  ;;  %v312_v62 = vld [vmem:[%s2478_s7 + $0xd90] sm:$0xff] }
  0x38   : > { %309 = vst [vmem:[%s2483_s8 + $0x1e0] sm:$0xff] %v308_v60  ;;  %311 = vst [vmem:[%s2483_s8 + $0x1e8] sm:$0xff] %v310_v61  ;;  %v314_v63 = vld [vmem:[%s2478_s7 + $0xd98] sm:$0xff] }
  0x39   : > { %313 = vst [vmem:[%s2483_s8 + $0x1f0] sm:$0xff] %v312_v62  ;;  %315 = vst [vmem:[%s2483_s8 + $0x1f8] sm:$0xff] %v314_v63 }
  0x3a PF: > { %p1760_p7 = scmp.ge.s32.totalorder %s2395_s18, 1  ;;  %p332_p8 = scmp.lt.s32.totalorder %s2395_s18, 15 }
  0x3c   : > { %p333_p9 = pnand %p1760_p7, %p332_p8 }
  0x3d   : > { %s339_s9 = sand.u32 (!%p333_p9), 1, %s2371_s12   ;;  %s1762_s10 = sshll.u32 (!%p333_p9), %s2379_s14, 6 }
  0x3e   : > { %336 = sbr.rel (%p333_p9) target bundleno = 485 (0x1e5), region = 51  ;;  %s1761_s11 = sshll.u32 (!%p333_p9), %s339_s9, 9 }
  0x3f   : > { %p379_p10 = scmp.lt.s32.totalorder (!%p333_p9), %s1762_s10, 447  ;;  %s1764_s21 = sshll.u32 (!%p333_p9), %s2383_s15, 5 }
  0x40   : > { %p391_p11 = scmp.lt.s32.totalorder (!%p333_p9), %s1764_s21, 63  ;;  %s2625_s12 = scalar_lea.vmem (!%p333_p9), [#allocation3], %s1761_s11 }
  0x41   : > { %p1766_p12 = scmp.ne.s32.totalorder (!%p333_p9), %s2379_s14, 0 }
  0x45   : > { %s2832_s10 = smov (!%p379_p10, %s1762_s10), 447  ;;  %s2834_s21 = smov (!%p391_p11, %s1764_s21), 63 }
  0x46   : > { %s1763_s22 = sshll.u32 %s2832_s10, 2  ;;  %s1765_s27 = sshll.u32 %s2834_s21, 3  ;;  %v2397_v0 = vmov (!%p1766_p12), 0.0  }
  0x47   : > { %s2618_s26 = scalar_lea.vmem %s2816_s1, %s1763_s22  ;;  %s2623_s30 = scalar_lea.vmem %s2818_s3, %s1765_s27  ;;  %404 = vst [vmem:[#allocation2] sm:$0xff] (!%p1766_p12), %v2397_v0  ;;  %405 = vst [vmem:[#allocation2 + $0x8] sm:$0xff] (!%p1766_p12), %v2397_v0 }
  0x48   : > { %403 = sbr.rel (%p1766_p12) target bundleno = 87 (0x57), region = 59  ;;  %406 = vst [vmem:[#allocation2 + $0x10] sm:$0xff] (!%p1766_p12), %v2397_v0  ;;  %407 = vst [vmem:[#allocation2 + $0x18] sm:$0xff] (!%p1766_p12), %v2397_v0 }
  0x49   : > { %408 = vst [vmem:[#allocation2 + $0x20] sm:$0xff] (!%p1766_p12), %v2397_v0  ;;  %409 = vst [vmem:[#allocation2 + $0x28] sm:$0xff] (!%p1766_p12), %v2397_v0 }
  0x4a   : > { %410 = vst [vmem:[#allocation2 + $0x30] sm:$0xff] (!%p1766_p12), %v2397_v0  ;;  %411 = vst [vmem:[#allocation2 + $0x38] sm:$0xff] (!%p1766_p12), %v2397_v0 }
  0x4b   : > { %412 = vst [vmem:[#allocation2 + $0x40] sm:$0xff] (!%p1766_p12), %v2397_v0  ;;  %413 = vst [vmem:[#allocation2 + $0x48] sm:$0xff] (!%p1766_p12), %v2397_v0 }
  0x4c   : > { %414 = vst [vmem:[#allocation2 + $0x50] sm:$0xff] (!%p1766_p12), %v2397_v0  ;;  %415 = vst [vmem:[#allocation2 + $0x58] sm:$0xff] (!%p1766_p12), %v2397_v0 }
  0x4d   : > { %416 = vst [vmem:[#allocation2 + $0x60] sm:$0xff] (!%p1766_p12), %v2397_v0  ;;  %417 = vst [vmem:[#allocation2 + $0x68] sm:$0xff] (!%p1766_p12), %v2397_v0 }
  0x4e   : > { %418 = vst [vmem:[#allocation2 + $0x70] sm:$0xff] (!%p1766_p12), %v2397_v0  ;;  %419 = vst [vmem:[#allocation2 + $0x78] sm:$0xff] (!%p1766_p12), %v2397_v0 }
  0x4f   : > { %420 = vst [vmem:[#allocation2 + $0x80] sm:$0xff] %v2397_v0  ;;  %421 = vst [vmem:[#allocation2 + $0x88] sm:$0xff] %v2397_v0 }
  0x50   : > { %422 = vst [vmem:[#allocation2 + $0x90] sm:$0xff] %v2397_v0  ;;  %423 = vst [vmem:[#allocation2 + $0x98] sm:$0xff] %v2397_v0 }
  0x51   : > { %424 = vst [vmem:[#allocation2 + $0xa0] sm:$0xff] %v2397_v0  ;;  %425 = vst [vmem:[#allocation2 + $0xa8] sm:$0xff] %v2397_v0 }
  0x52   : > { %426 = vst [vmem:[#allocation2 + $0xb0] sm:$0xff] %v2397_v0  ;;  %427 = vst [vmem:[#allocation2 + $0xb8] sm:$0xff] %v2397_v0 }
  0x53   : > { %428 = vst [vmem:[#allocation2 + $0xc0] sm:$0xff] %v2397_v0  ;;  %429 = vst [vmem:[#allocation2 + $0xc8] sm:$0xff] %v2397_v0 }
  0x54   : > { %430 = vst [vmem:[#allocation2 + $0xd0] sm:$0xff] %v2397_v0  ;;  %431 = vst [vmem:[#allocation2 + $0xd8] sm:$0xff] %v2397_v0 }
  0x55   : > { %432 = vst [vmem:[#allocation2 + $0xe0] sm:$0xff] %v2397_v0  ;;  %433 = vst [vmem:[#allocation2 + $0xe8] sm:$0xff] %v2397_v0 }
  0x56   : > { %434 = vst [vmem:[#allocation2 + $0xf0] sm:$0xff] %v2397_v0  ;;  %435 = vst [vmem:[#allocation2 + $0xf8] sm:$0xff] %v2397_v0 }
  0x57 PF: > { %v2149_v1 = vld [vmem:[%s2618_s26 + $0x40] sm:$0xff]   ;;  %v2153_v5 = vld [vmem:[%s2618_s26 + $0x48] sm:$0xff]   ;;  %v2157_v9 = vld [vmem:[%s2618_s26 + $0x50] sm:$0xff]   ;;  %p1863_p13 = scmp.ne.s32.totalorder %s2379_s14, 6 }
  0x58   : > { %v2150_v2 = vld [vmem:[%s2618_s26 + $0xc0] sm:$0xff]   ;;  %1867 = vmatprep.subr.bf16.mxu0 %v2149_v1  ;;  %v2154_v6 = vld [vmem:[%s2618_s26 + $0xc8] sm:$0xff]   ;;  %v2158_v10 = vld [vmem:[%s2618_s26 + $0xd0] sm:$0xff]  }
  0x59   : > { %v2151_v3 = vld [vmem:[%s2618_s26] sm:$0xff]   ;;  %1979 = vmatprep.subr.bf16.mxu1 %v2150_v2  ;;  %v2155_v7 = vld [vmem:[%s2618_s26 + $0x8] sm:$0xff]   ;;  %v2159_v11 = vld [vmem:[%s2618_s26 + $0x10] sm:$0xff]  }
  0x5a   : > { %v2152_v4 = vld [vmem:[%s2618_s26 + $0x80] sm:$0xff]   ;;  %1868 = vmatpush3.bf16.msra.mxu0 %v2151_v3  ;;  %v2156_v8 = vld [vmem:[%s2618_s26 + $0x88] sm:$0xff]   ;;  %v2160_v12 = vld [vmem:[%s2618_s26 + $0x90] sm:$0xff]  }
  0x5b   : > { %1980 = vmatpush3.bf16.msra.mxu1 %v2152_v4  ;;  %1869 = vmatprep.subr.bf16.mxu0 %v2153_v5  ;;  %v2161_v13 = vld [vmem:[%s2618_s26 + $0x58] sm:$0xff]   ;;  %v2165_v17 = vld [vmem:[%s2618_s26 + $0x60] sm:$0xff]   ;;  %v2169_v21 = vld [vmem:[%s2618_s26 + $0x68] sm:$0xff]  }
  0x5c   : > { %1981 = vmatprep.subr.bf16.mxu1 %v2154_v6  ;;  %v2162_v14 = vld [vmem:[%s2618_s26 + $0xd8] sm:$0xff]   ;;  %v2166_v18 = vld [vmem:[%s2618_s26 + $0xe0] sm:$0xff]   ;;  %v2170_v22 = vld [vmem:[%s2618_s26 + $0xe8] sm:$0xff]  }
  0x5d   : > { %v2163_v15 = vld [vmem:[%s2618_s26 + $0x18] sm:$0xff]   ;;  %v2167_v19 = vld [vmem:[%s2618_s26 + $0x20] sm:$0xff]   ;;  %v2171_v23 = vld [vmem:[%s2618_s26 + $0x28] sm:$0xff]  }
  0x5e   : > { %1870 = vmatpush3.bf16.msra.mxu0 %v2155_v7  ;;  %v2164_v16 = vld [vmem:[%s2618_s26 + $0x98] sm:$0xff]   ;;  %v2168_v20 = vld [vmem:[%s2618_s26 + $0xa0] sm:$0xff]   ;;  %v2172_v24 = vld [vmem:[%s2618_s26 + $0xa8] sm:$0xff]  }
  0x5f   : > { %1982 = vmatpush3.bf16.msra.mxu1 %v2156_v8  ;;  %1871 = vmatprep.subr.bf16.mxu0 %v2157_v9  ;;  %v2173_v25 = vld [vmem:[%s2618_s26 + $0x70] sm:$0xff]   ;;  %v2177_v29 = vld [vmem:[%s2618_s26 + $0x78] sm:$0xff]  }
  0x60   : > { %1983 = vmatprep.subr.bf16.mxu1 %v2158_v10  ;;  %v2174_v26 = vld [vmem:[%s2618_s26 + $0xf0] sm:$0xff]   ;;  %v2178_v30 = vld [vmem:[%s2618_s26 + $0xf8] sm:$0xff]  }
  0x61   : > { %v2175_v27 = vld [vmem:[%s2618_s26 + $0x30] sm:$0xff]   ;;  %v2179_v31 = vld [vmem:[%s2618_s26 + $0x38] sm:$0xff]  }
  0x62   : > { %1872 = vmatpush3.bf16.msra.mxu0 %v2159_v11  ;;  %v2176_v28 = vld [vmem:[%s2618_s26 + $0xb0] sm:$0xff]   ;;  %v2180_v32 = vld [vmem:[%s2618_s26 + $0xb8] sm:$0xff]  }
  0x63   : > { %1984 = vmatpush3.bf16.msra.mxu1 %v2160_v12  ;;  %1873 = vmatprep.subr.bf16.mxu0 %v2161_v13  ;;  %v2181_v33 = vld [vmem:[%s2625_s12] ss:$16 sps:$4 sm:$0xff]   ;;  %v2183_v34 = vld [vmem:[%s2625_s12 + $0x4] ss:$16 sps:$4 sm:$0xff]   ;;  %v2184_v35 = vld [vmem:[%s2625_s12 + $0x8] ss:$16 sps:$4 sm:$0xff]  }
  0x64   : > { %1985 = vmatprep.subr.bf16.mxu1 %v2162_v14  ;;  %v2186_v36 = vld [vmem:[%s2625_s12 + $0xc] ss:$16 sps:$4 sm:$0xff]   ;;  %1140 = vmatprep.mubr.bf16.mxu0 %v2183_v34  ;;  %v2187_v37 = vld [vmem:[%s2625_s12 + $0x24] ss:$16 sps:$4 sm:$0xff]   ;;  %v2191_v39 = vld [vmem:[%s2625_s12 + $0x20] ss:$16 sps:$4 sm:$0xff]  }
  0x65   : > { %1301 = vmatprep.mubr.bf16.mxu1 %v2186_v36  ;;  %v2189_v38 = vld [vmem:[%s2625_s12 + $0x2c] ss:$16 sps:$4 sm:$0xff]   ;;  %v2192_v40 = vld [vmem:[%s2625_s12 + $0x28] ss:$16 sps:$4 sm:$0xff]   ;;  %v2193_v41 = vld [vmem:[%s2625_s12 + $0x44] ss:$16 sps:$4 sm:$0xff]  }
  0x66   : > { %1874 = vmatpush3.bf16.msra.mxu0 %v2163_v15  ;;  %v2195_v42 = vld [vmem:[%s2625_s12 + $0x4c] ss:$16 sps:$4 sm:$0xff]   ;;  %v2197_v43 = vld [vmem:[%s2625_s12 + $0x40] ss:$16 sps:$4 sm:$0xff]   ;;  %v2198_v44 = vld [vmem:[%s2625_s12 + $0x48] ss:$16 sps:$4 sm:$0xff]  }
  0x67   : > { %1986 = vmatpush3.bf16.msra.mxu1 %v2164_v16  ;;  %1875 = vmatprep.subr.bf16.mxu0 %v2165_v17  ;;  %v2199_v45 = vld [vmem:[%s2625_s12 + $0x64] ss:$16 sps:$4 sm:$0xff]   ;;  %v2201_v46 = vld [vmem:[%s2625_s12 + $0x6c] ss:$16 sps:$4 sm:$0xff]   ;;  %v2203_v47 = vld [vmem:[%s2625_s12 + $0x60] ss:$16 sps:$4 sm:$0xff]  }
  0x68   : > { %1987 = vmatprep.subr.bf16.mxu1 %v2166_v18  ;;  %v2204_v48 = vld [vmem:[%s2625_s12 + $0x68] ss:$16 sps:$4 sm:$0xff]   ;;  %v2205_v49 = vld [vmem:[%s2625_s12 + $0x84] ss:$16 sps:$4 sm:$0xff]   ;;  %v2207_v50 = vld [vmem:[%s2625_s12 + $0x8c] ss:$16 sps:$4 sm:$0xff]  }
  0x69   : > { %v2209_v51 = vld [vmem:[%s2625_s12 + $0x80] ss:$16 sps:$4 sm:$0xff]   ;;  %v2210_v52 = vld [vmem:[%s2625_s12 + $0x88] ss:$16 sps:$4 sm:$0xff]   ;;  %v2211_v53 = vld [vmem:[%s2625_s12 + $0xa4] ss:$16 sps:$4 sm:$0xff]  }
  0x6a   : > { %1876 = vmatpush3.bf16.msra.mxu0 %v2167_v19  ;;  %v2213_v54 = vld [vmem:[%s2625_s12 + $0xac] ss:$16 sps:$4 sm:$0xff]   ;;  %v2215_v55 = vld [vmem:[%s2625_s12 + $0xa0] ss:$16 sps:$4 sm:$0xff]   ;;  %v2216_v56 = vld [vmem:[%s2625_s12 + $0xa8] ss:$16 sps:$4 sm:$0xff]  }
  0x6b   : > { %1988 = vmatpush3.bf16.msra.mxu1 %v2168_v20  ;;  %1877 = vmatprep.subr.bf16.mxu0 %v2169_v21  ;;  %v2217_v57 = vld [vmem:[%s2625_s12 + $0xc4] ss:$16 sps:$4 sm:$0xff]   ;;  %v2219_v58 = vld [vmem:[%s2625_s12 + $0xcc] ss:$16 sps:$4 sm:$0xff]   ;;  %v2221_v59 = vld [vmem:[%s2625_s12 + $0xc0] ss:$16 sps:$4 sm:$0xff]  }
  0x6c   : > { %1989 = vmatprep.subr.bf16.mxu1 %v2170_v22  ;;  %v2222_v60 = vld [vmem:[%s2625_s12 + $0xc8] ss:$16 sps:$4 sm:$0xff]   ;;  %v2223_v61 = vld [vmem:[%s2625_s12 + $0xe4] ss:$16 sps:$4 sm:$0xff]   ;;  %v2225_v62 = vld [vmem:[%s2625_s12 + $0xec] ss:$16 sps:$4 sm:$0xff]  }
  0x6d   : > { %v2227_v63 = vld [vmem:[%s2625_s12 + $0xe0] ss:$16 sps:$4 sm:$0xff]   ;;  %v2228_v0 = vld [vmem:[%s2625_s12 + $0xe8] ss:$16 sps:$4 sm:$0xff]   ;;  %v2229_v1 = vld [vmem:[%s2625_s12 + $0x104] ss:$16 sps:$4 sm:$0xff]  }
  0x6e   : > { %1878 = vmatpush3.bf16.msra.mxu0 %v2171_v23  ;;  %v2231_v2 = vld [vmem:[%s2625_s12 + $0x10c] ss:$16 sps:$4 sm:$0xff]   ;;  %v2233_v3 = vld [vmem:[%s2625_s12 + $0x100] ss:$16 sps:$4 sm:$0xff]   ;;  %v2234_v4 = vld [vmem:[%s2625_s12 + $0x108] ss:$16 sps:$4 sm:$0xff]  }
  0x6f   : > { %1990 = vmatpush3.bf16.msra.mxu1 %v2172_v24  ;;  %1879 = vmatprep.subr.bf16.mxu0 %v2173_v25  ;;  %v2235_v5 = vld [vmem:[%s2625_s12 + $0x124] ss:$16 sps:$4 sm:$0xff]   ;;  %v2237_v6 = vld [vmem:[%s2625_s12 + $0x12c] ss:$16 sps:$4 sm:$0xff]   ;;  %v2239_v7 = vld [vmem:[%s2625_s12 + $0x120] ss:$16 sps:$4 sm:$0xff]  }
  0x70   : > { %1991 = vmatprep.subr.bf16.mxu1 %v2174_v26  ;;  %v2240_v8 = vld [vmem:[%s2625_s12 + $0x128] ss:$16 sps:$4 sm:$0xff]   ;;  %v2241_v9 = vld [vmem:[%s2625_s12 + $0x144] ss:$16 sps:$4 sm:$0xff]   ;;  %v2243_v10 = vld [vmem:[%s2625_s12 + $0x14c] ss:$16 sps:$4 sm:$0xff]  }
  0x71   : > { %v2245_v11 = vld [vmem:[%s2625_s12 + $0x140] ss:$16 sps:$4 sm:$0xff]   ;;  %v2246_v12 = vld [vmem:[%s2625_s12 + $0x148] ss:$16 sps:$4 sm:$0xff]   ;;  %v2247_v13 = vld [vmem:[%s2625_s12 + $0x164] ss:$16 sps:$4 sm:$0xff]  }
  0x72   : > { %1880 = vmatpush3.bf16.msra.mxu0 %v2175_v27  ;;  %v2249_v14 = vld [vmem:[%s2625_s12 + $0x16c] ss:$16 sps:$4 sm:$0xff]   ;;  %v2251_v15 = vld [vmem:[%s2625_s12 + $0x160] ss:$16 sps:$4 sm:$0xff]   ;;  %v2252_v16 = vld [vmem:[%s2625_s12 + $0x168] ss:$16 sps:$4 sm:$0xff]  }
  0x73   : > { %1992 = vmatpush3.bf16.msra.mxu1 %v2176_v28  ;;  %1881 = vmatprep.subr.bf16.mxu0 %v2177_v29  ;;  %v2253_v17 = vld [vmem:[%s2625_s12 + $0x184] ss:$16 sps:$4 sm:$0xff]   ;;  %v2255_v18 = vld [vmem:[%s2625_s12 + $0x18c] ss:$16 sps:$4 sm:$0xff]   ;;  %v2257_v19 = vld [vmem:[%s2625_s12 + $0x180] ss:$16 sps:$4 sm:$0xff]  }
  0x74   : > { %1993 = vmatprep.subr.bf16.mxu1 %v2178_v30  ;;  %v2258_v20 = vld [vmem:[%s2625_s12 + $0x188] ss:$16 sps:$4 sm:$0xff]   ;;  %v2259_v21 = vld [vmem:[%s2625_s12 + $0x1a4] ss:$16 sps:$4 sm:$0xff]   ;;  %v2261_v22 = vld [vmem:[%s2625_s12 + $0x1ac] ss:$16 sps:$4 sm:$0xff]  }
  0x75   : > { %v2263_v23 = vld [vmem:[%s2625_s12 + $0x1a0] ss:$16 sps:$4 sm:$0xff]   ;;  %v2264_v24 = vld [vmem:[%s2625_s12 + $0x1a8] ss:$16 sps:$4 sm:$0xff]   ;;  %v2265_v25 = vld [vmem:[%s2625_s12 + $0x1c4] ss:$16 sps:$4 sm:$0xff]  }
  0x76   : > { %1882 = vmatpush3.bf16.msra.mxu0 %v2179_v31  ;;  %v2267_v26 = vld [vmem:[%s2625_s12 + $0x1cc] ss:$16 sps:$4 sm:$0xff]   ;;  %v2269_v27 = vld [vmem:[%s2625_s12 + $0x1c0] ss:$16 sps:$4 sm:$0xff]   ;;  %v2270_v28 = vld [vmem:[%s2625_s12 + $0x1c8] ss:$16 sps:$4 sm:$0xff]  }
  0x77   : > { %1994 = vmatpush3.bf16.msra.mxu1 %v2180_v32  ;;  %v2271_v29 = vld [vmem:[%s2625_s12 + $0x1e4] ss:$16 sps:$4 sm:$0xff]   ;;  %v2273_v30 = vld [vmem:[%s2625_s12 + $0x1ec] ss:$16 sps:$4 sm:$0xff]   ;;  %v2275_v31 = vld [vmem:[%s2625_s12 + $0x1e0] ss:$16 sps:$4 sm:$0xff]  }
  0x78   : > { %v2276_v32 = vld [vmem:[%s2625_s12 + $0x1e8] ss:$16 sps:$4 sm:$0xff]  }
  0x79   : > { %1141 = vmatmul.mubr.bf16.vlgmr.msra.gmra.mrb[0].mxu0 %v2181_v33 }
  0x7a   : > { %1302 = vmatmul.mubr.bf16.vlgmr.msra.gmra.mrb[0].mxu1 %v2184_v35  ;;  %1148 = vmatprep.mubr.bf16.mxu0 %v2187_v37 }
  0x7b   : > { %1309 = vmatprep.mubr.bf16.mxu1 %v2189_v38 }
  0x81   : > { %1149 = vmatmul.mubr.bf16.gmra.mrb[4].mxu0 %v2191_v39 }
  0x82   : > { %1310 = vmatmul.mubr.bf16.gmra.mrb[4].mxu1 %v2192_v40  ;;  %1156 = vmatprep.mubr.bf16.mxu0 %v2193_v41 }
  0x83   : > { %1317 = vmatprep.mubr.bf16.mxu1 %v2195_v42  ;;  %v436_v42 = vld [vmem:[#allocation2] sm:$0xff] }
  0x89   : > { %1157 = vmatmul.mubr.bf16.gmra.mrb[8].mxu0 %v2197_v43 }
  0x8a   : > { %1318 = vmatmul.mubr.bf16.gmra.mrb[8].mxu1 %v2198_v44  ;;  %1164 = vmatprep.mubr.bf16.mxu0 %v2199_v45 }
  0x8b   : > { %1325 = vmatprep.mubr.bf16.mxu1 %v2201_v46 }
  0x91   : > { %1165 = vmatmul.mubr.bf16.gmra.mrb[12].mxu0 %v2203_v47  ;;  %v437_v47 = vld [vmem:[#allocation2 + $0x8] sm:$0xff] }
  0x92   : > { %1326 = vmatmul.mubr.bf16.gmra.mrb[12].mxu1 %v2204_v48  ;;  %1172 = vmatprep.mubr.bf16.mxu0 %v2205_v49 }
  0x93   : > { %1333 = vmatprep.mubr.bf16.mxu1 %v2207_v50 }
  0x99   : > { %1173 = vmatmul.mubr.bf16.gmra.mrb[16].mxu0 %v2209_v51 }
  0x9a   : > { %1334 = vmatmul.mubr.bf16.gmra.mrb[16].mxu1 %v2210_v52  ;;  %1180 = vmatprep.mubr.bf16.mxu0 %v2211_v53 }
  0x9b   : > { %1341 = vmatprep.mubr.bf16.mxu1 %v2213_v54 }
  0xa1   : > { %1181 = vmatmul.mubr.bf16.gmra.mrb[20].mxu0 %v2215_v55 }
  0xa2   : > { %1342 = vmatmul.mubr.bf16.gmra.mrb[20].mxu1 %v2216_v56  ;;  %1188 = vmatprep.mubr.bf16.mxu0 %v2217_v57 }
  0xa3   : > { %1349 = vmatprep.mubr.bf16.mxu1 %v2219_v58 }
  0xa9   : > { %1189 = vmatmul.mubr.bf16.gmra.mrb[24].mxu0 %v2221_v59 }
  0xaa   : > { %1350 = vmatmul.mubr.bf16.gmra.mrb[24].mxu1 %v2222_v60  ;;  %1196 = vmatprep.mubr.bf16.mxu0 %v2223_v61  ;;  %v438_v60 = vld [vmem:[#allocation2 + $0x10] sm:$0xff] }
  0xab   : > { %1357 = vmatprep.mubr.bf16.mxu1 %v2225_v62 }
  0xb1   : > { %1197 = vmatmul.mubr.bf16.gmra.mrb[28].mxu0 %v2227_v63 }
  0xb2   : > { %1358 = vmatmul.mubr.bf16.gmra.mrb[28].mxu1 %v2228_v0  ;;  %1204 = vmatprep.mubr.bf16.mxu0 %v2229_v1  ;;  %v439_v1 = vld [vmem:[#allocation2 + $0x18] sm:$0xff] }
  0xb3   : > { %1365 = vmatprep.mubr.bf16.mxu1 %v2231_v2 }
  0xb9   : > { %1205 = vmatmul.mubr.bf16.gmra.mrb[32].mxu0 %v2233_v3 }
  0xba   : > { %1366 = vmatmul.mubr.bf16.gmra.mrb[32].mxu1 %v2234_v4  ;;  %1212 = vmatprep.mubr.bf16.mxu0 %v2235_v5 }
  0xbb   : > { %1373 = vmatprep.mubr.bf16.mxu1 %v2237_v6 }
  0xc1   : > { %1213 = vmatmul.mubr.bf16.gmra.mrb[36].mxu0 %v2239_v7 }
  0xc2   : > { %1374 = vmatmul.mubr.bf16.gmra.mrb[36].mxu1 %v2240_v8  ;;  %1220 = vmatprep.mubr.bf16.mxu0 %v2241_v9 }
  0xc3   : > { %1381 = vmatprep.mubr.bf16.mxu1 %v2243_v10 }
  0xc9   : > { %1221 = vmatmul.mubr.bf16.gmra.mrb[40].mxu0 %v2245_v11 }
  0xca   : > { %1382 = vmatmul.mubr.bf16.gmra.mrb[40].mxu1 %v2246_v12  ;;  %1228 = vmatprep.mubr.bf16.mxu0 %v2247_v13 }
  0xcb   : > { %1389 = vmatprep.mubr.bf16.mxu1 %v2249_v14  ;;  %v440_v14 = vld [vmem:[#allocation2 + $0x20] sm:$0xff] }
  0xd1   : > { %1229 = vmatmul.mubr.bf16.gmra.mrb[44].mxu0 %v2251_v15 }
  0xd2   : > { %1390 = vmatmul.mubr.bf16.gmra.mrb[44].mxu1 %v2252_v16  ;;  %1236 = vmatprep.mubr.bf16.mxu0 %v2253_v17 }
  0xd3   : > { %1397 = vmatprep.mubr.bf16.mxu1 %v2255_v18 }
  0xd9   : > { %1237 = vmatmul.mubr.bf16.gmra.mrb[48].mxu0 %v2257_v19  ;;  %v441_v19 = vld [vmem:[#allocation2 + $0x28] sm:$0xff] }
  0xda   : > { %1398 = vmatmul.mubr.bf16.gmra.mrb[48].mxu1 %v2258_v20  ;;  %1244 = vmatprep.mubr.bf16.mxu0 %v2259_v21 }
  0xdb   : > { %1405 = vmatprep.mubr.bf16.mxu1 %v2261_v22 }
  0xe1   : > { %1245 = vmatmul.mubr.bf16.gmra.mrb[52].mxu0 %v2263_v23 }
  0xe2   : > { %1406 = vmatmul.mubr.bf16.gmra.mrb[52].mxu1 %v2264_v24  ;;  %1252 = vmatprep.mubr.bf16.mxu0 %v2265_v25 }
  0xe3   : > { %1413 = vmatprep.mubr.bf16.mxu1 %v2267_v26 }
  0xe9   : > { %1253 = vmatmul.mubr.bf16.gmra.mrb[56].mxu0 %v2269_v27 }
  0xea   : > { %1414 = vmatmul.mubr.bf16.gmra.mrb[56].mxu1 %v2270_v28  ;;  %1260 = vmatprep.mubr.bf16.mxu0 %v2271_v29 }
  0xeb   : > { %1421 = vmatprep.mubr.bf16.mxu1 %v2273_v30 }
  0xf1   : > { %1261 = vmatmul.mubr.bf16.gmra.mrb[60].mxu0 %v2275_v31 }
  0xf2   : > { %1422 = vmatmul.mubr.bf16.gmra.mrb[60].mxu1 %v2276_v32  ;;  %v442_v32 = vld [vmem:[#allocation2 + $0x30] sm:$0xff] }
 0x14c   : > { %v1883_v33 = vpop.f32.mrb[0].mxu0 }
 0x14d   : > { %v1995_v34 = vpop.f32.mrb[0].mxu1  ;;  %v1884_v35 = vpop.f32.mrb[1].mxu0 }
 0x14e   : > { %v1885_v36 = vadd.f32 %v1884_v35, %v1883_v33  ;;  %v1996_v37 = vpop.f32.mrb[1].mxu1  ;;  %v1886_v38 = vpop.f32.mrb[2].mxu0 }
 0x14f   : > { %v1997_v39 = vadd.f32 %v1996_v37, %v1995_v34  ;;  %v1998_v40 = vpop.f32.mrb[2].mxu1  ;;  %v1887_v41 = vpop.f32.mrb[3].mxu0  ;;  %v443_v37 = vld [vmem:[#allocation2 + $0x38] sm:$0xff] }
 0x150   : > { %v1888_v43 = vadd.f32 %v1887_v41, %v1886_v38  ;;  %v1999_v44 = vpop.f32.mrb[3].mxu1 }
 0x151   : > { %v1304_v45 = vadd.f32 %v1997_v39, %v1885_v36  ;;  %v2000_v46 = vadd.f32 %v1999_v44, %v1998_v40 }
 0x153   : > { %v1430_v48 = vadd.f32 %v1304_v45, %v436_v42  ;;  %v1307_v49 = vadd.f32 %v2000_v46, %v1888_v43 }
 0x154   : > { %v1889_v50 = vpop.f32.mrb[4].mxu0 }
 0x155   : > { %1462 = vst [vmem:[#allocation2] sm:$0xff] %v1430_v48  ;;  %v1431_v51 = vadd.f32 %v1307_v49, %v437_v47  ;;  %v2001_v52 = vpop.f32.mrb[4].mxu1  ;;  %v1890_v53 = vpop.f32.mrb[5].mxu0 }
 0x156   : > { %v1891_v54 = vadd.f32 %v1890_v53, %v1889_v50  ;;  %v2002_v55 = vpop.f32.mrb[5].mxu1  ;;  %v1892_v56 = vpop.f32.mrb[6].mxu0  ;;  %v444_v50 = vld [vmem:[#allocation2 + $0x40] sm:$0xff] }
 0x157   : > { %1463 = vst [vmem:[#allocation2 + $0x8] sm:$0xff] %v1431_v51  ;;  %v2003_v57 = vadd.f32 %v2002_v55, %v2001_v52  ;;  %v2004_v58 = vpop.f32.mrb[6].mxu1  ;;  %v1893_v59 = vpop.f32.mrb[7].mxu0  ;;  %v445_v55 = vld [vmem:[#allocation2 + $0x48] sm:$0xff] }
 0x158   : > { %v1894_v61 = vadd.f32 %v1893_v59, %v1892_v56  ;;  %v2005_v62 = vpop.f32.mrb[7].mxu1 }
 0x159   : > { %v1312_v63 = vadd.f32 %v2003_v57, %v1891_v54  ;;  %v2006_v0 = vadd.f32 %v2005_v62, %v2004_v58 }
 0x15b   : > { %v1432_v2 = vadd.f32 %v1312_v63, %v438_v60  ;;  %v1315_v3 = vadd.f32 %v2006_v0, %v1894_v61 }
 0x15c   : > { %v1895_v4 = vpop.f32.mrb[8].mxu0 }
 0x15d   : > { %1464 = vst [vmem:[#allocation2 + $0x10] sm:$0xff] %v1432_v2  ;;  %v1433_v5 = vadd.f32 %v1315_v3, %v439_v1  ;;  %v2007_v6 = vpop.f32.mrb[8].mxu1  ;;  %v1896_v7 = vpop.f32.mrb[9].mxu0 }
 0x15e   : > { %v1897_v8 = vadd.f32 %v1896_v7, %v1895_v4  ;;  %v2008_v9 = vpop.f32.mrb[9].mxu1  ;;  %v1898_v10 = vpop.f32.mrb[10].mxu0  ;;  %v446_v4 = vld [vmem:[#allocation2 + $0x50] sm:$0xff] }
 0x15f   : > { %1465 = vst [vmem:[#allocation2 + $0x18] sm:$0xff] %v1433_v5  ;;  %v2009_v11 = vadd.f32 %v2008_v9, %v2007_v6  ;;  %v2010_v12 = vpop.f32.mrb[10].mxu1  ;;  %v1899_v13 = vpop.f32.mrb[11].mxu0  ;;  %v447_v9 = vld [vmem:[#allocation2 + $0x58] sm:$0xff] }
 0x160   : > { %v1900_v15 = vadd.f32 %v1899_v13, %v1898_v10  ;;  %v2011_v16 = vpop.f32.mrb[11].mxu1 }
 0x161   : > { %v1320_v17 = vadd.f32 %v2009_v11, %v1897_v8  ;;  %v2012_v18 = vadd.f32 %v2011_v16, %v2010_v12 }
 0x163   : > { %v1434_v20 = vadd.f32 %v1320_v17, %v440_v14  ;;  %v1323_v21 = vadd.f32 %v2012_v18, %v1900_v15 }
 0x164   : > { %v1901_v22 = vpop.f32.mrb[12].mxu0 }
 0x165   : > { %1466 = vst [vmem:[#allocation2 + $0x20] sm:$0xff] %v1434_v20  ;;  %v1435_v23 = vadd.f32 %v1323_v21, %v441_v19  ;;  %v2013_v24 = vpop.f32.mrb[12].mxu1  ;;  %v1902_v25 = vpop.f32.mrb[13].mxu0 }
 0x166   : > { %v1903_v26 = vadd.f32 %v1902_v25, %v1901_v22  ;;  %v2014_v27 = vpop.f32.mrb[13].mxu1  ;;  %v1904_v28 = vpop.f32.mrb[14].mxu0  ;;  %v448_v22 = vld [vmem:[#allocation2 + $0x60] sm:$0xff] }
 0x167   : > { %1467 = vst [vmem:[#allocation2 + $0x28] sm:$0xff] %v1435_v23  ;;  %v2015_v29 = vadd.f32 %v2014_v27, %v2013_v24  ;;  %v2016_v30 = vpop.f32.mrb[14].mxu1  ;;  %v1905_v31 = vpop.f32.mrb[15].mxu0  ;;  %v449_v27 = vld [vmem:[#allocation2 + $0x68] sm:$0xff] }
 0x168   : > { %v1906_v33 = vadd.f32 %v1905_v31, %v1904_v28  ;;  %v2017_v34 = vpop.f32.mrb[15].mxu1 }
 0x169   : > { %v1328_v35 = vadd.f32 %v2015_v29, %v1903_v26  ;;  %v2018_v36 = vadd.f32 %v2017_v34, %v2016_v30 }
 0x16b   : > { %v1436_v38 = vadd.f32 %v1328_v35, %v442_v32  ;;  %v1331_v39 = vadd.f32 %v2018_v36, %v1906_v33 }
 0x16c   : > { %v1907_v40 = vpop.f32.mrb[16].mxu0 }
 0x16d   : > { %1468 = vst [vmem:[#allocation2 + $0x30] sm:$0xff] %v1436_v38  ;;  %v1437_v41 = vadd.f32 %v1331_v39, %v443_v37  ;;  %v2019_v42 = vpop.f32.mrb[16].mxu1  ;;  %v1908_v43 = vpop.f32.mrb[17].mxu0 }
 0x16e   : > { %v1909_v44 = vadd.f32 %v1908_v43, %v1907_v40  ;;  %v2020_v45 = vpop.f32.mrb[17].mxu1  ;;  %v1910_v46 = vpop.f32.mrb[18].mxu0  ;;  %v450_v40 = vld [vmem:[#allocation2 + $0x70] sm:$0xff] }
 0x16f   : > { %1469 = vst [vmem:[#allocation2 + $0x38] sm:$0xff] %v1437_v41  ;;  %v2021_v47 = vadd.f32 %v2020_v45, %v2019_v42  ;;  %v2022_v48 = vpop.f32.mrb[18].mxu1  ;;  %v1911_v49 = vpop.f32.mrb[19].mxu0  ;;  %v451_v45 = vld [vmem:[#allocation2 + $0x78] sm:$0xff] }
 0x170   : > { %v1912_v51 = vadd.f32 %v1911_v49, %v1910_v46  ;;  %v2023_v52 = vpop.f32.mrb[19].mxu1 }
 0x171   : > { %v1336_v53 = vadd.f32 %v2021_v47, %v1909_v44  ;;  %v2024_v54 = vadd.f32 %v2023_v52, %v2022_v48 }
 0x173   : > { %v1438_v56 = vadd.f32 %v1336_v53, %v444_v50  ;;  %v1339_v57 = vadd.f32 %v2024_v54, %v1912_v51 }
 0x174   : > { %v1913_v58 = vpop.f32.mrb[20].mxu0 }
 0x175   : > { %1470 = vst [vmem:[#allocation2 + $0x40] sm:$0xff] %v1438_v56  ;;  %v1439_v59 = vadd.f32 %v1339_v57, %v445_v55  ;;  %v2025_v60 = vpop.f32.mrb[20].mxu1  ;;  %v1914_v61 = vpop.f32.mrb[21].mxu0 }
 0x176   : > { %v1915_v62 = vadd.f32 %v1914_v61, %v1913_v58  ;;  %v2026_v63 = vpop.f32.mrb[21].mxu1  ;;  %v1916_v0 = vpop.f32.mrb[22].mxu0  ;;  %v452_v58 = vld [vmem:[#allocation2 + $0x80] sm:$0xff] }
 0x177   : > { %1471 = vst [vmem:[#allocation2 + $0x48] sm:$0xff] %v1439_v59  ;;  %v2027_v1 = vadd.f32 %v2026_v63, %v2025_v60  ;;  %v2028_v2 = vpop.f32.mrb[22].mxu1  ;;  %v1917_v3 = vpop.f32.mrb[23].mxu0  ;;  %v453_v63 = vld [vmem:[#allocation2 + $0x88] sm:$0xff] }
 0x178   : > { %v1918_v5 = vadd.f32 %v1917_v3, %v1916_v0  ;;  %v2029_v6 = vpop.f32.mrb[23].mxu1 }
 0x179   : > { %v1344_v7 = vadd.f32 %v2027_v1, %v1915_v62  ;;  %v2030_v8 = vadd.f32 %v2029_v6, %v2028_v2 }
 0x17b   : > { %v1440_v10 = vadd.f32 %v1344_v7, %v446_v4  ;;  %v1347_v11 = vadd.f32 %v2030_v8, %v1918_v5 }
 0x17c   : > { %v1919_v12 = vpop.f32.mrb[24].mxu0 }
 0x17d   : > { %1472 = vst [vmem:[#allocation2 + $0x50] sm:$0xff] %v1440_v10  ;;  %v1441_v13 = vadd.f32 %v1347_v11, %v447_v9  ;;  %v2031_v14 = vpop.f32.mrb[24].mxu1  ;;  %v1920_v15 = vpop.f32.mrb[25].mxu0 }
 0x17e   : > { %v1921_v16 = vadd.f32 %v1920_v15, %v1919_v12  ;;  %v2032_v17 = vpop.f32.mrb[25].mxu1  ;;  %v1922_v18 = vpop.f32.mrb[26].mxu0  ;;  %v454_v12 = vld [vmem:[#allocation2 + $0x90] sm:$0xff] }
 0x17f   : > { %1473 = vst [vmem:[#allocation2 + $0x58] sm:$0xff] %v1441_v13  ;;  %v2033_v19 = vadd.f32 %v2032_v17, %v2031_v14  ;;  %v2034_v20 = vpop.f32.mrb[26].mxu1  ;;  %v1923_v21 = vpop.f32.mrb[27].mxu0  ;;  %v455_v17 = vld [vmem:[#allocation2 + $0x98] sm:$0xff] }
 0x180   : > { %v1924_v23 = vadd.f32 %v1923_v21, %v1922_v18  ;;  %v2035_v24 = vpop.f32.mrb[27].mxu1 }
 0x181   : > { %v1352_v25 = vadd.f32 %v2033_v19, %v1921_v16  ;;  %v2036_v26 = vadd.f32 %v2035_v24, %v2034_v20 }
 0x183   : > { %v1442_v28 = vadd.f32 %v1352_v25, %v448_v22  ;;  %v1355_v29 = vadd.f32 %v2036_v26, %v1924_v23 }
 0x184   : > { %v1925_v30 = vpop.f32.mrb[28].mxu0 }
 0x185   : > { %1474 = vst [vmem:[#allocation2 + $0x60] sm:$0xff] %v1442_v28  ;;  %v1443_v31 = vadd.f32 %v1355_v29, %v449_v27  ;;  %v2037_v32 = vpop.f32.mrb[28].mxu1  ;;  %v1926_v33 = vpop.f32.mrb[29].mxu0 }
 0x186   : > { %v1927_v34 = vadd.f32 %v1926_v33, %v1925_v30  ;;  %v2038_v35 = vpop.f32.mrb[29].mxu1  ;;  %v1928_v36 = vpop.f32.mrb[30].mxu0  ;;  %v456_v30 = vld [vmem:[#allocation2 + $0xa0] sm:$0xff] }
 0x187   : > { %1475 = vst [vmem:[#allocation2 + $0x68] sm:$0xff] %v1443_v31  ;;  %v2039_v37 = vadd.f32 %v2038_v35, %v2037_v32  ;;  %v2040_v38 = vpop.f32.mrb[30].mxu1  ;;  %v1929_v39 = vpop.f32.mrb[31].mxu0  ;;  %v457_v35 = vld [vmem:[#allocation2 + $0xa8] sm:$0xff] }
 0x188   : > { %v1930_v41 = vadd.f32 %v1929_v39, %v1928_v36  ;;  %v2041_v42 = vpop.f32.mrb[31].mxu1 }
 0x189   : > { %v1360_v43 = vadd.f32 %v2039_v37, %v1927_v34  ;;  %v2042_v44 = vadd.f32 %v2041_v42, %v2040_v38 }
 0x18b   : > { %v1444_v46 = vadd.f32 %v1360_v43, %v450_v40  ;;  %v1363_v47 = vadd.f32 %v2042_v44, %v1930_v41 }
 0x18c   : > { %v1931_v48 = vpop.f32.mrb[32].mxu0 }
 0x18d   : > { %1476 = vst [vmem:[#allocation2 + $0x70] sm:$0xff] %v1444_v46  ;;  %v1445_v49 = vadd.f32 %v1363_v47, %v451_v45  ;;  %v2043_v50 = vpop.f32.mrb[32].mxu1  ;;  %v1932_v51 = vpop.f32.mrb[33].mxu0 }
 0x18e   : > { %v1933_v52 = vadd.f32 %v1932_v51, %v1931_v48  ;;  %v2044_v53 = vpop.f32.mrb[33].mxu1  ;;  %v1934_v54 = vpop.f32.mrb[34].mxu0  ;;  %v458_v48 = vld [vmem:[#allocation2 + $0xb0] sm:$0xff] }
 0x18f   : > { %1477 = vst [vmem:[#allocation2 + $0x78] sm:$0xff] %v1445_v49  ;;  %v2045_v55 = vadd.f32 %v2044_v53, %v2043_v50  ;;  %v2046_v56 = vpop.f32.mrb[34].mxu1  ;;  %v1935_v57 = vpop.f32.mrb[35].mxu0  ;;  %v459_v53 = vld [vmem:[#allocation2 + $0xb8] sm:$0xff] }
 0x190   : > { %v1936_v59 = vadd.f32 %v1935_v57, %v1934_v54  ;;  %v2047_v60 = vpop.f32.mrb[35].mxu1 }
 0x191   : > { %v1368_v61 = vadd.f32 %v2045_v55, %v1933_v52  ;;  %v2048_v62 = vadd.f32 %v2047_v60, %v2046_v56 }
 0x193   : > { %v1446_v0 = vadd.f32 %v1368_v61, %v452_v58  ;;  %v1371_v1 = vadd.f32 %v2048_v62, %v1936_v59 }
 0x194   : > { %v1937_v2 = vpop.f32.mrb[36].mxu0 }
 0x195   : > { %1478 = vst [vmem:[#allocation2 + $0x80] sm:$0xff] %v1446_v0  ;;  %v1447_v3 = vadd.f32 %v1371_v1, %v453_v63  ;;  %v2049_v4 = vpop.f32.mrb[36].mxu1  ;;  %v1938_v5 = vpop.f32.mrb[37].mxu0 }
 0x196   : > { %v1939_v6 = vadd.f32 %v1938_v5, %v1937_v2  ;;  %v2050_v7 = vpop.f32.mrb[37].mxu1  ;;  %v1940_v8 = vpop.f32.mrb[38].mxu0  ;;  %v460_v2 = vld [vmem:[#allocation2 + $0xc0] sm:$0xff] }
 0x197   : > { %1479 = vst [vmem:[#allocation2 + $0x88] sm:$0xff] %v1447_v3  ;;  %v2051_v9 = vadd.f32 %v2050_v7, %v2049_v4  ;;  %v2052_v10 = vpop.f32.mrb[38].mxu1  ;;  %v1941_v11 = vpop.f32.mrb[39].mxu0  ;;  %v461_v7 = vld [vmem:[#allocation2 + $0xc8] sm:$0xff] }
 0x198   : > { %v1942_v13 = vadd.f32 %v1941_v11, %v1940_v8  ;;  %v2053_v14 = vpop.f32.mrb[39].mxu1 }
 0x199   : > { %v1376_v15 = vadd.f32 %v2051_v9, %v1939_v6  ;;  %v2054_v16 = vadd.f32 %v2053_v14, %v2052_v10 }
 0x19b   : > { %v1448_v18 = vadd.f32 %v1376_v15, %v454_v12  ;;  %v1379_v19 = vadd.f32 %v2054_v16, %v1942_v13 }
 0x19c   : > { %v1943_v20 = vpop.f32.mrb[40].mxu0 }
 0x19d   : > { %1480 = vst [vmem:[#allocation2 + $0x90] sm:$0xff] %v1448_v18  ;;  %v1449_v21 = vadd.f32 %v1379_v19, %v455_v17  ;;  %v2055_v22 = vpop.f32.mrb[40].mxu1  ;;  %v1944_v23 = vpop.f32.mrb[41].mxu0 }
 0x19e   : > { %v1945_v24 = vadd.f32 %v1944_v23, %v1943_v20  ;;  %v2056_v25 = vpop.f32.mrb[41].mxu1  ;;  %v1946_v26 = vpop.f32.mrb[42].mxu0  ;;  %v462_v20 = vld [vmem:[#allocation2 + $0xd0] sm:$0xff] }
 0x19f   : > { %1481 = vst [vmem:[#allocation2 + $0x98] sm:$0xff] %v1449_v21  ;;  %v2057_v27 = vadd.f32 %v2056_v25, %v2055_v22  ;;  %v2058_v28 = vpop.f32.mrb[42].mxu1  ;;  %v1947_v29 = vpop.f32.mrb[43].mxu0  ;;  %v463_v25 = vld [vmem:[#allocation2 + $0xd8] sm:$0xff] }
 0x1a0   : > { %v1948_v31 = vadd.f32 %v1947_v29, %v1946_v26  ;;  %v2059_v32 = vpop.f32.mrb[43].mxu1 }
 0x1a1   : > { %v1384_v33 = vadd.f32 %v2057_v27, %v1945_v24  ;;  %v2060_v34 = vadd.f32 %v2059_v32, %v2058_v28 }
 0x1a3   : > { %v1450_v36 = vadd.f32 %v1384_v33, %v456_v30  ;;  %v1387_v37 = vadd.f32 %v2060_v34, %v1948_v31 }
 0x1a4   : > { %v1949_v38 = vpop.f32.mrb[44].mxu0 }
 0x1a5   : > { %1482 = vst [vmem:[#allocation2 + $0xa0] sm:$0xff] %v1450_v36  ;;  %v1451_v39 = vadd.f32 %v1387_v37, %v457_v35  ;;  %v2061_v40 = vpop.f32.mrb[44].mxu1  ;;  %v1950_v41 = vpop.f32.mrb[45].mxu0 }
 0x1a6   : > { %v1951_v42 = vadd.f32 %v1950_v41, %v1949_v38  ;;  %v2062_v43 = vpop.f32.mrb[45].mxu1  ;;  %v1952_v44 = vpop.f32.mrb[46].mxu0  ;;  %v464_v38 = vld [vmem:[#allocation2 + $0xe0] sm:$0xff] }
 0x1a7   : > { %1483 = vst [vmem:[#allocation2 + $0xa8] sm:$0xff] %v1451_v39  ;;  %v2063_v45 = vadd.f32 %v2062_v43, %v2061_v40  ;;  %v2064_v46 = vpop.f32.mrb[46].mxu1  ;;  %v1953_v47 = vpop.f32.mrb[47].mxu0  ;;  %v465_v43 = vld [vmem:[#allocation2 + $0xe8] sm:$0xff] }
 0x1a8   : > { %v1954_v49 = vadd.f32 %v1953_v47, %v1952_v44  ;;  %v2065_v50 = vpop.f32.mrb[47].mxu1 }
 0x1a9   : > { %v1392_v51 = vadd.f32 %v2063_v45, %v1951_v42  ;;  %v2066_v52 = vadd.f32 %v2065_v50, %v2064_v46 }
 0x1ab   : > { %v1452_v54 = vadd.f32 %v1392_v51, %v458_v48  ;;  %v1395_v55 = vadd.f32 %v2066_v52, %v1954_v49 }
 0x1ac   : > { %v1955_v56 = vpop.f32.mrb[48].mxu0 }
 0x1ad   : > { %1484 = vst [vmem:[#allocation2 + $0xb0] sm:$0xff] %v1452_v54  ;;  %v1453_v57 = vadd.f32 %v1395_v55, %v459_v53  ;;  %v2067_v58 = vpop.f32.mrb[48].mxu1  ;;  %v1956_v59 = vpop.f32.mrb[49].mxu0 }
 0x1ae   : > { %v1957_v60 = vadd.f32 %v1956_v59, %v1955_v56  ;;  %v2068_v61 = vpop.f32.mrb[49].mxu1  ;;  %v1958_v62 = vpop.f32.mrb[50].mxu0  ;;  %v466_v56 = vld [vmem:[#allocation2 + $0xf0] sm:$0xff] }
 0x1af   : > { %1485 = vst [vmem:[#allocation2 + $0xb8] sm:$0xff] %v1453_v57  ;;  %v2069_v63 = vadd.f32 %v2068_v61, %v2067_v58  ;;  %v2070_v0 = vpop.f32.mrb[50].mxu1  ;;  %v1959_v1 = vpop.f32.mrb[51].mxu0  ;;  %v467_v61 = vld [vmem:[#allocation2 + $0xf8] sm:$0xff] }
 0x1b0   : > { %v1960_v3 = vadd.f32 %v1959_v1, %v1958_v62  ;;  %v2071_v4 = vpop.f32.mrb[51].mxu1  ;;  %v1498_v1 = vld [vmem:[#allocation2] sm:$0xff] (!%p1863_p13) }
 0x1b1   : > { %v1400_v5 = vadd.f32 %v2069_v63, %v1957_v60  ;;  %v2072_v6 = vadd.f32 %v2071_v4, %v2070_v0 }
 0x1b3   : > { %v1454_v8 = vadd.f32 %v1400_v5, %v460_v2  ;;  %v1403_v9 = vadd.f32 %v2072_v6, %v1960_v3  ;;  %v2728_v2 = vld [vmem:[%s2817_s2] ss:$0 sm:$0xff] (!%p1863_p13)  ;;  %v1499_v3 = vld [vmem:[#allocation2 + $0x8] sm:$0xff] (!%p1863_p13)  ;;  %v1500_v6 = vld [vmem:[#allocation2 + $0x10] sm:$0xff] (!%p1863_p13) }
 0x1b4   : > { %v1961_v10 = vpop.f32.mrb[52].mxu0  ;;  %v1537_v4 = vadd.f32 (!%p1863_p13), %v2728_v2, %v1498_v1  ;;  %v1538_v5 = vadd.f32 (!%p1863_p13), %v2728_v2, %v1499_v3 }
 0x1b5   : > { %1486 = vst [vmem:[#allocation2 + $0xc0] sm:$0xff] %v1454_v8  ;;  %v1455_v11 = vadd.f32 %v1403_v9, %v461_v7  ;;  %v2073_v12 = vpop.f32.mrb[52].mxu1  ;;  %v1962_v13 = vpop.f32.mrb[53].mxu0  ;;  %v1501_v7 = vld [vmem:[#allocation2 + $0x18] sm:$0xff] (!%p1863_p13)  ;;  %v1502_v8 = vld [vmem:[#allocation2 + $0x20] sm:$0xff] (!%p1863_p13)  ;;  %v1539_v9 = vadd.f32 (!%p1863_p13), %v2728_v2, %v1500_v6 }
 0x1b6   : > { %v1963_v14 = vadd.f32 %v1962_v13, %v1961_v10  ;;  %v2074_v15 = vpop.f32.mrb[53].mxu1  ;;  %v1964_v16 = vpop.f32.mrb[54].mxu0  ;;  %v1540_v10 = vadd.f32 (!%p1863_p13), %v2728_v2, %v1501_v7  ;;  %2277 = vtanh.f32 (!%p1863_p13), %v1537_v4  ;;  %v1541_v13 = vadd.f32 (!%p1863_p13), %v2728_v2, %v1502_v8 }
 0x1b7   : > { %1487 = vst [vmem:[#allocation2 + $0xc8] sm:$0xff] %v1455_v11  ;;  %v2075_v17 = vadd.f32 %v2074_v15, %v2073_v12  ;;  %v2076_v18 = vpop.f32.mrb[54].mxu1  ;;  %v1965_v19 = vpop.f32.mrb[55].mxu0  ;;  %v1503_v11 = vld [vmem:[#allocation2 + $0x28] sm:$0xff] (!%p1863_p13)  ;;  %v1504_v12 = vld [vmem:[#allocation2 + $0x30] sm:$0xff] (!%p1863_p13)  ;;  %2279 = vtanh.f32 (!%p1863_p13), %v1538_v5 }
 0x1b8   : > { %v1966_v21 = vadd.f32 %v1965_v19, %v1964_v16  ;;  %v2077_v22 = vpop.f32.mrb[55].mxu1  ;;  %v1542_v15 = vadd.f32 (!%p1863_p13), %v2728_v2, %v1503_v11  ;;  %v1506_v16 = vld [vmem:[#allocation2 + $0x40] sm:$0xff] (!%p1863_p13)  ;;  %2281 = vtanh.f32 (!%p1863_p13), %v1539_v9 }
 0x1b9   : > { %v1408_v23 = vadd.f32 %v2075_v17, %v1963_v14  ;;  %v2078_v24 = vadd.f32 %v2077_v22, %v2076_v18  ;;  %v1505_v14 = vld [vmem:[#allocation2 + $0x38] sm:$0xff] (!%p1863_p13)  ;;  %v1543_v17 = vadd.f32 (!%p1863_p13), %v2728_v2, %v1504_v12  ;;  %v1507_v18 = vld [vmem:[#allocation2 + $0x48] sm:$0xff] (!%p1863_p13)  ;;  %2283 = vtanh.f32 (!%p1863_p13), %v1540_v10 }
 0x1ba   : > { %v1544_v19 = vadd.f32 (!%p1863_p13), %v2728_v2, %v1505_v14  ;;  %2285 = vtanh.f32 (!%p1863_p13), %v1541_v13  ;;  %v1509_v22 = vld [vmem:[#allocation2 + $0x58] sm:$0xff] (!%p1863_p13) }
 0x1bb   : > { %v1456_v26 = vadd.f32 %v1408_v23, %v462_v20  ;;  %v1411_v27 = vadd.f32 %v2078_v24, %v1966_v21  ;;  %v1508_v20 = vld [vmem:[#allocation2 + $0x50] sm:$0xff] (!%p1863_p13)  ;;  %v1545_v21 = vadd.f32 (!%p1863_p13), %v2728_v2, %v1506_v16  ;;  %2287 = vtanh.f32 (!%p1863_p13), %v1542_v15  ;;  %v1510_v24 = vld [vmem:[#allocation2 + $0x60] sm:$0xff] (!%p1863_p13) }
 0x1bc   : > { %v1967_v28 = vpop.f32.mrb[56].mxu0  ;;  %v1546_v23 = vadd.f32 (!%p1863_p13), %v2728_v2, %v1507_v18  ;;  %2289 = vtanh.f32 (!%p1863_p13), %v1543_v17 }
 0x1bd   : > { %1488 = vst [vmem:[#allocation2 + $0xd0] sm:$0xff] %v1456_v26  ;;  %v1457_v29 = vadd.f32 %v1411_v27, %v463_v25  ;;  %v2079_v30 = vpop.f32.mrb[56].mxu1  ;;  %v1968_v31 = vpop.f32.mrb[57].mxu0  ;;  %v1547_v25 = vadd.f32 (!%p1863_p13), %v2728_v2, %v1508_v20  ;;  %v1511_v26 = vld [vmem:[#allocation2 + $0x68] sm:$0xff] (!%p1863_p13)  ;;  %2291 = vtanh.f32 (!%p1863_p13), %v1544_v19  ;;  %v1548_v27 = vadd.f32 (!%p1863_p13), %v2728_v2, %v1509_v22 }
 0x1be   : > { %v1969_v32 = vadd.f32 %v1968_v31, %v1967_v28  ;;  %v2080_v33 = vpop.f32.mrb[57].mxu1  ;;  %v1970_v34 = vpop.f32.mrb[58].mxu0  ;;  %v1512_v28 = vld [vmem:[#allocation2 + $0x70] sm:$0xff] (!%p1863_p13)  ;;  %2293 = vtanh.f32 (!%p1863_p13), %v1545_v21  ;;  %v1550_v31 = vadd.f32 (!%p1863_p13), %v2728_v2, %v1511_v26 }
 0x1bf   : > { %1489 = vst [vmem:[#allocation2 + $0xd8] sm:$0xff] %v1457_v29  ;;  %v2081_v35 = vadd.f32 %v2080_v33, %v2079_v30  ;;  %v2082_v36 = vpop.f32.mrb[58].mxu1  ;;  %v1971_v37 = vpop.f32.mrb[59].mxu0  ;;  %v1549_v29 = vadd.f32 (!%p1863_p13), %v2728_v2, %v1510_v24  ;;  %v1513_v30 = vld [vmem:[#allocation2 + $0x78] sm:$0xff] (!%p1863_p13)  ;;  %2295 = vtanh.f32 (!%p1863_p13), %v1546_v23 }
 0x1c0   : > { %v1972_v39 = vadd.f32 %v1971_v37, %v1970_v34  ;;  %v2083_v40 = vpop.f32.mrb[59].mxu1  ;;  %v2278_v33 = vpop.eup (!%p1863_p13), %2277  ;;  %2297 = vtanh.f32 (!%p1863_p13), %v1547_v25  ;;  %v1551_v34 = vadd.f32 (!%p1863_p13), %v2728_v2, %v1512_v28  ;;  %v1552_v37 = vadd.f32 (!%p1863_p13), %v2728_v2, %v1513_v30 }
 0x1c1   : > { %v1416_v41 = vadd.f32 %v2081_v35, %v1969_v32  ;;  %v2084_v42 = vadd.f32 %v2083_v40, %v2082_v36  ;;  %v1514_v32 = vld [vmem:[#allocation2 + $0x80] sm:$0xff] (!%p1863_p13)  ;;  %v1515_v35 = vld [vmem:[#allocation2 + $0x88] sm:$0xff] (!%p1863_p13)  ;;  %v2280_v36 = vpop.eup (!%p1863_p13), %2279  ;;  %1601 = vst [vmem:[%s2623_s30] sm:$0xff] (!%p1863_p13), %v2278_v33  ;;  %2299 = vtanh.f32 (!%p1863_p13), %v1548_v27 }
 0x1c2   : > { %1602 = vst [vmem:[%s2623_s30 + $0x8] sm:$0xff] (!%p1863_p13), %v2280_v36  ;;  %2301 = vtanh.f32 (!%p1863_p13), %v1549_v29  ;;  %v1553_v40 = vadd.f32 (!%p1863_p13), %v2728_v2, %v1514_v32 }
 0x1c3   : > { %v1458_v44 = vadd.f32 %v1416_v41, %v464_v38  ;;  %v1419_v45 = vadd.f32 %v2084_v42, %v1972_v39  ;;  %v1516_v38 = vld [vmem:[#allocation2 + $0x90] sm:$0xff] (!%p1863_p13)  ;;  %v2282_v39 = vpop.eup (!%p1863_p13), %2281  ;;  %v1517_v41 = vld [vmem:[#allocation2 + $0x98] sm:$0xff] (!%p1863_p13)  ;;  %2303 = vtanh.f32 (!%p1863_p13), %v1550_v31 }
 0x1c4   : > { %v1973_v46 = vpop.f32.mrb[60].mxu0  ;;  %v2284_v42 = vpop.eup (!%p1863_p13), %2283  ;;  %1603 = vst [vmem:[%s2623_s30 + $0x10] sm:$0xff] (!%p1863_p13), %v2282_v39  ;;  %2305 = vtanh.f32 (!%p1863_p13), %v1551_v34 }
 0x1c5   : > { %1490 = vst [vmem:[#allocation2 + $0xe0] sm:$0xff] %v1458_v44  ;;  %v1459_v47 = vadd.f32 %v1419_v45, %v465_v43  ;;  %v2085_v48 = vpop.f32.mrb[60].mxu1  ;;  %v1974_v49 = vpop.f32.mrb[61].mxu0  ;;  %v1554_v43 = vadd.f32 (!%p1863_p13), %v2728_v2, %v1515_v35  ;;  %v1518_v44 = vld [vmem:[#allocation2 + $0xa0] sm:$0xff] (!%p1863_p13)  ;;  %1604 = vst [vmem:[%s2623_s30 + $0x18] sm:$0xff] (!%p1863_p13), %v2284_v42  ;;  %2307 = vtanh.f32 (!%p1863_p13), %v1552_v37 }
 0x1c6   : > { %v1975_v50 = vadd.f32 %v1974_v49, %v1973_v46  ;;  %v2086_v51 = vpop.f32.mrb[61].mxu1  ;;  %v1976_v52 = vpop.f32.mrb[62].mxu0  ;;  %v1555_v46 = vadd.f32 (!%p1863_p13), %v2728_v2, %v1516_v38  ;;  %v1556_v49 = vadd.f32 (!%p1863_p13), %v2728_v2, %v1517_v41  ;;  %2309 = vtanh.f32 (!%p1863_p13), %v1553_v40  ;;  %v1525_v1 = vld [vmem:[#allocation2 + $0xd8] sm:$0xff] (!%p1863_p13) }
 0x1c7   : > { %1491 = vst [vmem:[#allocation2 + $0xe8] sm:$0xff] %v1459_v47  ;;  %v2087_v53 = vadd.f32 %v2086_v51, %v2085_v48  ;;  %v2088_v54 = vpop.f32.mrb[62].mxu1  ;;  %v1977_v55 = vpop.f32.mrb[63].mxu0  ;;  %v1519_v47 = vld [vmem:[#allocation2 + $0xa8] sm:$0xff] (!%p1863_p13)  ;;  %2311 = vtanh.f32 (!%p1863_p13), %v1554_v43  ;;  %v1564_v10 = vadd.f32 (!%p1863_p13), %v2728_v2, %v1525_v1 }
 0x1c8   : > { %v1978_v57 = vadd.f32 %v1977_v55, %v1976_v52  ;;  %v2089_v58 = vpop.f32.mrb[63].mxu1  ;;  %v2286_v45 = vpop.eup (!%p1863_p13), %2285  ;;  %v1557_v52 = vadd.f32 (!%p1863_p13), %v2728_v2, %v1518_v44  ;;  %v1558_v55 = vadd.f32 (!%p1863_p13), %v2728_v2, %v1519_v47  ;;  %2313 = vtanh.f32 (!%p1863_p13), %v1555_v46 }
 0x1c9   : > { %v1424_v59 = vadd.f32 %v2087_v53, %v1975_v50  ;;  %v2090_v60 = vadd.f32 %v2089_v58, %v2088_v54  ;;  %1497 = sbr.rel (%p1863_p13) target bundleno = 485 (0x1e5), region = 63  ;;  %v2288_v48 = vpop.eup (!%p1863_p13), %2287  ;;  %1605 = vst [vmem:[%s2623_s30 + $0x20] sm:$0xff] (!%p1863_p13), %v2286_v45  ;;  %v1520_v50 = vld [vmem:[#allocation2 + $0xb0] sm:$0xff] (!%p1863_p13)  ;;  %v1521_v53 = vld [vmem:[#allocation2 + $0xb8] sm:$0xff] (!%p1863_p13)  ;;  %2315 = vtanh.f32 (!%p1863_p13), %v1556_v49 }
 0x1ca   : > { %v2290_v51 = vpop.eup (!%p1863_p13), %2289  ;;  %1606 = vst [vmem:[%s2623_s30 + $0x28] sm:$0xff] (!%p1863_p13), %v2288_v48  ;;  %v1559_v58 = vadd.f32 (!%p1863_p13), %v2728_v2, %v1520_v50  ;;  %2317 = vtanh.f32 (!%p1863_p13), %v1557_v52 }
 0x1cb   : > { %v1460_v62 = vadd.f32 %v1424_v59, %v466_v56  ;;  %v1427_v63 = vadd.f32 %v2090_v60, %v1978_v57  ;;  %v2292_v54 = vpop.eup (!%p1863_p13), %2291  ;;  %1607 = vst [vmem:[%s2623_s30 + $0x30] sm:$0xff] (!%p1863_p13), %v2290_v51  ;;  %v1522_v56 = vld [vmem:[#allocation2 + $0xc0] sm:$0xff] (!%p1863_p13)  ;;  %v1523_v59 = vld [vmem:[#allocation2 + $0xc8] sm:$0xff] (!%p1863_p13)  ;;  %2319 = vtanh.f32 (!%p1863_p13), %v1558_v55 }
 0x1cc   : > { %v2294_v57 = vpop.eup (!%p1863_p13), %2293  ;;  %1608 = vst [vmem:[%s2623_s30 + $0x38] sm:$0xff] (!%p1863_p13), %v2292_v54  ;;  %v1562_v4 = vadd.f32 (!%p1863_p13), %v2728_v2, %v1523_v59  ;;  %v1526_v5 = vld [vmem:[#allocation2 + $0xe0] sm:$0xff] (!%p1863_p13)  ;;  %2321 = vtanh.f32 (!%p1863_p13), %v1559_v58 }
 0x1cd   : > { %1492 = vst [vmem:[#allocation2 + $0xf0] sm:$0xff] %v1460_v62  ;;  %v1461_v0 = vadd.f32 %v1427_v63, %v467_v61  ;;  %v2296_v60 = vpop.eup (!%p1863_p13), %2295  ;;  %1609 = vst [vmem:[%s2623_s30 + $0x40] sm:$0xff] (!%p1863_p13), %v2294_v57  ;;  %v1560_v61 = vadd.f32 (!%p1863_p13), %v2728_v2, %v1521_v53  ;;  %v1524_v62 = vld [vmem:[#allocation2 + $0xd0] sm:$0xff] (!%p1863_p13)  ;;  %v1565_v13 = vadd.f32 (!%p1863_p13), %v2728_v2, %v1526_v5 }
 0x1ce   : > { %v2298_v63 = vpop.eup (!%p1863_p13), %2297  ;;  %1610 = vst [vmem:[%s2623_s30 + $0x48] sm:$0xff] (!%p1863_p13), %v2296_v60  ;;  %v1563_v7 = vadd.f32 (!%p1863_p13), %v2728_v2, %v1524_v62  ;;  %v1527_v8 = vld [vmem:[#allocation2 + $0xe8] sm:$0xff] (!%p1863_p13) }
 0x1cf   : > { %1493 = vst [vmem:[#allocation2 + $0xf8] sm:$0xff] %v1461_v0  ;;  %v1561_v0 = vadd.f32 (!%p1863_p13), %v2728_v2, %v1522_v56  ;;  %v2300_v3 = vpop.eup (!%p1863_p13), %2299  ;;  %1611 = vst [vmem:[%s2623_s30 + $0x50] sm:$0xff] (!%p1863_p13), %v2298_v63  ;;  %2323 = vtanh.f32 (!%p1863_p13), %v1560_v61  ;;  %v1566_v16 = vadd.f32 (!%p1863_p13), %v2728_v2, %v1527_v8 }
 0x1d0   : > { %v2302_v6 = vpop.eup %2301  ;;  %1612 = vst [vmem:[%s2623_s30 + $0x58] sm:$0xff] %v2300_v3 }
 0x1d1   : > { %v2304_v9 = vpop.eup %2303  ;;  %1613 = vst [vmem:[%s2623_s30 + $0x60] sm:$0xff] %v2302_v6  ;;  %2325 = vtanh.f32 %v1561_v0 }
 0x1d2   : > { %v2306_v12 = vpop.eup %2305  ;;  %1614 = vst [vmem:[%s2623_s30 + $0x68] sm:$0xff] %v2304_v9  ;;  %2327 = vtanh.f32 %v1562_v4 }
 0x1d3   : > { %v2308_v15 = vpop.eup %2307  ;;  %1615 = vst [vmem:[%s2623_s30 + $0x70] sm:$0xff] %v2306_v12  ;;  %2329 = vtanh.f32 %v1563_v7 }
 0x1d4   : > { %v1528_v11 = vld [vmem:[#allocation2 + $0xf0] sm:$0xff]  ;;  %v2310_v17 = vpop.eup %2309  ;;  %1616 = vst [vmem:[%s2623_s30 + $0x78] sm:$0xff] %v2308_v15  ;;  %2331 = vtanh.f32 %v1564_v10 }
 0x1d5   : > { %v1567_v18 = vadd.f32 %v2728_v2, %v1528_v11  ;;  %v2312_v19 = vpop.eup %2311  ;;  %1617 = vst [vmem:[%s2623_s30 + $0x80] sm:$0xff] %v2310_v17  ;;  %2333 = vtanh.f32 %v1565_v13 }
 0x1d6   : > { %v1529_v14 = vld [vmem:[#allocation2 + $0xf8] sm:$0xff]  ;;  %v2314_v21 = vpop.eup %2313  ;;  %1618 = vst [vmem:[%s2623_s30 + $0x88] sm:$0xff] %v2312_v19  ;;  %2335 = vtanh.f32 %v1566_v16 }
 0x1d7   : > { %v1568_v20 = vadd.f32 %v2728_v2, %v1529_v14  ;;  %v2316_v22 = vpop.eup %2315  ;;  %1619 = vst [vmem:[%s2623_s30 + $0x90] sm:$0xff] %v2314_v21  ;;  %2337 = vtanh.f32 %v1567_v18 }
 0x1d8   : > { %v2318_v23 = vpop.eup %2317  ;;  %1620 = vst [vmem:[%s2623_s30 + $0x98] sm:$0xff] %v2316_v22 }
 0x1d9   : > { %v2320_v24 = vpop.eup %2319  ;;  %1621 = vst [vmem:[%s2623_s30 + $0xa0] sm:$0xff] %v2318_v23  ;;  %2339 = vtanh.f32 %v1568_v20 }
 0x1da   : > { %v2322_v2 = vpop.eup %2321  ;;  %1622 = vst [vmem:[%s2623_s30 + $0xa8] sm:$0xff] %v2320_v24 }
 0x1db   : > { %v2324_v25 = vpop.eup %2323  ;;  %1623 = vst [vmem:[%s2623_s30 + $0xb0] sm:$0xff] %v2322_v2 }
 0x1dc   : > { %v2326_v26 = vpop.eup %2325  ;;  %1624 = vst [vmem:[%s2623_s30 + $0xb8] sm:$0xff] %v2324_v25 }
 0x1dd   : > { %v2328_v27 = vpop.eup %2327  ;;  %1625 = vst [vmem:[%s2623_s30 + $0xc0] sm:$0xff] %v2326_v26 }
 0x1de   : > { %v2330_v28 = vpop.eup %2329  ;;  %1626 = vst [vmem:[%s2623_s30 + $0xc8] sm:$0xff] %v2328_v27 }
 0x1df   : > { %v2332_v29 = vpop.eup %2331  ;;  %1627 = vst [vmem:[%s2623_s30 + $0xd0] sm:$0xff] %v2330_v28 }
 0x1e0   : > { %v2334_v30 = vpop.eup %2333  ;;  %1628 = vst [vmem:[%s2623_s30 + $0xd8] sm:$0xff] %v2332_v29 }
 0x1e1   : > { %v2336_v31 = vpop.eup %2335  ;;  %1629 = vst [vmem:[%s2623_s30 + $0xe0] sm:$0xff] %v2334_v30 }
 0x1e2   : > { %v2338_v32 = vpop.eup %2337  ;;  %1630 = vst [vmem:[%s2623_s30 + $0xe8] sm:$0xff] %v2336_v31 }
 0x1e3   : > { %v2340_v33 = vpop.eup %2339  ;;  %1631 = vst [vmem:[%s2623_s30 + $0xf0] sm:$0xff] %v2338_v32 }
 0x1e4   : > { %1632 = vst [vmem:[%s2623_s30 + $0xf8] sm:$0xff] %v2340_v33 }
 0x1e5 PF: > { %s13_s18 = sadd.s32 1, %s2395_s18   ;;  %s2819_s12 = smov %s2375_s13 }
 0x1e6   : > { %p10_p0 = scmp.ge.s32.totalorder %s13_s18, 16   ;;  %s2820_s13 = smov %s2469_s25 }
 0x1e7   : > { %s2821_s14 = smov %s2387_s16  ;;  %s2822_s15 = smov %s2391_s17 }
 0x1e8   : > { %s2823_s16 = smov %s2826_s19  ;;  %s2824_s17 = smov %s2830_s20 }
 0x1e9   :  { %12 = sbr.rel (!%p10_p0) target bundleno = 4 (0x4), region = 104 }

</bundles_post_ra>
